<compile_context>
chip_gen: v6e
topology: v6e:2x2x1
jax: 0.10.0
libtpu: 0.0.40
codegen_flags: <defaults>
</compile_context>

<pallas_src>
import numpy as np
import jax
import jax.numpy as jnp
from jax.experimental import pallas as pl
from jax.experimental.pallas import tpu as pltpu

IMG_H, IMG_W = 10, 20
IN_FEATS = IMG_H * IMG_W          # 200
BN_EPS = 1e-5                     # torch BatchNorm2d default


# ------------------------------------------------------------------
# the fused Pallas kernel: 9 affine layers, ReLUs, residual subtract
# ------------------------------------------------------------------
def _ae1_kernel(x_ref,
                we0_ref, be0_ref, we1_ref, be1_ref, wet_ref, bet_ref,
                wd0_ref, bd0_ref, wd1_ref, bd1_ref, wd2_ref, bd2_ref,
                wdt_ref, bdt_ref, wf1_ref, bf1_ref, wf2_ref, bf2_ref,
                o_ref):
    x = x_ref[...]                                              # (TB, 200) f32

    def affine(h, w_ref, b_ref):
        return jnp.dot(h, w_ref[...],
                       preferred_element_type=jnp.float32) + b_ref[...]

    # -------- encoder --------
    h = jnp.maximum(affine(x, we0_ref, be0_ref), 0.0)           # Conv(1,8)+BN+ReLU   -> (TB, 1152)
    h = jnp.maximum(affine(h, we1_ref, be1_ref), 0.0)           # Conv(8,16)+BN+ReLU  -> (TB, 1536)
    z = affine(h, wet_ref, bet_ref)                             # Conv(16,32)+BN+pool+flatten+Linear -> (TB, 64)
    # -------- decoder --------
    h = jnp.maximum(affine(z, wd0_ref, bd0_ref), 0.0)           # Deconv(32,16)+BN+ReLU -> (TB, 192)
    h = jnp.maximum(affine(h, wd1_ref, bd1_ref), 0.0)           # Deconv(16,8)+BN+ReLU  -> (TB, 504)
    h = jnp.maximum(affine(h, wd2_ref, bd2_ref), 0.0)           # Deconv(8,8)+BN+ReLU   -> (TB, 1368)
    r = affine(h, wdt_ref, bdt_ref)                             # nearest-resize + Conv(8,1) -> (TB, 200)
    # -------- head --------
    y = r - x                                                   # x - f
    y = affine(y, wf1_ref, bf1_ref)                             # Linear(200,100)
    o_ref[...] = affine(y, wf2_ref, bf2_ref)                    # Linear(100,2)


def ae1_forward(x, prep, *, batch_tile=128):
    x = x.astype(jnp.float32)                                   # x.to(torch.float)
    B = x.shape[0]
    xf = x.reshape(B, IN_FEATS)                                 # (h, w) row-major flatten
    TB = min(batch_tile, B)
    Bp = ((B + TB - 1) // TB) * TB
    if Bp != B:
        xf = jnp.pad(xf, ((0, Bp - B), (0, 0)))

    tok_spec = pl.BlockSpec((TB, IN_FEATS), lambda i: (i, 0))
    w_specs = [pl.BlockSpec(w.shape, lambda i: (0, 0)) for w in prep]

    out = pl.pallas_call(
        _ae1_kernel,
        out_shape=jax.ShapeDtypeStruct((Bp, 2), jnp.float32),
        grid=(Bp // TB,),
        in_specs=[tok_spec] + w_specs,
        out_specs=pl.BlockSpec((TB, 2), lambda i: (i, 0)),
        compiler_params=pltpu.CompilerParams(
            dimension_semantics=("parallel",),                  # batch iterations independent (v7x 2 TC)
            vmem_limit_bytes=48 * 1024 * 1024,                  # ~13 MB f32 weights, 2x buffered; < v7x 64 MiB
        ),
    )(xf, *prep)
    return out[:B]


# ------------------------------------------------------------------
# one-time weight preprocessing: lower every layer to a dense affine map
# ------------------------------------------------------------------
def _shift_onehots_conv(n_in, n_out, k):
    # E[kk, i_in, i_out] = 1  iff  i_in == i_out + kk   (valid conv, stride 1)
    E = np.zeros((k, n_in, n_out), np.float32)
    for kk in range(k):
        for o in range(n_out):
            E[kk, o + kk, o] = 1.0
    return E


def _shift_onehots_deconv(n_in, n_out, k, s):
    # E[kk, i_in, i_out] = 1  iff  i_out == i_in * s + kk  (ConvTranspose, pad=0)
    E = np.zeros((k, n_in, n_out), np.float32)
    for kk in range(k):
        for i in range(n_in):
            E[kk, i, i * s + kk] = 1.0
    return E


def _flatten_op(D6, in_order="hwc"):
    # D6: (Hin, Win, Cin, Hout, Wout, Cout); rows/cols flattened row-major.
    if in_order == "chw":
        D6 = jnp.transpose(D6, (2, 0, 1, 3, 4, 5))
    s = D6.shape
    return D6.reshape(s[0] * s[1] * s[2], s[3] * s[4] * s[5])


def _conv_as_matrix(w_oihw, hin, win, in_order="hwc"):
    # torch Conv2d weight (Cout, Cin, kh, kw), stride 1, no padding.
    cout, cin, k, _ = w_oihw.shape
    hout, wout = hin - k + 1, win - k + 1
    Eh = _shift_onehots_conv(hin, hout, k)
    Ew = _shift_onehots_conv(win, wout, k)
    w = jnp.transpose(w_oihw, (2, 3, 1, 0))                     # (ky, kx, Cin, Cout)
    D6 = jnp.einsum("khH,lwW,klcd->hwcHWd", Eh, Ew, w)
    return _flatten_op(D6, in_order), (hout, wout, cout)


def _deconv_as_matrix(w_iohw, hin, win, stride, in_order="hwc"):
    # torch ConvTranspose2d weight (Cin, Cout, kh, kw), pad=0, out_pad=0.
    cin, cout, k, _ = w_iohw.shape
    sh, sw = stride
    hout, wout = (hin - 1) * sh + k, (win - 1) * sw + k
    Eh = _shift_onehots_deconv(hin, hout, k, sh)
    Ew = _shift_onehots_deconv(win, wout, k, sw)
    w = jnp.transpose(w_iohw, (2, 3, 0, 1))                     # (ky, kx, Cin, Cout)
    D6 = jnp.einsum("khH,lwW,klcd->hwcHWd", Eh, Ew, w)
    return _flatten_op(D6, in_order), (hout, wout, cout)


def _adaptive_avgpool_matrix(hin, win, c, hout, wout):
    # input flat 'hwc' -> output flat 'chw' (matches torch NCHW Flatten order)
    P = np.zeros((hin, win, c, c, hout, wout), np.float32)
    for i in range(hout):
        h0, h1 = (i * hin) // hout, -((-(i + 1) * hin) // hout)
        for j in range(wout):
            w0, w1 = (j * win) // wout, -((-(j + 1) * win) // wout)
            inv = 1.0 / ((h1 - h0) * (w1 - w0))
            for cc in range(c):
                P[h0:h1, w0:w1, cc, cc, i, j] = inv
    return jnp.asarray(P.reshape(hin * win * c, c * hout * wout))


def _nearest_resize_matrix(hin, win, c, hout, wout):
    # F.interpolate(mode='nearest'): src = floor(dst * in / out); flat 'hwc' both sides.
    M = np.zeros((hin, win, c, hout, wout, c), np.float32)
    for i in range(hout):
        hi = (i * hin) // hout
        for j in range(wout):
            wi = (j * win) // wout
            for cc in range(c):
                M[hi, wi, cc, i, j, cc] = 1.0
    return jnp.asarray(M.reshape(hin * win * c, hout * wout * c))


def _fold_bn(W, b, bn, hw):
    # layer output flat 'hwc' (channel-minor): inference-mode BN is a per-column affine.
    scale = bn["gamma"] / jnp.sqrt(bn["var"] + BN_EPS)
    col_scale = jnp.tile(scale, hw)
    col_shift = jnp.tile((b - bn["mean"]) * scale + bn["beta"], hw)
    return W * col_scale[None, :], col_shift


def prepare_params(p):
    """Fold the whole ae1 forward into 9 affine layers (run once, off the hot path)."""
    # ---- encoder ----
    We0, (h0, w0, c0) = _conv_as_matrix(p["e0_w"], IMG_H, IMG_W)          # (200, 1152)  -> 8x18x8
    We0, be0 = _fold_bn(We0, p["e0_b"], p["e0_bn"], h0 * w0)
    We1, (h1, w1, c1) = _conv_as_matrix(p["e1_w"], h0, w0)                # (1152, 1536) -> 6x16x16
    We1, be1 = _fold_bn(We1, p["e1_b"], p["e1_bn"], h1 * w1)
    We2, (h2, w2, c2) = _conv_as_matrix(p["e2_w"], h1, w1)                # (1536, 1792) -> 4x14x32
    We2, be2 = _fold_bn(We2, p["e2_b"], p["e2_bn"], h2 * w2)              # no ReLU (activation=False)
    P = _adaptive_avgpool_matrix(h2, w2, c2, 2, 2)                        # (1792, 128) in torch CHW order
    Lw = p["lin_w"].T                                                     # (128, 64)
    Wet = (We2 @ P) @ Lw                                                  # Conv3+BN+pool+flatten+Linear
    bet = (be2 @ P) @ Lw + p["lin_b"]

    # ---- decoder (input is the 64-vec == view(B,32,1,2), i.e. 'chw' flatten) ----
    Wd0, (dh0, dw0, dc0) = _deconv_as_matrix(p["d0_w"], 1, 2, (1, 1), in_order="chw")   # (64, 192)  -> 3x4x16
    Wd0, bd0 = _fold_bn(Wd0, p["d0_b"], p["d0_bn"], dh0 * dw0)
    Wd1, (dh1, dw1, dc1) = _deconv_as_matrix(p["d1_w"], dh0, dw0, (2, 2))               # (192, 504) -> 7x9x8
    Wd1, bd1 = _fold_bn(Wd1, p["d1_b"], p["d1_bn"], dh1 * dw1)
    Wd2, (dh2, dw2, dc2) = _deconv_as_matrix(p["d2_w"], dh1, dw1, (1, 2))               # (504, 1368) -> 9x19x8
    Wd2, bd2 = _fold_bn(Wd2, p["d2_b"], p["d2_bn"], dh2 * dw2)
    R = _nearest_resize_matrix(dh2, dw2, dc2, 12, 22)                                   # (1368, 2112)
    Wd3, (fh, fw, fc) = _conv_as_matrix(p["d3_w"], 12, 22)                              # (2112, 200) -> 10x20x1
    Wdt = R @ Wd3                                                                       # interpolate + Conv(8,1)
    bdt = jnp.tile(p["d3_b"], fh * fw)

    # ---- fc head ----
    Wf1, bf1 = p["fc1_w"].T, p["fc1_b"]
    Wf2, bf2 = p["fc2_w"].T, p["fc2_b"]

    def row(v):                                                           # biases as (1, N) rows
        return jnp.asarray(v, jnp.float32).reshape(1, -1)

    mats = (We0, row(be0), We1, row(be1), Wet, row(bet),
            Wd0, row(bd0), Wd1, row(bd1), Wd2, row(bd2),
            Wdt, row(bdt), Wf1, row(bf1), Wf2, row(bf2))
    return tuple(jnp.asarray(m, jnp.float32) for m in mats)


# ------------------------------------------------------------------
# deterministic parameter init (torch layouts) + plain-jnp reference
# ------------------------------------------------------------------
def init_params(key):
    ks = iter(jax.random.split(key, 20))

    def conv_w(k, cout, cin, kk=3):
        return (jax.random.normal(k, (cout, cin, kk, kk)) / np.sqrt(cin * kk * kk)).astype(jnp.float32)

    def deconv_w(k, cin, cout, kk=3):
        return (jax.random.normal(k, (cin, cout, kk, kk)) / np.sqrt(cin * kk * kk)).astype(jnp.float32)

    def lin_w(k, out_f, in_f):
        return (jax.random.normal(k, (out_f, in_f)) / np.sqrt(in_f)).astype(jnp.float32)

    def bias(k, n, s=0.02):
        return (s * jax.random.normal(k, (n,))).astype(jnp.float32)

    def bn(c):
        return {"gamma": jnp.ones((c,), jnp.float32), "beta": jnp.zeros((c,), jnp.float32),
                "mean": jnp.zeros((c,), jnp.float32), "var": jnp.ones((c,), jnp.float32)}

    return {
        "e0_w": conv_w(next(ks), 8, 1),   "e0_b": bias(next(ks), 8),   "e0_bn": bn(8),
        "e1_w": conv_w(next(ks), 16, 8),  "e1_b": bias(next(ks), 16),  "e1_bn": bn(16),
        "e2_w": conv_w(next(ks), 32, 16), "e2_b": bias(next(ks), 32),  "e2_bn": bn(32),
        "lin_w": lin_w(next(ks), 64, 128), "lin_b": bias(next(ks), 64),
        "d0_w": deconv_w(next(ks), 32, 16), "d0_b": bias(next(ks), 16), "d0_bn": bn(16),
        "d1_w": deconv_w(next(ks), 16, 8),  "d1_b": bias(next(ks), 8),  "d1_bn": bn(8),
        "d2_w": deconv_w(next(ks), 8, 8),   "d2_b": bias(next(ks), 8),  "d2_bn": bn(8),
        "d3_w": conv_w(next(ks), 1, 8),     "d3_b": bias(next(ks), 1),
        "fc1_w": lin_w(next(ks), 100, 200), "fc1_b": bias(next(ks), 100),
        "fc2_w": lin_w(next(ks), 2, 100),   "fc2_b": bias(next(ks), 2),
    }


def _reference_forward(x, prep):
    (We0, be0, We1, be1, Wet, bet, Wd0, bd0, Wd1, bd1, Wd2, bd2,
     Wdt, bdt, Wf1, bf1, Wf2, bf2) = prep
    xf = x.astype(jnp.float32).reshape(x.shape[0], -1)
    h = jnp.maximum(xf @ We0 + be0, 0.0)
    h = jnp.maximum(h @ We1 + be1, 0.0)
    z = h @ Wet + bet
    h = jnp.maximum(z @ Wd0 + bd0, 0.0)
    h = jnp.maximum(h @ Wd1 + bd1, 0.0)
    h = jnp.maximum(h @ Wd2 + bd2, 0.0)
    r = h @ Wdt + bdt
    y = r - xf
    return (y @ Wf1 + bf1) @ Wf2 + bf2


if __name__ == "__main__":
    key = jax.random.PRNGKey(0)
    kx, kp = jax.random.split(key)
    x = jax.random.normal(kx, (4, IMG_H, IMG_W), dtype=jnp.float32)     # (B, 10, 20)
    params = init_params(kp)
    prep = prepare_params(params)            # one-time weight folding (outside hot path)

    fwd = jax.jit(ae1_forward)
    out = fwd(x, prep)
    jax.block_until_ready(out)
    assert out.shape == (4, 2) and out.dtype == jnp.float32

    ref = _reference_forward(x, prep)
    assert jnp.allclose(out, ref, rtol=5e-2, atol=5e-2)
    print("KERNEL_OK")
</pallas_src>

<mosaic_0001>
module attributes {stable_mosaic.version = 11 : i64} {
  func.func @_ae1_kernel(%arg0: i32, %arg1: memref<4x200xf32, #tpu.memory_space<vmem>>, %arg2: memref<200x1152xf32, #tpu.memory_space<vmem>>, %arg3: memref<1x1152xf32, #tpu.memory_space<vmem>>, %arg4: memref<1152x1536xf32, #tpu.memory_space<vmem>>, %arg5: memref<1x1536xf32, #tpu.memory_space<vmem>>, %arg6: memref<1536x64xf32, #tpu.memory_space<vmem>>, %arg7: memref<1x64xf32, #tpu.memory_space<vmem>>, %arg8: memref<64x192xf32, #tpu.memory_space<vmem>>, %arg9: memref<1x192xf32, #tpu.memory_space<vmem>>, %arg10: memref<192x504xf32, #tpu.memory_space<vmem>>, %arg11: memref<1x504xf32, #tpu.memory_space<vmem>>, %arg12: memref<504x1368xf32, #tpu.memory_space<vmem>>, %arg13: memref<1x1368xf32, #tpu.memory_space<vmem>>, %arg14: memref<1368x200xf32, #tpu.memory_space<vmem>>, %arg15: memref<1x200xf32, #tpu.memory_space<vmem>>, %arg16: memref<200x100xf32, #tpu.memory_space<vmem>>, %arg17: memref<1x100xf32, #tpu.memory_space<vmem>>, %arg18: memref<100x2xf32, #tpu.memory_space<vmem>>, %arg19: memref<1x2xf32, #tpu.memory_space<vmem>>, %arg20: memref<4x2xf32, #tpu.memory_space<vmem>>) attributes {dimension_semantics = [#tpu.dimension_semantics<parallel>], iteration_bounds = array<i64: 1>, scalar_prefetch = 0 : i64, scratch_operands = 0 : i64, tpu.core_type = #tpu.core_type<tc>, window_params = [{transform_indices = @transform_0, window_bounds = array<i64: 4, 200>}, {pipeline_mode = #tpu.pipeline_mode<synchronous>, transform_indices = @transform_1, window_bounds = array<i64: 200, 1152>}, {pipeline_mode = #tpu.pipeline_mode<synchronous>, transform_indices = @transform_2, window_bounds = array<i64: 1, 1152>}, {pipeline_mode = #tpu.pipeline_mode<synchronous>, transform_indices = @transform_3, window_bounds = array<i64: 1152, 1536>}, {pipeline_mode = #tpu.pipeline_mode<synchronous>, transform_indices = @transform_4, window_bounds = array<i64: 1, 1536>}, {pipeline_mode = #tpu.pipeline_mode<synchronous>, transform_indices = @transform_5, window_bounds = array<i64: 1536, 64>}, {pipeline_mode = #tpu.pipeline_mode<synchronous>, transform_indices = @transform_6, window_bounds = array<i64: 1, 64>}, {pipeline_mode = #tpu.pipeline_mode<synchronous>, transform_indices = @transform_7, window_bounds = array<i64: 64, 192>}, {pipeline_mode = #tpu.pipeline_mode<synchronous>, transform_indices = @transform_8, window_bounds = array<i64: 1, 192>}, {pipeline_mode = #tpu.pipeline_mode<synchronous>, transform_indices = @transform_9, window_bounds = array<i64: 192, 504>}, {pipeline_mode = #tpu.pipeline_mode<synchronous>, transform_indices = @transform_10, window_bounds = array<i64: 1, 504>}, {pipeline_mode = #tpu.pipeline_mode<synchronous>, transform_indices = @transform_11, window_bounds = array<i64: 504, 1368>}, {pipeline_mode = #tpu.pipeline_mode<synchronous>, transform_indices = @transform_12, window_bounds = array<i64: 1, 1368>}, {pipeline_mode = #tpu.pipeline_mode<synchronous>, transform_indices = @transform_13, window_bounds = array<i64: 1368, 200>}, {pipeline_mode = #tpu.pipeline_mode<synchronous>, transform_indices = @transform_14, window_bounds = array<i64: 1, 200>}, {pipeline_mode = #tpu.pipeline_mode<synchronous>, transform_indices = @transform_15, window_bounds = array<i64: 200, 100>}, {pipeline_mode = #tpu.pipeline_mode<synchronous>, transform_indices = @transform_16, window_bounds = array<i64: 1, 100>}, {pipeline_mode = #tpu.pipeline_mode<synchronous>, transform_indices = @transform_17, window_bounds = array<i64: 100, 2>}, {pipeline_mode = #tpu.pipeline_mode<synchronous>, transform_indices = @transform_18, window_bounds = array<i64: 1, 2>}, {transform_indices = @transform_19, window_bounds = array<i64: 4, 2>}]} {
    %c0 = arith.constant 0 : index
    %c0_0 = arith.constant 0 : index
    %0 = vector.load %arg1[%c0, %c0_0] : memref<4x200xf32, #tpu.memory_space<vmem>>, vector<4x200xf32>
    %c0_1 = arith.constant 0 : index
    %c0_2 = arith.constant 0 : index
    %1 = vector.load %arg2[%c0_1, %c0_2] : memref<200x1152xf32, #tpu.memory_space<vmem>>, vector<200x1152xf32>
    %cst = arith.constant dense<0.000000e+00> : vector<4x1152xf32>
    %2 = tpu.matmul %0, %1, %cst {dimension_numbers = #tpu.dot_dimension_numbers<[1], [0], [0], [1], [0, 0, 1, 1], [], []>} : vector<4x200xf32>, vector<200x1152xf32>, vector<4x1152xf32> -> vector<4x1152xf32>
    %c0_3 = arith.constant 0 : index
    %c0_4 = arith.constant 0 : index
    %3 = vector.load %arg3[%c0_3, %c0_4] : memref<1x1152xf32, #tpu.memory_space<vmem>>, vector<1x1152xf32>
    %4 = vector.broadcast %3 : vector<1x1152xf32> to vector<4x1152xf32>
    %5 = arith.addf %2, %4 : vector<4x1152xf32>
    %cst_5 = arith.constant 0.000000e+00 : f32
    %6 = vector.broadcast %cst_5 : f32 to vector<4x1152xf32>
    %7 = arith.maximumf %5, %6 : vector<4x1152xf32>
    %c0_6 = arith.constant 0 : index
    %c0_7 = arith.constant 0 : index
    %8 = vector.load %arg4[%c0_6, %c0_7] : memref<1152x1536xf32, #tpu.memory_space<vmem>>, vector<1152x1536xf32>
    %cst_8 = arith.constant dense<0.000000e+00> : vector<4x1536xf32>
    %9 = tpu.matmul %7, %8, %cst_8 {dimension_numbers = #tpu.dot_dimension_numbers<[1], [0], [0], [1], [0, 0, 1, 1], [], []>} : vector<4x1152xf32>, vector<1152x1536xf32>, vector<4x1536xf32> -> vector<4x1536xf32>
    %c0_9 = arith.constant 0 : index
    %c0_10 = arith.constant 0 : index
    %10 = vector.load %arg5[%c0_9, %c0_10] : memref<1x1536xf32, #tpu.memory_space<vmem>>, vector<1x1536xf32>
    %11 = vector.broadcast %10 : vector<1x1536xf32> to vector<4x1536xf32>
    %12 = arith.addf %9, %11 : vector<4x1536xf32>
    %cst_11 = arith.constant 0.000000e+00 : f32
    %13 = vector.broadcast %cst_11 : f32 to vector<4x1536xf32>
    %14 = arith.maximumf %12, %13 : vector<4x1536xf32>
    %c0_12 = arith.constant 0 : index
    %c0_13 = arith.constant 0 : index
    %15 = vector.load %arg6[%c0_12, %c0_13] : memref<1536x64xf32, #tpu.memory_space<vmem>>, vector<1536x64xf32>
    %cst_14 = arith.constant dense<0.000000e+00> : vector<4x64xf32>
    %16 = tpu.matmul %14, %15, %cst_14 {dimension_numbers = #tpu.dot_dimension_numbers<[1], [0], [0], [1], [0, 0, 1, 1], [], []>} : vector<4x1536xf32>, vector<1536x64xf32>, vector<4x64xf32> -> vector<4x64xf32>
    %c0_15 = arith.constant 0 : index
    %c0_16 = arith.constant 0 : index
    %17 = vector.load %arg7[%c0_15, %c0_16] : memref<1x64xf32, #tpu.memory_space<vmem>>, vector<1x64xf32>
    %18 = vector.broadcast %17 : vector<1x64xf32> to vector<4x64xf32>
    %19 = arith.addf %16, %18 : vector<4x64xf32>
    %c0_17 = arith.constant 0 : index
    %c0_18 = arith.constant 0 : index
    %20 = vector.load %arg8[%c0_17, %c0_18] : memref<64x192xf32, #tpu.memory_space<vmem>>, vector<64x192xf32>
    %cst_19 = arith.constant dense<0.000000e+00> : vector<4x192xf32>
    %21 = tpu.matmul %19, %20, %cst_19 {dimension_numbers = #tpu.dot_dimension_numbers<[1], [0], [0], [1], [0, 0, 1, 1], [], []>} : vector<4x64xf32>, vector<64x192xf32>, vector<4x192xf32> -> vector<4x192xf32>
    %c0_20 = arith.constant 0 : index
    %c0_21 = arith.constant 0 : index
    %22 = vector.load %arg9[%c0_20, %c0_21] : memref<1x192xf32, #tpu.memory_space<vmem>>, vector<1x192xf32>
    %23 = vector.broadcast %22 : vector<1x192xf32> to vector<4x192xf32>
    %24 = arith.addf %21, %23 : vector<4x192xf32>
    %cst_22 = arith.constant 0.000000e+00 : f32
    %25 = vector.broadcast %cst_22 : f32 to vector<4x192xf32>
    %26 = arith.maximumf %24, %25 : vector<4x192xf32>
    %c0_23 = arith.constant 0 : index
    %c0_24 = arith.constant 0 : index
    %27 = vector.load %arg10[%c0_23, %c0_24] : memref<192x504xf32, #tpu.memory_space<vmem>>, vector<192x504xf32>
    %cst_25 = arith.constant dense<0.000000e+00> : vector<4x504xf32>
    %28 = tpu.matmul %26, %27, %cst_25 {dimension_numbers = #tpu.dot_dimension_numbers<[1], [0], [0], [1], [0, 0, 1, 1], [], []>} : vector<4x192xf32>, vector<192x504xf32>, vector<4x504xf32> -> vector<4x504xf32>
    %c0_26 = arith.constant 0 : index
    %c0_27 = arith.constant 0 : index
    %29 = vector.load %arg11[%c0_26, %c0_27] : memref<1x504xf32, #tpu.memory_space<vmem>>, vector<1x504xf32>
    %30 = vector.broadcast %29 : vector<1x504xf32> to vector<4x504xf32>
    %31 = arith.addf %28, %30 : vector<4x504xf32>
    %cst_28 = arith.constant 0.000000e+00 : f32
    %32 = vector.broadcast %cst_28 : f32 to vector<4x504xf32>
    %33 = arith.maximumf %31, %32 : vector<4x504xf32>
    %c0_29 = arith.constant 0 : index
    %c0_30 = arith.constant 0 : index
    %34 = vector.load %arg12[%c0_29, %c0_30] : memref<504x1368xf32, #tpu.memory_space<vmem>>, vector<504x1368xf32>
    %cst_31 = arith.constant dense<0.000000e+00> : vector<4x1368xf32>
    %35 = tpu.matmul %33, %34, %cst_31 {dimension_numbers = #tpu.dot_dimension_numbers<[1], [0], [0], [1], [0, 0, 1, 1], [], []>} : vector<4x504xf32>, vector<504x1368xf32>, vector<4x1368xf32> -> vector<4x1368xf32>
    %c0_32 = arith.constant 0 : index
    %c0_33 = arith.constant 0 : index
    %36 = vector.load %arg13[%c0_32, %c0_33] : memref<1x1368xf32, #tpu.memory_space<vmem>>, vector<1x1368xf32>
    %37 = vector.broadcast %36 : vector<1x1368xf32> to vector<4x1368xf32>
    %38 = arith.addf %35, %37 : vector<4x1368xf32>
    %cst_34 = arith.constant 0.000000e+00 : f32
    %39 = vector.broadcast %cst_34 : f32 to vector<4x1368xf32>
    %40 = arith.maximumf %38, %39 : vector<4x1368xf32>
    %c0_35 = arith.constant 0 : index
    %c0_36 = arith.constant 0 : index
    %41 = vector.load %arg14[%c0_35, %c0_36] : memref<1368x200xf32, #tpu.memory_space<vmem>>, vector<1368x200xf32>
    %cst_37 = arith.constant dense<0.000000e+00> : vector<4x200xf32>
    %42 = tpu.matmul %40, %41, %cst_37 {dimension_numbers = #tpu.dot_dimension_numbers<[1], [0], [0], [1], [0, 0, 1, 1], [], []>} : vector<4x1368xf32>, vector<1368x200xf32>, vector<4x200xf32> -> vector<4x200xf32>
    %c0_38 = arith.constant 0 : index
    %c0_39 = arith.constant 0 : index
    %43 = vector.load %arg15[%c0_38, %c0_39] : memref<1x200xf32, #tpu.memory_space<vmem>>, vector<1x200xf32>
    %44 = vector.broadcast %43 : vector<1x200xf32> to vector<4x200xf32>
    %45 = arith.addf %42, %44 : vector<4x200xf32>
    %46 = arith.subf %45, %0 : vector<4x200xf32>
    %c0_40 = arith.constant 0 : index
    %c0_41 = arith.constant 0 : index
    %47 = vector.load %arg16[%c0_40, %c0_41] : memref<200x100xf32, #tpu.memory_space<vmem>>, vector<200x100xf32>
    %cst_42 = arith.constant dense<0.000000e+00> : vector<4x100xf32>
    %48 = tpu.matmul %46, %47, %cst_42 {dimension_numbers = #tpu.dot_dimension_numbers<[1], [0], [0], [1], [0, 0, 1, 1], [], []>} : vector<4x200xf32>, vector<200x100xf32>, vector<4x100xf32> -> vector<4x100xf32>
    %c0_43 = arith.constant 0 : index
    %c0_44 = arith.constant 0 : index
    %49 = vector.load %arg17[%c0_43, %c0_44] : memref<1x100xf32, #tpu.memory_space<vmem>>, vector<1x100xf32>
    %50 = vector.broadcast %49 : vector<1x100xf32> to vector<4x100xf32>
    %51 = arith.addf %48, %50 : vector<4x100xf32>
    %c0_45 = arith.constant 0 : index
    %c0_46 = arith.constant 0 : index
    %52 = vector.load %arg18[%c0_45, %c0_46] : memref<100x2xf32, #tpu.memory_space<vmem>>, vector<100x2xf32>
    %cst_47 = arith.constant dense<0.000000e+00> : vector<4x2xf32>
    %53 = tpu.matmul %51, %52, %cst_47 {dimension_numbers = #tpu.dot_dimension_numbers<[1], [0], [0], [1], [0, 0, 1, 1], [], []>} : vector<4x100xf32>, vector<100x2xf32>, vector<4x2xf32> -> vector<4x2xf32>
    %c0_48 = arith.constant 0 : index
    %c0_49 = arith.constant 0 : index
    %54 = vector.load %arg19[%c0_48, %c0_49] : memref<1x2xf32, #tpu.memory_space<vmem>>, vector<1x2xf32>
    %55 = vector.broadcast %54 : vector<1x2xf32> to vector<4x2xf32>
    %56 = arith.addf %53, %55 : vector<4x2xf32>
    %c0_50 = arith.constant 0 : index
    %c0_51 = arith.constant 0 : index
    %57 = vector.load %arg20[%c0_50, %c0_51] : memref<4x2xf32, #tpu.memory_space<vmem>>, vector<4x2xf32>
    tpu.vector_store %arg20[%c0_50, %c0_51], %56 {strides = array<i32>} : memref<4x2xf32, #tpu.memory_space<vmem>>, vector<4x2xf32>,
    return
  }
  func.func @transform_0(%arg0: i32) -> (i32, i32) {
    %c0_i32 = arith.constant 0 : i32
    %c0_i32_0 = arith.constant 0 : i32
    return %arg0, %c0_i32 : i32, i32
  }
  func.func @transform_1(%arg0: i32) -> (i32, i32) {
    %c0_i32 = arith.constant 0 : i32
    %c0_i32_0 = arith.constant 0 : i32
    %c0_i32_1 = arith.constant 0 : i32
    return %c0_i32, %c0_i32_0 : i32, i32
  }
  func.func @transform_2(%arg0: i32) -> (i32, i32) {
    %c0_i32 = arith.constant 0 : i32
    %c0_i32_0 = arith.constant 0 : i32
    %c0_i32_1 = arith.constant 0 : i32
    return %c0_i32, %c0_i32_0 : i32, i32
  }
  func.func @transform_3(%arg0: i32) -> (i32, i32) {
    %c0_i32 = arith.constant 0 : i32
    %c0_i32_0 = arith.constant 0 : i32
    %c0_i32_1 = arith.constant 0 : i32
    return %c0_i32, %c0_i32_0 : i32, i32
  }
  func.func @transform_4(%arg0: i32) -> (i32, i32) {
    %c0_i32 = arith.constant 0 : i32
    %c0_i32_0 = arith.constant 0 : i32
    %c0_i32_1 = arith.constant 0 : i32
    return %c0_i32, %c0_i32_0 : i32, i32
  }
  func.func @transform_5(%arg0: i32) -> (i32, i32) {
    %c0_i32 = arith.constant 0 : i32
    %c0_i32_0 = arith.constant 0 : i32
    %c0_i32_1 = arith.constant 0 : i32
    return %c0_i32, %c0_i32_0 : i32, i32
  }
  func.func @transform_6(%arg0: i32) -> (i32, i32) {
    %c0_i32 = arith.constant 0 : i32
    %c0_i32_0 = arith.constant 0 : i32
    %c0_i32_1 = arith.constant 0 : i32
    return %c0_i32, %c0_i32_0 : i32, i32
  }
  func.func @transform_7(%arg0: i32) -> (i32, i32) {
    %c0_i32 = arith.constant 0 : i32
    %c0_i32_0 = arith.constant 0 : i32
    %c0_i32_1 = arith.constant 0 : i32
    return %c0_i32, %c0_i32_0 : i32, i32
  }
  func.func @transform_8(%arg0: i32) -> (i32, i32) {
    %c0_i32 = arith.constant 0 : i32
    %c0_i32_0 = arith.constant 0 : i32
    %c0_i32_1 = arith.constant 0 : i32
    return %c0_i32, %c0_i32_0 : i32, i32
  }
  func.func @transform_9(%arg0: i32) -> (i32, i32) {
    %c0_i32 = arith.constant 0 : i32
    %c0_i32_0 = arith.constant 0 : i32
    %c0_i32_1 = arith.constant 0 : i32
    return %c0_i32, %c0_i32_0 : i32, i32
  }
  func.func @transform_10(%arg0: i32) -> (i32, i32) {
    %c0_i32 = arith.constant 0 : i32
    %c0_i32_0 = arith.constant 0 : i32
    %c0_i32_1 = arith.constant 0 : i32
    return %c0_i32, %c0_i32_0 : i32, i32
  }
  func.func @transform_11(%arg0: i32) -> (i32, i32) {
    %c0_i32 = arith.constant 0 : i32
    %c0_i32_0 = arith.constant 0 : i32
    %c0_i32_1 = arith.constant 0 : i32
    return %c0_i32, %c0_i32_0 : i32, i32
  }
  func.func @transform_12(%arg0: i32) -> (i32, i32) {
    %c0_i32 = arith.constant 0 : i32
    %c0_i32_0 = arith.constant 0 : i32
    %c0_i32_1 = arith.constant 0 : i32
    return %c0_i32, %c0_i32_0 : i32, i32
  }
  func.func @transform_13(%arg0: i32) -> (i32, i32) {
    %c0_i32 = arith.constant 0 : i32
    %c0_i32_0 = arith.constant 0 : i32
    %c0_i32_1 = arith.constant 0 : i32
    return %c0_i32, %c0_i32_0 : i32, i32
  }
  func.func @transform_14(%arg0: i32) -> (i32, i32) {
    %c0_i32 = arith.constant 0 : i32
    %c0_i32_0 = arith.constant 0 : i32
    %c0_i32_1 = arith.constant 0 : i32
    return %c0_i32, %c0_i32_0 : i32, i32
  }
  func.func @transform_15(%arg0: i32) -> (i32, i32) {
    %c0_i32 = arith.constant 0 : i32
    %c0_i32_0 = arith.constant 0 : i32
    %c0_i32_1 = arith.constant 0 : i32
    return %c0_i32, %c0_i32_0 : i32, i32
  }
  func.func @transform_16(%arg0: i32) -> (i32, i32) {
    %c0_i32 = arith.constant 0 : i32
    %c0_i32_0 = arith.constant 0 : i32
    %c0_i32_1 = arith.constant 0 : i32
    return %c0_i32, %c0_i32_0 : i32, i32
  }
  func.func @transform_17(%arg0: i32) -> (i32, i32) {
    %c0_i32 = arith.constant 0 : i32
    %c0_i32_0 = arith.constant 0 : i32
    %c0_i32_1 = arith.constant 0 : i32
    return %c0_i32, %c0_i32_0 : i32, i32
  }
  func.func @transform_18(%arg0: i32) -> (i32, i32) {
    %c0_i32 = arith.constant 0 : i32
    %c0_i32_0 = arith.constant 0 : i32
    %c0_i32_1 = arith.constant 0 : i32
    return %c0_i32, %c0_i32_0 : i32, i32
  }
  func.func @transform_19(%arg0: i32) -> (i32, i32) {
    %c0_i32 = arith.constant 0 : i32
    %c0_i32_0 = arith.constant 0 : i32
    return %arg0, %c0_i32 : i32, i32
  }
}

</mosaic_0001>

<bundles_post_ra>
// kernel: ae1_forward.1
= control target key start
LH: loop header
LB: loop body
LE: loop exit
PB: predicated region body
PF: predicated region fallthrough
CT: control target
= control target key end

     0   :  { %vm339_vm0 = vcmask 588800   ;;  %vm5286_vm1 = vcmask 523264   ;;  %vm6382_vm2 = vcmask 982016   ;;  %vm7601_vm3 = vcmask 719872   ;;  %s19180_s1 = inlined_call_operand.vmem [shape: f32[200,1152], index: 1, kind: input, shape index: {}]   ;;  %s19181_s0 = inlined_call_operand.vmem [shape: f32[4,200], index: 0, kind: input, shape index: {}]   ;;  %s19182_s3 = inlined_call_operand.vmem [shape: f32[1152,1536], index: 3, kind: input, shape index: {}]   ;;  %s19183_s2 = inlined_call_operand.vmem [shape: f32[1,1152], index: 2, kind: input, shape index: {}]   ;;  %s19184_s4 = inlined_call_operand.vmem [shape: f32[1,1536], index: 4, kind: input, shape index: {}]   ;;  %s19185_s5 = inlined_call_operand.vmem [shape: f32[1536,64], index: 5, kind: input, shape index: {}]   ;;  %s19186_s7 = inlined_call_operand.vmem [shape: f32[64,192], index: 7, kind: input, shape index: {}]   ;;  %s19187_s9 = inlined_call_operand.vmem [shape: f32[192,504], index: 9, kind: input, shape index: {}]   ;;  %s19188_s6 = inlined_call_operand.vmem [shape: f32[1,64], index: 6, kind: input, shape index: {}]   ;;  %s19189_s11 = inlined_call_operand.vmem [shape: f32[504,1368], index: 11, kind: input, shape index: {}]   ;;  %s19190_s8 = inlined_call_operand.vmem [shape: f32[1,192], index: 8, kind: input, shape index: {}]   ;;  %s19191_s10 = inlined_call_operand.vmem [shape: f32[1,504], index: 10, kind: input, shape index: {}]   ;;  %s19192_s12 = inlined_call_operand.vmem [shape: f32[1,1368], index: 12, kind: input, shape index: {}]   ;;  %s19193_s13 = inlined_call_operand.vmem [shape: f32[1368,200], index: 13, kind: input, shape index: {}]   ;;  %s19194_s15 = inlined_call_operand.vmem [shape: f32[200,100], index: 15, kind: input, shape index: {}]   ;;  %s19195_s17 = inlined_call_operand.vmem [shape: f32[100,2], index: 17, kind: input, shape index: {}]   ;;  %s19196_s14 = inlined_call_operand.vmem [shape: f32[1,200], index: 14, kind: input, shape index: {}]   ;;  %s19197_s16 = inlined_call_operand.vmem [shape: f32[1,100], index: 16, kind: input, shape index: {}]   ;;  %s19198_s18 = inlined_call_operand.vmem [shape: f32[1,2], index: 18, kind: input, shape index: {}]   ;;  %s19199_s19 = inlined_call_operand.vmem [shape: f32[4,2], index: 19, kind: output, shape index: {}]  }
   0x1   :  { %19204 = sst [smem:[#allocation2_spill]] %s19180_s1  ;;  %vm8163_vm4 = vcmask 1043456   ;;  %vm8561_vm5 = vmmov 0   ;;  %vm8159_vm6 = vcmask 818176   ;;  %vm8237_vm7 = vcmask 11264  }
   0x2   :  { %19205 = sst [smem:[#allocation3_spill]] %s19181_s0 }
   0x3   :  { %19206 = sst [smem:[#allocation4_spill]] %s19182_s3 }
   0x4   :  { %19207 = sst [smem:[#allocation5_spill]] %s19183_s2 }
   0x5   :  { %s19208_s20 = sld [smem:[#allocation2_spill]] }
   0x6   :  { %s19209_s22 = sld [smem:[#allocation3_spill]] }
   0x7   :  { %s19210_s25 = sld [smem:[#allocation4_spill]] }
   0x8   :  { %s19211_s28 = sld [smem:[#allocation5_spill]] }
   0xb   :  { %v199_v0 = vld [vmem:[%s19208_s20 + $0x440] sm:$0xff]  ;;  %v201_v1 = vld [vmem:[%s19208_s20 + $0x450] sm:$0xff]  ;;  %v198_v2 = vld [vmem:[%s19208_s20 + $0x438] sm:$0xff] }
   0xc   :  { %342 = vmatprep.subr.mxu0 %v199_v0  ;;  %413 = vmatprep.subr.mxu1 %v201_v1  ;;  %v200_v3 = vld [vmem:[%s19208_s20 + $0x448] sm:$0xff]  ;;  %v190_v4 = vld [vmem:[%s19208_s20 + $0x3f8] sm:$0xff]  ;;  %v189_v6 = vld [vmem:[%s19208_s20 + $0x3f0] sm:$0xff] }
   0xd   :  { %v192_v5 = vld [vmem:[%s19208_s20 + $0x408] sm:$0xff]  ;;  %343 = vmatpush1.msra.mxu0 %v198_v2  ;;  %414 = vmatpush1.msra.mxu1 %v200_v3  ;;  %v191_v7 = vld [vmem:[%s19208_s20 + $0x400] sm:$0xff]  ;;  %v181_v8 = vld [vmem:[%s19208_s20 + $0x3b0] sm:$0xff] }
   0xe   :  { %344 = vmatprep.subr.mxu0 %v190_v4  ;;  %415 = vmatprep.subr.mxu1 %v192_v5  ;;  %v183_v9 = vld [vmem:[%s19208_s20 + $0x3c0] sm:$0xff]  ;;  %v180_v10 = vld [vmem:[%s19208_s20 + $0x3a8] sm:$0xff]  ;;  %v182_v11 = vld [vmem:[%s19208_s20 + $0x3b8] sm:$0xff] }
   0xf   :  { %345 = vmatpush1.msra.mxu0 %v189_v6  ;;  %416 = vmatpush1.msra.mxu1 %v191_v7  ;;  %v172_v12 = vld [vmem:[%s19208_s20 + $0x368] sm:$0xff]  ;;  %v174_v13 = vld [vmem:[%s19208_s20 + $0x378] sm:$0xff]  ;;  %v171_v14 = vld [vmem:[%s19208_s20 + $0x360] sm:$0xff] }
  0x10   :  { %346 = vmatprep.subr.mxu0 %v181_v8  ;;  %417 = vmatprep.subr.mxu1 %v183_v9  ;;  %v173_v15 = vld [vmem:[%s19208_s20 + $0x370] sm:$0xff]  ;;  %v163_v16 = vld [vmem:[%s19208_s20 + $0x320] sm:$0xff]  ;;  %v162_v18 = vld [vmem:[%s19208_s20 + $0x318] sm:$0xff] }
  0x11   :  { %347 = vmatpush1.msra.mxu0 %v180_v10  ;;  %418 = vmatpush1.msra.mxu1 %v182_v11  ;;  %v165_v17 = vld [vmem:[%s19208_s20 + $0x330] sm:$0xff]  ;;  %v164_v19 = vld [vmem:[%s19208_s20 + $0x328] sm:$0xff]  ;;  %v154_v20 = vld [vmem:[%s19208_s20 + $0x2d8] sm:$0xff] }
  0x12   :  { %348 = vmatprep.subr.mxu0 %v172_v12  ;;  %419 = vmatprep.subr.mxu1 %v174_v13  ;;  %v156_v21 = vld [vmem:[%s19208_s20 + $0x2e8] sm:$0xff]  ;;  %v153_v22 = vld [vmem:[%s19208_s20 + $0x2d0] sm:$0xff]  ;;  %v155_v23 = vld [vmem:[%s19208_s20 + $0x2e0] sm:$0xff] }
  0x13   :  { %349 = vmatpush1.msra.mxu0 %v171_v14  ;;  %420 = vmatpush1.msra.mxu1 %v173_v15  ;;  %v145_v24 = vld [vmem:[%s19208_s20 + $0x290] sm:$0xff]  ;;  %v147_v25 = vld [vmem:[%s19208_s20 + $0x2a0] sm:$0xff]  ;;  %v144_v26 = vld [vmem:[%s19208_s20 + $0x288] sm:$0xff] }
  0x14   :  { %350 = vmatprep.subr.mxu0 %v163_v16  ;;  %421 = vmatprep.subr.mxu1 %v165_v17  ;;  %v146_v27 = vld [vmem:[%s19208_s20 + $0x298] sm:$0xff]  ;;  %v136_v28 = vld [vmem:[%s19208_s20 + $0x248] sm:$0xff]  ;;  %v135_v30 = vld [vmem:[%s19208_s20 + $0x240] sm:$0xff] }
  0x15   :  { %351 = vmatpush1.msra.mxu0 %v162_v18  ;;  %422 = vmatpush1.msra.mxu1 %v164_v19  ;;  %v138_v29 = vld [vmem:[%s19208_s20 + $0x258] sm:$0xff]  ;;  %v137_v31 = vld [vmem:[%s19208_s20 + $0x250] sm:$0xff]  ;;  %v127_v32 = vld [vmem:[%s19208_s20 + $0x200] sm:$0xff] }
  0x16   :  { %352 = vmatprep.subr.mxu0 %v154_v20  ;;  %423 = vmatprep.subr.mxu1 %v156_v21  ;;  %v129_v33 = vld [vmem:[%s19208_s20 + $0x210] sm:$0xff]  ;;  %v126_v34 = vld [vmem:[%s19208_s20 + $0x1f8] sm:$0xff]  ;;  %v128_v35 = vld [vmem:[%s19208_s20 + $0x208] sm:$0xff] }
  0x17   :  { %353 = vmatpush1.msra.mxu0 %v153_v22  ;;  %424 = vmatpush1.msra.mxu1 %v155_v23  ;;  %v118_v36 = vld [vmem:[%s19208_s20 + $0x1b8] sm:$0xff]  ;;  %v120_v37 = vld [vmem:[%s19208_s20 + $0x1c8] sm:$0xff]  ;;  %v117_v38 = vld [vmem:[%s19208_s20 + $0x1b0] sm:$0xff] }
  0x18   :  { %354 = vmatprep.subr.mxu0 %v145_v24  ;;  %425 = vmatprep.subr.mxu1 %v147_v25  ;;  %v119_v39 = vld [vmem:[%s19208_s20 + $0x1c0] sm:$0xff]  ;;  %v109_v40 = vld [vmem:[%s19208_s20 + $0x170] sm:$0xff]  ;;  %v108_v42 = vld [vmem:[%s19208_s20 + $0x168] sm:$0xff] }
  0x19   :  { %355 = vmatpush1.msra.mxu0 %v144_v26  ;;  %426 = vmatpush1.msra.mxu1 %v146_v27  ;;  %v111_v41 = vld [vmem:[%s19208_s20 + $0x180] sm:$0xff]  ;;  %v110_v43 = vld [vmem:[%s19208_s20 + $0x178] sm:$0xff]  ;;  %v100_v44 = vld [vmem:[%s19208_s20 + $0x128] sm:$0xff] }
  0x1a   :  { %356 = vmatprep.subr.mxu0 %v136_v28  ;;  %427 = vmatprep.subr.mxu1 %v138_v29  ;;  %v102_v45 = vld [vmem:[%s19208_s20 + $0x138] sm:$0xff]  ;;  %v99_v46 = vld [vmem:[%s19208_s20 + $0x120] sm:$0xff]  ;;  %v101_v47 = vld [vmem:[%s19208_s20 + $0x130] sm:$0xff] }
  0x1b   :  { %357 = vmatpush1.msra.mxu0 %v135_v30  ;;  %428 = vmatpush1.msra.mxu1 %v137_v31  ;;  %v91_v48 = vld [vmem:[%s19208_s20 + $0xe0] sm:$0xff]  ;;  %v93_v49 = vld [vmem:[%s19208_s20 + $0xf0] sm:$0xff]  ;;  %v90_v50 = vld [vmem:[%s19208_s20 + $0xd8] sm:$0xff] }
  0x1c   :  { %358 = vmatprep.subr.mxu0 %v127_v32  ;;  %429 = vmatprep.subr.mxu1 %v129_v33  ;;  %v92_v51 = vld [vmem:[%s19208_s20 + $0xe8] sm:$0xff]  ;;  %v82_v52 = vld [vmem:[%s19208_s20 + $0x98] sm:$0xff]  ;;  %v81_v54 = vld [vmem:[%s19208_s20 + $0x90] sm:$0xff] }
  0x1d   :  { %359 = vmatpush1.msra.mxu0 %v126_v34  ;;  %430 = vmatpush1.msra.mxu1 %v128_v35  ;;  %v84_v53 = vld [vmem:[%s19208_s20 + $0xa8] sm:$0xff]  ;;  %v83_v55 = vld [vmem:[%s19208_s20 + $0xa0] sm:$0xff]  ;;  %v73_v56 = vld [vmem:[%s19208_s20 + $0x50] sm:$0xff] }
  0x1e   :  { %360 = vmatprep.subr.mxu0 %v118_v36  ;;  %431 = vmatprep.subr.mxu1 %v120_v37  ;;  %v75_v57 = vld [vmem:[%s19208_s20 + $0x60] sm:$0xff]  ;;  %v72_v58 = vld [vmem:[%s19208_s20 + $0x48] sm:$0xff]  ;;  %v74_v59 = vld [vmem:[%s19208_s20 + $0x58] sm:$0xff] }
  0x1f   :  { %361 = vmatpush1.msra.mxu0 %v117_v38  ;;  %432 = vmatpush1.msra.mxu1 %v119_v39  ;;  %v64_v60 = vld [vmem:[%s19208_s20 + $0x8] sm:$0xff]  ;;  %v66_v61 = vld [vmem:[%s19208_s20 + $0x18] sm:$0xff]  ;;  %v63_v62 = vld [vmem:[%s19208_s20] sm:$0xff] }
  0x20   :  { %362 = vmatprep.subr.mxu0 %v109_v40  ;;  %433 = vmatprep.subr.mxu1 %v111_v41  ;;  %v65_v63 = vld [vmem:[%s19208_s20 + $0x10] sm:$0xff]  ;;  %v280_v0 = vld [vmem:[%s19208_s20 + $0x6c8] sm:$0xff]  ;;  %v282_v1 = vld [vmem:[%s19208_s20 + $0x6d8] sm:$0xff] }
  0x21   :  { %363 = vmatpush1.msra.mxu0 %v108_v42  ;;  %434 = vmatpush1.msra.mxu1 %v110_v43  ;;  %v279_v2 = vld [vmem:[%s19208_s20 + $0x6c0] sm:$0xff]  ;;  %v281_v3 = vld [vmem:[%s19208_s20 + $0x6d0] sm:$0xff]  ;;  %v270_v6 = vld [vmem:[%s19208_s20 + $0x678] sm:$0xff] }
  0x22   :  { %364 = vmatprep.subr.mxu0 %v100_v44  ;;  %435 = vmatprep.subr.mxu1 %v102_v45  ;;  %v271_v4 = vld [vmem:[%s19208_s20 + $0x680] sm:$0xff]  ;;  %v273_v5 = vld [vmem:[%s19208_s20 + $0x690] sm:$0xff]  ;;  %v272_v7 = vld [vmem:[%s19208_s20 + $0x688] sm:$0xff] }
  0x23   :  { %365 = vmatpush1.msra.mxu0 %v99_v46  ;;  %436 = vmatpush1.msra.mxu1 %v101_v47  ;;  %v262_v8 = vld [vmem:[%s19208_s20 + $0x638] sm:$0xff]  ;;  %v264_v9 = vld [vmem:[%s19208_s20 + $0x648] sm:$0xff]  ;;  %v261_v10 = vld [vmem:[%s19208_s20 + $0x630] sm:$0xff] }
  0x24   :  { %366 = vmatprep.subr.mxu0 %v91_v48  ;;  %437 = vmatprep.subr.mxu1 %v93_v49  ;;  %v263_v11 = vld [vmem:[%s19208_s20 + $0x640] sm:$0xff]  ;;  %v253_v12 = vld [vmem:[%s19208_s20 + $0x5f0] sm:$0xff]  ;;  %v252_v14 = vld [vmem:[%s19208_s20 + $0x5e8] sm:$0xff] }
  0x25   :  { %367 = vmatpush1.msra.mxu0 %v90_v50  ;;  %438 = vmatpush1.msra.mxu1 %v92_v51  ;;  %v255_v13 = vld [vmem:[%s19208_s20 + $0x600] sm:$0xff]  ;;  %v254_v15 = vld [vmem:[%s19208_s20 + $0x5f8] sm:$0xff]  ;;  %v244_v16 = vld [vmem:[%s19208_s20 + $0x5a8] sm:$0xff] }
  0x26   :  { %368 = vmatprep.subr.mxu0 %v82_v52  ;;  %439 = vmatprep.subr.mxu1 %v84_v53  ;;  %v246_v17 = vld [vmem:[%s19208_s20 + $0x5b8] sm:$0xff]  ;;  %v243_v18 = vld [vmem:[%s19208_s20 + $0x5a0] sm:$0xff]  ;;  %v245_v19 = vld [vmem:[%s19208_s20 + $0x5b0] sm:$0xff] }
  0x27   :  { %369 = vmatpush1.msra.mxu0 %v81_v54  ;;  %440 = vmatpush1.msra.mxu1 %v83_v55  ;;  %v235_v20 = vld [vmem:[%s19208_s20 + $0x560] sm:$0xff]  ;;  %v237_v21 = vld [vmem:[%s19208_s20 + $0x570] sm:$0xff]  ;;  %v234_v22 = vld [vmem:[%s19208_s20 + $0x558] sm:$0xff] }
  0x28   :  { %370 = vmatprep.subr.mxu0 %v73_v56  ;;  %441 = vmatprep.subr.mxu1 %v75_v57  ;;  %v236_v23 = vld [vmem:[%s19208_s20 + $0x568] sm:$0xff]  ;;  %v226_v24 = vld [vmem:[%s19208_s20 + $0x518] sm:$0xff]  ;;  %v225_v26 = vld [vmem:[%s19208_s20 + $0x510] sm:$0xff] }
  0x29   :  { %371 = vmatpush1.msra.mxu0 %v72_v58  ;;  %442 = vmatpush1.msra.mxu1 %v74_v59  ;;  %v228_v25 = vld [vmem:[%s19208_s20 + $0x528] sm:$0xff]  ;;  %v227_v27 = vld [vmem:[%s19208_s20 + $0x520] sm:$0xff]  ;;  %v217_v29 = vld [vmem:[%s19208_s20 + $0x4d0] sm:$0xff] }
  0x2a   :  { %372 = vmatprep.subr.mxu0 %v64_v60  ;;  %443 = vmatprep.subr.mxu1 %v66_v61  ;;  %v8941_v28 = vld [vmem:[%s19209_s22] sm:$0xff]  ;;  %v216_v31 = vld [vmem:[%s19208_s20 + $0x4c8] sm:$0xff]  ;;  %v218_v32 = vld [vmem:[%s19208_s20 + $0x4d8] sm:$0xff] }
  0x2b   :  { %373 = vmatpush1.msra.mxu0 %v63_v62  ;;  %444 = vmatpush1.msra.mxu1 %v65_v63  ;;  %v219_v30 = vld [vmem:[%s19208_s20 + $0x4e0] sm:$0xff]  ;;  %v208_v33 = vld [vmem:[%s19208_s20 + $0x488] sm:$0xff]  ;;  %v210_v34 = vld [vmem:[%s19208_s20 + $0x498] sm:$0xff]  ;;  %v8963_v35 = vcombine.high %v8941_v28, %v8941_v28 }
  0x2c   :  { %388 = vmatprep.subr.mxu0 %v280_v0  ;;  %459 = vmatprep.subr.mxu1 %v282_v1  ;;  %v207_v36 = vld [vmem:[%s19208_s20 + $0x480] sm:$0xff]  ;;  %v209_v37 = vld [vmem:[%s19208_s20 + $0x490] sm:$0xff]  ;;  %v202_v40 = vld [vmem:[%s19208_s20 + $0x458] sm:$0xff] }
  0x2d   :  { %389 = vmatpush2.msra.mxu0 %v279_v2  ;;  %460 = vmatpush2.msra.mxu1 %v281_v3  ;;  %v203_v38 = vld [vmem:[%s19208_s20 + $0x460] sm:$0xff]  ;;  %v205_v39 = vld [vmem:[%s19208_s20 + $0x470] sm:$0xff]  ;;  %v204_v41 = vld [vmem:[%s19208_s20 + $0x468] sm:$0xff] }
  0x2e   :  { %390 = vmatprep.subr.mxu0 %v271_v4  ;;  %461 = vmatprep.subr.mxu1 %v273_v5  ;;  %v194_v42 = vld [vmem:[%s19208_s20 + $0x418] sm:$0xff]  ;;  %v196_v43 = vld [vmem:[%s19208_s20 + $0x428] sm:$0xff]  ;;  %v193_v44 = vld [vmem:[%s19208_s20 + $0x410] sm:$0xff] }
  0x2f   :  { %391 = vmatpush2.msra.mxu0 %v270_v6  ;;  %462 = vmatpush2.msra.mxu1 %v272_v7  ;;  %v195_v45 = vld [vmem:[%s19208_s20 + $0x420] sm:$0xff]  ;;  %v185_v46 = vld [vmem:[%s19208_s20 + $0x3d0] sm:$0xff]  ;;  %v184_v48 = vld [vmem:[%s19208_s20 + $0x3c8] sm:$0xff] }
  0x30   :  { %392 = vmatprep.subr.mxu0 %v262_v8  ;;  %463 = vmatprep.subr.mxu1 %v264_v9  ;;  %v187_v47 = vld [vmem:[%s19208_s20 + $0x3e0] sm:$0xff]  ;;  %v186_v49 = vld [vmem:[%s19208_s20 + $0x3d8] sm:$0xff]  ;;  %v176_v50 = vld [vmem:[%s19208_s20 + $0x388] sm:$0xff] }
  0x31   :  { %393 = vmatpush2.msra.mxu0 %v261_v10  ;;  %464 = vmatpush2.msra.mxu1 %v263_v11  ;;  %v178_v51 = vld [vmem:[%s19208_s20 + $0x398] sm:$0xff]  ;;  %v175_v52 = vld [vmem:[%s19208_s20 + $0x380] sm:$0xff]  ;;  %v177_v53 = vld [vmem:[%s19208_s20 + $0x390] sm:$0xff] }
  0x32   :  { %394 = vmatprep.subr.mxu0 %v253_v12  ;;  %465 = vmatprep.subr.mxu1 %v255_v13  ;;  %v167_v54 = vld [vmem:[%s19208_s20 + $0x340] sm:$0xff]  ;;  %v169_v55 = vld [vmem:[%s19208_s20 + $0x350] sm:$0xff]  ;;  %v166_v56 = vld [vmem:[%s19208_s20 + $0x338] sm:$0xff] }
  0x33   :  { %395 = vmatpush2.msra.mxu0 %v252_v14  ;;  %466 = vmatpush2.msra.mxu1 %v254_v15  ;;  %v168_v57 = vld [vmem:[%s19208_s20 + $0x348] sm:$0xff]  ;;  %v158_v58 = vld [vmem:[%s19208_s20 + $0x2f8] sm:$0xff]  ;;  %v157_v60 = vld [vmem:[%s19208_s20 + $0x2f0] sm:$0xff] }
  0x34   :  { %396 = vmatprep.subr.mxu0 %v244_v16  ;;  %467 = vmatprep.subr.mxu1 %v246_v17  ;;  %v160_v59 = vld [vmem:[%s19208_s20 + $0x308] sm:$0xff]  ;;  %v159_v61 = vld [vmem:[%s19208_s20 + $0x300] sm:$0xff]  ;;  %v149_v62 = vld [vmem:[%s19208_s20 + $0x2b0] sm:$0xff] }
  0x35   :  { %397 = vmatpush2.msra.mxu0 %v243_v18  ;;  %468 = vmatpush2.msra.mxu1 %v245_v19  ;;  %v151_v63 = vld [vmem:[%s19208_s20 + $0x2c0] sm:$0xff]  ;;  %v148_v0 = vld [vmem:[%s19208_s20 + $0x2a8] sm:$0xff]  ;;  %v150_v1 = vld [vmem:[%s19208_s20 + $0x2b8] sm:$0xff] }
  0x36   :  { %398 = vmatprep.subr.mxu0 %v235_v20  ;;  %469 = vmatprep.subr.mxu1 %v237_v21  ;;  %v140_v2 = vld [vmem:[%s19208_s20 + $0x268] sm:$0xff]  ;;  %v142_v3 = vld [vmem:[%s19208_s20 + $0x278] sm:$0xff]  ;;  %v139_v4 = vld [vmem:[%s19208_s20 + $0x260] sm:$0xff] }
  0x37   :  { %399 = vmatpush2.msra.mxu0 %v234_v22  ;;  %470 = vmatpush2.msra.mxu1 %v236_v23  ;;  %v141_v5 = vld [vmem:[%s19208_s20 + $0x270] sm:$0xff]  ;;  %v131_v6 = vld [vmem:[%s19208_s20 + $0x220] sm:$0xff]  ;;  %v130_v8 = vld [vmem:[%s19208_s20 + $0x218] sm:$0xff] }
  0x38   :  { %400 = vmatprep.subr.mxu0 %v226_v24  ;;  %471 = vmatprep.subr.mxu1 %v228_v25  ;;  %v133_v7 = vld [vmem:[%s19208_s20 + $0x230] sm:$0xff]  ;;  %v132_v9 = vld [vmem:[%s19208_s20 + $0x228] sm:$0xff]  ;;  %v122_v10 = vld [vmem:[%s19208_s20 + $0x1d8] sm:$0xff] }
  0x39   :  { %401 = vmatpush2.msra.mxu0 %v225_v26  ;;  %472 = vmatpush2.msra.mxu1 %v227_v27  ;;  %v124_v11 = vld [vmem:[%s19208_s20 + $0x1e8] sm:$0xff]  ;;  %v121_v12 = vld [vmem:[%s19208_s20 + $0x1d0] sm:$0xff]  ;;  %v123_v13 = vld [vmem:[%s19208_s20 + $0x1e0] sm:$0xff] }
  0x3a   :  { %402 = vmatprep.subr.mxu0 %v217_v29  ;;  %473 = vmatprep.subr.mxu1 %v219_v30  ;;  %v113_v14 = vld [vmem:[%s19208_s20 + $0x190] sm:$0xff]  ;;  %v115_v15 = vld [vmem:[%s19208_s20 + $0x1a0] sm:$0xff]  ;;  %v112_v16 = vld [vmem:[%s19208_s20 + $0x188] sm:$0xff] }
  0x3b   :  { %403 = vmatpush2.msra.mxu0 %v216_v31  ;;  %474 = vmatpush2.msra.mxu1 %v218_v32  ;;  %v114_v17 = vld [vmem:[%s19208_s20 + $0x198] sm:$0xff]  ;;  %v104_v18 = vld [vmem:[%s19208_s20 + $0x148] sm:$0xff]  ;;  %v103_v20 = vld [vmem:[%s19208_s20 + $0x140] sm:$0xff] }
  0x3c   :  { %404 = vmatprep.subr.mxu0 %v208_v33  ;;  %475 = vmatprep.subr.mxu1 %v210_v34  ;;  %v106_v19 = vld [vmem:[%s19208_s20 + $0x158] sm:$0xff]  ;;  %v105_v21 = vld [vmem:[%s19208_s20 + $0x150] sm:$0xff]  ;;  %v95_v22 = vld [vmem:[%s19208_s20 + $0x100] sm:$0xff] }
  0x3d   :  { %405 = vmatpush2.msra.mxu0 %v207_v36  ;;  %8244 = vmatprep.mubr.msk.f32.mxu0 %vm339_vm0, %v8963_v35  ;;  %v97_v23 = vld [vmem:[%s19208_s20 + $0x110] sm:$0xff]  ;;  %v94_v24 = vld [vmem:[%s19208_s20 + $0xf8] sm:$0xff]  ;;  %v96_v25 = vld [vmem:[%s19208_s20 + $0x108] sm:$0xff] }
  0x3e   :  { %476 = vmatpush2.msra.mxu1 %v209_v37  ;;  %8245 = vmatprep.mubr.msk.f32.mxu1 %vm339_vm0, %v8963_v35  ;;  %v86_v26 = vld [vmem:[%s19208_s20 + $0xb8] sm:$0xff]  ;;  %v88_v27 = vld [vmem:[%s19208_s20 + $0xc8] sm:$0xff]  ;;  %v85_v29 = vld [vmem:[%s19208_s20 + $0xb0] sm:$0xff] }
  0x3f   :  { %407 = vmatmul.mubr.f32.vlgmr.msra.gmra.mxu0 %v8941_v28  ;;  %478 = vmatmul.mubr.f32.vlgmr.msra.gmra.mxu1 %v8941_v28  ;;  %v87_v30 = vld [vmem:[%s19208_s20 + $0xc0] sm:$0xff]  ;;  %v77_v31 = vld [vmem:[%s19208_s20 + $0x70] sm:$0xff]  ;;  %v76_v33 = vld [vmem:[%s19208_s20 + $0x68] sm:$0xff] }
  0x40   :  { %484 = vmatprep.subr.mxu0 %v203_v38  ;;  %555 = vmatprep.subr.mxu1 %v205_v39  ;;  %v79_v32 = vld [vmem:[%s19208_s20 + $0x80] sm:$0xff]  ;;  %v78_v34 = vld [vmem:[%s19208_s20 + $0x78] sm:$0xff]  ;;  %v68_v36 = vld [vmem:[%s19208_s20 + $0x28] sm:$0xff] }
  0x41   :  { %485 = vmatpush1.msra.mxu0 %v202_v40  ;;  %556 = vmatpush1.msra.mxu1 %v204_v41  ;;  %v70_v37 = vld [vmem:[%s19208_s20 + $0x38] sm:$0xff]  ;;  %v67_v38 = vld [vmem:[%s19208_s20 + $0x20] sm:$0xff]  ;;  %v69_v39 = vld [vmem:[%s19208_s20 + $0x30] sm:$0xff] }
  0x42   :  { %486 = vmatprep.subr.mxu0 %v194_v42  ;;  %557 = vmatprep.subr.mxu1 %v196_v43  ;;  %v284_v40 = vld [vmem:[%s19208_s20 + $0x6e8] sm:$0xff]  ;;  %v286_v41 = vld [vmem:[%s19208_s20 + $0x6f8] sm:$0xff]  ;;  %v283_v42 = vld [vmem:[%s19208_s20 + $0x6e0] sm:$0xff] }
  0x43   :  { %487 = vmatpush1.msra.mxu0 %v193_v44  ;;  %558 = vmatpush1.msra.mxu1 %v195_v45  ;;  %v285_v43 = vld [vmem:[%s19208_s20 + $0x6f0] sm:$0xff]  ;;  %v275_v44 = vld [vmem:[%s19208_s20 + $0x6a0] sm:$0xff] }
  0x44   :  { %488 = vmatprep.subr.mxu0 %v185_v46  ;;  %559 = vmatprep.subr.mxu1 %v187_v47  ;;  %v277_v45 = vld [vmem:[%s19208_s20 + $0x6b0] sm:$0xff]  ;;  %v274_v46 = vld [vmem:[%s19208_s20 + $0x698] sm:$0xff]  ;;  %v276_v47 = vld [vmem:[%s19208_s20 + $0x6a8] sm:$0xff] }
  0x45   :  { %489 = vmatpush1.msra.mxu0 %v184_v48  ;;  %560 = vmatpush1.msra.mxu1 %v186_v49  ;;  %v266_v48 = vld [vmem:[%s19208_s20 + $0x658] sm:$0xff]  ;;  %v265_v49 = vld [vmem:[%s19208_s20 + $0x650] sm:$0xff] }
  0x46   :  { %490 = vmatprep.subr.mxu0 %v176_v50  ;;  %561 = vmatprep.subr.mxu1 %v178_v51  ;;  %v268_v50 = vld [vmem:[%s19208_s20 + $0x668] sm:$0xff]  ;;  %v257_v51 = vld [vmem:[%s19208_s20 + $0x610] sm:$0xff] }
  0x47   :  { %491 = vmatpush1.msra.mxu0 %v175_v52  ;;  %562 = vmatpush1.msra.mxu1 %v177_v53  ;;  %v267_v52 = vld [vmem:[%s19208_s20 + $0x660] sm:$0xff]  ;;  %v256_v53 = vld [vmem:[%s19208_s20 + $0x608] sm:$0xff] }
  0x48   :  { %492 = vmatprep.subr.mxu0 %v167_v54  ;;  %563 = vmatprep.subr.mxu1 %v169_v55  ;;  %v259_v54 = vld [vmem:[%s19208_s20 + $0x620] sm:$0xff]  ;;  %v248_v55 = vld [vmem:[%s19208_s20 + $0x5c8] sm:$0xff] }
  0x49   :  { %493 = vmatpush1.msra.mxu0 %v166_v56  ;;  %564 = vmatpush1.msra.mxu1 %v168_v57  ;;  %v258_v56 = vld [vmem:[%s19208_s20 + $0x618] sm:$0xff]  ;;  %v247_v57 = vld [vmem:[%s19208_s20 + $0x5c0] sm:$0xff] }
  0x4a   :  { %494 = vmatprep.subr.mxu0 %v158_v58  ;;  %565 = vmatprep.subr.mxu1 %v160_v59  ;;  %v250_v58 = vld [vmem:[%s19208_s20 + $0x5d8] sm:$0xff]  ;;  %v239_v59 = vld [vmem:[%s19208_s20 + $0x580] sm:$0xff] }
  0x4b   :  { %495 = vmatpush1.msra.mxu0 %v157_v60  ;;  %566 = vmatpush1.msra.mxu1 %v159_v61  ;;  %v249_v60 = vld [vmem:[%s19208_s20 + $0x5d0] sm:$0xff]  ;;  %v238_v61 = vld [vmem:[%s19208_s20 + $0x578] sm:$0xff] }
  0x4c   :  { %496 = vmatprep.subr.mxu0 %v149_v62  ;;  %567 = vmatprep.subr.mxu1 %v151_v63  ;;  %v241_v62 = vld [vmem:[%s19208_s20 + $0x590] sm:$0xff]  ;;  %v230_v63 = vld [vmem:[%s19208_s20 + $0x538] sm:$0xff] }
  0x4d   :  { %497 = vmatpush1.msra.mxu0 %v148_v0  ;;  %568 = vmatpush1.msra.mxu1 %v150_v1  ;;  %v240_v0 = vld [vmem:[%s19208_s20 + $0x588] sm:$0xff]  ;;  %v229_v1 = vld [vmem:[%s19208_s20 + $0x530] sm:$0xff] }
  0x4e   :  { %498 = vmatprep.subr.mxu0 %v140_v2  ;;  %569 = vmatprep.subr.mxu1 %v142_v3  ;;  %v232_v2 = vld [vmem:[%s19208_s20 + $0x548] sm:$0xff]  ;;  %v221_v3 = vld [vmem:[%s19208_s20 + $0x4f0] sm:$0xff] }
  0x4f   :  { %499 = vmatpush1.msra.mxu0 %v139_v4  ;;  %570 = vmatpush1.msra.mxu1 %v141_v5  ;;  %v231_v4 = vld [vmem:[%s19208_s20 + $0x540] sm:$0xff]  ;;  %v220_v5 = vld [vmem:[%s19208_s20 + $0x4e8] sm:$0xff] }
  0x50   :  { %500 = vmatprep.subr.mxu0 %v131_v6  ;;  %571 = vmatprep.subr.mxu1 %v133_v7  ;;  %v223_v6 = vld [vmem:[%s19208_s20 + $0x500] sm:$0xff]  ;;  %v212_v7 = vld [vmem:[%s19208_s20 + $0x4a8] sm:$0xff] }
  0x51   :  { %501 = vmatpush1.msra.mxu0 %v130_v8  ;;  %572 = vmatpush1.msra.mxu1 %v132_v9  ;;  %v222_v8 = vld [vmem:[%s19208_s20 + $0x4f8] sm:$0xff]  ;;  %v211_v9 = vld [vmem:[%s19208_s20 + $0x4a0] sm:$0xff] }
  0x52   :  { %502 = vmatprep.subr.mxu0 %v122_v10  ;;  %573 = vmatprep.subr.mxu1 %v124_v11  ;;  %v214_v10 = vld [vmem:[%s19208_s20 + $0x4b8] sm:$0xff] }
  0x53   :  { %503 = vmatpush1.msra.mxu0 %v121_v12  ;;  %574 = vmatpush1.msra.mxu1 %v123_v13  ;;  %v206_v11 = vld [vmem:[%s19208_s20 + $0x478] sm:$0xff]  ;;  %v213_v12 = vld [vmem:[%s19208_s20 + $0x4b0] sm:$0xff]  ;;  %v8560_v13 = vmov 0.0  }
  0x54   :  { %504 = vmatprep.subr.mxu0 %v113_v14  ;;  %575 = vmatprep.subr.mxu1 %v115_v15  ;;  %v197_v14 = vld [vmem:[%s19208_s20 + $0x430] sm:$0xff]  ;;  %v188_v15 = vld [vmem:[%s19208_s20 + $0x3e8] sm:$0xff] }
  0x55   :  { %505 = vmatpush1.msra.mxu0 %v112_v16  ;;  %576 = vmatpush1.msra.mxu1 %v114_v17  ;;  %v886_v16 = vld [vmem:[%s19210_s25 + $0x5a8] sm:$0xff]  ;;  %v885_v17 = vld [vmem:[%s19210_s25 + $0x5a0] sm:$0xff] }
  0x56   :  { %506 = vmatprep.subr.mxu0 %v104_v18  ;;  %577 = vmatprep.subr.mxu1 %v106_v19  ;;  %v179_v18 = vld [vmem:[%s19208_s20 + $0x3a0] sm:$0xff]  ;;  %v874_v19 = vld [vmem:[%s19210_s25 + $0x548] sm:$0xff] }
  0x57   :  { %507 = vmatpush1.msra.mxu0 %v103_v20  ;;  %578 = vmatpush1.msra.mxu1 %v105_v21  ;;  %v873_v20 = vld [vmem:[%s19210_s25 + $0x540] sm:$0xff]  ;;  %v170_v21 = vld [vmem:[%s19208_s20 + $0x358] sm:$0xff] }
  0x58   :  { %508 = vmatprep.subr.mxu0 %v95_v22  ;;  %579 = vmatprep.subr.mxu1 %v97_v23  ;;  %v862_v22 = vld [vmem:[%s19210_s25 + $0x4e8] sm:$0xff]  ;;  %v861_v23 = vld [vmem:[%s19210_s25 + $0x4e0] sm:$0xff] }
  0x59   :  { %509 = vmatpush1.msra.mxu0 %v94_v24  ;;  %580 = vmatpush1.msra.mxu1 %v96_v25  ;;  %v161_v24 = vld [vmem:[%s19208_s20 + $0x310] sm:$0xff]  ;;  %v850_v25 = vld [vmem:[%s19210_s25 + $0x488] sm:$0xff] }
  0x5a   :  { %510 = vmatprep.subr.mxu0 %v86_v26  ;;  %581 = vmatprep.subr.mxu1 %v88_v27  ;;  %v849_v26 = vld [vmem:[%s19210_s25 + $0x480] sm:$0xff]  ;;  %v152_v27 = vld [vmem:[%s19208_s20 + $0x2c8] sm:$0xff] }
  0x5b   :  { %511 = vmatpush1.msra.mxu0 %v85_v29  ;;  %582 = vmatpush1.msra.mxu1 %v87_v30  ;;  %v838_v29 = vld [vmem:[%s19210_s25 + $0x428] sm:$0xff]  ;;  %v837_v30 = vld [vmem:[%s19210_s25 + $0x420] sm:$0xff] }
  0x5c   :  { %512 = vmatprep.subr.mxu0 %v77_v31  ;;  %583 = vmatprep.subr.mxu1 %v79_v32  ;;  %v143_v31 = vld [vmem:[%s19208_s20 + $0x280] sm:$0xff]  ;;  %v826_v32 = vld [vmem:[%s19210_s25 + $0x3c8] sm:$0xff] }
  0x5d   :  { %513 = vmatpush1.msra.mxu0 %v76_v33  ;;  %584 = vmatpush1.msra.mxu1 %v78_v34  ;;  %v825_v33 = vld [vmem:[%s19210_s25 + $0x3c0] sm:$0xff]  ;;  %v134_v34 = vld [vmem:[%s19208_s20 + $0x238] sm:$0xff] }
  0x5e   :  { %514 = vmatprep.subr.mxu0 %v68_v36  ;;  %585 = vmatprep.subr.mxu1 %v70_v37  ;;  %v814_v36 = vld [vmem:[%s19210_s25 + $0x368] sm:$0xff]  ;;  %v813_v37 = vld [vmem:[%s19210_s25 + $0x360] sm:$0xff] }
  0x5f   :  { %515 = vmatpush1.msra.mxu0 %v67_v38  ;;  %586 = vmatpush1.msra.mxu1 %v69_v39  ;;  %v125_v38 = vld [vmem:[%s19208_s20 + $0x1f0] sm:$0xff]  ;;  %v802_v39 = vld [vmem:[%s19210_s25 + $0x308] sm:$0xff] }
  0x60   :  { %530 = vmatprep.subr.mxu0 %v284_v40  ;;  %601 = vmatprep.subr.mxu1 %v286_v41  ;;  %v801_v40 = vld [vmem:[%s19210_s25 + $0x300] sm:$0xff]  ;;  %v116_v41 = vld [vmem:[%s19208_s20 + $0x1a8] sm:$0xff] }
  0x61   :  { %531 = vmatpush2.msra.mxu0 %v283_v42  ;;  %602 = vmatpush2.msra.mxu1 %v285_v43  ;;  %v790_v42 = vld [vmem:[%s19210_s25 + $0x2a8] sm:$0xff]  ;;  %v789_v43 = vld [vmem:[%s19210_s25 + $0x2a0] sm:$0xff] }
  0x62   :  { %532 = vmatprep.subr.mxu0 %v275_v44  ;;  %603 = vmatprep.subr.mxu1 %v277_v45  ;;  %v107_v44 = vld [vmem:[%s19208_s20 + $0x160] sm:$0xff]  ;;  %v778_v45 = vld [vmem:[%s19210_s25 + $0x248] sm:$0xff] }
  0x63   :  { %533 = vmatpush2.msra.mxu0 %v274_v46  ;;  %604 = vmatpush2.msra.mxu1 %v276_v47  ;;  %v777_v46 = vld [vmem:[%s19210_s25 + $0x240] sm:$0xff]  ;;  %v98_v47 = vld [vmem:[%s19208_s20 + $0x118] sm:$0xff] }
  0x64   :  { %534 = vmatprep.subr.mxu0 %v266_v48  ;;  %8246 = vmatprep.mubr.msk.f32.mxu0 %vm339_vm0, %v8963_v35  ;;  %v766_v48 = vld [vmem:[%s19210_s25 + $0x1e8] sm:$0xff] }
  0x65   :  { %535 = vmatpush2.msra.mxu0 %v265_v49  ;;  %605 = vmatprep.subr.mxu1 %v268_v50  ;;  %v765_v49 = vld [vmem:[%s19210_s25 + $0x1e0] sm:$0xff]  ;;  %v89_v50 = vld [vmem:[%s19208_s20 + $0xd0] sm:$0xff] }
  0x66   :  { %536 = vmatprep.subr.mxu0 %v257_v51  ;;  %606 = vmatpush2.msra.mxu1 %v267_v52  ;;  %v754_v51 = vld [vmem:[%s19210_s25 + $0x188] sm:$0xff]  ;;  %v753_v52 = vld [vmem:[%s19210_s25 + $0x180] sm:$0xff] }
  0x67   :  { %537 = vmatpush2.msra.mxu0 %v256_v53  ;;  %607 = vmatprep.subr.mxu1 %v259_v54  ;;  %v80_v53 = vld [vmem:[%s19208_s20 + $0x88] sm:$0xff] }
  0x68   :  { %538 = vmatprep.subr.mxu0 %v248_v55  ;;  %608 = vmatpush2.msra.mxu1 %v258_v56  ;;  %v742_v54 = vld [vmem:[%s19210_s25 + $0x128] sm:$0xff]  ;;  %v741_v55 = vld [vmem:[%s19210_s25 + $0x120] sm:$0xff] }
  0x69   :  { %539 = vmatpush2.msra.mxu0 %v247_v57  ;;  %609 = vmatprep.subr.mxu1 %v250_v58  ;;  %v71_v56 = vld [vmem:[%s19208_s20 + $0x40] sm:$0xff]  ;;  %v730_v57 = vld [vmem:[%s19210_s25 + $0xc8] sm:$0xff] }
  0x6a   :  { %540 = vmatprep.subr.mxu0 %v239_v59  ;;  %610 = vmatpush2.msra.mxu1 %v249_v60  ;;  %v729_v58 = vld [vmem:[%s19210_s25 + $0xc0] sm:$0xff]  ;;  %v718_v60 = vld [vmem:[%s19210_s25 + $0x68] sm:$0xff] }
  0x6b   :  { %541 = vmatpush2.msra.mxu0 %v238_v61  ;;  %611 = vmatprep.subr.mxu1 %v241_v62  ;;  %v287_v59 = vld [vmem:[%s19208_s20 + $0x700] sm:$0xff]  ;;  %v278_v62 = vld [vmem:[%s19208_s20 + $0x6b8] sm:$0xff] }
  0x6c   :  { %542 = vmatprep.subr.mxu0 %v230_v63  ;;  %612 = vmatpush2.msra.mxu1 %v240_v0  ;;  %v717_v61 = vld [vmem:[%s19210_s25 + $0x60] sm:$0xff]  ;;  %v706_v63 = vld [vmem:[%s19210_s25 + $0x8] sm:$0xff] }
  0x6d   :  { %543 = vmatpush2.msra.mxu0 %v229_v1  ;;  %613 = vmatprep.subr.mxu1 %v232_v2  ;;  %v705_v0 = vld [vmem:[%s19210_s25] sm:$0xff]  ;;  %v269_v1 = vld [vmem:[%s19208_s20 + $0x670] sm:$0xff]  ;;  %v1078_v2 = vld [vmem:[%s19210_s25 + $0xba8] sm:$0xff] }
  0x6e   :  { %544 = vmatprep.subr.mxu0 %v221_v3  ;;  %614 = vmatpush2.msra.mxu1 %v231_v4  ;;  %v1077_v3 = vld [vmem:[%s19210_s25 + $0xba0] sm:$0xff]  ;;  %v260_v4 = vld [vmem:[%s19208_s20 + $0x628] sm:$0xff] }
  0x6f   :  { %545 = vmatpush2.msra.mxu0 %v220_v5  ;;  %615 = vmatprep.subr.mxu1 %v223_v6  ;;  %v1066_v5 = vld [vmem:[%s19210_s25 + $0xb48] sm:$0xff]  ;;  %v1065_v6 = vld [vmem:[%s19210_s25 + $0xb40] sm:$0xff] }
  0x70   :  { %546 = vmatprep.subr.mxu0 %v212_v7  ;;  %616 = vmatpush2.msra.mxu1 %v222_v8  ;;  %v251_v7 = vld [vmem:[%s19208_s20 + $0x5e0] sm:$0xff]  ;;  %v1054_v8 = vld [vmem:[%s19210_s25 + $0xae8] sm:$0xff] }
  0x71   :  { %547 = vmatpush2.msra.mxu0 %v211_v9  ;;  %617 = vmatprep.subr.mxu1 %v214_v10  ;;  %v1053_v9 = vld [vmem:[%s19210_s25 + $0xae0] sm:$0xff]  ;;  %v242_v10 = vld [vmem:[%s19208_s20 + $0x598] sm:$0xff] }
  0x72   :  { %549 = vmatmul.mubr.f32.vlgmr.msra.gmra.mxu0 %v8941_v28  ;;  %626 = vmatprep.subr.mxu0 %v8560_v13 }
  0x73   :  { %627 = vmatpush1.msra.mxu0 %v206_v11  ;;  %618 = vmatpush2.msra.mxu1 %v213_v12  ;;  %v1042_v11 = vld [vmem:[%s19210_s25 + $0xa88] sm:$0xff]  ;;  %v1041_v12 = vld [vmem:[%s19210_s25 + $0xa80] sm:$0xff] }
  0x74   :  { %628 = vmatprep.subr.mxu0 %v8560_v13  ;;  %8247 = vmatprep.mubr.msk.f32.mxu1 %vm339_vm0, %v8963_v35 }
  0x75   :  { %629 = vmatpush1.msra.mxu0 %v197_v14  ;;  %620 = vmatmul.mubr.f32.vlgmr.msra.gmra.mxu1 %v8941_v28  ;;  %v233_v14 = vld [vmem:[%s19208_s20 + $0x550] sm:$0xff] }
  0x76   :  { %630 = vmatprep.subr.mxu0 %v8560_v13  ;;  %8248 = vmatprep.mubr.msk.f32.mxu0 %vm339_vm0, %v8963_v35 }
  0x77   :  { %631 = vmatpush1.msra.mxu0 %v188_v15  ;;  %2497 = vmatprep.subr.mxu1 %v886_v16  ;;  %v1030_v15 = vld [vmem:[%s19210_s25 + $0xa28] sm:$0xff]  ;;  %v1029_v16 = vld [vmem:[%s19210_s25 + $0xa20] sm:$0xff] }
  0x78   :  { %632 = vmatprep.subr.mxu0 %v8560_v13  ;;  %2498 = vmatpush1.msra.mxu1 %v885_v17  ;;  %v224_v17 = vld [vmem:[%s19208_s20 + $0x508] sm:$0xff] }
  0x79   :  { %633 = vmatpush1.msra.mxu0 %v179_v18  ;;  %2499 = vmatprep.subr.mxu1 %v874_v19  ;;  %v1018_v18 = vld [vmem:[%s19210_s25 + $0x9c8] sm:$0xff]  ;;  %v1017_v19 = vld [vmem:[%s19210_s25 + $0x9c0] sm:$0xff] }
  0x7a   :  { %634 = vmatprep.subr.mxu0 %v8560_v13  ;;  %2500 = vmatpush1.msra.mxu1 %v873_v20  ;;  %v215_v20 = vld [vmem:[%s19208_s20 + $0x4c0] sm:$0xff] }
  0x7b   :  { %635 = vmatpush1.msra.mxu0 %v170_v21  ;;  %2501 = vmatprep.subr.mxu1 %v862_v22  ;;  %v1006_v21 = vld [vmem:[%s19210_s25 + $0x968] sm:$0xff] }
  0x7c   :  { %636 = vmatprep.subr.mxu0 %v8560_v13  ;;  %2502 = vmatpush1.msra.mxu1 %v861_v23  ;;  %v1270_v22 = vld [vmem:[%s19210_s25 + $0x11a8] sm:$0xff]  ;;  %v1269_v23 = vld [vmem:[%s19210_s25 + $0x11a0] sm:$0xff] }
  0x7d   :  { %637 = vmatpush1.msra.mxu0 %v161_v24  ;;  %2503 = vmatprep.subr.mxu1 %v850_v25  ;;  %v1005_v24 = vld [vmem:[%s19210_s25 + $0x960] sm:$0xff]  ;;  %v1258_v25 = vld [vmem:[%s19210_s25 + $0x1148] sm:$0xff] }
  0x7e   :  { %638 = vmatprep.subr.mxu0 %v8560_v13  ;;  %2504 = vmatpush1.msra.mxu1 %v849_v26  ;;  %v994_v26 = vld [vmem:[%s19210_s25 + $0x908] sm:$0xff] }
  0x7f   :  { %639 = vmatpush1.msra.mxu0 %v152_v27  ;;  %2505 = vmatprep.subr.mxu1 %v838_v29  ;;  %v1257_v27 = vld [vmem:[%s19210_s25 + $0x1140] sm:$0xff] }
  0x80   :  { %640 = vmatprep.subr.mxu0 %v8560_v13  ;;  %2506 = vmatpush1.msra.mxu1 %v837_v30  ;;  %v993_v29 = vld [vmem:[%s19210_s25 + $0x900] sm:$0xff]  ;;  %v1246_v30 = vld [vmem:[%s19210_s25 + $0x10e8] sm:$0xff] }
  0x81   :  { %641 = vmatpush1.msra.mxu0 %v143_v31  ;;  %2507 = vmatprep.subr.mxu1 %v826_v32  ;;  %v982_v31 = vld [vmem:[%s19210_s25 + $0x8a8] sm:$0xff]  ;;  %v981_v32 = vld [vmem:[%s19210_s25 + $0x8a0] sm:$0xff] }
  0x82   :  { %642 = vmatprep.subr.mxu0 %v8560_v13  ;;  %2508 = vmatpush1.msra.mxu1 %v825_v33  ;;  %v1234_v33 = vld [vmem:[%s19210_s25 + $0x1088] sm:$0xff] }
  0x83   :  { %643 = vmatpush1.msra.mxu0 %v134_v34  ;;  %2509 = vmatprep.subr.mxu1 %v814_v36  ;;  %v970_v34 = vld [vmem:[%s19210_s25 + $0x848] sm:$0xff]  ;;  %v1233_v36 = vld [vmem:[%s19210_s25 + $0x1080] sm:$0xff] }
  0x84   :  { %644 = vmatprep.subr.mxu0 %v8560_v13  ;;  %2510 = vmatpush1.msra.mxu1 %v813_v37  ;;  %v969_v37 = vld [vmem:[%s19210_s25 + $0x840] sm:$0xff] }
  0x85   :  { %645 = vmatpush1.msra.mxu0 %v125_v38  ;;  %2511 = vmatprep.subr.mxu1 %v802_v39  ;;  %v1222_v38 = vld [vmem:[%s19210_s25 + $0x1028] sm:$0xff] }
  0x86   :  { %646 = vmatprep.subr.mxu0 %v8560_v13  ;;  %2512 = vmatpush1.msra.mxu1 %v801_v40  ;;  %v958_v39 = vld [vmem:[%s19210_s25 + $0x7e8] sm:$0xff]  ;;  %v1221_v40 = vld [vmem:[%s19210_s25 + $0x1020] sm:$0xff] }
  0x87   :  { %647 = vmatpush1.msra.mxu0 %v116_v41  ;;  %2513 = vmatprep.subr.mxu1 %v790_v42  ;;  %v957_v41 = vld [vmem:[%s19210_s25 + $0x7e0] sm:$0xff]  ;;  %v1210_v42 = vld [vmem:[%s19210_s25 + $0xfc8] sm:$0xff] }
  0x88   :  { %648 = vmatprep.subr.mxu0 %v8560_v13  ;;  %2514 = vmatpush1.msra.mxu1 %v789_v43  ;;  %v946_v43 = vld [vmem:[%s19210_s25 + $0x788] sm:$0xff] }
  0x89   :  { %649 = vmatpush1.msra.mxu0 %v107_v44  ;;  %2515 = vmatprep.subr.mxu1 %v778_v45  ;;  %v1209_v44 = vld [vmem:[%s19210_s25 + $0xfc0] sm:$0xff] }
  0x8a   :  { %650 = vmatprep.subr.mxu0 %v8560_v13  ;;  %2516 = vmatpush1.msra.mxu1 %v777_v46  ;;  %v945_v45 = vld [vmem:[%s19210_s25 + $0x780] sm:$0xff]  ;;  %v1198_v46 = vld [vmem:[%s19210_s25 + $0xf68] sm:$0xff] }
  0x8b   :  { %651 = vmatpush1.msra.mxu0 %v98_v47  ;;  %2517 = vmatprep.subr.mxu1 %v766_v48  ;;  %v934_v47 = vld [vmem:[%s19210_s25 + $0x728] sm:$0xff]  ;;  %v1197_v48 = vld [vmem:[%s19210_s25 + $0xf60] sm:$0xff] }
  0x8c   :  { %652 = vmatprep.subr.mxu0 %v8560_v13  ;;  %2518 = vmatpush1.msra.mxu1 %v765_v49  ;;  %v933_v49 = vld [vmem:[%s19210_s25 + $0x720] sm:$0xff] }
  0x8d   :  { %653 = vmatpush1.msra.mxu0 %v89_v50  ;;  %2519 = vmatprep.subr.mxu1 %v754_v51  ;;  %v1186_v50 = vld [vmem:[%s19210_s25 + $0xf08] sm:$0xff] }
  0x8e   :  { %654 = vmatprep.subr.mxu0 %v8560_v13  ;;  %2520 = vmatpush1.msra.mxu1 %v753_v52  ;;  %v922_v51 = vld [vmem:[%s19210_s25 + $0x6c8] sm:$0xff]  ;;  %v1185_v52 = vld [vmem:[%s19210_s25 + $0xf00] sm:$0xff] }
  0x8f   :  { %655 = vmatpush1.msra.mxu0 %v80_v53  ;;  %2521 = vmatprep.subr.mxu1 %v742_v54  ;;  %v921_v53 = vld [vmem:[%s19210_s25 + $0x6c0] sm:$0xff]  ;;  %v1174_v54 = vld [vmem:[%s19210_s25 + $0xea8] sm:$0xff] }
  0x90   :  { %656 = vmatprep.subr.mxu0 %v8560_v13  ;;  %2522 = vmatpush1.msra.mxu1 %v741_v55  ;;  %v910_v55 = vld [vmem:[%s19210_s25 + $0x668] sm:$0xff] }
  0x91   :  { %657 = vmatpush1.msra.mxu0 %v71_v56  ;;  %2523 = vmatprep.subr.mxu1 %v730_v57  ;;  %v1173_v56 = vld [vmem:[%s19210_s25 + $0xea0] sm:$0xff] }
  0x92   :  { %672 = vmatprep.subr.mxu0 %v8560_v13  ;;  %2524 = vmatpush1.msra.mxu1 %v729_v58  ;;  %v909_v57 = vld [vmem:[%s19210_s25 + $0x660] sm:$0xff]  ;;  %v1162_v58 = vld [vmem:[%s19210_s25 + $0xe48] sm:$0xff] }
  0x93   :  { %673 = vmatpush2.msra.mxu0 %v287_v59  ;;  %2525 = vmatprep.subr.mxu1 %v718_v60  ;;  %v898_v59 = vld [vmem:[%s19210_s25 + $0x608] sm:$0xff]  ;;  %v1161_v60 = vld [vmem:[%s19210_s25 + $0xe40] sm:$0xff] }
  0x94   :  { %674 = vmatprep.subr.mxu0 %v8560_v13  ;;  %2526 = vmatpush1.msra.mxu1 %v717_v61  ;;  %v897_v61 = vld [vmem:[%s19210_s25 + $0x600] sm:$0xff] }
  0x95   :  { %675 = vmatpush2.msra.mxu0 %v278_v62  ;;  %2527 = vmatprep.subr.mxu1 %v706_v63  ;;  %v1150_v62 = vld [vmem:[%s19210_s25 + $0xde8] sm:$0xff] }
  0x96   :  { %676 = vmatprep.subr.mxu0 %v8560_v13  ;;  %2528 = vmatpush1.msra.mxu1 %v705_v0  ;;  %v1654_v63 = vld [vmem:[%s19210_s25 + $0x1da8] sm:$0xff]  ;;  %v1149_v0 = vld [vmem:[%s19210_s25 + $0xde0] sm:$0xff] }
  0x97   :  { %677 = vmatpush2.msra.mxu0 %v269_v1  ;;  %2529 = vmatprep.subr.mxu1 %v1078_v2  ;;  %v1138_v1 = vld [vmem:[%s19210_s25 + $0xd88] sm:$0xff]  ;;  %v1137_v2 = vld [vmem:[%s19210_s25 + $0xd80] sm:$0xff] }
  0x98   :  { %678 = vmatprep.subr.mxu0 %v8560_v13  ;;  %2530 = vmatpush2.msra.mxu1 %v1077_v3  ;;  %v1126_v3 = vld [vmem:[%s19210_s25 + $0xd28] sm:$0xff] }
  0x99   :  { %679 = vmatpush2.msra.mxu0 %v260_v4  ;;  %2531 = vmatprep.subr.mxu1 %v1066_v5  ;;  %v1125_v4 = vld [vmem:[%s19210_s25 + $0xd20] sm:$0xff]  ;;  %v1114_v5 = vld [vmem:[%s19210_s25 + $0xcc8] sm:$0xff] }
  0x9a   :  { %680 = vmatprep.subr.mxu0 %v8560_v13  ;;  %2532 = vmatpush2.msra.mxu1 %v1065_v6  ;;  %v1113_v6 = vld [vmem:[%s19210_s25 + $0xcc0] sm:$0xff] }
  0x9b   :  { %681 = vmatpush2.msra.mxu0 %v251_v7  ;;  %2533 = vmatprep.subr.mxu1 %v1054_v8  ;;  %v1102_v7 = vld [vmem:[%s19210_s25 + $0xc68] sm:$0xff]  ;;  %v1101_v8 = vld [vmem:[%s19210_s25 + $0xc60] sm:$0xff] }
  0x9c   :  { %682 = vmatprep.subr.mxu0 %v8560_v13  ;;  %2534 = vmatpush2.msra.mxu1 %v1053_v9  ;;  %v1090_v9 = vld [vmem:[%s19210_s25 + $0xc08] sm:$0xff] }
  0x9d   :  { %683 = vmatpush2.msra.mxu0 %v242_v10  ;;  %2535 = vmatprep.subr.mxu1 %v1042_v11  ;;  %v1089_v10 = vld [vmem:[%s19210_s25 + $0xc00] sm:$0xff]  ;;  %v1462_v11 = vld [vmem:[%s19210_s25 + $0x17a8] sm:$0xff] }
  0x9e   :  { %684 = vmatprep.subr.mxu0 %v8560_v13  ;;  %2536 = vmatpush2.msra.mxu1 %v1041_v12  ;;  %v1461_v12 = vld [vmem:[%s19210_s25 + $0x17a0] sm:$0xff] }
  0x9f   :  { %685 = vmatpush2.msra.mxu0 %v233_v14  ;;  %2537 = vmatprep.subr.mxu1 %v1030_v15  ;;  %v1450_v14 = vld [vmem:[%s19210_s25 + $0x1748] sm:$0xff]  ;;  %v1449_v15 = vld [vmem:[%s19210_s25 + $0x1740] sm:$0xff] }
  0xa0   :  { %686 = vmatprep.subr.mxu0 %v8560_v13  ;;  %2538 = vmatpush2.msra.mxu1 %v1029_v16  ;;  %v1438_v16 = vld [vmem:[%s19210_s25 + $0x16e8] sm:$0xff] }
  0xa1   :  { %687 = vmatpush2.msra.mxu0 %v224_v17  ;;  %2539 = vmatprep.subr.mxu1 %v1018_v18  ;;  %v1437_v17 = vld [vmem:[%s19210_s25 + $0x16e0] sm:$0xff]  ;;  %v1426_v18 = vld [vmem:[%s19210_s25 + $0x1688] sm:$0xff] }
  0xa2   :  { %688 = vmatprep.subr.mxu0 %v8560_v13  ;;  %2540 = vmatpush2.msra.mxu1 %v1017_v19  ;;  %v1425_v19 = vld [vmem:[%s19210_s25 + $0x1680] sm:$0xff] }
  0xa3   :  { %689 = vmatpush2.msra.mxu0 %v215_v20  ;;  %2541 = vmatprep.subr.mxu1 %v1006_v21  ;;  %v1414_v20 = vld [vmem:[%s19210_s25 + $0x1628] sm:$0xff]  ;;  %v1413_v21 = vld [vmem:[%s19210_s25 + $0x1620] sm:$0xff] }
  0xa4   :  { %691 = vmatmul.mubr.f32.vlgmr.msra.gmra.mxu0 %v8941_v28  ;;  %2568 = vmatprep.subr.mxu0 %v1270_v22  ;;  %v1245_v28 = vld [vmem:[%s19210_s25 + $0x10e0] sm:$0xff]  ;;  %v1402_v22 = vld [vmem:[%s19210_s25 + $0x15c8] sm:$0xff] }
  0xa5   :  { %2569 = vmatpush1.msra.mxu0 %v1269_v23  ;;  %2542 = vmatpush2.msra.mxu1 %v1005_v24  ;;  %v1401_v23 = vld [vmem:[%s19210_s25 + $0x15c0] sm:$0xff]  ;;  %v1390_v24 = vld [vmem:[%s19210_s25 + $0x1568] sm:$0xff] }
  0xa6   :  { %2570 = vmatprep.subr.mxu0 %v1258_v25  ;;  %2543 = vmatprep.subr.mxu1 %v994_v26  ;;  %v1389_v25 = vld [vmem:[%s19210_s25 + $0x1560] sm:$0xff]  ;;  %v1378_v26 = vld [vmem:[%s19210_s25 + $0x1508] sm:$0xff] }
  0xa7   :  { %2571 = vmatpush1.msra.mxu0 %v1257_v27  ;;  %2544 = vmatpush2.msra.mxu1 %v993_v29  ;;  %v1377_v27 = vld [vmem:[%s19210_s25 + $0x1500] sm:$0xff]  ;;  %v1366_v29 = vld [vmem:[%s19210_s25 + $0x14a8] sm:$0xff] }
  0xa8   :  { %2572 = vmatprep.subr.mxu0 %v1246_v30  ;;  %2545 = vmatprep.subr.mxu1 %v982_v31  ;;  %v1365_v30 = vld [vmem:[%s19210_s25 + $0x14a0] sm:$0xff]  ;;  %v1354_v31 = vld [vmem:[%s19210_s25 + $0x1448] sm:$0xff] }
  0xa9   :  { %2573 = vmatpush1.msra.mxu0 %v1245_v28  ;;  %2546 = vmatpush2.msra.mxu1 %v981_v32  ;;  %v1353_v28 = vld [vmem:[%s19210_s25 + $0x1440] sm:$0xff]  ;;  %v1342_v32 = vld [vmem:[%s19210_s25 + $0x13e8] sm:$0xff] }
  0xaa   :  { %2574 = vmatprep.subr.mxu0 %v1234_v33  ;;  %2547 = vmatprep.subr.mxu1 %v970_v34  ;;  %v1341_v33 = vld [vmem:[%s19210_s25 + $0x13e0] sm:$0xff]  ;;  %v1330_v34 = vld [vmem:[%s19210_s25 + $0x1388] sm:$0xff] }
  0xab   :  { %2575 = vmatpush1.msra.mxu0 %v1233_v36  ;;  %2548 = vmatpush2.msra.mxu1 %v969_v37  ;;  %v1329_v36 = vld [vmem:[%s19210_s25 + $0x1380] sm:$0xff]  ;;  %v1318_v37 = vld [vmem:[%s19210_s25 + $0x1328] sm:$0xff] }
  0xac   :  { %2576 = vmatprep.subr.mxu0 %v1222_v38  ;;  %2549 = vmatprep.subr.mxu1 %v958_v39  ;;  %v1317_v38 = vld [vmem:[%s19210_s25 + $0x1320] sm:$0xff]  ;;  %v1306_v39 = vld [vmem:[%s19210_s25 + $0x12c8] sm:$0xff] }
  0xad   :  { %2577 = vmatpush1.msra.mxu0 %v1221_v40  ;;  %2550 = vmatpush2.msra.mxu1 %v957_v41  ;;  %v1305_v40 = vld [vmem:[%s19210_s25 + $0x12c0] sm:$0xff]  ;;  %v1294_v41 = vld [vmem:[%s19210_s25 + $0x1268] sm:$0xff] }
  0xae   :  { %2578 = vmatprep.subr.mxu0 %v1210_v42  ;;  %2551 = vmatprep.subr.mxu1 %v946_v43  ;;  %v1293_v42 = vld [vmem:[%s19210_s25 + $0x1260] sm:$0xff]  ;;  %v1282_v43 = vld [vmem:[%s19210_s25 + $0x1208] sm:$0xff] }
  0xaf   :  { %2579 = vmatpush1.msra.mxu0 %v1209_v44  ;;  %2552 = vmatpush2.msra.mxu1 %v945_v45  ;;  %v1281_v44 = vld [vmem:[%s19210_s25 + $0x1200] sm:$0xff]  ;;  %v2038_v45 = vld [vmem:[%s19210_s25 + $0x29a8] sm:$0xff] }
  0xb0   :  { %2580 = vmatprep.subr.mxu0 %v1198_v46  ;;  %2553 = vmatprep.subr.mxu1 %v934_v47  ;;  %v292_v46 = vlaneseq }
  0xb1   :  { %2581 = vmatpush1.msra.mxu0 %v1197_v48  ;;  %2554 = vmatpush2.msra.mxu1 %v933_v49 }
  0xb2   :  { %2582 = vmatprep.subr.mxu0 %v1186_v50  ;;  %2555 = vmatprep.subr.mxu1 %v922_v51  ;;  %v9776_v47 = vshrl.u32 %v292_v46, 7  ;;  %v9787_v50 = vld [vmem:[%s19211_s28] sm:$0xff]  ;;  %v1918_v46 = vld [vmem:[%s19210_s25 + $0x25e8] sm:$0xff] }
  0xb3   :  { %2583 = vmatpush1.msra.mxu0 %v1185_v52  ;;  %2556 = vmatpush2.msra.mxu1 %v921_v53 }
  0xb4   :  { %2584 = vmatprep.subr.mxu0 %v1174_v54  ;;  %2557 = vmatprep.subr.mxu1 %v910_v55  ;;  %v9779_v48 = vsub.s32 2, %v9776_v47  ;;  %v9782_v49 = vsub.s32 0, %v9776_v47  ;;  %v9790_v51 = vsub.s32 1, %v9776_v47  ;;  %v9793_v52 = vsub.s32 3, %v9776_v47 }
  0xb5   :  { %2585 = vmatpush1.msra.mxu0 %v1173_v56  ;;  %2558 = vmatpush2.msra.mxu1 %v909_v57 }
  0xb6   :  { %2586 = vmatprep.subr.mxu0 %v1162_v58  ;;  %2559 = vmatprep.subr.mxu1 %v898_v59  ;;  %v303_v53 = vrot.slane %v9787_v50, %v9779_v48  ;;  %v295_v54 = vrot.slane %v9787_v50, %v9782_v49  ;;  %v299_v55 = vrot.slane %v9787_v50, %v9790_v51 }
  0xb7   :  { %2587 = vmatpush1.msra.mxu0 %v1161_v60  ;;  %2560 = vmatpush2.msra.mxu1 %v897_v61  ;;  %v307_v56 = vrot.slane %v9787_v50, %v9793_v52 }
  0xb8   :  { %2588 = vmatprep.subr.mxu0 %v1150_v62  ;;  %2639 = vmatprep.subr.mxu1 %v1654_v63 }
  0xb9   :  { %2589 = vmatpush1.msra.mxu0 %v1149_v0 }
  0xba   :  { %2590 = vmatprep.subr.mxu0 %v1138_v1 }
  0xbb   :  { %2591 = vmatpush1.msra.mxu0 %v1137_v2 }
  0xbc   :  { %2592 = vmatprep.subr.mxu0 %v1126_v3 }
  0xbd   :  { %2593 = vmatpush1.msra.mxu0 %v1125_v4 }
  0xbe   :  { %2594 = vmatprep.subr.mxu0 %v1114_v5  ;;  %v1653_v5 = vld [vmem:[%s19210_s25 + $0x1da0] sm:$0xff] }
  0xbf   :  { %2595 = vmatpush1.msra.mxu0 %v1113_v6  ;;  %v2037_v6 = vld [vmem:[%s19210_s25 + $0x29a0] sm:$0xff] }
  0xc0   :  { %2596 = vmatprep.subr.mxu0 %v1102_v7  ;;  %v1642_v7 = vld [vmem:[%s19210_s25 + $0x1d48] sm:$0xff] }
  0xc1   :  { %2597 = vmatpush1.msra.mxu0 %v1101_v8  ;;  %v2026_v8 = vld [vmem:[%s19210_s25 + $0x2948] sm:$0xff] }
  0xc2   :  { %2598 = vmatprep.subr.mxu0 %v1090_v9  ;;  %v1641_v9 = vld [vmem:[%s19210_s25 + $0x1d40] sm:$0xff] }
  0xc3   :  { %2599 = vmatpush1.msra.mxu0 %v1089_v10  ;;  %v2025_v10 = vld [vmem:[%s19210_s25 + $0x2940] sm:$0xff] }
  0xc4   :  { %2600 = vmatprep.subr.mxu0 %v1462_v11  ;;  %v1630_v11 = vld [vmem:[%s19210_s25 + $0x1ce8] sm:$0xff] }
  0xc5   :  { %2601 = vmatpush2.msra.mxu0 %v1461_v12  ;;  %v2014_v12 = vld [vmem:[%s19210_s25 + $0x28e8] sm:$0xff] }
  0xc6   :  { %2602 = vmatprep.subr.mxu0 %v1450_v14  ;;  %v1629_v14 = vld [vmem:[%s19210_s25 + $0x1ce0] sm:$0xff] }
  0xc7   :  { %2603 = vmatpush2.msra.mxu0 %v1449_v15  ;;  %v2013_v15 = vld [vmem:[%s19210_s25 + $0x28e0] sm:$0xff] }
  0xc8   :  { %2604 = vmatprep.subr.mxu0 %v1438_v16  ;;  %v1618_v16 = vld [vmem:[%s19210_s25 + $0x1c88] sm:$0xff] }
  0xc9   :  { %2605 = vmatpush2.msra.mxu0 %v1437_v17  ;;  %v2002_v17 = vld [vmem:[%s19210_s25 + $0x2888] sm:$0xff] }
  0xca   :  { %2606 = vmatprep.subr.mxu0 %v1426_v18  ;;  %v1617_v18 = vld [vmem:[%s19210_s25 + $0x1c80] sm:$0xff] }
  0xcb   :  { %2607 = vmatpush2.msra.mxu0 %v1425_v19  ;;  %v2001_v19 = vld [vmem:[%s19210_s25 + $0x2880] sm:$0xff] }
  0xcc   :  { %2608 = vmatprep.subr.mxu0 %v1414_v20  ;;  %v1606_v20 = vld [vmem:[%s19210_s25 + $0x1c28] sm:$0xff] }
  0xcd   :  { %2609 = vmatpush2.msra.mxu0 %v1413_v21  ;;  %v1990_v21 = vld [vmem:[%s19210_s25 + $0x2828] sm:$0xff] }
  0xce   :  { %2610 = vmatprep.subr.mxu0 %v1402_v22  ;;  %v1605_v22 = vld [vmem:[%s19210_s25 + $0x1c20] sm:$0xff] }
  0xcf   :  { %2611 = vmatpush2.msra.mxu0 %v1401_v23  ;;  %v1989_v23 = vld [vmem:[%s19210_s25 + $0x2820] sm:$0xff] }
  0xd0   :  { %2612 = vmatprep.subr.mxu0 %v1390_v24  ;;  %v1594_v24 = vld [vmem:[%s19210_s25 + $0x1bc8] sm:$0xff] }
  0xd1   :  { %2613 = vmatpush2.msra.mxu0 %v1389_v25  ;;  %v1978_v25 = vld [vmem:[%s19210_s25 + $0x27c8] sm:$0xff] }
  0xd2   :  { %2614 = vmatprep.subr.mxu0 %v1378_v26  ;;  %v1593_v26 = vld [vmem:[%s19210_s25 + $0x1bc0] sm:$0xff] }
  0xd3   :  { %2615 = vmatpush2.msra.mxu0 %v1377_v27  ;;  %v1977_v27 = vld [vmem:[%s19210_s25 + $0x27c0] sm:$0xff] }
  0xd4   :  { %2616 = vmatprep.subr.mxu0 %v1366_v29  ;;  %v1582_v29 = vld [vmem:[%s19210_s25 + $0x1b68] sm:$0xff] }
  0xd5   :  { %2617 = vmatpush2.msra.mxu0 %v1365_v30  ;;  %v1966_v30 = vld [vmem:[%s19210_s25 + $0x2768] sm:$0xff] }
  0xd6   :  { %2618 = vmatprep.subr.mxu0 %v1354_v31  ;;  %v1581_v31 = vld [vmem:[%s19210_s25 + $0x1b60] sm:$0xff] }
  0xd7   :  { %2619 = vmatpush2.msra.mxu0 %v1353_v28  ;;  %v1965_v28 = vld [vmem:[%s19210_s25 + $0x2760] sm:$0xff] }
  0xd8   :  { %2620 = vmatprep.subr.mxu0 %v1342_v32  ;;  %v1570_v32 = vld [vmem:[%s19210_s25 + $0x1b08] sm:$0xff] }
  0xd9   :  { %2621 = vmatpush2.msra.mxu0 %v1341_v33  ;;  %v1954_v33 = vld [vmem:[%s19210_s25 + $0x2708] sm:$0xff] }
  0xda   :  { %2622 = vmatprep.subr.mxu0 %v1330_v34  ;;  %v1569_v34 = vld [vmem:[%s19210_s25 + $0x1b00] sm:$0xff] }
  0xdb   :  { %2623 = vmatpush2.msra.mxu0 %v1329_v36  ;;  %v1953_v36 = vld [vmem:[%s19210_s25 + $0x2700] sm:$0xff] }
  0xdc   :  { %2624 = vmatprep.subr.mxu0 %v1318_v37  ;;  %v1558_v37 = vld [vmem:[%s19210_s25 + $0x1aa8] sm:$0xff] }
  0xdd   :  { %2625 = vmatpush2.msra.mxu0 %v1317_v38  ;;  %v1942_v38 = vld [vmem:[%s19210_s25 + $0x26a8] sm:$0xff] }
  0xde   :  { %2626 = vmatprep.subr.mxu0 %v1306_v39  ;;  %v1557_v39 = vld [vmem:[%s19210_s25 + $0x1aa0] sm:$0xff] }
  0xdf   :  { %2627 = vmatpush2.msra.mxu0 %v1305_v40  ;;  %v1941_v40 = vld [vmem:[%s19210_s25 + $0x26a0] sm:$0xff] }
  0xe0   :  { %2628 = vmatprep.subr.mxu0 %v1294_v41  ;;  %v1546_v41 = vld [vmem:[%s19210_s25 + $0x1a48] sm:$0xff] }
  0xe1   :  { %2629 = vmatpush2.msra.mxu0 %v1293_v42  ;;  %v1930_v42 = vld [vmem:[%s19210_s25 + $0x2648] sm:$0xff] }
  0xe2   :  { %2630 = vmatprep.subr.mxu0 %v1282_v43  ;;  %v1545_v43 = vld [vmem:[%s19210_s25 + $0x1a40] sm:$0xff] }
  0xe3   :  { %2631 = vmatpush2.msra.mxu0 %v1281_v44  ;;  %v1929_v44 = vld [vmem:[%s19210_s25 + $0x2640] sm:$0xff] }
  0xe4   :  { %2710 = vmatprep.subr.mxu0 %v2038_v45  ;;  %v1534_v45 = vld [vmem:[%s19210_s25 + $0x19e8] sm:$0xff] }
  0xff   :  { %v408_v57 = vpop.f32.mrf.mxu0  ;;  %v479_v58 = vpop.f32.mrf.mxu1 }
 0x100   :  { %v480_v59 = vadd.f32 %v479_v58, %v303_v53  ;;  %v409_v60 = vadd.f32 %v408_v57, %v295_v54  ;;  %v1533_v53 = vld [vmem:[%s19210_s25 + $0x19e0] sm:$0xff] }
 0x101   :  { %v410_v61 = vpop.f32.mrf.mxu0  ;;  %v481_v62 = vpop.f32.mrf.mxu1  ;;  %v1917_v54 = vld [vmem:[%s19210_s25 + $0x25e0] sm:$0xff] }
 0x102   :  { %v411_v63 = vadd.f32 %v410_v61, %v299_v55  ;;  %v482_v0 = vadd.f32 %v481_v62, %v307_v56  ;;  %v9803_v1 = vmax.f32 %v480_v59, 0.0  ;;  %v9809_v4 = vmax.f32 %v409_v60, 0.0  ;;  %v1522_v55 = vld [vmem:[%s19210_s25 + $0x1988] sm:$0xff]  ;;  %v1521_v57 = vld [vmem:[%s19210_s25 + $0x1980] sm:$0xff] }
 0x103   :  { %v1906_v56 = vld [vmem:[%s19210_s25 + $0x2588] sm:$0xff]  ;;  %v1905_v58 = vld [vmem:[%s19210_s25 + $0x2580] sm:$0xff] }
 0x104   :  { %v9805_v2 = vmax.f32 %v411_v63, 0.0  ;;  %v9807_v3 = vmax.f32 %v482_v0, 0.0  ;;  %v1510_v59 = vld [vmem:[%s19210_s25 + $0x1928] sm:$0xff]  ;;  %v1509_v61 = vld [vmem:[%s19210_s25 + $0x1920] sm:$0xff] }
 0x105   :  { %v1894_v60 = vld [vmem:[%s19210_s25 + $0x2528] sm:$0xff]  ;;  %v1893_v62 = vld [vmem:[%s19210_s25 + $0x2520] sm:$0xff] }
 0x106   :  { %2561 = vmatprep.mubr.f32.mxu1 %v9805_v2  ;;  %2632 = vmatprep.mubr.f32.mxu0 %v9807_v3  ;;  %v1498_v63 = vld [vmem:[%s19210_s25 + $0x18c8] sm:$0xff] }
 0x107   :  { %2562 = vmatmul.mubr.f32.vlgmr.msra.gmra.mxu1 %v9809_v4  ;;  %2633 = vmatmul.mubr.f32.vlgmr.msra.gmra.mxu0 %v9803_v1  ;;  %v1882_v0 = vld [vmem:[%s19210_s25 + $0x24c8] sm:$0xff] }
 0x108   :  { %2640 = vmatpush1.msra.mxu1 %v1653_v5  ;;  %2711 = vmatpush1.msra.mxu0 %v2037_v6  ;;  %v1497_v5 = vld [vmem:[%s19210_s25 + $0x18c0] sm:$0xff] }
 0x109   :  { %2641 = vmatprep.subr.mxu1 %v1642_v7  ;;  %2712 = vmatprep.subr.mxu0 %v2026_v8  ;;  %v1881_v6 = vld [vmem:[%s19210_s25 + $0x24c0] sm:$0xff]  ;;  %v1486_v7 = vld [vmem:[%s19210_s25 + $0x1868] sm:$0xff] }
 0x10a   :  { %2642 = vmatpush1.msra.mxu1 %v1641_v9  ;;  %2713 = vmatpush1.msra.mxu0 %v2025_v10  ;;  %v1870_v8 = vld [vmem:[%s19210_s25 + $0x2468] sm:$0xff]  ;;  %v1485_v9 = vld [vmem:[%s19210_s25 + $0x1860] sm:$0xff] }
 0x10b   :  { %2643 = vmatprep.subr.mxu1 %v1630_v11  ;;  %2714 = vmatprep.subr.mxu0 %v2014_v12  ;;  %v1869_v10 = vld [vmem:[%s19210_s25 + $0x2460] sm:$0xff]  ;;  %v1474_v11 = vld [vmem:[%s19210_s25 + $0x1808] sm:$0xff] }
 0x10c   :  { %2644 = vmatpush1.msra.mxu1 %v1629_v14  ;;  %2715 = vmatpush1.msra.mxu0 %v2013_v15  ;;  %v1858_v12 = vld [vmem:[%s19210_s25 + $0x2408] sm:$0xff]  ;;  %v1473_v14 = vld [vmem:[%s19210_s25 + $0x1800] sm:$0xff] }
 0x10d   :  { %2645 = vmatprep.subr.mxu1 %v1618_v16  ;;  %2716 = vmatprep.subr.mxu0 %v2002_v17  ;;  %v1857_v15 = vld [vmem:[%s19210_s25 + $0x2400] sm:$0xff]  ;;  %v1846_v16 = vld [vmem:[%s19210_s25 + $0x23a8] sm:$0xff] }
 0x10e   :  { %2646 = vmatpush1.msra.mxu1 %v1617_v18  ;;  %2717 = vmatpush1.msra.mxu0 %v2001_v19  ;;  %v2230_v17 = vld [vmem:[%s19210_s25 + $0x2fa8] sm:$0xff]  ;;  %v1845_v18 = vld [vmem:[%s19210_s25 + $0x23a0] sm:$0xff] }
 0x10f   :  { %2647 = vmatprep.subr.mxu1 %v1606_v20  ;;  %2718 = vmatprep.subr.mxu0 %v1990_v21  ;;  %v2229_v19 = vld [vmem:[%s19210_s25 + $0x2fa0] sm:$0xff]  ;;  %v1834_v20 = vld [vmem:[%s19210_s25 + $0x2348] sm:$0xff] }
 0x110   :  { %2648 = vmatpush1.msra.mxu1 %v1605_v22  ;;  %2719 = vmatpush1.msra.mxu0 %v1989_v23  ;;  %v2218_v21 = vld [vmem:[%s19210_s25 + $0x2f48] sm:$0xff]  ;;  %v1833_v22 = vld [vmem:[%s19210_s25 + $0x2340] sm:$0xff] }
 0x111   :  { %2649 = vmatprep.subr.mxu1 %v1594_v24  ;;  %2720 = vmatprep.subr.mxu0 %v1978_v25  ;;  %v2217_v23 = vld [vmem:[%s19210_s25 + $0x2f40] sm:$0xff]  ;;  %v1822_v24 = vld [vmem:[%s19210_s25 + $0x22e8] sm:$0xff] }
 0x112   :  { %2650 = vmatpush1.msra.mxu1 %v1593_v26  ;;  %2721 = vmatpush1.msra.mxu0 %v1977_v27  ;;  %v2206_v25 = vld [vmem:[%s19210_s25 + $0x2ee8] sm:$0xff]  ;;  %v1821_v26 = vld [vmem:[%s19210_s25 + $0x22e0] sm:$0xff] }
 0x113   :  { %2651 = vmatprep.subr.mxu1 %v1582_v29  ;;  %2722 = vmatprep.subr.mxu0 %v1966_v30  ;;  %v2205_v27 = vld [vmem:[%s19210_s25 + $0x2ee0] sm:$0xff]  ;;  %v1810_v29 = vld [vmem:[%s19210_s25 + $0x2288] sm:$0xff] }
 0x114   :  { %2652 = vmatpush1.msra.mxu1 %v1581_v31  ;;  %2723 = vmatpush1.msra.mxu0 %v1965_v28  ;;  %v2194_v30 = vld [vmem:[%s19210_s25 + $0x2e88] sm:$0xff]  ;;  %v1809_v31 = vld [vmem:[%s19210_s25 + $0x2280] sm:$0xff] }
 0x115   :  { %2653 = vmatprep.subr.mxu1 %v1570_v32  ;;  %2724 = vmatprep.subr.mxu0 %v1954_v33  ;;  %v2193_v28 = vld [vmem:[%s19210_s25 + $0x2e80] sm:$0xff]  ;;  %v1798_v32 = vld [vmem:[%s19210_s25 + $0x2228] sm:$0xff] }
 0x116   :  { %2654 = vmatpush1.msra.mxu1 %v1569_v34  ;;  %2725 = vmatpush1.msra.mxu0 %v1953_v36  ;;  %v2182_v33 = vld [vmem:[%s19210_s25 + $0x2e28] sm:$0xff]  ;;  %v1797_v34 = vld [vmem:[%s19210_s25 + $0x2220] sm:$0xff] }
 0x117   :  { %2655 = vmatprep.subr.mxu1 %v1558_v37  ;;  %2726 = vmatprep.subr.mxu0 %v1942_v38  ;;  %v2181_v36 = vld [vmem:[%s19210_s25 + $0x2e20] sm:$0xff]  ;;  %v10062_v37 = vsub.s32 5, %v9776_v47  ;;  %v1786_v38 = vld [vmem:[%s19210_s25 + $0x21c8] sm:$0xff] }
 0x118   :  { %2656 = vmatpush1.msra.mxu1 %v1557_v39  ;;  %2727 = vmatpush1.msra.mxu0 %v1941_v40  ;;  %v2170_v39 = vld [vmem:[%s19210_s25 + $0x2dc8] sm:$0xff]  ;;  %v1785_v40 = vld [vmem:[%s19210_s25 + $0x21c0] sm:$0xff] }
 0x119   :  { %2657 = vmatprep.subr.mxu1 %v1546_v41  ;;  %2728 = vmatprep.subr.mxu0 %v1930_v42  ;;  %v2169_v41 = vld [vmem:[%s19210_s25 + $0x2dc0] sm:$0xff]  ;;  %v1774_v42 = vld [vmem:[%s19210_s25 + $0x2168] sm:$0xff] }
 0x11a   :  { %2658 = vmatpush1.msra.mxu1 %v1545_v43  ;;  %2729 = vmatpush1.msra.mxu0 %v1929_v44  ;;  %v2158_v43 = vld [vmem:[%s19210_s25 + $0x2d68] sm:$0xff]  ;;  %v315_v44 = vrot.slane %v9787_v50, %v10062_v37 }
 0x11b   :  { %2659 = vmatprep.subr.mxu1 %v1534_v45  ;;  %2730 = vmatprep.subr.mxu0 %v1918_v46  ;;  %v1773_v45 = vld [vmem:[%s19210_s25 + $0x2160] sm:$0xff] }
 0x11c   :  { %2660 = vmatpush1.msra.mxu1 %v1533_v53  ;;  %2731 = vmatpush1.msra.mxu0 %v1917_v54  ;;  %v2157_v46 = vld [vmem:[%s19210_s25 + $0x2d60] sm:$0xff]  ;;  %v1762_v54 = vld [vmem:[%s19210_s25 + $0x2108] sm:$0xff] }
 0x11d   :  { %2661 = vmatprep.subr.mxu1 %v1522_v55  ;;  %2732 = vmatprep.subr.mxu0 %v1906_v56  ;;  %v2146_v55 = vld [vmem:[%s19210_s25 + $0x2d08] sm:$0xff]  ;;  %v1761_v56 = vld [vmem:[%s19210_s25 + $0x2100] sm:$0xff] }
 0x11e   :  { %2662 = vmatpush1.msra.mxu1 %v1521_v57  ;;  %2733 = vmatpush1.msra.mxu0 %v1905_v58  ;;  %v2145_v57 = vld [vmem:[%s19210_s25 + $0x2d00] sm:$0xff] }
 0x11f   :  { %2663 = vmatprep.subr.mxu1 %v1510_v59  ;;  %2734 = vmatprep.subr.mxu0 %v1894_v60  ;;  %v1750_v59 = vld [vmem:[%s19210_s25 + $0x20a8] sm:$0xff] }
 0x120   :  { %2664 = vmatpush1.msra.mxu1 %v1509_v61  ;;  %2735 = vmatpush1.msra.mxu0 %v1893_v62  ;;  %v2134_v60 = vld [vmem:[%s19210_s25 + $0x2ca8] sm:$0xff]  ;;  %v1749_v62 = vld [vmem:[%s19210_s25 + $0x20a0] sm:$0xff] }
 0x121   :  { %2665 = vmatprep.subr.mxu1 %v1498_v63  ;;  %2736 = vmatprep.subr.mxu0 %v1882_v0  ;;  %v2133_v63 = vld [vmem:[%s19210_s25 + $0x2ca0] sm:$0xff]  ;;  %v1738_v0 = vld [vmem:[%s19210_s25 + $0x2048] sm:$0xff] }
 0x122   :  { %2666 = vmatpush1.msra.mxu1 %v1497_v5  ;;  %2737 = vmatpush1.msra.mxu0 %v1881_v6  ;;  %v2122_v6 = vld [vmem:[%s19210_s25 + $0x2c48] sm:$0xff] }
 0x123   :  { %2667 = vmatprep.subr.mxu1 %v1486_v7  ;;  %2738 = vmatprep.subr.mxu0 %v1870_v8  ;;  %v1737_v7 = vld [vmem:[%s19210_s25 + $0x2040] sm:$0xff]  ;;  %v10128_v8 = vsub.s32 7, %v9776_v47 }
 0x124   :  { %2668 = vmatpush1.msra.mxu1 %v1485_v9  ;;  %2739 = vmatpush1.msra.mxu0 %v1869_v10  ;;  %v2121_v9 = vld [vmem:[%s19210_s25 + $0x2c40] sm:$0xff]  ;;  %v1726_v10 = vld [vmem:[%s19210_s25 + $0x1fe8] sm:$0xff] }
 0x125   :  { %2669 = vmatprep.subr.mxu1 %v1474_v11  ;;  %2740 = vmatprep.subr.mxu0 %v1858_v12  ;;  %v10137_v11 = vsub.s32 6, %v9776_v47 }
 0x126   :  { %2670 = vmatpush1.msra.mxu1 %v1473_v14  ;;  %2741 = vmatpush1.msra.mxu0 %v1857_v15  ;;  %v2110_v14 = vld [vmem:[%s19210_s25 + $0x2be8] sm:$0xff]  ;;  %v1725_v15 = vld [vmem:[%s19210_s25 + $0x1fe0] sm:$0xff] }
 0x127   :  { %2671 = vmatprep.subr.mxu1 %v1846_v16  ;;  %2742 = vmatprep.subr.mxu0 %v2230_v17  ;;  %v10147_v16 = vsub.s32 4, %v9776_v47  ;;  %v2109_v17 = vld [vmem:[%s19210_s25 + $0x2be0] sm:$0xff] }
 0x128   :  { %2672 = vmatpush2.msra.mxu1 %v1845_v18  ;;  %2743 = vmatpush2.msra.mxu0 %v2229_v19  ;;  %v1714_v18 = vld [vmem:[%s19210_s25 + $0x1f88] sm:$0xff]  ;;  %v1713_v47 = vld [vmem:[%s19210_s25 + $0x1f80] sm:$0xff] }
 0x129   :  { %2673 = vmatprep.subr.mxu1 %v1834_v20  ;;  %2744 = vmatprep.subr.mxu0 %v2218_v21  ;;  %v2098_v19 = vld [vmem:[%s19210_s25 + $0x2b88] sm:$0xff]  ;;  %v323_v20 = vrot.slane %v9787_v50, %v10128_v8  ;;  %v2097_v21 = vld [vmem:[%s19210_s25 + $0x2b80] sm:$0xff] }
 0x12a   :  { %2674 = vmatpush2.msra.mxu1 %v1833_v22  ;;  %2745 = vmatpush2.msra.mxu0 %v2217_v23  ;;  %v319_v22 = vrot.slane %v9787_v50, %v10137_v11  ;;  %v1702_v23 = vld [vmem:[%s19210_s25 + $0x1f28] sm:$0xff] }
 0x12b   :  { %2675 = vmatprep.subr.mxu1 %v1822_v24  ;;  %2746 = vmatprep.subr.mxu0 %v2206_v25  ;;  %v2086_v25 = vld [vmem:[%s19210_s25 + $0x2b28] sm:$0xff] }
 0x12c   :  { %2676 = vmatpush2.msra.mxu1 %v1821_v26  ;;  %2747 = vmatpush2.msra.mxu0 %v2205_v27  ;;  %v1701_v26 = vld [vmem:[%s19210_s25 + $0x1f20] sm:$0xff]  ;;  %v311_v27 = vrot.slane %v9787_v50, %v10147_v16 }
 0x12d   :  { %2677 = vmatprep.subr.mxu1 %v1810_v29  ;;  %2748 = vmatprep.subr.mxu0 %v2194_v30  ;;  %v2085_v29 = vld [vmem:[%s19210_s25 + $0x2b20] sm:$0xff]  ;;  %v1690_v30 = vld [vmem:[%s19210_s25 + $0x1ec8] sm:$0xff] }
 0x12e   :  { %2678 = vmatpush2.msra.mxu1 %v1809_v31  ;;  %2749 = vmatpush2.msra.mxu0 %v2193_v28  ;;  %v2074_v28 = vld [vmem:[%s19210_s25 + $0x2ac8] sm:$0xff]  ;;  %v1689_v50 = vld [vmem:[%s19210_s25 + $0x1ec0] sm:$0xff] }
 0x12f   :  { %2679 = vmatprep.subr.mxu1 %v1798_v32  ;;  %2750 = vmatprep.subr.mxu0 %v2182_v33  ;;  %v2073_v33 = vld [vmem:[%s19210_s25 + $0x2ac0] sm:$0xff] }
 0x130   :  { %2680 = vmatpush2.msra.mxu1 %v1797_v34  ;;  %2751 = vmatpush2.msra.mxu0 %v2181_v36  ;;  %v1678_v34 = vld [vmem:[%s19210_s25 + $0x1e68] sm:$0xff] }
 0x131   :  { %2681 = vmatprep.subr.mxu1 %v1786_v38  ;;  %2752 = vmatprep.subr.mxu0 %v2170_v39  ;;  %v2062_v36 = vld [vmem:[%s19210_s25 + $0x2a68] sm:$0xff]  ;;  %v1677_v38 = vld [vmem:[%s19210_s25 + $0x1e60] sm:$0xff] }
 0x132   :  { %v10090_v53 = vpop.f32.mrf.mxu0  ;;  %2682 = vmatpush2.msra.mxu1 %v1785_v40  ;;  %2753 = vmatpush2.msra.mxu0 %v2169_v41  ;;  %v2061_v40 = vld [vmem:[%s19210_s25 + $0x2a60] sm:$0xff]  ;;  %v1666_v41 = vld [vmem:[%s19210_s25 + $0x1e08] sm:$0xff] }
 0x133   :  { %2683 = vmatprep.subr.mxu1 %v1774_v42  ;;  %2754 = vmatprep.subr.mxu0 %v2158_v43  ;;  %v551_v39 = vadd.f32 %v10090_v53, %v311_v27  ;;  %v2050_v43 = vld [vmem:[%s19210_s25 + $0x2a08] sm:$0xff] }
 0x134   :  { %v552_v58 = vpop.f32.mrf.mxu0  ;;  %2684 = vmatpush2.msra.mxu1 %v1773_v45  ;;  %2755 = vmatpush2.msra.mxu0 %v2157_v46  ;;  %v2049_v46 = vld [vmem:[%s19210_s25 + $0x2a00] sm:$0xff]  ;;  %v2338_v27 = vld [vmem:[%s19210_s25 + $0x3308] sm:$0xff] }
 0x135   :  { %v553_v61 = vadd.f32 %v552_v58, %v315_v44  ;;  %2685 = vmatprep.subr.mxu1 %v1762_v54  ;;  %2756 = vmatprep.subr.mxu0 %v2146_v55  ;;  %v621_v12 = vpop.f32.mrf.mxu1  ;;  %v1665_v44 = vld [vmem:[%s19210_s25 + $0x1e00] sm:$0xff]  ;;  %v10223_v53 = vmax.f32 %v551_v39, 0.0  ;;  %v1272_v54 = vld [vmem:[%s19210_s25 + $0x11b8] sm:$0xff]  ;;  %v2422_v55 = vld [vmem:[%s19210_s25 + $0x35a8] sm:$0xff] }
 0x136   :  { %2686 = vmatpush2.msra.mxu1 %v1761_v56  ;;  %2757 = vmatpush2.msra.mxu0 %v2145_v57  ;;  %v622_v32 = vadd.f32 %v621_v12, %v319_v22  ;;  %v1271_v56 = vld [vmem:[%s19210_s25 + $0x11b0] sm:$0xff]  ;;  %v2421_v57 = vld [vmem:[%s19210_s25 + $0x35a0] sm:$0xff]  ;;  %v1260_v58 = vld [vmem:[%s19210_s25 + $0x1158] sm:$0xff] }
 0x137   :  { %v10119_v5 = vmax.f32 %v553_v61, 0.0  ;;  %2687 = vmatprep.subr.mxu1 %v1750_v59  ;;  %2758 = vmatprep.subr.mxu0 %v2134_v60  ;;  %v623_v24 = vpop.f32.mrf.mxu1  ;;  %v2410_v59 = vld [vmem:[%s19210_s25 + $0x3548] sm:$0xff]  ;;  %v1259_v60 = vld [vmem:[%s19210_s25 + $0x1150] sm:$0xff]  ;;  %v2409_v61 = vld [vmem:[%s19210_s25 + $0x3540] sm:$0xff] }
 0x138   :  { %2688 = vmatpush2.msra.mxu1 %v1749_v62  ;;  %2759 = vmatpush2.msra.mxu0 %v2133_v63  ;;  %v624_v31 = vadd.f32 %v623_v24, %v323_v20  ;;  %v10218_v45 = vmax.f32 %v622_v32, 0.0  ;;  %v1248_v62 = vld [vmem:[%s19210_s25 + $0x10f8] sm:$0xff]  ;;  %v2398_v63 = vld [vmem:[%s19210_s25 + $0x34e8] sm:$0xff]  ;;  %v2385_v12 = vld [vmem:[%s19210_s25 + $0x3480] sm:$0xff] }
 0x139   :  { %2689 = vmatprep.subr.mxu1 %v1738_v0  ;;  %2703 = vmatprep.mubr.f32.mxu1 %v10119_v5  ;;  %v1247_v0 = vld [vmem:[%s19210_s25 + $0x10f0] sm:$0xff]  ;;  %v1200_v22 = vld [vmem:[%s19210_s25 + $0xf78] sm:$0xff]  ;;  %v2325_v32 = vld [vmem:[%s19210_s25 + $0x32a0] sm:$0xff] }
 0x13a   :  { %2760 = vmatprep.subr.mxu0 %v2122_v6  ;;  %2690 = vmatpush2.msra.mxu1 %v1737_v7  ;;  %v10210_v42 = vmax.f32 %v624_v31, 0.0  ;;  %v2397_v6 = vld [vmem:[%s19210_s25 + $0x34e0] sm:$0xff]  ;;  %v1236_v7 = vld [vmem:[%s19210_s25 + $0x1098] sm:$0xff]  ;;  %v1211_v20 = vld [vmem:[%s19210_s25 + $0xfd0] sm:$0xff] }
 0x13b   :  { %2761 = vmatpush2.msra.mxu0 %v2121_v9  ;;  %2691 = vmatprep.subr.mxu1 %v1726_v10  ;;  %v2386_v9 = vld [vmem:[%s19210_s25 + $0x3488] sm:$0xff]  ;;  %v1235_v10 = vld [vmem:[%s19210_s25 + $0x1090] sm:$0xff]  ;;  %v1176_v31 = vld [vmem:[%s19210_s25 + $0xeb8] sm:$0xff] }
 0x13c   :  { %2762 = vmatprep.subr.mxu0 %v2110_v14  ;;  %2692 = vmatpush2.msra.mxu1 %v1725_v15  ;;  %v1224_v14 = vld [vmem:[%s19210_s25 + $0x1038] sm:$0xff]  ;;  %v2374_v15 = vld [vmem:[%s19210_s25 + $0x3428] sm:$0xff]  ;;  %v1199_v24 = vld [vmem:[%s19210_s25 + $0xf70] sm:$0xff] }
 0x13d   :  { %2763 = vmatpush2.msra.mxu0 %v2109_v17  ;;  %2693 = vmatprep.subr.mxu1 %v1714_v18  ;;  %v1223_v17 = vld [vmem:[%s19210_s25 + $0x1030] sm:$0xff]  ;;  %v2373_v18 = vld [vmem:[%s19210_s25 + $0x3420] sm:$0xff]  ;;  %v1152_v39 = vld [vmem:[%s19210_s25 + $0xdf8] sm:$0xff] }
 0x13e   :  { %2764 = vmatprep.subr.mxu0 %v2098_v19  ;;  %2694 = vmatpush2.msra.mxu1 %v1713_v47  ;;  %v1212_v19 = vld [vmem:[%s19210_s25 + $0xfd8] sm:$0xff]  ;;  %v2362_v47 = vld [vmem:[%s19210_s25 + $0x33c8] sm:$0xff] }
 0x13f   :  { %2765 = vmatpush2.msra.mxu0 %v2097_v21  ;;  %2695 = vmatprep.subr.mxu1 %v1702_v23  ;;  %v2361_v21 = vld [vmem:[%s19210_s25 + $0x33c0] sm:$0xff]  ;;  %v2350_v23 = vld [vmem:[%s19210_s25 + $0x3368] sm:$0xff] }
 0x140   :  { %2766 = vmatprep.subr.mxu0 %v2086_v25  ;;  %2696 = vmatpush2.msra.mxu1 %v1701_v26  ;;  %v2349_v25 = vld [vmem:[%s19210_s25 + $0x3360] sm:$0xff]  ;;  %v1188_v26 = vld [vmem:[%s19210_s25 + $0xf18] sm:$0xff] }
 0x141   :  { %2767 = vmatpush2.msra.mxu0 %v2085_v29  ;;  %2697 = vmatprep.subr.mxu1 %v1690_v30  ;;  %v1187_v29 = vld [vmem:[%s19210_s25 + $0xf10] sm:$0xff]  ;;  %v2337_v30 = vld [vmem:[%s19210_s25 + $0x3300] sm:$0xff] }
 0x142   :  { %2768 = vmatprep.subr.mxu0 %v2074_v28  ;;  %2698 = vmatpush2.msra.mxu1 %v1689_v50  ;;  %v2326_v28 = vld [vmem:[%s19210_s25 + $0x32a8] sm:$0xff]  ;;  %v1175_v50 = vld [vmem:[%s19210_s25 + $0xeb0] sm:$0xff] }
 0x143   :  { %2769 = vmatpush2.msra.mxu0 %v2073_v33  ;;  %2699 = vmatprep.subr.mxu1 %v1678_v34  ;;  %v1164_v33 = vld [vmem:[%s19210_s25 + $0xe58] sm:$0xff]  ;;  %v2314_v34 = vld [vmem:[%s19210_s25 + $0x3248] sm:$0xff] }
 0x144   :  { %2770 = vmatprep.subr.mxu0 %v2062_v36  ;;  %2700 = vmatpush2.msra.mxu1 %v1677_v38  ;;  %v1163_v36 = vld [vmem:[%s19210_s25 + $0xe50] sm:$0xff]  ;;  %v2313_v38 = vld [vmem:[%s19210_s25 + $0x3240] sm:$0xff] }
 0x145   :  { %2771 = vmatpush2.msra.mxu0 %v2061_v40  ;;  %2701 = vmatprep.subr.mxu1 %v1666_v41  ;;  %v2302_v40 = vld [vmem:[%s19210_s25 + $0x31e8] sm:$0xff]  ;;  %v1151_v41 = vld [vmem:[%s19210_s25 + $0xdf0] sm:$0xff] }
 0x146   :  { %2772 = vmatprep.subr.mxu0 %v2050_v43  ;;  %2702 = vmatpush2.msra.mxu1 %v1665_v44  ;;  %v2301_v43 = vld [vmem:[%s19210_s25 + $0x31e0] sm:$0xff]  ;;  %v1140_v44 = vld [vmem:[%s19210_s25 + $0xd98] sm:$0xff] }
 0x147   :  { %2773 = vmatpush2.msra.mxu0 %v2049_v46  ;;  %2774 = vmatprep.mubr.f32.mxu0 %v10210_v42  ;;  %v2290_v46 = vld [vmem:[%s19210_s25 + $0x3188] sm:$0xff] }
 0x148   :  { %2704 = vmatmul.mubr.f32.vlgmr.msra.gmra.mxu1 %v10223_v53  ;;  %2775 = vmatmul.mubr.f32.vlgmr.msra.gmra.mxu0 %v10218_v45 }
 0x149   :  { %2923 = vmatprep.subr.mxu0 %v1272_v54  ;;  %2781 = vmatprep.subr.mxu1 %v2422_v55  ;;  %v1139_v54 = vld [vmem:[%s19210_s25 + $0xd90] sm:$0xff]  ;;  %v2289_v55 = vld [vmem:[%s19210_s25 + $0x3180] sm:$0xff] }
 0x14a   :  { %2924 = vmatpush1.msra.mxu0 %v1271_v56  ;;  %2987 = vmatprep.mubr.f32.mxu0 %v9807_v3  ;;  %v1128_v56 = vld [vmem:[%s19210_s25 + $0xd38] sm:$0xff] }
 0x14b   :  { %2782 = vmatpush1.msra.mxu1 %v2421_v57  ;;  %2925 = vmatprep.subr.mxu0 %v1260_v58  ;;  %v2278_v57 = vld [vmem:[%s19210_s25 + $0x3128] sm:$0xff]  ;;  %v1127_v58 = vld [vmem:[%s19210_s25 + $0xd30] sm:$0xff] }
 0x14c   :  { %2783 = vmatprep.subr.mxu1 %v2410_v59  ;;  %2926 = vmatpush1.msra.mxu0 %v1259_v60  ;;  %v2277_v59 = vld [vmem:[%s19210_s25 + $0x3120] sm:$0xff]  ;;  %v1116_v60 = vld [vmem:[%s19210_s25 + $0xcd8] sm:$0xff] }
 0x14d   :  { %2784 = vmatpush1.msra.mxu1 %v2409_v61  ;;  %2927 = vmatprep.subr.mxu0 %v1248_v62  ;;  %v2266_v61 = vld [vmem:[%s19210_s25 + $0x30c8] sm:$0xff]  ;;  %v1115_v62 = vld [vmem:[%s19210_s25 + $0xcd0] sm:$0xff] }
 0x14e   :  { %2785 = vmatprep.subr.mxu1 %v2398_v63  ;;  %2928 = vmatpush1.msra.mxu0 %v1247_v0  ;;  %v2265_v63 = vld [vmem:[%s19210_s25 + $0x30c0] sm:$0xff]  ;;  %v1104_v0 = vld [vmem:[%s19210_s25 + $0xc78] sm:$0xff] }
 0x14f   :  { %2786 = vmatpush1.msra.mxu1 %v2397_v6  ;;  %2929 = vmatprep.subr.mxu0 %v1236_v7  ;;  %v8243_v6 = vld [vmem:[%s19211_s28 + $0x8] ss:$0 sm:$0xff] }
 0x150   :  { %2787 = vmatprep.subr.mxu1 %v2386_v9  ;;  %2930 = vmatpush1.msra.mxu0 %v1235_v10  ;;  %v2254_v7 = vld [vmem:[%s19210_s25 + $0x3068] sm:$0xff]  ;;  %v1103_v9 = vld [vmem:[%s19210_s25 + $0xc70] sm:$0xff] }
 0x151   :  { %2788 = vmatpush1.msra.mxu1 %v2385_v12  ;;  %2931 = vmatprep.subr.mxu0 %v1224_v14  ;;  %v2253_v12 = vld [vmem:[%s19210_s25 + $0x3060] sm:$0xff]  ;;  %v1092_v14 = vld [vmem:[%s19210_s25 + $0xc18] sm:$0xff] }
 0x152   :  { %2789 = vmatprep.subr.mxu1 %v2374_v15  ;;  %2932 = vmatpush1.msra.mxu0 %v1223_v17  ;;  %v2242_v17 = vld [vmem:[%s19210_s25 + $0x3008] sm:$0xff] }
 0x153   :  { %2790 = vmatpush1.msra.mxu1 %v2373_v18  ;;  %2933 = vmatprep.subr.mxu0 %v1212_v19  ;;  %v1091_v18 = vld [vmem:[%s19210_s25 + $0xc10] sm:$0xff] }
 0x154   :  { %2791 = vmatprep.subr.mxu1 %v2362_v47  ;;  %2934 = vmatpush1.msra.mxu0 %v1211_v20  ;;  %v2241_v47 = vld [vmem:[%s19210_s25 + $0x3000] sm:$0xff]  ;;  %v1464_v20 = vld [vmem:[%s19210_s25 + $0x17b8] sm:$0xff] }
 0x155   :  { %2792 = vmatpush1.msra.mxu1 %v2361_v21  ;;  %2935 = vmatprep.subr.mxu0 %v1200_v22  ;;  %v888_v22 = vld [vmem:[%s19210_s25 + $0x5b8] sm:$0xff] }
 0x156   :  { %2793 = vmatprep.subr.mxu1 %v2350_v23  ;;  %2936 = vmatpush1.msra.mxu0 %v1199_v24  ;;  %v1463_v23 = vld [vmem:[%s19210_s25 + $0x17b0] sm:$0xff] }
 0x157   :  { %2794 = vmatpush1.msra.mxu1 %v2349_v25  ;;  %2937 = vmatprep.subr.mxu0 %v1188_v26  ;;  %v887_v24 = vld [vmem:[%s19210_s25 + $0x5b0] sm:$0xff]  ;;  %v1452_v25 = vld [vmem:[%s19210_s25 + $0x1758] sm:$0xff] }
 0x158   :  { %2795 = vmatprep.subr.mxu1 %v2338_v27  ;;  %2938 = vmatpush1.msra.mxu0 %v1187_v29  ;;  %v876_v26 = vld [vmem:[%s19210_s25 + $0x558] sm:$0xff]  ;;  %v1451_v27 = vld [vmem:[%s19210_s25 + $0x1750] sm:$0xff] }
 0x159   :  { %2796 = vmatpush1.msra.mxu1 %v2337_v30  ;;  %2939 = vmatprep.subr.mxu0 %v1176_v31  ;;  %v875_v29 = vld [vmem:[%s19210_s25 + $0x550] sm:$0xff]  ;;  %v1440_v30 = vld [vmem:[%s19210_s25 + $0x16f8] sm:$0xff] }
 0x15a   :  { %2797 = vmatprep.subr.mxu1 %v2326_v28  ;;  %2940 = vmatpush1.msra.mxu0 %v1175_v50  ;;  %v864_v31 = vld [vmem:[%s19210_s25 + $0x4f8] sm:$0xff]  ;;  %v1439_v28 = vld [vmem:[%s19210_s25 + $0x16f0] sm:$0xff] }
 0x15b   :  { %2798 = vmatpush1.msra.mxu1 %v2325_v32  ;;  %2941 = vmatprep.subr.mxu0 %v1164_v33  ;;  %v863_v50 = vld [vmem:[%s19210_s25 + $0x4f0] sm:$0xff]  ;;  %v1428_v32 = vld [vmem:[%s19210_s25 + $0x1698] sm:$0xff] }
 0x15c   :  { %2799 = vmatprep.subr.mxu1 %v2314_v34  ;;  %2942 = vmatpush1.msra.mxu0 %v1163_v36  ;;  %v852_v33 = vld [vmem:[%s19210_s25 + $0x498] sm:$0xff]  ;;  %v1427_v34 = vld [vmem:[%s19210_s25 + $0x1690] sm:$0xff] }
 0x15d   :  { %2800 = vmatpush1.msra.mxu1 %v2313_v38  ;;  %2943 = vmatprep.subr.mxu0 %v1152_v39  ;;  %v851_v36 = vld [vmem:[%s19210_s25 + $0x490] sm:$0xff]  ;;  %v1416_v38 = vld [vmem:[%s19210_s25 + $0x1638] sm:$0xff] }
 0x15e   :  { %2801 = vmatprep.subr.mxu1 %v2302_v40  ;;  %2944 = vmatpush1.msra.mxu0 %v1151_v41  ;;  %v840_v39 = vld [vmem:[%s19210_s25 + $0x438] sm:$0xff]  ;;  %v1415_v40 = vld [vmem:[%s19210_s25 + $0x1630] sm:$0xff] }
 0x15f   :  { %2802 = vmatpush1.msra.mxu1 %v2301_v43  ;;  %2945 = vmatprep.subr.mxu0 %v1140_v44  ;;  %v839_v41 = vld [vmem:[%s19210_s25 + $0x430] sm:$0xff]  ;;  %v1404_v43 = vld [vmem:[%s19210_s25 + $0x15d8] sm:$0xff] }
 0x160   :  { %2803 = vmatprep.subr.mxu1 %v2290_v46  ;;  %2946 = vmatpush1.msra.mxu0 %v1139_v54  ;;  %v828_v44 = vld [vmem:[%s19210_s25 + $0x3d8] sm:$0xff]  ;;  %v1403_v46 = vld [vmem:[%s19210_s25 + $0x15d0] sm:$0xff] }
 0x161   :  { %2804 = vmatpush1.msra.mxu1 %v2289_v55  ;;  %2947 = vmatprep.subr.mxu0 %v1128_v56  ;;  %v827_v54 = vld [vmem:[%s19210_s25 + $0x3d0] sm:$0xff]  ;;  %v1392_v55 = vld [vmem:[%s19210_s25 + $0x1578] sm:$0xff] }
 0x162   :  { %2805 = vmatprep.subr.mxu1 %v2278_v57  ;;  %2948 = vmatpush1.msra.mxu0 %v1127_v58  ;;  %v816_v56 = vld [vmem:[%s19210_s25 + $0x378] sm:$0xff]  ;;  %v1391_v57 = vld [vmem:[%s19210_s25 + $0x1570] sm:$0xff] }
 0x163   :  { %2806 = vmatpush1.msra.mxu1 %v2277_v59  ;;  %2949 = vmatprep.subr.mxu0 %v1116_v60  ;;  %v815_v58 = vld [vmem:[%s19210_s25 + $0x370] sm:$0xff]  ;;  %v1380_v59 = vld [vmem:[%s19210_s25 + $0x1518] sm:$0xff] }
 0x164   :  { %2807 = vmatprep.subr.mxu1 %v2266_v61  ;;  %2950 = vmatpush1.msra.mxu0 %v1115_v62  ;;  %v692_v10 = vpop.f32.mrf.mxu0  ;;  %v804_v60 = vld [vmem:[%s19210_s25 + $0x318] sm:$0xff]  ;;  %v1379_v61 = vld [vmem:[%s19210_s25 + $0x1510] sm:$0xff] }
 0x165   :  { %2808 = vmatpush1.msra.mxu1 %v2265_v63  ;;  %2951 = vmatprep.subr.mxu0 %v1104_v0  ;;  %v693_v15 = vadd.f32 %v8243_v6, %v692_v10  ;;  %v803_v62 = vld [vmem:[%s19210_s25 + $0x310] sm:$0xff]  ;;  %v1368_v63 = vld [vmem:[%s19210_s25 + $0x14b8] sm:$0xff] }
 0x166   :  { %2809 = vmatprep.subr.mxu1 %v2254_v7  ;;  %2952 = vmatpush1.msra.mxu0 %v1103_v9  ;;  %v694_v19 = vpop.f32.mrf.mxu0  ;;  %v792_v0 = vld [vmem:[%s19210_s25 + $0x2b8] sm:$0xff]  ;;  %v1367_v6 = vld [vmem:[%s19210_s25 + $0x14b0] sm:$0xff] }
 0x167   :  { %v10427_v21 = vmax.f32 %v693_v15, 0.0  ;;  %2810 = vmatpush1.msra.mxu1 %v2253_v12  ;;  %2953 = vmatprep.subr.mxu0 %v1092_v14  ;;  %v791_v7 = vld [vmem:[%s19210_s25 + $0x2b0] sm:$0xff]  ;;  %v1356_v9 = vld [vmem:[%s19210_s25 + $0x1458] sm:$0xff] }
 0x168   :  { %2811 = vmatprep.subr.mxu1 %v2242_v17  ;;  %2954 = vmatpush1.msra.mxu0 %v1091_v18  ;;  %v780_v10 = vld [vmem:[%s19210_s25 + $0x258] sm:$0xff]  ;;  %v1355_v12 = vld [vmem:[%s19210_s25 + $0x1450] sm:$0xff] }
 0x169   :  { %2812 = vmatpush1.msra.mxu1 %v2241_v47  ;;  %2955 = vmatprep.subr.mxu0 %v1464_v20  ;;  %v779_v14 = vld [vmem:[%s19210_s25 + $0x250] sm:$0xff]  ;;  %v1344_v15 = vld [vmem:[%s19210_s25 + $0x13f8] sm:$0xff] }
 0x16a   :  { %2845 = vmatprep.mubr.f32.mxu1 %v8560_v13  ;;  %2852 = vmatprep.subr.mxu1 %v888_v22  ;;  %v768_v17 = vld [vmem:[%s19210_s25 + $0x1f8] sm:$0xff]  ;;  %v1343_v18 = vld [vmem:[%s19210_s25 + $0x13f0] sm:$0xff] }
 0x16b   :  { %2956 = vmatpush2.msra.mxu0 %v1463_v23  ;;  %2846 = vmatmul.mubr.f32.vlgmr.msra.gmra.mxu1 %v10427_v21  ;;  %v767_v19 = vld [vmem:[%s19210_s25 + $0x1f0] sm:$0xff]  ;;  %v1332_v47 = vld [vmem:[%s19210_s25 + $0x1398] sm:$0xff] }
 0x16c   :  { %2853 = vmatpush1.msra.mxu1 %v887_v24  ;;  %2957 = vmatprep.subr.mxu0 %v1452_v25  ;;  %v756_v20 = vld [vmem:[%s19210_s25 + $0x198] sm:$0xff]  ;;  %v1331_v22 = vld [vmem:[%s19210_s25 + $0x1390] sm:$0xff] }
 0x16d   :  { %2854 = vmatprep.subr.mxu1 %v876_v26  ;;  %2916 = vmatprep.mubr.f32.mxu1 %v9805_v2  ;;  %v755_v23 = vld [vmem:[%s19210_s25 + $0x190] sm:$0xff]  ;;  %v1320_v24 = vld [vmem:[%s19210_s25 + $0x1338] sm:$0xff] }
 0x16e   :  { %2958 = vmatpush2.msra.mxu0 %v1451_v27  ;;  %2855 = vmatpush1.msra.mxu1 %v875_v29  ;;  %v744_v25 = vld [vmem:[%s19210_s25 + $0x138] sm:$0xff]  ;;  %v1319_v26 = vld [vmem:[%s19210_s25 + $0x1330] sm:$0xff] }
 0x16f   :  { %2959 = vmatprep.subr.mxu0 %v1440_v30  ;;  %2856 = vmatprep.subr.mxu1 %v864_v31  ;;  %v743_v27 = vld [vmem:[%s19210_s25 + $0x130] sm:$0xff]  ;;  %v1308_v29 = vld [vmem:[%s19210_s25 + $0x12d8] sm:$0xff] }
 0x170   :  { %2960 = vmatpush2.msra.mxu0 %v1439_v28  ;;  %2857 = vmatpush1.msra.mxu1 %v863_v50  ;;  %v732_v30 = vld [vmem:[%s19210_s25 + $0xd8] sm:$0xff]  ;;  %v1307_v31 = vld [vmem:[%s19210_s25 + $0x12d0] sm:$0xff] }
 0x171   :  { %2961 = vmatprep.subr.mxu0 %v1428_v32  ;;  %2858 = vmatprep.subr.mxu1 %v852_v33  ;;  %v731_v28 = vld [vmem:[%s19210_s25 + $0xd0] sm:$0xff]  ;;  %v1296_v50 = vld [vmem:[%s19210_s25 + $0x1278] sm:$0xff] }
 0x172   :  { %2962 = vmatpush2.msra.mxu0 %v1427_v34  ;;  %2859 = vmatpush1.msra.mxu1 %v851_v36  ;;  %v720_v32 = vld [vmem:[%s19210_s25 + $0x78] sm:$0xff]  ;;  %v1295_v33 = vld [vmem:[%s19210_s25 + $0x1270] sm:$0xff] }
 0x173   :  { %2963 = vmatprep.subr.mxu0 %v1416_v38  ;;  %2860 = vmatprep.subr.mxu1 %v840_v39  ;;  %v719_v34 = vld [vmem:[%s19210_s25 + $0x70] sm:$0xff]  ;;  %v1284_v36 = vld [vmem:[%s19210_s25 + $0x1218] sm:$0xff] }
 0x174   :  { %2964 = vmatpush2.msra.mxu0 %v1415_v40  ;;  %2861 = vmatpush1.msra.mxu1 %v839_v41  ;;  %v708_v38 = vld [vmem:[%s19210_s25 + $0x18] sm:$0xff]  ;;  %v1283_v39 = vld [vmem:[%s19210_s25 + $0x1210] sm:$0xff] }
 0x175   :  { %2965 = vmatprep.subr.mxu0 %v1404_v43  ;;  %2862 = vmatprep.subr.mxu1 %v828_v44  ;;  %v707_v40 = vld [vmem:[%s19210_s25 + $0x10] sm:$0xff]  ;;  %v2040_v41 = vld [vmem:[%s19210_s25 + $0x29b8] sm:$0xff] }
 0x176   :  { %2966 = vmatpush2.msra.mxu0 %v1403_v46  ;;  %2863 = vmatpush1.msra.mxu1 %v827_v54  ;;  %v1080_v43 = vld [vmem:[%s19210_s25 + $0xbb8] sm:$0xff]  ;;  %v2039_v44 = vld [vmem:[%s19210_s25 + $0x29b0] sm:$0xff] }
 0x177   :  { %2967 = vmatprep.subr.mxu0 %v1392_v55  ;;  %2864 = vmatprep.subr.mxu1 %v816_v56  ;;  %v1079_v46 = vld [vmem:[%s19210_s25 + $0xbb0] sm:$0xff]  ;;  %v2028_v54 = vld [vmem:[%s19210_s25 + $0x2958] sm:$0xff] }
 0x178   :  { %2968 = vmatpush2.msra.mxu0 %v1391_v57  ;;  %2865 = vmatpush1.msra.mxu1 %v815_v58  ;;  %v1068_v55 = vld [vmem:[%s19210_s25 + $0xb58] sm:$0xff]  ;;  %v2027_v56 = vld [vmem:[%s19210_s25 + $0x2950] sm:$0xff] }
 0x179   :  { %2969 = vmatprep.subr.mxu0 %v1380_v59  ;;  %2866 = vmatprep.subr.mxu1 %v804_v60  ;;  %v1067_v57 = vld [vmem:[%s19210_s25 + $0xb50] sm:$0xff]  ;;  %v2016_v58 = vld [vmem:[%s19210_s25 + $0x28f8] sm:$0xff] }
 0x17a   :  { %2970 = vmatpush2.msra.mxu0 %v1379_v61  ;;  %2867 = vmatpush1.msra.mxu1 %v803_v62  ;;  %v1056_v59 = vld [vmem:[%s19210_s25 + $0xaf8] sm:$0xff]  ;;  %v2015_v60 = vld [vmem:[%s19210_s25 + $0x28f0] sm:$0xff] }
 0x17b   :  { %2971 = vmatprep.subr.mxu0 %v1368_v63  ;;  %2868 = vmatprep.subr.mxu1 %v792_v0  ;;  %v1055_v61 = vld [vmem:[%s19210_s25 + $0xaf0] sm:$0xff]  ;;  %v2004_v62 = vld [vmem:[%s19210_s25 + $0x2898] sm:$0xff] }
 0x17c   :  { %2972 = vmatpush2.msra.mxu0 %v1367_v6  ;;  %2869 = vmatpush1.msra.mxu1 %v791_v7  ;;  %v1044_v63 = vld [vmem:[%s19210_s25 + $0xa98] sm:$0xff]  ;;  %v2003_v0 = vld [vmem:[%s19210_s25 + $0x2890] sm:$0xff] }
 0x17d   :  { %2973 = vmatprep.subr.mxu0 %v1356_v9  ;;  %2870 = vmatprep.subr.mxu1 %v780_v10  ;;  %v1043_v6 = vld [vmem:[%s19210_s25 + $0xa90] sm:$0xff]  ;;  %v1992_v7 = vld [vmem:[%s19210_s25 + $0x2838] sm:$0xff] }
 0x17e   :  { %2974 = vmatpush2.msra.mxu0 %v1355_v12  ;;  %2871 = vmatpush1.msra.mxu1 %v779_v14  ;;  %v1032_v9 = vld [vmem:[%s19210_s25 + $0xa38] sm:$0xff]  ;;  %v1991_v10 = vld [vmem:[%s19210_s25 + $0x2830] sm:$0xff] }
 0x17f   :  { %2975 = vmatprep.subr.mxu0 %v1344_v15  ;;  %2872 = vmatprep.subr.mxu1 %v768_v17  ;;  %v1031_v12 = vld [vmem:[%s19210_s25 + $0xa30] sm:$0xff]  ;;  %v1980_v14 = vld [vmem:[%s19210_s25 + $0x27d8] sm:$0xff] }
 0x180   :  { %2976 = vmatpush2.msra.mxu0 %v1343_v18  ;;  %2873 = vmatpush1.msra.mxu1 %v767_v19  ;;  %v1020_v15 = vld [vmem:[%s19210_s25 + $0x9d8] sm:$0xff]  ;;  %v1979_v17 = vld [vmem:[%s19210_s25 + $0x27d0] sm:$0xff] }
 0x181   :  { %2977 = vmatprep.subr.mxu0 %v1332_v47  ;;  %2874 = vmatprep.subr.mxu1 %v756_v20  ;;  %v1019_v18 = vld [vmem:[%s19210_s25 + $0x9d0] sm:$0xff]  ;;  %v1968_v19 = vld [vmem:[%s19210_s25 + $0x2778] sm:$0xff] }
 0x182   :  { %2978 = vmatpush2.msra.mxu0 %v1331_v22  ;;  %2875 = vmatpush1.msra.mxu1 %v755_v23  ;;  %v1008_v47 = vld [vmem:[%s19210_s25 + $0x978] sm:$0xff]  ;;  %v1967_v20 = vld [vmem:[%s19210_s25 + $0x2770] sm:$0xff] }
 0x183   :  { %2979 = vmatprep.subr.mxu0 %v1320_v24  ;;  %2876 = vmatprep.subr.mxu1 %v744_v25  ;;  %v1007_v22 = vld [vmem:[%s19210_s25 + $0x970] sm:$0xff]  ;;  %v1956_v23 = vld [vmem:[%s19210_s25 + $0x2718] sm:$0xff] }
 0x184   :  { %2980 = vmatpush2.msra.mxu0 %v1319_v26  ;;  %2877 = vmatpush1.msra.mxu1 %v743_v27  ;;  %v996_v24 = vld [vmem:[%s19210_s25 + $0x918] sm:$0xff]  ;;  %v1955_v25 = vld [vmem:[%s19210_s25 + $0x2710] sm:$0xff] }
 0x185   :  { %2981 = vmatprep.subr.mxu0 %v1308_v29  ;;  %2878 = vmatprep.subr.mxu1 %v732_v30  ;;  %v995_v26 = vld [vmem:[%s19210_s25 + $0x910] sm:$0xff]  ;;  %v1944_v27 = vld [vmem:[%s19210_s25 + $0x26b8] sm:$0xff] }
 0x186   :  { %2982 = vmatpush2.msra.mxu0 %v1307_v31  ;;  %2879 = vmatpush1.msra.mxu1 %v731_v28  ;;  %v984_v29 = vld [vmem:[%s19210_s25 + $0x8b8] sm:$0xff]  ;;  %v1943_v30 = vld [vmem:[%s19210_s25 + $0x26b0] sm:$0xff] }
 0x187   :  { %2983 = vmatprep.subr.mxu0 %v1296_v50  ;;  %2880 = vmatprep.subr.mxu1 %v720_v32  ;;  %v983_v31 = vld [vmem:[%s19210_s25 + $0x8b0] sm:$0xff]  ;;  %v1932_v28 = vld [vmem:[%s19210_s25 + $0x2658] sm:$0xff] }
 0x188   :  { %2984 = vmatpush2.msra.mxu0 %v1295_v33  ;;  %2881 = vmatpush1.msra.mxu1 %v719_v34  ;;  %v972_v50 = vld [vmem:[%s19210_s25 + $0x858] sm:$0xff]  ;;  %v1931_v32 = vld [vmem:[%s19210_s25 + $0x2650] sm:$0xff] }
 0x189   :  { %2985 = vmatprep.subr.mxu0 %v1284_v36  ;;  %2882 = vmatprep.subr.mxu1 %v708_v38  ;;  %v971_v33 = vld [vmem:[%s19210_s25 + $0x850] sm:$0xff]  ;;  %v1920_v34 = vld [vmem:[%s19210_s25 + $0x25f8] sm:$0xff] }
 0x18a   :  { %2986 = vmatpush2.msra.mxu0 %v1283_v39  ;;  %2883 = vmatpush1.msra.mxu1 %v707_v40  ;;  %v960_v36 = vld [vmem:[%s19210_s25 + $0x7f8] sm:$0xff]  ;;  %v1919_v38 = vld [vmem:[%s19210_s25 + $0x25f0] sm:$0xff] }
 0x18b   :  { %2988 = vmatmul.mubr.f32.vlgmr.msra.gmra.mxu0 %v9803_v1  ;;  %3065 = vmatprep.subr.mxu0 %v2040_v41  ;;  %v959_v39 = vld [vmem:[%s19210_s25 + $0x7f0] sm:$0xff]  ;;  %v1908_v40 = vld [vmem:[%s19210_s25 + $0x2598] sm:$0xff] }
 0x18c   :  { %2884 = vmatprep.subr.mxu1 %v1080_v43  ;;  %3066 = vmatpush1.msra.mxu0 %v2039_v44  ;;  %v948_v41 = vld [vmem:[%s19210_s25 + $0x798] sm:$0xff]  ;;  %v1907_v43 = vld [vmem:[%s19210_s25 + $0x2590] sm:$0xff] }
 0x18d   :  { %3129 = vmatprep.mubr.f32.mxu0 %v10210_v42  ;;  %2885 = vmatpush2.msra.mxu1 %v1079_v46  ;;  %v947_v44 = vld [vmem:[%s19210_s25 + $0x790] sm:$0xff]  ;;  %v1896_v46 = vld [vmem:[%s19210_s25 + $0x2538] sm:$0xff] }
 0x18e   :  { %3067 = vmatprep.subr.mxu0 %v2028_v54  ;;  %2886 = vmatprep.subr.mxu1 %v1068_v55  ;;  %v936_v54 = vld [vmem:[%s19210_s25 + $0x738] sm:$0xff]  ;;  %v1895_v55 = vld [vmem:[%s19210_s25 + $0x2530] sm:$0xff] }
 0x18f   :  { %3068 = vmatpush1.msra.mxu0 %v2027_v56  ;;  %2887 = vmatpush2.msra.mxu1 %v1067_v57  ;;  %v935_v56 = vld [vmem:[%s19210_s25 + $0x730] sm:$0xff]  ;;  %v1884_v57 = vld [vmem:[%s19210_s25 + $0x24d8] sm:$0xff] }
 0x190   :  { %3069 = vmatprep.subr.mxu0 %v2016_v58  ;;  %2888 = vmatprep.subr.mxu1 %v1056_v59  ;;  %v924_v58 = vld [vmem:[%s19210_s25 + $0x6d8] sm:$0xff]  ;;  %v1883_v59 = vld [vmem:[%s19210_s25 + $0x24d0] sm:$0xff] }
 0x191   :  { %3070 = vmatpush1.msra.mxu0 %v2015_v60  ;;  %2889 = vmatpush2.msra.mxu1 %v1055_v61  ;;  %v923_v60 = vld [vmem:[%s19210_s25 + $0x6d0] sm:$0xff]  ;;  %v1872_v61 = vld [vmem:[%s19210_s25 + $0x2478] sm:$0xff] }
 0x192   :  { %3071 = vmatprep.subr.mxu0 %v2004_v62  ;;  %2890 = vmatprep.subr.mxu1 %v1044_v63  ;;  %v912_v62 = vld [vmem:[%s19210_s25 + $0x678] sm:$0xff]  ;;  %v1871_v63 = vld [vmem:[%s19210_s25 + $0x2470] sm:$0xff] }
 0x193   :  { %3072 = vmatpush1.msra.mxu0 %v2003_v0  ;;  %2891 = vmatpush2.msra.mxu1 %v1043_v6  ;;  %v911_v0 = vld [vmem:[%s19210_s25 + $0x670] sm:$0xff]  ;;  %v1860_v6 = vld [vmem:[%s19210_s25 + $0x2418] sm:$0xff] }
 0x194   :  { %3073 = vmatprep.subr.mxu0 %v1992_v7  ;;  %2892 = vmatprep.subr.mxu1 %v1032_v9  ;;  %v900_v7 = vld [vmem:[%s19210_s25 + $0x618] sm:$0xff]  ;;  %v1859_v9 = vld [vmem:[%s19210_s25 + $0x2410] sm:$0xff] }
 0x195   :  { %3074 = vmatpush1.msra.mxu0 %v1991_v10  ;;  %2893 = vmatpush2.msra.mxu1 %v1031_v12  ;;  %v899_v10 = vld [vmem:[%s19210_s25 + $0x610] sm:$0xff]  ;;  %v2232_v12 = vld [vmem:[%s19210_s25 + $0x2fb8] sm:$0xff] }
 0x196   :  { %3075 = vmatprep.subr.mxu0 %v1980_v14  ;;  %2894 = vmatprep.subr.mxu1 %v1020_v15  ;;  %v1656_v14 = vld [vmem:[%s19210_s25 + $0x1db8] sm:$0xff]  ;;  %v2231_v15 = vld [vmem:[%s19210_s25 + $0x2fb0] sm:$0xff] }
 0x197   :  { %3076 = vmatpush1.msra.mxu0 %v1979_v17  ;;  %2895 = vmatpush2.msra.mxu1 %v1019_v18  ;;  %v1655_v17 = vld [vmem:[%s19210_s25 + $0x1db0] sm:$0xff]  ;;  %v2220_v18 = vld [vmem:[%s19210_s25 + $0x2f58] sm:$0xff] }
 0x198   :  { %3077 = vmatprep.subr.mxu0 %v1968_v19  ;;  %2896 = vmatprep.subr.mxu1 %v1008_v47  ;;  %v1644_v19 = vld [vmem:[%s19210_s25 + $0x1d58] sm:$0xff]  ;;  %v2219_v47 = vld [vmem:[%s19210_s25 + $0x2f50] sm:$0xff] }
 0x199   :  { %3078 = vmatpush1.msra.mxu0 %v1967_v20  ;;  %2897 = vmatpush2.msra.mxu1 %v1007_v22  ;;  %v1643_v20 = vld [vmem:[%s19210_s25 + $0x1d50] sm:$0xff]  ;;  %v2208_v22 = vld [vmem:[%s19210_s25 + $0x2ef8] sm:$0xff] }
 0x19a   :  { %3079 = vmatprep.subr.mxu0 %v1956_v23  ;;  %2898 = vmatprep.subr.mxu1 %v996_v24  ;;  %v1632_v23 = vld [vmem:[%s19210_s25 + $0x1cf8] sm:$0xff]  ;;  %v2207_v24 = vld [vmem:[%s19210_s25 + $0x2ef0] sm:$0xff] }
 0x19b   :  { %3080 = vmatpush1.msra.mxu0 %v1955_v25  ;;  %2899 = vmatpush2.msra.mxu1 %v995_v26  ;;  %v1631_v25 = vld [vmem:[%s19210_s25 + $0x1cf0] sm:$0xff]  ;;  %v2196_v26 = vld [vmem:[%s19210_s25 + $0x2e98] sm:$0xff] }
 0x19c   :  { %3081 = vmatprep.subr.mxu0 %v1944_v27  ;;  %2900 = vmatprep.subr.mxu1 %v984_v29  ;;  %v1620_v27 = vld [vmem:[%s19210_s25 + $0x1c98] sm:$0xff]  ;;  %v2195_v29 = vld [vmem:[%s19210_s25 + $0x2e90] sm:$0xff] }
 0x19d   :  { %3082 = vmatpush1.msra.mxu0 %v1943_v30  ;;  %2901 = vmatpush2.msra.mxu1 %v983_v31  ;;  %v1619_v30 = vld [vmem:[%s19210_s25 + $0x1c90] sm:$0xff]  ;;  %v2184_v31 = vld [vmem:[%s19210_s25 + $0x2e38] sm:$0xff] }
 0x19e   :  { %3083 = vmatprep.subr.mxu0 %v1932_v28  ;;  %2902 = vmatprep.subr.mxu1 %v972_v50  ;;  %v1608_v28 = vld [vmem:[%s19210_s25 + $0x1c38] sm:$0xff]  ;;  %v2183_v50 = vld [vmem:[%s19210_s25 + $0x2e30] sm:$0xff] }
 0x19f   :  { %3084 = vmatpush1.msra.mxu0 %v1931_v32  ;;  %2903 = vmatpush2.msra.mxu1 %v971_v33  ;;  %v1607_v32 = vld [vmem:[%s19210_s25 + $0x1c30] sm:$0xff]  ;;  %v2172_v33 = vld [vmem:[%s19210_s25 + $0x2dd8] sm:$0xff] }
 0x1a0   :  { %3085 = vmatprep.subr.mxu0 %v1920_v34  ;;  %2904 = vmatprep.subr.mxu1 %v960_v36  ;;  %v1596_v34 = vld [vmem:[%s19210_s25 + $0x1bd8] sm:$0xff]  ;;  %v2171_v36 = vld [vmem:[%s19210_s25 + $0x2dd0] sm:$0xff] }
 0x1a1   :  { %3086 = vmatpush1.msra.mxu0 %v1919_v38  ;;  %2905 = vmatpush2.msra.mxu1 %v959_v39  ;;  %v1595_v38 = vld [vmem:[%s19210_s25 + $0x1bd0] sm:$0xff]  ;;  %v2160_v39 = vld [vmem:[%s19210_s25 + $0x2d78] sm:$0xff] }
 0x1a2   :  { %3087 = vmatprep.subr.mxu0 %v1908_v40  ;;  %2906 = vmatprep.subr.mxu1 %v948_v41  ;;  %v1584_v40 = vld [vmem:[%s19210_s25 + $0x1b78] sm:$0xff]  ;;  %v2159_v41 = vld [vmem:[%s19210_s25 + $0x2d70] sm:$0xff] }
 0x1a3   :  { %3088 = vmatpush1.msra.mxu0 %v1907_v43  ;;  %2907 = vmatpush2.msra.mxu1 %v947_v44  ;;  %v1583_v43 = vld [vmem:[%s19210_s25 + $0x1b70] sm:$0xff]  ;;  %v2148_v44 = vld [vmem:[%s19210_s25 + $0x2d18] sm:$0xff] }
 0x1a4   :  { %3089 = vmatprep.subr.mxu0 %v1896_v46  ;;  %2908 = vmatprep.subr.mxu1 %v936_v54  ;;  %v1572_v46 = vld [vmem:[%s19210_s25 + $0x1b18] sm:$0xff]  ;;  %v2147_v54 = vld [vmem:[%s19210_s25 + $0x2d10] sm:$0xff] }
 0x1a5   :  { %3090 = vmatpush1.msra.mxu0 %v1895_v55  ;;  %2909 = vmatpush2.msra.mxu1 %v935_v56  ;;  %v1571_v55 = vld [vmem:[%s19210_s25 + $0x1b10] sm:$0xff]  ;;  %v2136_v56 = vld [vmem:[%s19210_s25 + $0x2cb8] sm:$0xff] }
 0x1a6   :  { %3091 = vmatprep.subr.mxu0 %v1884_v57  ;;  %2910 = vmatprep.subr.mxu1 %v924_v58  ;;  %v1560_v57 = vld [vmem:[%s19210_s25 + $0x1ab8] sm:$0xff]  ;;  %v2135_v58 = vld [vmem:[%s19210_s25 + $0x2cb0] sm:$0xff] }
 0x1a7   :  { %3092 = vmatpush1.msra.mxu0 %v1883_v59  ;;  %2911 = vmatpush2.msra.mxu1 %v923_v60  ;;  %v1559_v59 = vld [vmem:[%s19210_s25 + $0x1ab0] sm:$0xff]  ;;  %v2124_v60 = vld [vmem:[%s19210_s25 + $0x2c58] sm:$0xff] }
 0x1a8   :  { %3093 = vmatprep.subr.mxu0 %v1872_v61  ;;  %2912 = vmatprep.subr.mxu1 %v912_v62  ;;  %v1548_v61 = vld [vmem:[%s19210_s25 + $0x1a58] sm:$0xff]  ;;  %v2123_v62 = vld [vmem:[%s19210_s25 + $0x2c50] sm:$0xff] }
 0x1a9   :  { %3094 = vmatpush1.msra.mxu0 %v1871_v63  ;;  %2913 = vmatpush2.msra.mxu1 %v911_v0  ;;  %v1547_v63 = vld [vmem:[%s19210_s25 + $0x1a50] sm:$0xff]  ;;  %v2112_v0 = vld [vmem:[%s19210_s25 + $0x2bf8] sm:$0xff] }
 0x1aa   :  { %3095 = vmatprep.subr.mxu0 %v1860_v6  ;;  %2914 = vmatprep.subr.mxu1 %v900_v7  ;;  %v1536_v6 = vld [vmem:[%s19210_s25 + $0x19f8] sm:$0xff]  ;;  %v2111_v7 = vld [vmem:[%s19210_s25 + $0x2bf0] sm:$0xff] }
 0x1ab   :  { %3096 = vmatpush1.msra.mxu0 %v1859_v9  ;;  %2915 = vmatpush2.msra.mxu1 %v899_v10  ;;  %v1535_v9 = vld [vmem:[%s19210_s25 + $0x19f0] sm:$0xff]  ;;  %v2100_v10 = vld [vmem:[%s19210_s25 + $0x2b98] sm:$0xff] }
 0x1ac   :  { %3097 = vmatprep.subr.mxu0 %v2232_v12  ;;  %2917 = vmatmul.mubr.f32.vlgmr.msra.gmra.mxu1 %v9809_v4  ;;  %v1524_v12 = vld [vmem:[%s19210_s25 + $0x1998] sm:$0xff] }
 0x1ad   :  { %2994 = vmatprep.subr.mxu1 %v1656_v14  ;;  %3098 = vmatpush2.msra.mxu0 %v2231_v15  ;;  %v2099_v14 = vld [vmem:[%s19210_s25 + $0x2b90] sm:$0xff] }
 0x1ae   :  { %2995 = vmatpush1.msra.mxu1 %v1655_v17  ;;  %3058 = vmatprep.mubr.f32.mxu1 %v10119_v5  ;;  %v1523_v15 = vld [vmem:[%s19210_s25 + $0x1990] sm:$0xff]  ;;  %v2088_v17 = vld [vmem:[%s19210_s25 + $0x2b38] sm:$0xff] }
 0x1af   :  { %3099 = vmatprep.subr.mxu0 %v2220_v18  ;;  %2996 = vmatprep.subr.mxu1 %v1644_v19  ;;  %v1512_v18 = vld [vmem:[%s19210_s25 + $0x1938] sm:$0xff]  ;;  %v2087_v19 = vld [vmem:[%s19210_s25 + $0x2b30] sm:$0xff] }
 0x1b0   :  { %3100 = vmatpush2.msra.mxu0 %v2219_v47  ;;  %2997 = vmatpush1.msra.mxu1 %v1643_v20  ;;  %v1511_v47 = vld [vmem:[%s19210_s25 + $0x1930] sm:$0xff]  ;;  %v2076_v20 = vld [vmem:[%s19210_s25 + $0x2ad8] sm:$0xff] }
 0x1b1   :  { %3101 = vmatprep.subr.mxu0 %v2208_v22  ;;  %2998 = vmatprep.subr.mxu1 %v1632_v23  ;;  %v1500_v22 = vld [vmem:[%s19210_s25 + $0x18d8] sm:$0xff]  ;;  %v2075_v23 = vld [vmem:[%s19210_s25 + $0x2ad0] sm:$0xff] }
 0x1b2   :  { %3102 = vmatpush2.msra.mxu0 %v2207_v24  ;;  %2999 = vmatpush1.msra.mxu1 %v1631_v25  ;;  %v1499_v24 = vld [vmem:[%s19210_s25 + $0x18d0] sm:$0xff]  ;;  %v2064_v25 = vld [vmem:[%s19210_s25 + $0x2a78] sm:$0xff] }
 0x1b3   :  { %3103 = vmatprep.subr.mxu0 %v2196_v26  ;;  %3000 = vmatprep.subr.mxu1 %v1620_v27  ;;  %v1488_v26 = vld [vmem:[%s19210_s25 + $0x1878] sm:$0xff]  ;;  %v2063_v27 = vld [vmem:[%s19210_s25 + $0x2a70] sm:$0xff] }
 0x1b4   :  { %3104 = vmatpush2.msra.mxu0 %v2195_v29  ;;  %3001 = vmatpush1.msra.mxu1 %v1619_v30  ;;  %v1487_v29 = vld [vmem:[%s19210_s25 + $0x1870] sm:$0xff]  ;;  %v2052_v30 = vld [vmem:[%s19210_s25 + $0x2a18] sm:$0xff] }
 0x1b5   :  { %3105 = vmatprep.subr.mxu0 %v2184_v31  ;;  %3002 = vmatprep.subr.mxu1 %v1608_v28  ;;  %v1476_v31 = vld [vmem:[%s19210_s25 + $0x1818] sm:$0xff]  ;;  %v2051_v28 = vld [vmem:[%s19210_s25 + $0x2a10] sm:$0xff] }
 0x1b6   :  { %3106 = vmatpush2.msra.mxu0 %v2183_v50  ;;  %3003 = vmatpush1.msra.mxu1 %v1607_v32  ;;  %v1475_v50 = vld [vmem:[%s19210_s25 + $0x1810] sm:$0xff]  ;;  %v890_v32 = vld [vmem:[%s19210_s25 + $0x5c8] sm:$0xff] }
 0x1b7   :  { %3107 = vmatprep.subr.mxu0 %v2172_v33  ;;  %3004 = vmatprep.subr.mxu1 %v1596_v34  ;;  %v1848_v33 = vld [vmem:[%s19210_s25 + $0x23b8] sm:$0xff]  ;;  %v889_v34 = vld [vmem:[%s19210_s25 + $0x5c0] sm:$0xff] }
 0x1b8   :  { %3108 = vmatpush2.msra.mxu0 %v2171_v36  ;;  %3005 = vmatpush1.msra.mxu1 %v1595_v38  ;;  %v1847_v36 = vld [vmem:[%s19210_s25 + $0x23b0] sm:$0xff]  ;;  %v878_v38 = vld [vmem:[%s19210_s25 + $0x568] sm:$0xff] }
 0x1b9   :  { %3109 = vmatprep.subr.mxu0 %v2160_v39  ;;  %3006 = vmatprep.subr.mxu1 %v1584_v40  ;;  %v1836_v39 = vld [vmem:[%s19210_s25 + $0x2358] sm:$0xff]  ;;  %v877_v40 = vld [vmem:[%s19210_s25 + $0x560] sm:$0xff] }
 0x1ba   :  { %3110 = vmatpush2.msra.mxu0 %v2159_v41  ;;  %3007 = vmatpush1.msra.mxu1 %v1583_v43  ;;  %v1835_v41 = vld [vmem:[%s19210_s25 + $0x2350] sm:$0xff]  ;;  %v866_v43 = vld [vmem:[%s19210_s25 + $0x508] sm:$0xff] }
 0x1bb   :  { %3111 = vmatprep.subr.mxu0 %v2148_v44  ;;  %3008 = vmatprep.subr.mxu1 %v1572_v46  ;;  %v1824_v44 = vld [vmem:[%s19210_s25 + $0x22f8] sm:$0xff]  ;;  %v865_v46 = vld [vmem:[%s19210_s25 + $0x500] sm:$0xff] }
 0x1bc   :  { %3112 = vmatpush2.msra.mxu0 %v2147_v54  ;;  %3009 = vmatpush1.msra.mxu1 %v1571_v55  ;;  %v1823_v54 = vld [vmem:[%s19210_s25 + $0x22f0] sm:$0xff]  ;;  %v854_v55 = vld [vmem:[%s19210_s25 + $0x4a8] sm:$0xff] }
 0x1bd   :  { %3113 = vmatprep.subr.mxu0 %v2136_v56  ;;  %3010 = vmatprep.subr.mxu1 %v1560_v57  ;;  %v1812_v56 = vld [vmem:[%s19210_s25 + $0x2298] sm:$0xff]  ;;  %v853_v57 = vld [vmem:[%s19210_s25 + $0x4a0] sm:$0xff] }
 0x1be   :  { %3114 = vmatpush2.msra.mxu0 %v2135_v58  ;;  %3011 = vmatpush1.msra.mxu1 %v1559_v59  ;;  %v1811_v58 = vld [vmem:[%s19210_s25 + $0x2290] sm:$0xff]  ;;  %v842_v59 = vld [vmem:[%s19210_s25 + $0x448] sm:$0xff] }
 0x1bf   :  { %3115 = vmatprep.subr.mxu0 %v2124_v60  ;;  %3012 = vmatprep.subr.mxu1 %v1548_v61  ;;  %v1800_v60 = vld [vmem:[%s19210_s25 + $0x2238] sm:$0xff]  ;;  %v841_v61 = vld [vmem:[%s19210_s25 + $0x440] sm:$0xff] }
 0x1c0   :  { %3116 = vmatpush2.msra.mxu0 %v2123_v62  ;;  %3013 = vmatpush1.msra.mxu1 %v1547_v63  ;;  %v1799_v62 = vld [vmem:[%s19210_s25 + $0x2230] sm:$0xff]  ;;  %v830_v63 = vld [vmem:[%s19210_s25 + $0x3e8] sm:$0xff] }
 0x1c1   :  { %3117 = vmatprep.subr.mxu0 %v2112_v0  ;;  %3014 = vmatprep.subr.mxu1 %v1536_v6  ;;  %v1788_v0 = vld [vmem:[%s19210_s25 + $0x21d8] sm:$0xff]  ;;  %v829_v6 = vld [vmem:[%s19210_s25 + $0x3e0] sm:$0xff] }
 0x1c2   :  { %3118 = vmatpush2.msra.mxu0 %v2111_v7  ;;  %3015 = vmatpush1.msra.mxu1 %v1535_v9  ;;  %v1787_v7 = vld [vmem:[%s19210_s25 + $0x21d0] sm:$0xff]  ;;  %v818_v9 = vld [vmem:[%s19210_s25 + $0x388] sm:$0xff] }
 0x1c3   :  { %3119 = vmatprep.subr.mxu0 %v2100_v10  ;;  %3016 = vmatprep.subr.mxu1 %v1524_v12  ;;  %v1776_v10 = vld [vmem:[%s19210_s25 + $0x2178] sm:$0xff]  ;;  %v817_v12 = vld [vmem:[%s19210_s25 + $0x380] sm:$0xff] }
 0x1c4   :  { %3120 = vmatpush2.msra.mxu0 %v2099_v14  ;;  %3017 = vmatpush1.msra.mxu1 %v1523_v15  ;;  %v1775_v14 = vld [vmem:[%s19210_s25 + $0x2170] sm:$0xff]  ;;  %v806_v15 = vld [vmem:[%s19210_s25 + $0x328] sm:$0xff] }
 0x1c5   :  { %3121 = vmatprep.subr.mxu0 %v2088_v17  ;;  %3018 = vmatprep.subr.mxu1 %v1512_v18  ;;  %v1764_v17 = vld [vmem:[%s19210_s25 + $0x2118] sm:$0xff]  ;;  %v805_v18 = vld [vmem:[%s19210_s25 + $0x320] sm:$0xff] }
 0x1c6   :  { %3122 = vmatpush2.msra.mxu0 %v2087_v19  ;;  %3019 = vmatpush1.msra.mxu1 %v1511_v47  ;;  %v1763_v19 = vld [vmem:[%s19210_s25 + $0x2110] sm:$0xff]  ;;  %v794_v47 = vld [vmem:[%s19210_s25 + $0x2c8] sm:$0xff] }
 0x1c7   :  { %3123 = vmatprep.subr.mxu0 %v2076_v20  ;;  %3020 = vmatprep.subr.mxu1 %v1500_v22  ;;  %v1752_v20 = vld [vmem:[%s19210_s25 + $0x20b8] sm:$0xff]  ;;  %v793_v22 = vld [vmem:[%s19210_s25 + $0x2c0] sm:$0xff] }
 0x1c8   :  { %3124 = vmatpush2.msra.mxu0 %v2075_v23  ;;  %3021 = vmatpush1.msra.mxu1 %v1499_v24  ;;  %v1751_v23 = vld [vmem:[%s19210_s25 + $0x20b0] sm:$0xff]  ;;  %v782_v24 = vld [vmem:[%s19210_s25 + $0x268] sm:$0xff] }
 0x1c9   :  { %3125 = vmatprep.subr.mxu0 %v2064_v25  ;;  %3022 = vmatprep.subr.mxu1 %v1488_v26  ;;  %v1740_v25 = vld [vmem:[%s19210_s25 + $0x2058] sm:$0xff]  ;;  %v781_v26 = vld [vmem:[%s19210_s25 + $0x260] sm:$0xff] }
 0x1ca   :  { %3126 = vmatpush2.msra.mxu0 %v2063_v27  ;;  %3023 = vmatpush1.msra.mxu1 %v1487_v29  ;;  %v1739_v27 = vld [vmem:[%s19210_s25 + $0x2050] sm:$0xff]  ;;  %v770_v29 = vld [vmem:[%s19210_s25 + $0x208] sm:$0xff] }
 0x1cb   :  { %3127 = vmatprep.subr.mxu0 %v2052_v30  ;;  %3024 = vmatprep.subr.mxu1 %v1476_v31  ;;  %v1728_v30 = vld [vmem:[%s19210_s25 + $0x1ff8] sm:$0xff]  ;;  %v769_v31 = vld [vmem:[%s19210_s25 + $0x200] sm:$0xff] }
 0x1cc   :  { %3128 = vmatpush2.msra.mxu0 %v2051_v28  ;;  %3025 = vmatpush1.msra.mxu1 %v1475_v50  ;;  %v1727_v28 = vld [vmem:[%s19210_s25 + $0x1ff0] sm:$0xff]  ;;  %v758_v50 = vld [vmem:[%s19210_s25 + $0x1a8] sm:$0xff] }
 0x1cd   :  { %3130 = vmatmul.mubr.f32.vlgmr.msra.gmra.mxu0 %v10218_v45  ;;  %3207 = vmatprep.subr.mxu0 %v890_v32  ;;  %v1716_v32 = vld [vmem:[%s19210_s25 + $0x1f98] sm:$0xff] }
 0x1ce   :  { %3026 = vmatprep.subr.mxu1 %v1848_v33  ;;  %3208 = vmatpush1.msra.mxu0 %v889_v34  ;;  %v757_v33 = vld [vmem:[%s19210_s25 + $0x1a0] sm:$0xff]  ;;  %v1715_v34 = vld [vmem:[%s19210_s25 + $0x1f90] sm:$0xff] }
 0x1cf   :  { %3271 = vmatprep.mubr.f32.mxu0 %v9805_v2  ;;  %3027 = vmatpush2.msra.mxu1 %v1847_v36  ;;  %v746_v36 = vld [vmem:[%s19210_s25 + $0x148] sm:$0xff] }
 0x1d0   :  { %3209 = vmatprep.subr.mxu0 %v878_v38  ;;  %3028 = vmatprep.subr.mxu1 %v1836_v39  ;;  %v1704_v38 = vld [vmem:[%s19210_s25 + $0x1f38] sm:$0xff]  ;;  %v745_v39 = vld [vmem:[%s19210_s25 + $0x140] sm:$0xff] }
 0x1d1   :  { %3210 = vmatpush1.msra.mxu0 %v877_v40  ;;  %3029 = vmatpush2.msra.mxu1 %v1835_v41  ;;  %v1703_v40 = vld [vmem:[%s19210_s25 + $0x1f30] sm:$0xff]  ;;  %v734_v41 = vld [vmem:[%s19210_s25 + $0xe8] sm:$0xff] }
 0x1d2   :  { %3211 = vmatprep.subr.mxu0 %v866_v43  ;;  %3030 = vmatprep.subr.mxu1 %v1824_v44  ;;  %v1692_v43 = vld [vmem:[%s19210_s25 + $0x1ed8] sm:$0xff]  ;;  %v733_v44 = vld [vmem:[%s19210_s25 + $0xe0] sm:$0xff] }
 0x1d3   :  { %3212 = vmatpush1.msra.mxu0 %v865_v46  ;;  %3031 = vmatpush2.msra.mxu1 %v1823_v54  ;;  %v1691_v46 = vld [vmem:[%s19210_s25 + $0x1ed0] sm:$0xff]  ;;  %v722_v54 = vld [vmem:[%s19210_s25 + $0x88] sm:$0xff] }
 0x1d4   :  { %3213 = vmatprep.subr.mxu0 %v854_v55  ;;  %3032 = vmatprep.subr.mxu1 %v1812_v56  ;;  %v1680_v55 = vld [vmem:[%s19210_s25 + $0x1e78] sm:$0xff]  ;;  %v721_v56 = vld [vmem:[%s19210_s25 + $0x80] sm:$0xff] }
 0x1d5   :  { %3214 = vmatpush1.msra.mxu0 %v853_v57  ;;  %3033 = vmatpush2.msra.mxu1 %v1811_v58  ;;  %v1679_v57 = vld [vmem:[%s19210_s25 + $0x1e70] sm:$0xff]  ;;  %v710_v58 = vld [vmem:[%s19210_s25 + $0x28] sm:$0xff] }
 0x1d6   :  { %3215 = vmatprep.subr.mxu0 %v842_v59  ;;  %3034 = vmatprep.subr.mxu1 %v1800_v60  ;;  %v1668_v59 = vld [vmem:[%s19210_s25 + $0x1e18] sm:$0xff]  ;;  %v709_v60 = vld [vmem:[%s19210_s25 + $0x20] sm:$0xff] }
 0x1d7   :  { %3216 = vmatpush1.msra.mxu0 %v841_v61  ;;  %3035 = vmatpush2.msra.mxu1 %v1799_v62  ;;  %v1667_v61 = vld [vmem:[%s19210_s25 + $0x1e10] sm:$0xff]  ;;  %v1082_v62 = vld [vmem:[%s19210_s25 + $0xbc8] sm:$0xff] }
 0x1d8   :  { %3217 = vmatprep.subr.mxu0 %v830_v63  ;;  %3036 = vmatprep.subr.mxu1 %v1788_v0  ;;  %v2424_v63 = vld [vmem:[%s19210_s25 + $0x35b8] sm:$0xff]  ;;  %v1081_v0 = vld [vmem:[%s19210_s25 + $0xbc0] sm:$0xff] }
 0x1d9   :  { %3218 = vmatpush1.msra.mxu0 %v829_v6  ;;  %3037 = vmatpush2.msra.mxu1 %v1787_v7  ;;  %v2423_v6 = vld [vmem:[%s19210_s25 + $0x35b0] sm:$0xff]  ;;  %v1070_v7 = vld [vmem:[%s19210_s25 + $0xb68] sm:$0xff] }
 0x1da   :  { %3219 = vmatprep.subr.mxu0 %v818_v9  ;;  %3038 = vmatprep.subr.mxu1 %v1776_v10  ;;  %v2412_v9 = vld [vmem:[%s19210_s25 + $0x3558] sm:$0xff]  ;;  %v1069_v10 = vld [vmem:[%s19210_s25 + $0xb60] sm:$0xff] }
 0x1db   :  { %3220 = vmatpush1.msra.mxu0 %v817_v12  ;;  %3039 = vmatpush2.msra.mxu1 %v1775_v14  ;;  %v2411_v12 = vld [vmem:[%s19210_s25 + $0x3550] sm:$0xff]  ;;  %v1058_v14 = vld [vmem:[%s19210_s25 + $0xb08] sm:$0xff] }
 0x1dc   :  { %3221 = vmatprep.subr.mxu0 %v806_v15  ;;  %3040 = vmatprep.subr.mxu1 %v1764_v17  ;;  %v2400_v15 = vld [vmem:[%s19210_s25 + $0x34f8] sm:$0xff]  ;;  %v1057_v17 = vld [vmem:[%s19210_s25 + $0xb00] sm:$0xff] }
 0x1dd   :  { %3222 = vmatpush1.msra.mxu0 %v805_v18  ;;  %3041 = vmatpush2.msra.mxu1 %v1763_v19  ;;  %v2399_v18 = vld [vmem:[%s19210_s25 + $0x34f0] sm:$0xff]  ;;  %v1046_v19 = vld [vmem:[%s19210_s25 + $0xaa8] sm:$0xff] }
 0x1de   :  { %3223 = vmatprep.subr.mxu0 %v794_v47  ;;  %3042 = vmatprep.subr.mxu1 %v1752_v20  ;;  %v2388_v47 = vld [vmem:[%s19210_s25 + $0x3498] sm:$0xff]  ;;  %v1045_v20 = vld [vmem:[%s19210_s25 + $0xaa0] sm:$0xff] }
 0x1df   :  { %3224 = vmatpush1.msra.mxu0 %v793_v22  ;;  %3043 = vmatpush2.msra.mxu1 %v1751_v23  ;;  %v2387_v22 = vld [vmem:[%s19210_s25 + $0x3490] sm:$0xff]  ;;  %v1034_v23 = vld [vmem:[%s19210_s25 + $0xa48] sm:$0xff] }
 0x1e0   :  { %3225 = vmatprep.subr.mxu0 %v782_v24  ;;  %3044 = vmatprep.subr.mxu1 %v1740_v25  ;;  %v2376_v24 = vld [vmem:[%s19210_s25 + $0x3438] sm:$0xff]  ;;  %v1033_v25 = vld [vmem:[%s19210_s25 + $0xa40] sm:$0xff] }
 0x1e1   :  { %3226 = vmatpush1.msra.mxu0 %v781_v26  ;;  %3045 = vmatpush2.msra.mxu1 %v1739_v27  ;;  %v2375_v26 = vld [vmem:[%s19210_s25 + $0x3430] sm:$0xff]  ;;  %v1022_v27 = vld [vmem:[%s19210_s25 + $0x9e8] sm:$0xff] }
 0x1e2   :  { %3227 = vmatprep.subr.mxu0 %v770_v29  ;;  %3046 = vmatprep.subr.mxu1 %v1728_v30  ;;  %v2364_v29 = vld [vmem:[%s19210_s25 + $0x33d8] sm:$0xff]  ;;  %v1021_v30 = vld [vmem:[%s19210_s25 + $0x9e0] sm:$0xff] }
 0x1e3   :  { %3228 = vmatpush1.msra.mxu0 %v769_v31  ;;  %3047 = vmatpush2.msra.mxu1 %v1727_v28  ;;  %v2363_v31 = vld [vmem:[%s19210_s25 + $0x33d0] sm:$0xff]  ;;  %v1010_v28 = vld [vmem:[%s19210_s25 + $0x988] sm:$0xff] }
 0x1e4   :  { %3229 = vmatprep.subr.mxu0 %v758_v50  ;;  %3048 = vmatprep.subr.mxu1 %v1716_v32  ;;  %v2352_v50 = vld [vmem:[%s19210_s25 + $0x3378] sm:$0xff]  ;;  %v1009_v32 = vld [vmem:[%s19210_s25 + $0x980] sm:$0xff] }
 0x1e5   :  { %3230 = vmatpush1.msra.mxu0 %v757_v33  ;;  %3049 = vmatpush2.msra.mxu1 %v1715_v34  ;;  %v2351_v33 = vld [vmem:[%s19210_s25 + $0x3370] sm:$0xff]  ;;  %v998_v34 = vld [vmem:[%s19210_s25 + $0x928] sm:$0xff] }
 0x1e6   :  { %3231 = vmatprep.subr.mxu0 %v746_v36  ;;  %3050 = vmatprep.subr.mxu1 %v1704_v38  ;;  %v2340_v36 = vld [vmem:[%s19210_s25 + $0x3318] sm:$0xff]  ;;  %v997_v38 = vld [vmem:[%s19210_s25 + $0x920] sm:$0xff] }
 0x1e7   :  { %3232 = vmatpush1.msra.mxu0 %v745_v39  ;;  %3051 = vmatpush2.msra.mxu1 %v1703_v40  ;;  %v2339_v39 = vld [vmem:[%s19210_s25 + $0x3310] sm:$0xff]  ;;  %v986_v40 = vld [vmem:[%s19210_s25 + $0x8c8] sm:$0xff] }
 0x1e8   :  { %3233 = vmatprep.subr.mxu0 %v734_v41  ;;  %3052 = vmatprep.subr.mxu1 %v1692_v43  ;;  %v2328_v41 = vld [vmem:[%s19210_s25 + $0x32b8] sm:$0xff]  ;;  %v985_v43 = vld [vmem:[%s19210_s25 + $0x8c0] sm:$0xff] }
 0x1e9   :  { %3234 = vmatpush1.msra.mxu0 %v733_v44  ;;  %3053 = vmatpush2.msra.mxu1 %v1691_v46  ;;  %v2327_v44 = vld [vmem:[%s19210_s25 + $0x32b0] sm:$0xff]  ;;  %v974_v46 = vld [vmem:[%s19210_s25 + $0x868] sm:$0xff] }
 0x1ea   :  { %3235 = vmatprep.subr.mxu0 %v722_v54  ;;  %3054 = vmatprep.subr.mxu1 %v1680_v55  ;;  %v2316_v54 = vld [vmem:[%s19210_s25 + $0x3258] sm:$0xff]  ;;  %v973_v55 = vld [vmem:[%s19210_s25 + $0x860] sm:$0xff] }
 0x1eb   :  { %3236 = vmatpush1.msra.mxu0 %v721_v56  ;;  %3055 = vmatpush2.msra.mxu1 %v1679_v57  ;;  %v2315_v56 = vld [vmem:[%s19210_s25 + $0x3250] sm:$0xff]  ;;  %v962_v57 = vld [vmem:[%s19210_s25 + $0x808] sm:$0xff] }
 0x1ec   :  { %3237 = vmatprep.subr.mxu0 %v710_v58  ;;  %3056 = vmatprep.subr.mxu1 %v1668_v59  ;;  %v2304_v58 = vld [vmem:[%s19210_s25 + $0x31f8] sm:$0xff]  ;;  %v961_v59 = vld [vmem:[%s19210_s25 + $0x800] sm:$0xff] }
 0x1ed   :  { %3238 = vmatpush1.msra.mxu0 %v709_v60  ;;  %3057 = vmatpush2.msra.mxu1 %v1667_v61  ;;  %v2303_v60 = vld [vmem:[%s19210_s25 + $0x31f0] sm:$0xff]  ;;  %v950_v61 = vld [vmem:[%s19210_s25 + $0x7a8] sm:$0xff] }
 0x1ee   :  { %3239 = vmatprep.subr.mxu0 %v1082_v62  ;;  %3059 = vmatmul.mubr.f32.vlgmr.msra.gmra.mxu1 %v10223_v53  ;;  %v2292_v62 = vld [vmem:[%s19210_s25 + $0x3198] sm:$0xff] }
 0x1ef   :  { %3136 = vmatprep.subr.mxu1 %v2424_v63  ;;  %3240 = vmatpush2.msra.mxu0 %v1081_v0  ;;  %v949_v63 = vld [vmem:[%s19210_s25 + $0x7a0] sm:$0xff]  ;;  %v2291_v0 = vld [vmem:[%s19210_s25 + $0x3190] sm:$0xff] }
 0x1f0   :  { %3137 = vmatpush1.msra.mxu1 %v2423_v6  ;;  %3241 = vmatprep.subr.mxu0 %v1070_v7  ;;  %v938_v6 = vld [vmem:[%s19210_s25 + $0x748] sm:$0xff]  ;;  %v2280_v7 = vld [vmem:[%s19210_s25 + $0x3138] sm:$0xff] }
 0x1f1   :  { %3138 = vmatprep.subr.mxu1 %v2412_v9  ;;  %3242 = vmatpush2.msra.mxu0 %v1069_v10  ;;  %v937_v9 = vld [vmem:[%s19210_s25 + $0x740] sm:$0xff]  ;;  %v2279_v10 = vld [vmem:[%s19210_s25 + $0x3130] sm:$0xff] }
 0x1f2   :  { %3139 = vmatpush1.msra.mxu1 %v2411_v12  ;;  %3243 = vmatprep.subr.mxu0 %v1058_v14  ;;  %v926_v12 = vld [vmem:[%s19210_s25 + $0x6e8] sm:$0xff]  ;;  %v2268_v14 = vld [vmem:[%s19210_s25 + $0x30d8] sm:$0xff] }
 0x1f3   :  { %3140 = vmatprep.subr.mxu1 %v2400_v15  ;;  %3244 = vmatpush2.msra.mxu0 %v1057_v17  ;;  %v925_v15 = vld [vmem:[%s19210_s25 + $0x6e0] sm:$0xff]  ;;  %v2267_v17 = vld [vmem:[%s19210_s25 + $0x30d0] sm:$0xff] }
 0x1f4   :  { %3141 = vmatpush1.msra.mxu1 %v2399_v18  ;;  %3245 = vmatprep.subr.mxu0 %v1046_v19  ;;  %v914_v18 = vld [vmem:[%s19210_s25 + $0x688] sm:$0xff]  ;;  %v2256_v19 = vld [vmem:[%s19210_s25 + $0x3078] sm:$0xff] }
 0x1f5   :  { %3142 = vmatprep.subr.mxu1 %v2388_v47  ;;  %3246 = vmatpush2.msra.mxu0 %v1045_v20  ;;  %v913_v47 = vld [vmem:[%s19210_s25 + $0x680] sm:$0xff]  ;;  %v2255_v20 = vld [vmem:[%s19210_s25 + $0x3070] sm:$0xff] }
 0x1f6   :  { %3143 = vmatpush1.msra.mxu1 %v2387_v22  ;;  %3247 = vmatprep.subr.mxu0 %v1034_v23  ;;  %v902_v22 = vld [vmem:[%s19210_s25 + $0x628] sm:$0xff]  ;;  %v2244_v23 = vld [vmem:[%s19210_s25 + $0x3018] sm:$0xff] }
 0x1f7   :  { %3144 = vmatprep.subr.mxu1 %v2376_v24  ;;  %3248 = vmatpush2.msra.mxu0 %v1033_v25  ;;  %v901_v24 = vld [vmem:[%s19210_s25 + $0x620] sm:$0xff]  ;;  %v2243_v25 = vld [vmem:[%s19210_s25 + $0x3010] sm:$0xff] }
 0x1f8   :  { %3145 = vmatpush1.msra.mxu1 %v2375_v26  ;;  %3249 = vmatprep.subr.mxu0 %v1022_v27  ;;  %v1658_v26 = vld [vmem:[%s19210_s25 + $0x1dc8] sm:$0xff] }
 0x1f9   :  { %3146 = vmatprep.subr.mxu1 %v2364_v29  ;;  %3250 = vmatpush2.msra.mxu0 %v1021_v30  ;;  %v1274_v27 = vld [vmem:[%s19210_s25 + $0x11c8] sm:$0xff]  ;;  %v1657_v29 = vld [vmem:[%s19210_s25 + $0x1dc0] sm:$0xff] }
 0x1fa   :  { %3147 = vmatpush1.msra.mxu1 %v2363_v31  ;;  %3251 = vmatprep.subr.mxu0 %v1010_v28  ;;  %v1273_v30 = vld [vmem:[%s19210_s25 + $0x11c0] sm:$0xff]  ;;  %v1646_v31 = vld [vmem:[%s19210_s25 + $0x1d68] sm:$0xff] }
 0x1fb   :  { %3148 = vmatprep.subr.mxu1 %v2352_v50  ;;  %3252 = vmatpush2.msra.mxu0 %v1009_v32  ;;  %v1262_v28 = vld [vmem:[%s19210_s25 + $0x1168] sm:$0xff]  ;;  %v1645_v50 = vld [vmem:[%s19210_s25 + $0x1d60] sm:$0xff] }
 0x1fc   :  { %3149 = vmatpush1.msra.mxu1 %v2351_v33  ;;  %3253 = vmatprep.subr.mxu0 %v998_v34  ;;  %v1261_v32 = vld [vmem:[%s19210_s25 + $0x1160] sm:$0xff]  ;;  %v1634_v33 = vld [vmem:[%s19210_s25 + $0x1d08] sm:$0xff] }
 0x1fd   :  { %3150 = vmatprep.subr.mxu1 %v2340_v36  ;;  %3254 = vmatpush2.msra.mxu0 %v997_v38  ;;  %v1250_v34 = vld [vmem:[%s19210_s25 + $0x1108] sm:$0xff]  ;;  %v1633_v36 = vld [vmem:[%s19210_s25 + $0x1d00] sm:$0xff] }
 0x1fe   :  { %3151 = vmatpush1.msra.mxu1 %v2339_v39  ;;  %3255 = vmatprep.subr.mxu0 %v986_v40  ;;  %v1249_v38 = vld [vmem:[%s19210_s25 + $0x1100] sm:$0xff]  ;;  %v1622_v39 = vld [vmem:[%s19210_s25 + $0x1ca8] sm:$0xff] }
 0x1ff   :  { %3152 = vmatprep.subr.mxu1 %v2328_v41  ;;  %3256 = vmatpush2.msra.mxu0 %v985_v43  ;;  %v1238_v40 = vld [vmem:[%s19210_s25 + $0x10a8] sm:$0xff]  ;;  %v1621_v41 = vld [vmem:[%s19210_s25 + $0x1ca0] sm:$0xff] }
 0x200   :  { %3153 = vmatpush1.msra.mxu1 %v2327_v44  ;;  %3257 = vmatprep.subr.mxu0 %v974_v46  ;;  %v1237_v43 = vld [vmem:[%s19210_s25 + $0x10a0] sm:$0xff]  ;;  %v1610_v44 = vld [vmem:[%s19210_s25 + $0x1c48] sm:$0xff] }
 0x201   :  { %3154 = vmatprep.subr.mxu1 %v2316_v54  ;;  %3258 = vmatpush2.msra.mxu0 %v973_v55  ;;  %v1226_v46 = vld [vmem:[%s19210_s25 + $0x1048] sm:$0xff]  ;;  %v1609_v54 = vld [vmem:[%s19210_s25 + $0x1c40] sm:$0xff] }
 0x202   :  { %3155 = vmatpush1.msra.mxu1 %v2315_v56  ;;  %3259 = vmatprep.subr.mxu0 %v962_v57  ;;  %v1225_v55 = vld [vmem:[%s19210_s25 + $0x1040] sm:$0xff]  ;;  %v1598_v56 = vld [vmem:[%s19210_s25 + $0x1be8] sm:$0xff] }
 0x203   :  { %3156 = vmatprep.subr.mxu1 %v2304_v58  ;;  %3260 = vmatpush2.msra.mxu0 %v961_v59  ;;  %v1214_v57 = vld [vmem:[%s19210_s25 + $0xfe8] sm:$0xff]  ;;  %v1597_v58 = vld [vmem:[%s19210_s25 + $0x1be0] sm:$0xff] }
 0x204   :  { %3157 = vmatpush1.msra.mxu1 %v2303_v60  ;;  %3261 = vmatprep.subr.mxu0 %v950_v61  ;;  %v1213_v59 = vld [vmem:[%s19210_s25 + $0xfe0] sm:$0xff]  ;;  %v1586_v60 = vld [vmem:[%s19210_s25 + $0x1b88] sm:$0xff] }
 0x205   :  { %3158 = vmatprep.subr.mxu1 %v2292_v62  ;;  %3262 = vmatpush2.msra.mxu0 %v949_v63  ;;  %v1202_v61 = vld [vmem:[%s19210_s25 + $0xf88] sm:$0xff]  ;;  %v1585_v62 = vld [vmem:[%s19210_s25 + $0x1b80] sm:$0xff] }
 0x206   :  { %3159 = vmatpush1.msra.mxu1 %v2291_v0  ;;  %3263 = vmatprep.subr.mxu0 %v938_v6  ;;  %v1201_v63 = vld [vmem:[%s19210_s25 + $0xf80] sm:$0xff]  ;;  %v1574_v0 = vld [vmem:[%s19210_s25 + $0x1b28] sm:$0xff] }
 0x207   :  { %3160 = vmatprep.subr.mxu1 %v2280_v7  ;;  %3264 = vmatpush2.msra.mxu0 %v937_v9  ;;  %v1190_v6 = vld [vmem:[%s19210_s25 + $0xf28] sm:$0xff]  ;;  %v1573_v7 = vld [vmem:[%s19210_s25 + $0x1b20] sm:$0xff] }
 0x208   :  { %3161 = vmatpush1.msra.mxu1 %v2279_v10  ;;  %3265 = vmatprep.subr.mxu0 %v926_v12  ;;  %v1189_v9 = vld [vmem:[%s19210_s25 + $0xf20] sm:$0xff]  ;;  %v1562_v10 = vld [vmem:[%s19210_s25 + $0x1ac8] sm:$0xff] }
 0x209   :  { %3162 = vmatprep.subr.mxu1 %v2268_v14  ;;  %3266 = vmatpush2.msra.mxu0 %v925_v15  ;;  %v1178_v12 = vld [vmem:[%s19210_s25 + $0xec8] sm:$0xff]  ;;  %v1561_v14 = vld [vmem:[%s19210_s25 + $0x1ac0] sm:$0xff] }
 0x20a   :  { %3163 = vmatpush1.msra.mxu1 %v2267_v17  ;;  %3267 = vmatprep.subr.mxu0 %v914_v18  ;;  %v1177_v15 = vld [vmem:[%s19210_s25 + $0xec0] sm:$0xff]  ;;  %v1550_v17 = vld [vmem:[%s19210_s25 + $0x1a68] sm:$0xff] }
 0x20b   :  { %3164 = vmatprep.subr.mxu1 %v2256_v19  ;;  %3268 = vmatpush2.msra.mxu0 %v913_v47  ;;  %v1166_v18 = vld [vmem:[%s19210_s25 + $0xe68] sm:$0xff]  ;;  %v1549_v19 = vld [vmem:[%s19210_s25 + $0x1a60] sm:$0xff] }
 0x20c   :  { %3165 = vmatpush1.msra.mxu1 %v2255_v20  ;;  %3269 = vmatprep.subr.mxu0 %v902_v22  ;;  %v1165_v47 = vld [vmem:[%s19210_s25 + $0xe60] sm:$0xff]  ;;  %v1538_v20 = vld [vmem:[%s19210_s25 + $0x1a08] sm:$0xff] }
 0x20d   :  { %3166 = vmatprep.subr.mxu1 %v2244_v23  ;;  %3270 = vmatpush2.msra.mxu0 %v901_v24  ;;  %v1154_v22 = vld [vmem:[%s19210_s25 + $0xe08] sm:$0xff]  ;;  %v1537_v23 = vld [vmem:[%s19210_s25 + $0x1a00] sm:$0xff] }
 0x20e   :  { %3167 = vmatpush1.msra.mxu1 %v2243_v25  ;;  %3200 = vmatprep.mubr.f32.mxu1 %v8560_v13  ;;  %v1153_v24 = vld [vmem:[%s19210_s25 + $0xe00] sm:$0xff]  ;;  %v1526_v25 = vld [vmem:[%s19210_s25 + $0x19a8] sm:$0xff] }
 0x20f   :  { %3272 = vmatmul.mubr.f32.vlgmr.msra.gmra.mxu0 %v9809_v4  ;;  %3349 = vmatprep.subr.mxu0 %v1658_v26  ;;  %v1142_v26 = vld [vmem:[%s19210_s25 + $0xda8] sm:$0xff] }
 0x210   :  { %3201 = vmatmul.mubr.f32.vlgmr.msra.gmra.mxu1 %v10427_v21  ;;  %3278 = vmatprep.subr.mxu1 %v1274_v27  ;;  %v1525_v27 = vld [vmem:[%s19210_s25 + $0x19a0] sm:$0xff] }
 0x211   :  { %3350 = vmatpush1.msra.mxu0 %v1657_v29  ;;  %3413 = vmatprep.mubr.f32.mxu0 %v10119_v5  ;;  %v1141_v29 = vld [vmem:[%s19210_s25 + $0xda0] sm:$0xff] }
 0x212   :  { %3279 = vmatpush1.msra.mxu1 %v1273_v30  ;;  %3342 = vmatprep.mubr.f32.mxu1 %v9807_v3  ;;  %v1514_v30 = vld [vmem:[%s19210_s25 + $0x1948] sm:$0xff] }
 0x213   :  { %3351 = vmatprep.subr.mxu0 %v1646_v31  ;;  %3280 = vmatprep.subr.mxu1 %v1262_v28  ;;  %v1130_v31 = vld [vmem:[%s19210_s25 + $0xd48] sm:$0xff]  ;;  %v1513_v28 = vld [vmem:[%s19210_s25 + $0x1940] sm:$0xff] }
 0x214   :  { %3352 = vmatpush1.msra.mxu0 %v1645_v50  ;;  %3281 = vmatpush1.msra.mxu1 %v1261_v32  ;;  %v1129_v50 = vld [vmem:[%s19210_s25 + $0xd40] sm:$0xff]  ;;  %v1502_v32 = vld [vmem:[%s19210_s25 + $0x18e8] sm:$0xff] }
 0x215   :  { %3353 = vmatprep.subr.mxu0 %v1634_v33  ;;  %3282 = vmatprep.subr.mxu1 %v1250_v34  ;;  %v1118_v33 = vld [vmem:[%s19210_s25 + $0xce8] sm:$0xff]  ;;  %v1501_v34 = vld [vmem:[%s19210_s25 + $0x18e0] sm:$0xff] }
 0x216   :  { %3354 = vmatpush1.msra.mxu0 %v1633_v36  ;;  %3283 = vmatpush1.msra.mxu1 %v1249_v38  ;;  %v1117_v36 = vld [vmem:[%s19210_s25 + $0xce0] sm:$0xff]  ;;  %v1490_v38 = vld [vmem:[%s19210_s25 + $0x1888] sm:$0xff] }
 0x217   :  { %3355 = vmatprep.subr.mxu0 %v1622_v39  ;;  %3284 = vmatprep.subr.mxu1 %v1238_v40  ;;  %v1106_v39 = vld [vmem:[%s19210_s25 + $0xc88] sm:$0xff]  ;;  %v1489_v40 = vld [vmem:[%s19210_s25 + $0x1880] sm:$0xff] }
 0x218   :  { %3356 = vmatpush1.msra.mxu0 %v1621_v41  ;;  %3285 = vmatpush1.msra.mxu1 %v1237_v43  ;;  %v1105_v41 = vld [vmem:[%s19210_s25 + $0xc80] sm:$0xff]  ;;  %v1478_v43 = vld [vmem:[%s19210_s25 + $0x1828] sm:$0xff] }
 0x219   :  { %3357 = vmatprep.subr.mxu0 %v1610_v44  ;;  %3286 = vmatprep.subr.mxu1 %v1226_v46  ;;  %v1094_v44 = vld [vmem:[%s19210_s25 + $0xc28] sm:$0xff]  ;;  %v1477_v46 = vld [vmem:[%s19210_s25 + $0x1820] sm:$0xff] }
 0x21a   :  { %3358 = vmatpush1.msra.mxu0 %v1609_v54  ;;  %3287 = vmatpush1.msra.mxu1 %v1225_v55  ;;  %v1093_v54 = vld [vmem:[%s19210_s25 + $0xc20] sm:$0xff]  ;;  %v1850_v55 = vld [vmem:[%s19210_s25 + $0x23c8] sm:$0xff] }
 0x21b   :  { %3359 = vmatprep.subr.mxu0 %v1598_v56  ;;  %3288 = vmatprep.subr.mxu1 %v1214_v57  ;;  %v1466_v56 = vld [vmem:[%s19210_s25 + $0x17c8] sm:$0xff]  ;;  %v1849_v57 = vld [vmem:[%s19210_s25 + $0x23c0] sm:$0xff] }
 0x21c   :  { %3360 = vmatpush1.msra.mxu0 %v1597_v58  ;;  %3289 = vmatpush1.msra.mxu1 %v1213_v59  ;;  %v1465_v58 = vld [vmem:[%s19210_s25 + $0x17c0] sm:$0xff]  ;;  %v1838_v59 = vld [vmem:[%s19210_s25 + $0x2368] sm:$0xff] }
 0x21d   :  { %3361 = vmatprep.subr.mxu0 %v1586_v60  ;;  %3290 = vmatprep.subr.mxu1 %v1202_v61  ;;  %v1454_v60 = vld [vmem:[%s19210_s25 + $0x1768] sm:$0xff]  ;;  %v1837_v61 = vld [vmem:[%s19210_s25 + $0x2360] sm:$0xff] }
 0x21e   :  { %3362 = vmatpush1.msra.mxu0 %v1585_v62  ;;  %3291 = vmatpush1.msra.mxu1 %v1201_v63  ;;  %v1453_v62 = vld [vmem:[%s19210_s25 + $0x1760] sm:$0xff]  ;;  %v1826_v63 = vld [vmem:[%s19210_s25 + $0x2308] sm:$0xff] }
 0x21f   :  { %3363 = vmatprep.subr.mxu0 %v1574_v0  ;;  %3292 = vmatprep.subr.mxu1 %v1190_v6  ;;  %v1442_v0 = vld [vmem:[%s19210_s25 + $0x1708] sm:$0xff]  ;;  %v1825_v6 = vld [vmem:[%s19210_s25 + $0x2300] sm:$0xff] }
 0x220   :  { %3364 = vmatpush1.msra.mxu0 %v1573_v7  ;;  %3293 = vmatpush1.msra.mxu1 %v1189_v9  ;;  %v1441_v7 = vld [vmem:[%s19210_s25 + $0x1700] sm:$0xff]  ;;  %v1814_v9 = vld [vmem:[%s19210_s25 + $0x22a8] sm:$0xff] }
 0x221   :  { %3365 = vmatprep.subr.mxu0 %v1562_v10  ;;  %3294 = vmatprep.subr.mxu1 %v1178_v12  ;;  %v1430_v10 = vld [vmem:[%s19210_s25 + $0x16a8] sm:$0xff]  ;;  %v1813_v12 = vld [vmem:[%s19210_s25 + $0x22a0] sm:$0xff] }
 0x222   :  { %3366 = vmatpush1.msra.mxu0 %v1561_v14  ;;  %3295 = vmatpush1.msra.mxu1 %v1177_v15  ;;  %v1429_v14 = vld [vmem:[%s19210_s25 + $0x16a0] sm:$0xff]  ;;  %v1802_v15 = vld [vmem:[%s19210_s25 + $0x2248] sm:$0xff] }
 0x223   :  { %3367 = vmatprep.subr.mxu0 %v1550_v17  ;;  %3296 = vmatprep.subr.mxu1 %v1166_v18  ;;  %v1418_v17 = vld [vmem:[%s19210_s25 + $0x1648] sm:$0xff]  ;;  %v1801_v18 = vld [vmem:[%s19210_s25 + $0x2240] sm:$0xff] }
 0x224   :  { %3368 = vmatpush1.msra.mxu0 %v1549_v19  ;;  %3297 = vmatpush1.msra.mxu1 %v1165_v47  ;;  %v1417_v19 = vld [vmem:[%s19210_s25 + $0x1640] sm:$0xff]  ;;  %v1790_v47 = vld [vmem:[%s19210_s25 + $0x21e8] sm:$0xff] }
 0x225   :  { %3369 = vmatprep.subr.mxu0 %v1538_v20  ;;  %3298 = vmatprep.subr.mxu1 %v1154_v22  ;;  %v1406_v20 = vld [vmem:[%s19210_s25 + $0x15e8] sm:$0xff]  ;;  %v1789_v22 = vld [vmem:[%s19210_s25 + $0x21e0] sm:$0xff] }
 0x226   :  { %3370 = vmatpush1.msra.mxu0 %v1537_v23  ;;  %3299 = vmatpush1.msra.mxu1 %v1153_v24  ;;  %v1405_v23 = vld [vmem:[%s19210_s25 + $0x15e0] sm:$0xff]  ;;  %v1778_v24 = vld [vmem:[%s19210_s25 + $0x2188] sm:$0xff] }
 0x227   :  { %3371 = vmatprep.subr.mxu0 %v1526_v25  ;;  %3300 = vmatprep.subr.mxu1 %v1142_v26  ;;  %v1394_v25 = vld [vmem:[%s19210_s25 + $0x1588] sm:$0xff]  ;;  %v1777_v26 = vld [vmem:[%s19210_s25 + $0x2180] sm:$0xff] }
 0x228   :  { %3372 = vmatpush1.msra.mxu0 %v1525_v27  ;;  %3301 = vmatpush1.msra.mxu1 %v1141_v29  ;;  %v1393_v27 = vld [vmem:[%s19210_s25 + $0x1580] sm:$0xff]  ;;  %v1766_v29 = vld [vmem:[%s19210_s25 + $0x2128] sm:$0xff] }
 0x229   :  { %3373 = vmatprep.subr.mxu0 %v1514_v30  ;;  %3302 = vmatprep.subr.mxu1 %v1130_v31  ;;  %v1382_v30 = vld [vmem:[%s19210_s25 + $0x1528] sm:$0xff]  ;;  %v1765_v31 = vld [vmem:[%s19210_s25 + $0x2120] sm:$0xff] }
 0x22a   :  { %3374 = vmatpush1.msra.mxu0 %v1513_v28  ;;  %3303 = vmatpush1.msra.mxu1 %v1129_v50  ;;  %v1381_v28 = vld [vmem:[%s19210_s25 + $0x1520] sm:$0xff]  ;;  %v1754_v50 = vld [vmem:[%s19210_s25 + $0x20c8] sm:$0xff] }
 0x22b   :  { %3375 = vmatprep.subr.mxu0 %v1502_v32  ;;  %3304 = vmatprep.subr.mxu1 %v1118_v33  ;;  %v1370_v32 = vld [vmem:[%s19210_s25 + $0x14c8] sm:$0xff]  ;;  %v1753_v33 = vld [vmem:[%s19210_s25 + $0x20c0] sm:$0xff] }
 0x22c   :  { %3376 = vmatpush1.msra.mxu0 %v1501_v34  ;;  %3305 = vmatpush1.msra.mxu1 %v1117_v36  ;;  %v1369_v34 = vld [vmem:[%s19210_s25 + $0x14c0] sm:$0xff]  ;;  %v1742_v36 = vld [vmem:[%s19210_s25 + $0x2068] sm:$0xff] }
 0x22d   :  { %3377 = vmatprep.subr.mxu0 %v1490_v38  ;;  %3306 = vmatprep.subr.mxu1 %v1106_v39  ;;  %v1358_v38 = vld [vmem:[%s19210_s25 + $0x1468] sm:$0xff]  ;;  %v1741_v39 = vld [vmem:[%s19210_s25 + $0x2060] sm:$0xff] }
 0x22e   :  { %3378 = vmatpush1.msra.mxu0 %v1489_v40  ;;  %3307 = vmatpush1.msra.mxu1 %v1105_v41  ;;  %v1357_v40 = vld [vmem:[%s19210_s25 + $0x1460] sm:$0xff]  ;;  %v1730_v41 = vld [vmem:[%s19210_s25 + $0x2008] sm:$0xff] }
 0x22f   :  { %3379 = vmatprep.subr.mxu0 %v1478_v43  ;;  %3308 = vmatprep.subr.mxu1 %v1094_v44  ;;  %v1346_v43 = vld [vmem:[%s19210_s25 + $0x1408] sm:$0xff]  ;;  %v1729_v44 = vld [vmem:[%s19210_s25 + $0x2000] sm:$0xff] }
 0x230   :  { %3380 = vmatpush1.msra.mxu0 %v1477_v46  ;;  %3309 = vmatpush1.msra.mxu1 %v1093_v54  ;;  %v1345_v46 = vld [vmem:[%s19210_s25 + $0x1400] sm:$0xff]  ;;  %v1718_v54 = vld [vmem:[%s19210_s25 + $0x1fa8] sm:$0xff] }
 0x231   :  { %3381 = vmatprep.subr.mxu0 %v1850_v55  ;;  %3310 = vmatprep.subr.mxu1 %v1466_v56  ;;  %v1334_v55 = vld [vmem:[%s19210_s25 + $0x13a8] sm:$0xff]  ;;  %v1717_v56 = vld [vmem:[%s19210_s25 + $0x1fa0] sm:$0xff] }
 0x232   :  { %3382 = vmatpush2.msra.mxu0 %v1849_v57  ;;  %3311 = vmatpush2.msra.mxu1 %v1465_v58  ;;  %v1333_v57 = vld [vmem:[%s19210_s25 + $0x13a0] sm:$0xff]  ;;  %v1706_v58 = vld [vmem:[%s19210_s25 + $0x1f48] sm:$0xff] }
 0x233   :  { %3383 = vmatprep.subr.mxu0 %v1838_v59  ;;  %3312 = vmatprep.subr.mxu1 %v1454_v60  ;;  %v1322_v59 = vld [vmem:[%s19210_s25 + $0x1348] sm:$0xff]  ;;  %v1705_v60 = vld [vmem:[%s19210_s25 + $0x1f40] sm:$0xff] }
 0x234   :  { %3384 = vmatpush2.msra.mxu0 %v1837_v61  ;;  %3313 = vmatpush2.msra.mxu1 %v1453_v62  ;;  %v1321_v61 = vld [vmem:[%s19210_s25 + $0x1340] sm:$0xff]  ;;  %v1694_v62 = vld [vmem:[%s19210_s25 + $0x1ee8] sm:$0xff] }
 0x235   :  { %3385 = vmatprep.subr.mxu0 %v1826_v63  ;;  %3314 = vmatprep.subr.mxu1 %v1442_v0  ;;  %v1310_v63 = vld [vmem:[%s19210_s25 + $0x12e8] sm:$0xff]  ;;  %v1693_v0 = vld [vmem:[%s19210_s25 + $0x1ee0] sm:$0xff] }
 0x236   :  { %3386 = vmatpush2.msra.mxu0 %v1825_v6  ;;  %3315 = vmatpush2.msra.mxu1 %v1441_v7  ;;  %v1309_v6 = vld [vmem:[%s19210_s25 + $0x12e0] sm:$0xff]  ;;  %v1682_v7 = vld [vmem:[%s19210_s25 + $0x1e88] sm:$0xff] }
 0x237   :  { %3387 = vmatprep.subr.mxu0 %v1814_v9  ;;  %3316 = vmatprep.subr.mxu1 %v1430_v10  ;;  %v1298_v9 = vld [vmem:[%s19210_s25 + $0x1288] sm:$0xff]  ;;  %v1681_v10 = vld [vmem:[%s19210_s25 + $0x1e80] sm:$0xff] }
 0x238   :  { %3388 = vmatpush2.msra.mxu0 %v1813_v12  ;;  %3317 = vmatpush2.msra.mxu1 %v1429_v14  ;;  %v1297_v12 = vld [vmem:[%s19210_s25 + $0x1280] sm:$0xff]  ;;  %v1670_v14 = vld [vmem:[%s19210_s25 + $0x1e28] sm:$0xff] }
 0x239   :  { %3389 = vmatprep.subr.mxu0 %v1802_v15  ;;  %3318 = vmatprep.subr.mxu1 %v1418_v17  ;;  %v1286_v15 = vld [vmem:[%s19210_s25 + $0x1228] sm:$0xff]  ;;  %v1669_v17 = vld [vmem:[%s19210_s25 + $0x1e20] sm:$0xff] }
 0x23a   :  { %3390 = vmatpush2.msra.mxu0 %v1801_v18  ;;  %3319 = vmatpush2.msra.mxu1 %v1417_v19  ;;  %v1285_v18 = vld [vmem:[%s19210_s25 + $0x1220] sm:$0xff]  ;;  %v2426_v19 = vld [vmem:[%s19210_s25 + $0x35c8] sm:$0xff] }
 0x23b   :  { %3391 = vmatprep.subr.mxu0 %v1790_v47  ;;  %3320 = vmatprep.subr.mxu1 %v1406_v20  ;;  %v2042_v47 = vld [vmem:[%s19210_s25 + $0x29c8] sm:$0xff]  ;;  %v2425_v20 = vld [vmem:[%s19210_s25 + $0x35c0] sm:$0xff] }
 0x23c   :  { %3392 = vmatpush2.msra.mxu0 %v1789_v22  ;;  %3321 = vmatpush2.msra.mxu1 %v1405_v23  ;;  %v2041_v22 = vld [vmem:[%s19210_s25 + $0x29c0] sm:$0xff]  ;;  %v2414_v23 = vld [vmem:[%s19210_s25 + $0x3568] sm:$0xff] }
 0x23d   :  { %3393 = vmatprep.subr.mxu0 %v1778_v24  ;;  %3322 = vmatprep.subr.mxu1 %v1394_v25  ;;  %v2030_v24 = vld [vmem:[%s19210_s25 + $0x2968] sm:$0xff]  ;;  %v2413_v25 = vld [vmem:[%s19210_s25 + $0x3560] sm:$0xff] }
 0x23e   :  { %3394 = vmatpush2.msra.mxu0 %v1777_v26  ;;  %3323 = vmatpush2.msra.mxu1 %v1393_v27  ;;  %v2029_v26 = vld [vmem:[%s19210_s25 + $0x2960] sm:$0xff]  ;;  %v2402_v27 = vld [vmem:[%s19210_s25 + $0x3508] sm:$0xff] }
 0x23f   :  { %3395 = vmatprep.subr.mxu0 %v1766_v29  ;;  %3324 = vmatprep.subr.mxu1 %v1382_v30  ;;  %v2018_v29 = vld [vmem:[%s19210_s25 + $0x2908] sm:$0xff]  ;;  %v2401_v30 = vld [vmem:[%s19210_s25 + $0x3500] sm:$0xff] }
 0x240   :  { %3396 = vmatpush2.msra.mxu0 %v1765_v31  ;;  %3325 = vmatpush2.msra.mxu1 %v1381_v28  ;;  %v2017_v31 = vld [vmem:[%s19210_s25 + $0x2900] sm:$0xff]  ;;  %v2390_v28 = vld [vmem:[%s19210_s25 + $0x34a8] sm:$0xff] }
 0x241   :  { %3397 = vmatprep.subr.mxu0 %v1754_v50  ;;  %3326 = vmatprep.subr.mxu1 %v1370_v32  ;;  %v2006_v50 = vld [vmem:[%s19210_s25 + $0x28a8] sm:$0xff]  ;;  %v2389_v32 = vld [vmem:[%s19210_s25 + $0x34a0] sm:$0xff] }
 0x242   :  { %3398 = vmatpush2.msra.mxu0 %v1753_v33  ;;  %3327 = vmatpush2.msra.mxu1 %v1369_v34  ;;  %v2005_v33 = vld [vmem:[%s19210_s25 + $0x28a0] sm:$0xff]  ;;  %v2378_v34 = vld [vmem:[%s19210_s25 + $0x3448] sm:$0xff] }
 0x243   :  { %3399 = vmatprep.subr.mxu0 %v1742_v36  ;;  %3328 = vmatprep.subr.mxu1 %v1358_v38  ;;  %v1994_v36 = vld [vmem:[%s19210_s25 + $0x2848] sm:$0xff]  ;;  %v2377_v38 = vld [vmem:[%s19210_s25 + $0x3440] sm:$0xff] }
 0x244   :  { %3400 = vmatpush2.msra.mxu0 %v1741_v39  ;;  %3329 = vmatpush2.msra.mxu1 %v1357_v40  ;;  %v1993_v39 = vld [vmem:[%s19210_s25 + $0x2840] sm:$0xff]  ;;  %v2366_v40 = vld [vmem:[%s19210_s25 + $0x33e8] sm:$0xff] }
 0x245   :  { %3401 = vmatprep.subr.mxu0 %v1730_v41  ;;  %3330 = vmatprep.subr.mxu1 %v1346_v43  ;;  %v11851_v41 = vpop.f32.mrf.mxu1  ;;  %v1982_v43 = vld [vmem:[%s19210_s25 + $0x27e8] sm:$0xff] }
 0x246   :  { %3402 = vmatpush2.msra.mxu0 %v1729_v44  ;;  %3331 = vmatpush2.msra.mxu1 %v1345_v46  ;;  %v2365_v44 = vld [vmem:[%s19210_s25 + $0x33e0] sm:$0xff] }
 0x247   :  { %3403 = vmatprep.subr.mxu0 %v1718_v54  ;;  %3332 = vmatprep.subr.mxu1 %v1334_v55  ;;  %v1981_v46 = vld [vmem:[%s19210_s25 + $0x27e0] sm:$0xff]  ;;  %v2354_v54 = vld [vmem:[%s19210_s25 + $0x3388] sm:$0xff] }
 0x248   :  { %3404 = vmatpush2.msra.mxu0 %v1717_v56  ;;  %3333 = vmatpush2.msra.mxu1 %v1333_v57  ;;  %v1970_v55 = vld [vmem:[%s19210_s25 + $0x2788] sm:$0xff]  ;;  %v2353_v56 = vld [vmem:[%s19210_s25 + $0x3380] sm:$0xff] }
 0x249   :  { %3405 = vmatprep.subr.mxu0 %v1706_v58  ;;  %3334 = vmatprep.subr.mxu1 %v1322_v59  ;;  %v1969_v57 = vld [vmem:[%s19210_s25 + $0x2780] sm:$0xff]  ;;  %v2342_v58 = vld [vmem:[%s19210_s25 + $0x3328] sm:$0xff]  ;;  %v11877_v59 = vpop.f32.mrf.mxu1 }
 0x24a   :  { %3406 = vmatpush2.msra.mxu0 %v1705_v60  ;;  %3335 = vmatpush2.msra.mxu1 %v1321_v61  ;;  %v1958_v60 = vld [vmem:[%s19210_s25 + $0x2728] sm:$0xff]  ;;  %v2341_v61 = vld [vmem:[%s19210_s25 + $0x3320] sm:$0xff] }
 0x24b   :  { %3407 = vmatprep.subr.mxu0 %v1694_v62  ;;  %3336 = vmatprep.subr.mxu1 %v1310_v63  ;;  %v1957_v62 = vld [vmem:[%s19210_s25 + $0x2720] sm:$0xff]  ;;  %v2330_v63 = vld [vmem:[%s19210_s25 + $0x32c8] sm:$0xff] }
 0x24c   :  { %3408 = vmatpush2.msra.mxu0 %v1693_v0  ;;  %3337 = vmatpush2.msra.mxu1 %v1309_v6  ;;  %v11891_v0 = vpop.f32.mrf.mxu1  ;;  %v1946_v6 = vld [vmem:[%s19210_s25 + $0x26c8] sm:$0xff] }
 0x24d   :  { %3409 = vmatprep.subr.mxu0 %v1682_v7  ;;  %3338 = vmatprep.subr.mxu1 %v1298_v9  ;;  %v2329_v7 = vld [vmem:[%s19210_s25 + $0x32c0] sm:$0xff] }
 0x24e   :  { %3410 = vmatpush2.msra.mxu0 %v1681_v10  ;;  %3339 = vmatpush2.msra.mxu1 %v1297_v12  ;;  %v1945_v9 = vld [vmem:[%s19210_s25 + $0x26c0] sm:$0xff]  ;;  %v2318_v10 = vld [vmem:[%s19210_s25 + $0x3268] sm:$0xff]  ;;  %v11905_v12 = vpop.f32.mrf.mxu0 }
 0x24f   :  { %3411 = vmatprep.subr.mxu0 %v1670_v14  ;;  %3340 = vmatprep.subr.mxu1 %v1286_v15  ;;  %v1934_v14 = vld [vmem:[%s19210_s25 + $0x2668] sm:$0xff]  ;;  %v2317_v15 = vld [vmem:[%s19210_s25 + $0x3260] sm:$0xff] }
 0x250   :  { %3412 = vmatpush2.msra.mxu0 %v1669_v17  ;;  %3341 = vmatpush2.msra.mxu1 %v1285_v18  ;;  %v1933_v17 = vld [vmem:[%s19210_s25 + $0x2660] sm:$0xff]  ;;  %v2306_v18 = vld [vmem:[%s19210_s25 + $0x3208] sm:$0xff] }
 0x251   :  { %3414 = vmatmul.mubr.f32.vlgmr.msra.gmra.mxu0 %v10223_v53  ;;  %3491 = vmatprep.subr.mxu0 %v2426_v19  ;;  %v11919_v19 = vpop.f32.mrf.mxu1 }
 0x252   :  { %3343 = vmatmul.mubr.f32.vlgmr.msra.gmra.mxu1 %v9803_v1  ;;  %3420 = vmatprep.subr.mxu1 %v2042_v47  ;;  %v1922_v47 = vld [vmem:[%s19210_s25 + $0x2608] sm:$0xff] }
 0x253   :  { %3492 = vmatpush1.msra.mxu0 %v2425_v20  ;;  %3421 = vmatpush1.msra.mxu1 %v2041_v22  ;;  %v2305_v20 = vld [vmem:[%s19210_s25 + $0x3200] sm:$0xff] }
 0x254   :  { %3484 = vmatprep.mubr.f32.mxu1 %v10210_v42  ;;  %3493 = vmatprep.subr.mxu0 %v2414_v23  ;;  %v1921_v22 = vld [vmem:[%s19210_s25 + $0x2600] sm:$0xff]  ;;  %v2294_v23 = vld [vmem:[%s19210_s25 + $0x31a8] sm:$0xff] }
 0x255   :  { %3422 = vmatprep.subr.mxu1 %v2030_v24  ;;  %3494 = vmatpush1.msra.mxu0 %v2413_v25  ;;  %v11933_v24 = vpop.f32.mrf.mxu0  ;;  %v11935_v25 = vpop.f32.mrf.mxu1 }
 0x256   :  { %3423 = vmatpush1.msra.mxu1 %v2029_v26  ;;  %3495 = vmatprep.subr.mxu0 %v2402_v27  ;;  %v1910_v26 = vld [vmem:[%s19210_s25 + $0x25a8] sm:$0xff]  ;;  %v2293_v27 = vld [vmem:[%s19210_s25 + $0x31a0] sm:$0xff] }
 0x257   :  { %3424 = vmatprep.subr.mxu1 %v2018_v29  ;;  %3496 = vmatpush1.msra.mxu0 %v2401_v30  ;;  %v1909_v29 = vld [vmem:[%s19210_s25 + $0x25a0] sm:$0xff]  ;;  %v2282_v30 = vld [vmem:[%s19210_s25 + $0x3148] sm:$0xff] }
 0x258   :  { %3425 = vmatpush1.msra.mxu1 %v2017_v31  ;;  %3497 = vmatprep.subr.mxu0 %v2390_v28  ;;  %v2433_v31 = vld [vmem:[%s19184_s4] sm:$0xff]  ;;  %v11952_v28 = vpop.f32.mrf.mxu0 }
 0x259   :  { %3426 = vmatprep.subr.mxu1 %v2006_v50  ;;  %3498 = vmatpush1.msra.mxu0 %v2389_v32  ;;  %v1898_v50 = vld [vmem:[%s19210_s25 + $0x2548] sm:$0xff]  ;;  %v2281_v32 = vld [vmem:[%s19210_s25 + $0x3140] sm:$0xff] }
 0x25a   :  { %3427 = vmatpush1.msra.mxu1 %v2005_v33  ;;  %3499 = vmatprep.subr.mxu0 %v2378_v34  ;;  %v1897_v33 = vld [vmem:[%s19210_s25 + $0x2540] sm:$0xff]  ;;  %v2270_v34 = vld [vmem:[%s19210_s25 + $0x30e8] sm:$0xff] }
 0x25b   :  { %3428 = vmatprep.subr.mxu1 %v1994_v36  ;;  %3500 = vmatpush1.msra.mxu0 %v2377_v38  ;;  %v2448_v36 = vrot.slane %v2433_v31, %v9779_v48  ;;  %v11967_v38 = vpop.f32.mrf.mxu1  ;;  %v1239_v31 = vld [vmem:[%s19210_s25 + $0x10b0] sm:$0xff] }
 0x25c   :  { %3429 = vmatpush1.msra.mxu1 %v1993_v39  ;;  %3501 = vmatprep.subr.mxu0 %v2366_v40  ;;  %v1886_v39 = vld [vmem:[%s19210_s25 + $0x24e8] sm:$0xff]  ;;  %v2269_v40 = vld [vmem:[%s19210_s25 + $0x30e0] sm:$0xff] }
 0x25d   :  { %3430 = vmatprep.subr.mxu1 %v1982_v43  ;;  %3502 = vmatpush1.msra.mxu0 %v2365_v44  ;;  %v1885_v43 = vld [vmem:[%s19210_s25 + $0x24e0] sm:$0xff]  ;;  %v2258_v44 = vld [vmem:[%s19210_s25 + $0x3088] sm:$0xff] }
 0x25e   :  { %3431 = vmatpush1.msra.mxu1 %v1981_v46  ;;  %3503 = vmatprep.subr.mxu0 %v2354_v54  ;;  %v11981_v46 = vpop.f32.mrf.mxu0  ;;  %v1874_v54 = vld [vmem:[%s19210_s25 + $0x2488] sm:$0xff] }
 0x25f   :  { %3432 = vmatprep.subr.mxu1 %v1970_v55  ;;  %3504 = vmatpush1.msra.mxu0 %v2353_v56  ;;  %v2257_v55 = vld [vmem:[%s19210_s25 + $0x3080] sm:$0xff] }
 0x260   :  { %3433 = vmatpush1.msra.mxu1 %v1969_v57  ;;  %3505 = vmatprep.subr.mxu0 %v2342_v58  ;;  %v1873_v57 = vld [vmem:[%s19210_s25 + $0x2480] sm:$0xff]  ;;  %v2246_v58 = vld [vmem:[%s19210_s25 + $0x3028] sm:$0xff] }
 0x261   :  { %3434 = vmatprep.subr.mxu1 %v1958_v60  ;;  %3506 = vmatpush1.msra.mxu0 %v2341_v61  ;;  %v2989_v61 = vpop.f32.mrf.mxu0 }
 0x262   :  { %3435 = vmatpush1.msra.mxu1 %v1957_v62  ;;  %3507 = vmatprep.subr.mxu0 %v2330_v63  ;;  %v1862_v62 = vld [vmem:[%s19210_s25 + $0x2428] sm:$0xff]  ;;  %v2245_v63 = vld [vmem:[%s19210_s25 + $0x3020] sm:$0xff] }
 0x263   :  { %3436 = vmatprep.subr.mxu1 %v1946_v6  ;;  %3508 = vmatpush1.msra.mxu0 %v2329_v7  ;;  %v1861_v6 = vld [vmem:[%s19210_s25 + $0x2420] sm:$0xff] }
 0x264   :  { %3437 = vmatpush1.msra.mxu1 %v1945_v9  ;;  %3509 = vmatprep.subr.mxu0 %v2318_v10  ;;  %v1276_v9 = vld [vmem:[%s19210_s25 + $0x11d8] sm:$0xff]  ;;  %v2234_v10 = vld [vmem:[%s19210_s25 + $0x2fc8] sm:$0xff] }
 0x265   :  { %3438 = vmatprep.subr.mxu1 %v1934_v14  ;;  %3510 = vmatpush1.msra.mxu0 %v2317_v15  ;;  %v1275_v14 = vld [vmem:[%s19210_s25 + $0x11d0] sm:$0xff]  ;;  %v2233_v15 = vld [vmem:[%s19210_s25 + $0x2fc0] sm:$0xff] }
 0x266   :  { %3439 = vmatpush1.msra.mxu1 %v1933_v17  ;;  %3511 = vmatprep.subr.mxu0 %v2306_v18  ;;  %v1264_v17 = vld [vmem:[%s19210_s25 + $0x1178] sm:$0xff]  ;;  %v2222_v18 = vld [vmem:[%s19210_s25 + $0x2f68] sm:$0xff] }
 0x267   :  { %3440 = vmatprep.subr.mxu1 %v1922_v47  ;;  %3512 = vmatpush1.msra.mxu0 %v2305_v20  ;;  %v1263_v47 = vld [vmem:[%s19210_s25 + $0x1170] sm:$0xff]  ;;  %v2221_v20 = vld [vmem:[%s19210_s25 + $0x2f60] sm:$0xff] }
 0x268   :  { %3441 = vmatpush1.msra.mxu1 %v1921_v22  ;;  %3513 = vmatprep.subr.mxu0 %v2294_v23  ;;  %v1252_v22 = vld [vmem:[%s19210_s25 + $0x1118] sm:$0xff]  ;;  %v2210_v23 = vld [vmem:[%s19210_s25 + $0x2f08] sm:$0xff] }
 0x269   :  { %3442 = vmatprep.subr.mxu1 %v1910_v26  ;;  %3514 = vmatpush1.msra.mxu0 %v2293_v27  ;;  %v1251_v26 = vld [vmem:[%s19210_s25 + $0x1110] sm:$0xff]  ;;  %v2209_v27 = vld [vmem:[%s19210_s25 + $0x2f00] sm:$0xff] }
 0x26a   :  { %3443 = vmatpush1.msra.mxu1 %v1909_v29  ;;  %3515 = vmatprep.subr.mxu0 %v2282_v30  ;;  %v1240_v29 = vld [vmem:[%s19210_s25 + $0x10b8] sm:$0xff]  ;;  %v2198_v30 = vld [vmem:[%s19210_s25 + $0x2ea8] sm:$0xff] }
 0x26b   :  { %3444 = vmatprep.subr.mxu1 %v1898_v50  ;;  %3516 = vmatpush1.msra.mxu0 %v2281_v32  ;;  %v2197_v50 = vld [vmem:[%s19210_s25 + $0x2ea0] sm:$0xff]  ;;  %v1228_v32 = vld [vmem:[%s19210_s25 + $0x1058] sm:$0xff] }
 0x26c   :  { %3445 = vmatpush1.msra.mxu1 %v1897_v33  ;;  %3517 = vmatprep.subr.mxu0 %v2270_v34  ;;  %v2918_v56 = vpop.f32.mrf.mxu1  ;;  %v2186_v33 = vld [vmem:[%s19210_s25 + $0x2e48] sm:$0xff]  ;;  %v1227_v34 = vld [vmem:[%s19210_s25 + $0x1050] sm:$0xff] }
 0x26d   :  { %3446 = vmatprep.subr.mxu1 %v1886_v39  ;;  %3518 = vmatpush1.msra.mxu0 %v2269_v40  ;;  %v2919_v60 = vadd.f32 %v2918_v56, %v2448_v36  ;;  %v2185_v36 = vld [vmem:[%s19210_s25 + $0x2e40] sm:$0xff]  ;;  %v1216_v39 = vld [vmem:[%s19210_s25 + $0xff8] sm:$0xff]  ;;  %v2174_v40 = vld [vmem:[%s19210_s25 + $0x2de8] sm:$0xff] }
 0x26e   :  { %3447 = vmatpush1.msra.mxu1 %v1885_v43  ;;  %3519 = vmatprep.subr.mxu0 %v2258_v44  ;;  %v1215_v43 = vld [vmem:[%s19210_s25 + $0xff0] sm:$0xff]  ;;  %v2173_v44 = vld [vmem:[%s19210_s25 + $0x2de0] sm:$0xff] }
 0x26f   :  { %3448 = vmatprep.subr.mxu1 %v1874_v54  ;;  %3520 = vmatpush1.msra.mxu0 %v2257_v55  ;;  %v12004_v7 = vadd.f32 %v2989_v61, %v2919_v60  ;;  %v1204_v54 = vld [vmem:[%s19210_s25 + $0xf98] sm:$0xff]  ;;  %v2162_v55 = vld [vmem:[%s19210_s25 + $0x2d88] sm:$0xff]  ;;  %v1203_v56 = vld [vmem:[%s19210_s25 + $0xf90] sm:$0xff] }
 0x270   :  { %3449 = vmatpush1.msra.mxu1 %v1873_v57  ;;  %3521 = vmatprep.subr.mxu0 %v2246_v58  ;;  %v2161_v57 = vld [vmem:[%s19210_s25 + $0x2d80] sm:$0xff]  ;;  %v1192_v58 = vld [vmem:[%s19210_s25 + $0xf38] sm:$0xff]  ;;  %v2150_v60 = vld [vmem:[%s19210_s25 + $0x2d28] sm:$0xff] }
 0x271   :  { %3450 = vmatprep.subr.mxu1 %v1862_v62  ;;  %3522 = vmatpush1.msra.mxu0 %v2245_v63  ;;  %v1191_v61 = vld [vmem:[%s19210_s25 + $0xf30] sm:$0xff]  ;;  %v2149_v62 = vld [vmem:[%s19210_s25 + $0x2d20] sm:$0xff]  ;;  %v1180_v63 = vld [vmem:[%s19210_s25 + $0xed8] sm:$0xff] }
 0x272   :  { %3555 = vmatprep.mubr.f32.mxu0 %v8560_v13  ;;  %3451 = vmatpush1.msra.mxu1 %v1861_v6  ;;  %v2138_v6 = vld [vmem:[%s19210_s25 + $0x2cc8] sm:$0xff] }
 0x273   :  { %3556 = vmatmul.mubr.f32.vlgmr.msra.gmra.mxu0 %v10427_v21  ;;  %3633 = vmatprep.subr.mxu0 %v1276_v9  ;;  %v1179_v9 = vld [vmem:[%s19210_s25 + $0xed0] sm:$0xff] }
 0x274   :  { %3452 = vmatprep.subr.mxu1 %v2234_v10  ;;  %3634 = vmatpush1.msra.mxu0 %v1275_v14  ;;  %v2137_v10 = vld [vmem:[%s19210_s25 + $0x2cc0] sm:$0xff]  ;;  %v1168_v14 = vld [vmem:[%s19210_s25 + $0xe78] sm:$0xff] }
 0x275   :  { %3697 = vmatprep.mubr.f32.mxu0 %v9807_v3  ;;  %3453 = vmatpush2.msra.mxu1 %v2233_v15  ;;  %v2126_v15 = vld [vmem:[%s19210_s25 + $0x2c68] sm:$0xff] }
 0x276   :  { %3635 = vmatprep.subr.mxu0 %v1264_v17  ;;  %3454 = vmatprep.subr.mxu1 %v2222_v18  ;;  %v1167_v17 = vld [vmem:[%s19210_s25 + $0xe70] sm:$0xff]  ;;  %v2125_v18 = vld [vmem:[%s19210_s25 + $0x2c60] sm:$0xff] }
 0x277   :  { %3636 = vmatpush1.msra.mxu0 %v1263_v47  ;;  %3455 = vmatpush2.msra.mxu1 %v2221_v20  ;;  %v1156_v47 = vld [vmem:[%s19210_s25 + $0xe18] sm:$0xff]  ;;  %v2114_v20 = vld [vmem:[%s19210_s25 + $0x2c08] sm:$0xff] }
 0x278   :  { %3637 = vmatprep.subr.mxu0 %v1252_v22  ;;  %3456 = vmatprep.subr.mxu1 %v2210_v23  ;;  %v1155_v22 = vld [vmem:[%s19210_s25 + $0xe10] sm:$0xff]  ;;  %v2113_v23 = vld [vmem:[%s19210_s25 + $0x2c00] sm:$0xff] }
 0x279   :  { %3638 = vmatpush1.msra.mxu0 %v1251_v26  ;;  %3457 = vmatpush2.msra.mxu1 %v2209_v27  ;;  %v1144_v26 = vld [vmem:[%s19210_s25 + $0xdb8] sm:$0xff]  ;;  %v2102_v27 = vld [vmem:[%s19210_s25 + $0x2ba8] sm:$0xff] }
 0x27a   :  { %3639 = vmatprep.subr.mxu0 %v1240_v29  ;;  %3458 = vmatprep.subr.mxu1 %v2198_v30  ;;  %v1143_v29 = vld [vmem:[%s19210_s25 + $0xdb0] sm:$0xff]  ;;  %v2101_v30 = vld [vmem:[%s19210_s25 + $0x2ba0] sm:$0xff] }
 0x27b   :  { %3640 = vmatpush1.msra.mxu0 %v1239_v31  ;;  %3459 = vmatpush2.msra.mxu1 %v2197_v50  ;;  %v1132_v31 = vld [vmem:[%s19210_s25 + $0xd58] sm:$0xff]  ;;  %v2090_v50 = vld [vmem:[%s19210_s25 + $0x2b48] sm:$0xff] }
 0x27c   :  { %3641 = vmatprep.subr.mxu0 %v1228_v32  ;;  %3460 = vmatprep.subr.mxu1 %v2186_v33  ;;  %v1131_v32 = vld [vmem:[%s19210_s25 + $0xd50] sm:$0xff]  ;;  %v2089_v33 = vld [vmem:[%s19210_s25 + $0x2b40] sm:$0xff] }
 0x27d   :  { %3642 = vmatpush1.msra.mxu0 %v1227_v34  ;;  %3461 = vmatpush2.msra.mxu1 %v2185_v36  ;;  %v1120_v34 = vld [vmem:[%s19210_s25 + $0xcf8] sm:$0xff]  ;;  %v2078_v36 = vld [vmem:[%s19210_s25 + $0x2ae8] sm:$0xff] }
 0x27e   :  { %3643 = vmatprep.subr.mxu0 %v1216_v39  ;;  %3462 = vmatprep.subr.mxu1 %v2174_v40  ;;  %v1119_v39 = vld [vmem:[%s19210_s25 + $0xcf0] sm:$0xff]  ;;  %v2077_v40 = vld [vmem:[%s19210_s25 + $0x2ae0] sm:$0xff] }
 0x27f   :  { %3644 = vmatpush1.msra.mxu0 %v1215_v43  ;;  %3463 = vmatpush2.msra.mxu1 %v2173_v44  ;;  %v1108_v43 = vld [vmem:[%s19210_s25 + $0xc98] sm:$0xff]  ;;  %v2066_v44 = vld [vmem:[%s19210_s25 + $0x2a88] sm:$0xff] }
 0x280   :  { %3645 = vmatprep.subr.mxu0 %v1204_v54  ;;  %3464 = vmatprep.subr.mxu1 %v2162_v55  ;;  %v1107_v54 = vld [vmem:[%s19210_s25 + $0xc90] sm:$0xff]  ;;  %v2065_v55 = vld [vmem:[%s19210_s25 + $0x2a80] sm:$0xff] }
 0x281   :  { %3646 = vmatpush1.msra.mxu0 %v1203_v56  ;;  %3465 = vmatpush2.msra.mxu1 %v2161_v57  ;;  %v1096_v56 = vld [vmem:[%s19210_s25 + $0xc38] sm:$0xff]  ;;  %v2054_v57 = vld [vmem:[%s19210_s25 + $0x2a28] sm:$0xff] }
 0x282   :  { %3647 = vmatprep.subr.mxu0 %v1192_v58  ;;  %3466 = vmatprep.subr.mxu1 %v2150_v60  ;;  %v1095_v58 = vld [vmem:[%s19210_s25 + $0xc30] sm:$0xff]  ;;  %v2053_v60 = vld [vmem:[%s19210_s25 + $0x2a20] sm:$0xff] }
 0x283   :  { %3648 = vmatpush1.msra.mxu0 %v1191_v61  ;;  %3467 = vmatpush2.msra.mxu1 %v2149_v62  ;;  %v1468_v61 = vld [vmem:[%s19210_s25 + $0x17d8] sm:$0xff] }
 0x284   :  { %3649 = vmatprep.subr.mxu0 %v1180_v63  ;;  %3468 = vmatprep.subr.mxu1 %v2138_v6  ;;  %v892_v62 = vld [vmem:[%s19210_s25 + $0x5d8] sm:$0xff]  ;;  %v1467_v63 = vld [vmem:[%s19210_s25 + $0x17d0] sm:$0xff] }
 0x285   :  { %3650 = vmatpush1.msra.mxu0 %v1179_v9  ;;  %3469 = vmatpush2.msra.mxu1 %v2137_v10  ;;  %v891_v6 = vld [vmem:[%s19210_s25 + $0x5d0] sm:$0xff]  ;;  %v1456_v9 = vld [vmem:[%s19210_s25 + $0x1778] sm:$0xff] }
 0x286   :  { %3651 = vmatprep.subr.mxu0 %v1168_v14  ;;  %3470 = vmatprep.subr.mxu1 %v2126_v15  ;;  %v880_v10 = vld [vmem:[%s19210_s25 + $0x578] sm:$0xff]  ;;  %v1455_v14 = vld [vmem:[%s19210_s25 + $0x1770] sm:$0xff] }
 0x287   :  { %3652 = vmatpush1.msra.mxu0 %v1167_v17  ;;  %3471 = vmatpush2.msra.mxu1 %v2125_v18  ;;  %v879_v15 = vld [vmem:[%s19210_s25 + $0x570] sm:$0xff]  ;;  %v1444_v17 = vld [vmem:[%s19210_s25 + $0x1718] sm:$0xff] }
 0x288   :  { %3653 = vmatprep.subr.mxu0 %v1156_v47  ;;  %3472 = vmatprep.subr.mxu1 %v2114_v20  ;;  %v868_v18 = vld [vmem:[%s19210_s25 + $0x518] sm:$0xff]  ;;  %v1443_v47 = vld [vmem:[%s19210_s25 + $0x1710] sm:$0xff] }
 0x289   :  { %3654 = vmatpush1.msra.mxu0 %v1155_v22  ;;  %3473 = vmatpush2.msra.mxu1 %v2113_v23  ;;  %v867_v20 = vld [vmem:[%s19210_s25 + $0x510] sm:$0xff]  ;;  %v1432_v22 = vld [vmem:[%s19210_s25 + $0x16b8] sm:$0xff] }
 0x28a   :  { %3655 = vmatprep.subr.mxu0 %v1144_v26  ;;  %3474 = vmatprep.subr.mxu1 %v2102_v27  ;;  %v856_v23 = vld [vmem:[%s19210_s25 + $0x4b8] sm:$0xff]  ;;  %v1431_v26 = vld [vmem:[%s19210_s25 + $0x16b0] sm:$0xff] }
 0x28b   :  { %3656 = vmatpush1.msra.mxu0 %v1143_v29  ;;  %3475 = vmatpush2.msra.mxu1 %v2101_v30  ;;  %v855_v27 = vld [vmem:[%s19210_s25 + $0x4b0] sm:$0xff]  ;;  %v1420_v29 = vld [vmem:[%s19210_s25 + $0x1658] sm:$0xff] }
 0x28c   :  { %3657 = vmatprep.subr.mxu0 %v1132_v31  ;;  %3476 = vmatprep.subr.mxu1 %v2090_v50  ;;  %v844_v30 = vld [vmem:[%s19210_s25 + $0x458] sm:$0xff]  ;;  %v1419_v31 = vld [vmem:[%s19210_s25 + $0x1650] sm:$0xff] }
 0x28d   :  { %3658 = vmatpush1.msra.mxu0 %v1131_v32  ;;  %3477 = vmatpush2.msra.mxu1 %v2089_v33  ;;  %v843_v50 = vld [vmem:[%s19210_s25 + $0x450] sm:$0xff]  ;;  %v1408_v32 = vld [vmem:[%s19210_s25 + $0x15f8] sm:$0xff] }
 0x28e   :  { %3659 = vmatprep.subr.mxu0 %v1120_v34  ;;  %3478 = vmatprep.subr.mxu1 %v2078_v36  ;;  %v832_v33 = vld [vmem:[%s19210_s25 + $0x3f8] sm:$0xff]  ;;  %v1407_v34 = vld [vmem:[%s19210_s25 + $0x15f0] sm:$0xff] }
 0x28f   :  { %3660 = vmatpush1.msra.mxu0 %v1119_v39  ;;  %3479 = vmatpush2.msra.mxu1 %v2077_v40  ;;  %v831_v36 = vld [vmem:[%s19210_s25 + $0x3f0] sm:$0xff]  ;;  %v1396_v39 = vld [vmem:[%s19210_s25 + $0x1598] sm:$0xff] }
 0x290   :  { %3661 = vmatprep.subr.mxu0 %v1108_v43  ;;  %3480 = vmatprep.subr.mxu1 %v2066_v44  ;;  %v820_v40 = vld [vmem:[%s19210_s25 + $0x398] sm:$0xff]  ;;  %v1395_v43 = vld [vmem:[%s19210_s25 + $0x1590] sm:$0xff] }
 0x291   :  { %3662 = vmatpush1.msra.mxu0 %v1107_v54  ;;  %3481 = vmatpush2.msra.mxu1 %v2065_v55  ;;  %v819_v44 = vld [vmem:[%s19210_s25 + $0x390] sm:$0xff]  ;;  %v1384_v54 = vld [vmem:[%s19210_s25 + $0x1538] sm:$0xff] }
 0x292   :  { %3663 = vmatprep.subr.mxu0 %v1096_v56  ;;  %3482 = vmatprep.subr.mxu1 %v2054_v57  ;;  %v808_v55 = vld [vmem:[%s19210_s25 + $0x338] sm:$0xff]  ;;  %v1383_v56 = vld [vmem:[%s19210_s25 + $0x1530] sm:$0xff] }
 0x293   :  { %3664 = vmatpush1.msra.mxu0 %v1095_v58  ;;  %3483 = vmatpush2.msra.mxu1 %v2053_v60  ;;  %v807_v57 = vld [vmem:[%s19210_s25 + $0x330] sm:$0xff]  ;;  %v1372_v58 = vld [vmem:[%s19210_s25 + $0x14d8] sm:$0xff] }
 0x294   :  { %3665 = vmatprep.subr.mxu0 %v1468_v61  ;;  %3485 = vmatmul.mubr.f32.vlgmr.msra.gmra.mxu1 %v10218_v45  ;;  %v796_v60 = vld [vmem:[%s19210_s25 + $0x2d8] sm:$0xff]  ;;  %v1371_v61 = vld [vmem:[%s19210_s25 + $0x14d0] sm:$0xff] }
 0x295   :  { %3562 = vmatprep.subr.mxu1 %v892_v62  ;;  %3666 = vmatpush2.msra.mxu0 %v1467_v63  ;;  %v795_v62 = vld [vmem:[%s19210_s25 + $0x2d0] sm:$0xff]  ;;  %v1360_v63 = vld [vmem:[%s19210_s25 + $0x1478] sm:$0xff] }
 0x296   :  { %3563 = vmatpush1.msra.mxu1 %v891_v6  ;;  %3626 = vmatprep.mubr.f32.mxu1 %v9805_v2  ;;  %v784_v6 = vld [vmem:[%s19210_s25 + $0x278] sm:$0xff] }
 0x297   :  { %3667 = vmatprep.subr.mxu0 %v1456_v9  ;;  %3564 = vmatprep.subr.mxu1 %v880_v10  ;;  %v1359_v9 = vld [vmem:[%s19210_s25 + $0x1470] sm:$0xff] }
 0x298   :  { %3668 = vmatpush2.msra.mxu0 %v1455_v14  ;;  %3565 = vmatpush1.msra.mxu1 %v879_v15  ;;  %v783_v10 = vld [vmem:[%s19210_s25 + $0x270] sm:$0xff]  ;;  %v1348_v14 = vld [vmem:[%s19210_s25 + $0x1418] sm:$0xff] }
 0x299   :  { %3669 = vmatprep.subr.mxu0 %v1444_v17  ;;  %3566 = vmatprep.subr.mxu1 %v868_v18  ;;  %v772_v15 = vld [vmem:[%s19210_s25 + $0x218] sm:$0xff]  ;;  %v1347_v17 = vld [vmem:[%s19210_s25 + $0x1410] sm:$0xff] }
 0x29a   :  { %3670 = vmatpush2.msra.mxu0 %v1443_v47  ;;  %3567 = vmatpush1.msra.mxu1 %v867_v20  ;;  %v771_v18 = vld [vmem:[%s19210_s25 + $0x210] sm:$0xff]  ;;  %v1336_v47 = vld [vmem:[%s19210_s25 + $0x13b8] sm:$0xff] }
 0x29b   :  { %3671 = vmatprep.subr.mxu0 %v1432_v22  ;;  %3568 = vmatprep.subr.mxu1 %v856_v23  ;;  %v760_v20 = vld [vmem:[%s19210_s25 + $0x1b8] sm:$0xff]  ;;  %v1335_v22 = vld [vmem:[%s19210_s25 + $0x13b0] sm:$0xff] }
 0x29c   :  { %3672 = vmatpush2.msra.mxu0 %v1431_v26  ;;  %3569 = vmatpush1.msra.mxu1 %v855_v27  ;;  %v759_v23 = vld [vmem:[%s19210_s25 + $0x1b0] sm:$0xff]  ;;  %v1324_v26 = vld [vmem:[%s19210_s25 + $0x1358] sm:$0xff] }
 0x29d   :  { %3673 = vmatprep.subr.mxu0 %v1420_v29  ;;  %3570 = vmatprep.subr.mxu1 %v844_v30  ;;  %v748_v27 = vld [vmem:[%s19210_s25 + $0x158] sm:$0xff]  ;;  %v1323_v29 = vld [vmem:[%s19210_s25 + $0x1350] sm:$0xff] }
 0x29e   :  { %3674 = vmatpush2.msra.mxu0 %v1419_v31  ;;  %3571 = vmatpush1.msra.mxu1 %v843_v50  ;;  %v747_v30 = vld [vmem:[%s19210_s25 + $0x150] sm:$0xff]  ;;  %v12359_v31 = vpop.f32.mrf.mxu1  ;;  %v1312_v50 = vld [vmem:[%s19210_s25 + $0x12f8] sm:$0xff] }
 0x29f   :  { %3675 = vmatprep.subr.mxu0 %v1408_v32  ;;  %3572 = vmatprep.subr.mxu1 %v832_v33  ;;  %v736_v32 = vld [vmem:[%s19210_s25 + $0xf8] sm:$0xff]  ;;  %v1311_v33 = vld [vmem:[%s19210_s25 + $0x12f0] sm:$0xff] }
 0x2a0   :  { %3676 = vmatpush2.msra.mxu0 %v1407_v34  ;;  %3573 = vmatpush1.msra.mxu1 %v831_v36  ;;  %v735_v34 = vld [vmem:[%s19210_s25 + $0xf0] sm:$0xff]  ;;  %v12373_v36 = vpop.f32.mrf.mxu0 }
 0x2a1   :  { %3677 = vmatprep.subr.mxu0 %v1396_v39  ;;  %3574 = vmatprep.subr.mxu1 %v820_v40  ;;  %v1300_v39 = vld [vmem:[%s19210_s25 + $0x1298] sm:$0xff] }
 0x2a2   :  { %3678 = vmatpush2.msra.mxu0 %v1395_v43  ;;  %3575 = vmatpush1.msra.mxu1 %v819_v44  ;;  %v724_v40 = vld [vmem:[%s19210_s25 + $0x98] sm:$0xff]  ;;  %v1299_v44 = vld [vmem:[%s19210_s25 + $0x1290] sm:$0xff] }
 0x2a3   :  { %3679 = vmatprep.subr.mxu0 %v1384_v54  ;;  %3576 = vmatprep.subr.mxu1 %v808_v55  ;;  %v723_v54 = vld [vmem:[%s19210_s25 + $0x90] sm:$0xff] }
 0x2a4   :  { %3680 = vmatpush2.msra.mxu0 %v1383_v56  ;;  %3577 = vmatpush1.msra.mxu1 %v807_v57  ;;  %v3131_v56 = vpop.f32.mrf.mxu0  ;;  %v1288_v57 = vld [vmem:[%s19210_s25 + $0x1238] sm:$0xff] }
 0x2a5   :  { %3681 = vmatprep.subr.mxu0 %v1372_v58  ;;  %3578 = vmatprep.subr.mxu1 %v796_v60  ;;  %v712_v58 = vld [vmem:[%s19210_s25 + $0x38] sm:$0xff]  ;;  %v1287_v60 = vld [vmem:[%s19210_s25 + $0x1230] sm:$0xff] }
 0x2a6   :  { %3682 = vmatpush2.msra.mxu0 %v1371_v61  ;;  %3579 = vmatpush1.msra.mxu1 %v795_v62  ;;  %v2044_v62 = vld [vmem:[%s19210_s25 + $0x29d8] sm:$0xff] }
 0x2a7   :  { %3683 = vmatprep.subr.mxu0 %v1360_v63  ;;  %3580 = vmatprep.subr.mxu1 %v784_v6  ;;  %v1084_v63 = vld [vmem:[%s19210_s25 + $0xbd8] sm:$0xff]  ;;  %v2043_v6 = vld [vmem:[%s19210_s25 + $0x29d0] sm:$0xff] }
 0x2a8   :  { %3684 = vmatpush2.msra.mxu0 %v1359_v9  ;;  %3581 = vmatpush1.msra.mxu1 %v783_v10  ;;  %v1083_v9 = vld [vmem:[%s19210_s25 + $0xbd0] sm:$0xff]  ;;  %v2032_v10 = vld [vmem:[%s19210_s25 + $0x2978] sm:$0xff] }
 0x2a9   :  { %3685 = vmatprep.subr.mxu0 %v1348_v14  ;;  %3582 = vmatprep.subr.mxu1 %v772_v15  ;;  %v1072_v14 = vld [vmem:[%s19210_s25 + $0xb78] sm:$0xff]  ;;  %v2031_v15 = vld [vmem:[%s19210_s25 + $0x2970] sm:$0xff] }
 0x2aa   :  { %3686 = vmatpush2.msra.mxu0 %v1347_v17  ;;  %3583 = vmatpush1.msra.mxu1 %v771_v18  ;;  %v1071_v17 = vld [vmem:[%s19210_s25 + $0xb70] sm:$0xff]  ;;  %v2020_v18 = vld [vmem:[%s19210_s25 + $0x2918] sm:$0xff] }
 0x2ab   :  { %3687 = vmatprep.subr.mxu0 %v1336_v47  ;;  %3584 = vmatprep.subr.mxu1 %v760_v20  ;;  %v1060_v47 = vld [vmem:[%s19210_s25 + $0xb18] sm:$0xff]  ;;  %v2019_v20 = vld [vmem:[%s19210_s25 + $0x2910] sm:$0xff] }
 0x2ac   :  { %3688 = vmatpush2.msra.mxu0 %v1335_v22  ;;  %3585 = vmatpush1.msra.mxu1 %v759_v23  ;;  %v1059_v22 = vld [vmem:[%s19210_s25 + $0xb10] sm:$0xff]  ;;  %v2008_v23 = vld [vmem:[%s19210_s25 + $0x28b8] sm:$0xff] }
 0x2ad   :  { %3689 = vmatprep.subr.mxu0 %v1324_v26  ;;  %3586 = vmatprep.subr.mxu1 %v748_v27  ;;  %v1048_v26 = vld [vmem:[%s19210_s25 + $0xab8] sm:$0xff]  ;;  %v2007_v27 = vld [vmem:[%s19210_s25 + $0x28b0] sm:$0xff] }
 0x2ae   :  { %3690 = vmatpush2.msra.mxu0 %v1323_v29  ;;  %3587 = vmatpush1.msra.mxu1 %v747_v30  ;;  %v3060_v43 = vpop.f32.mrf.mxu1  ;;  %v1047_v29 = vld [vmem:[%s19210_s25 + $0xab0] sm:$0xff]  ;;  %v1996_v30 = vld [vmem:[%s19210_s25 + $0x2858] sm:$0xff] }
 0x2af   :  { %3691 = vmatprep.subr.mxu0 %v1312_v50  ;;  %3588 = vmatprep.subr.mxu1 %v736_v32  ;;  %v3061_v55 = vadd.f32 %v3060_v43, %v12004_v7  ;;  %v711_v7 = vld [vmem:[%s19210_s25 + $0x30] sm:$0xff]  ;;  %v1036_v50 = vld [vmem:[%s19210_s25 + $0xa58] sm:$0xff] }
 0x2b0   :  { %3692 = vmatpush2.msra.mxu0 %v1311_v33  ;;  %3589 = vmatpush1.msra.mxu1 %v735_v34  ;;  %v1995_v32 = vld [vmem:[%s19210_s25 + $0x2850] sm:$0xff]  ;;  %v1984_v34 = vld [vmem:[%s19210_s25 + $0x27f8] sm:$0xff] }
 0x2b1   :  { %3693 = vmatprep.subr.mxu0 %v1300_v39  ;;  %3590 = vmatprep.subr.mxu1 %v724_v40  ;;  %v12400_v61 = vadd.f32 %v3131_v56, %v3061_v55  ;;  %v1035_v33 = vld [vmem:[%s19210_s25 + $0xa50] sm:$0xff]  ;;  %v1024_v39 = vld [vmem:[%s19210_s25 + $0x9f8] sm:$0xff] }
 0x2b2   :  { %3694 = vmatpush2.msra.mxu0 %v1299_v44  ;;  %3591 = vmatpush1.msra.mxu1 %v723_v54  ;;  %v1983_v40 = vld [vmem:[%s19210_s25 + $0x27f0] sm:$0xff]  ;;  %v1972_v44 = vld [vmem:[%s19210_s25 + $0x2798] sm:$0xff] }
 0x2b3   :  { %3695 = vmatprep.subr.mxu0 %v1288_v57  ;;  %3592 = vmatprep.subr.mxu1 %v712_v58  ;;  %v1023_v43 = vld [vmem:[%s19210_s25 + $0x9f0] sm:$0xff]  ;;  %v1012_v54 = vld [vmem:[%s19210_s25 + $0x998] sm:$0xff] }
 0x2b4   :  { %3696 = vmatpush2.msra.mxu0 %v1287_v60  ;;  %3593 = vmatpush1.msra.mxu1 %v711_v7  ;;  %v1971_v55 = vld [vmem:[%s19210_s25 + $0x2790] sm:$0xff]  ;;  %v1960_v57 = vld [vmem:[%s19210_s25 + $0x2738] sm:$0xff] }
 0x2b5   :  { %3698 = vmatmul.mubr.f32.vlgmr.msra.gmra.mxu0 %v9803_v1  ;;  %3775 = vmatprep.subr.mxu0 %v2044_v62  ;;  %v1011_v56 = vld [vmem:[%s19210_s25 + $0x990] sm:$0xff]  ;;  %v1000_v58 = vld [vmem:[%s19210_s25 + $0x938] sm:$0xff] }
 0x2b6   :  { %3594 = vmatprep.subr.mxu1 %v1084_v63  ;;  %3776 = vmatpush1.msra.mxu0 %v2043_v6  ;;  %v1959_v60 = vld [vmem:[%s19210_s25 + $0x2730] sm:$0xff]  ;;  %v1948_v62 = vld [vmem:[%s19210_s25 + $0x26d8] sm:$0xff] }
 0x2b7   :  { %3839 = vmatprep.mubr.f32.mxu0 %v10210_v42  ;;  %3595 = vmatpush2.msra.mxu1 %v1083_v9  ;;  %v999_v7 = vld [vmem:[%s19210_s25 + $0x930] sm:$0xff]  ;;  %v988_v63 = vld [vmem:[%s19210_s25 + $0x8d8] sm:$0xff] }
 0x2b8   :  { %3777 = vmatprep.subr.mxu0 %v2032_v10  ;;  %3596 = vmatprep.subr.mxu1 %v1072_v14  ;;  %v1947_v6 = vld [vmem:[%s19210_s25 + $0x26d0] sm:$0xff]  ;;  %v1936_v10 = vld [vmem:[%s19210_s25 + $0x2678] sm:$0xff] }
 0x2b9   :  { %3778 = vmatpush1.msra.mxu0 %v2031_v15  ;;  %3597 = vmatpush2.msra.mxu1 %v1071_v17  ;;  %v987_v9 = vld [vmem:[%s19210_s25 + $0x8d0] sm:$0xff]  ;;  %v976_v14 = vld [vmem:[%s19210_s25 + $0x878] sm:$0xff] }
 0x2ba   :  { %3779 = vmatprep.subr.mxu0 %v2020_v18  ;;  %3598 = vmatprep.subr.mxu1 %v1060_v47  ;;  %v1935_v15 = vld [vmem:[%s19210_s25 + $0x2670] sm:$0xff]  ;;  %v1924_v18 = vld [vmem:[%s19210_s25 + $0x2618] sm:$0xff] }
 0x2bb   :  { %3780 = vmatpush1.msra.mxu0 %v2019_v20  ;;  %3599 = vmatpush2.msra.mxu1 %v1059_v22  ;;  %v975_v17 = vld [vmem:[%s19210_s25 + $0x870] sm:$0xff]  ;;  %v964_v47 = vld [vmem:[%s19210_s25 + $0x818] sm:$0xff] }
 0x2bc   :  { %3781 = vmatprep.subr.mxu0 %v2008_v23  ;;  %3600 = vmatprep.subr.mxu1 %v1048_v26  ;;  %v1923_v20 = vld [vmem:[%s19210_s25 + $0x2610] sm:$0xff]  ;;  %v1912_v23 = vld [vmem:[%s19210_s25 + $0x25b8] sm:$0xff] }
 0x2bd   :  { %3782 = vmatpush1.msra.mxu0 %v2007_v27  ;;  %3601 = vmatpush2.msra.mxu1 %v1047_v29  ;;  %v963_v22 = vld [vmem:[%s19210_s25 + $0x810] sm:$0xff]  ;;  %v952_v26 = vld [vmem:[%s19210_s25 + $0x7b8] sm:$0xff] }
 0x2be   :  { %3783 = vmatprep.subr.mxu0 %v1996_v30  ;;  %3602 = vmatprep.subr.mxu1 %v1036_v50  ;;  %v1911_v27 = vld [vmem:[%s19210_s25 + $0x25b0] sm:$0xff]  ;;  %v1900_v30 = vld [vmem:[%s19210_s25 + $0x2558] sm:$0xff] }
 0x2bf   :  { %3784 = vmatpush1.msra.mxu0 %v1995_v32  ;;  %3603 = vmatpush2.msra.mxu1 %v1035_v33  ;;  %v951_v29 = vld [vmem:[%s19210_s25 + $0x7b0] sm:$0xff]  ;;  %v940_v50 = vld [vmem:[%s19210_s25 + $0x758] sm:$0xff] }
 0x2c0   :  { %3785 = vmatprep.subr.mxu0 %v1984_v34  ;;  %3604 = vmatprep.subr.mxu1 %v1024_v39  ;;  %v1899_v32 = vld [vmem:[%s19210_s25 + $0x2550] sm:$0xff]  ;;  %v1888_v34 = vld [vmem:[%s19210_s25 + $0x24f8] sm:$0xff] }
 0x2c1   :  { %3786 = vmatpush1.msra.mxu0 %v1983_v40  ;;  %3605 = vmatpush2.msra.mxu1 %v1023_v43  ;;  %v939_v33 = vld [vmem:[%s19210_s25 + $0x750] sm:$0xff]  ;;  %v928_v39 = vld [vmem:[%s19210_s25 + $0x6f8] sm:$0xff]  ;;  %v12566_v40 = vpop.f32.mrf.mxu1 }
 0x2c2   :  { %3787 = vmatprep.subr.mxu0 %v1972_v44  ;;  %3606 = vmatprep.subr.mxu1 %v1012_v54  ;;  %v1887_v43 = vld [vmem:[%s19210_s25 + $0x24f0] sm:$0xff]  ;;  %v1876_v54 = vld [vmem:[%s19210_s25 + $0x2498] sm:$0xff] }
 0x2c3   :  { %3788 = vmatpush1.msra.mxu0 %v1971_v55  ;;  %3607 = vmatpush2.msra.mxu1 %v1011_v56  ;;  %v927_v44 = vld [vmem:[%s19210_s25 + $0x6f0] sm:$0xff]  ;;  %v916_v55 = vld [vmem:[%s19210_s25 + $0x698] sm:$0xff] }
 0x2c4   :  { %3789 = vmatprep.subr.mxu0 %v1960_v57  ;;  %3608 = vmatprep.subr.mxu1 %v1000_v58  ;;  %v1875_v56 = vld [vmem:[%s19210_s25 + $0x2490] sm:$0xff] }
 0x2c5   :  { %3790 = vmatpush1.msra.mxu0 %v1959_v60  ;;  %3609 = vmatpush2.msra.mxu1 %v999_v7  ;;  %v915_v57 = vld [vmem:[%s19210_s25 + $0x690] sm:$0xff]  ;;  %v1864_v60 = vld [vmem:[%s19210_s25 + $0x2438] sm:$0xff] }
 0x2c6   :  { %3791 = vmatprep.subr.mxu0 %v1948_v62  ;;  %3610 = vmatprep.subr.mxu1 %v988_v63  ;;  %v904_v7 = vld [vmem:[%s19210_s25 + $0x638] sm:$0xff]  ;;  %v1863_v63 = vld [vmem:[%s19210_s25 + $0x2430] sm:$0xff] }
 0x2c7   :  { %3792 = vmatpush1.msra.mxu0 %v1947_v6  ;;  %3611 = vmatpush2.msra.mxu1 %v987_v9  ;;  %v903_v6 = vld [vmem:[%s19210_s25 + $0x630] sm:$0xff]  ;;  %v2236_v9 = vld [vmem:[%s19210_s25 + $0x2fd8] sm:$0xff] }
 0x2c8   :  { %3793 = vmatprep.subr.mxu0 %v1936_v10  ;;  %3612 = vmatprep.subr.mxu1 %v976_v14  ;;  %v2235_v10 = vld [vmem:[%s19210_s25 + $0x2fd0] sm:$0xff] }
 0x2c9   :  { %3794 = vmatpush1.msra.mxu0 %v1935_v15  ;;  %3613 = vmatpush2.msra.mxu1 %v975_v17  ;;  %v1659_v14 = vld [vmem:[%s19210_s25 + $0x1dd0] sm:$0xff]  ;;  %v2224_v15 = vld [vmem:[%s19210_s25 + $0x2f78] sm:$0xff] }
 0x2ca   :  { %3795 = vmatprep.subr.mxu0 %v1924_v18  ;;  %3614 = vmatprep.subr.mxu1 %v964_v47  ;;  %v1648_v17 = vld [vmem:[%s19210_s25 + $0x1d78] sm:$0xff]  ;;  %v2223_v18 = vld [vmem:[%s19210_s25 + $0x2f70] sm:$0xff] }
 0x2cb   :  { %3796 = vmatpush1.msra.mxu0 %v1923_v20  ;;  %3615 = vmatpush2.msra.mxu1 %v963_v22  ;;  %v1647_v47 = vld [vmem:[%s19210_s25 + $0x1d70] sm:$0xff]  ;;  %v2212_v20 = vld [vmem:[%s19210_s25 + $0x2f18] sm:$0xff] }
 0x2cc   :  { %3797 = vmatprep.subr.mxu0 %v1912_v23  ;;  %3616 = vmatprep.subr.mxu1 %v952_v26  ;;  %v1636_v22 = vld [vmem:[%s19210_s25 + $0x1d18] sm:$0xff]  ;;  %v2211_v23 = vld [vmem:[%s19210_s25 + $0x2f10] sm:$0xff] }
 0x2cd   :  { %3798 = vmatpush1.msra.mxu0 %v1911_v27  ;;  %3617 = vmatpush2.msra.mxu1 %v951_v29  ;;  %v1635_v26 = vld [vmem:[%s19210_s25 + $0x1d10] sm:$0xff]  ;;  %v2200_v27 = vld [vmem:[%s19210_s25 + $0x2eb8] sm:$0xff] }
 0x2ce   :  { %3799 = vmatprep.subr.mxu0 %v1900_v30  ;;  %3618 = vmatprep.subr.mxu1 %v940_v50  ;;  %v1624_v29 = vld [vmem:[%s19210_s25 + $0x1cb8] sm:$0xff]  ;;  %v2199_v30 = vld [vmem:[%s19210_s25 + $0x2eb0] sm:$0xff] }
 0x2cf   :  { %3800 = vmatpush1.msra.mxu0 %v1899_v32  ;;  %3619 = vmatpush2.msra.mxu1 %v939_v33  ;;  %v1623_v50 = vld [vmem:[%s19210_s25 + $0x1cb0] sm:$0xff]  ;;  %v2188_v32 = vld [vmem:[%s19210_s25 + $0x2e58] sm:$0xff] }
 0x2d0   :  { %3801 = vmatprep.subr.mxu0 %v1888_v34  ;;  %3620 = vmatprep.subr.mxu1 %v928_v39  ;;  %v3202_v58 = vpop.f32.mrf.mxu1  ;;  %v1612_v33 = vld [vmem:[%s19210_s25 + $0x1c58] sm:$0xff]  ;;  %v2187_v34 = vld [vmem:[%s19210_s25 + $0x2e50] sm:$0xff] }
 0x2d1   :  { %3802 = vmatpush1.msra.mxu0 %v1887_v43  ;;  %3621 = vmatpush2.msra.mxu1 %v927_v44  ;;  %v12593_v62 = vadd.f32 %v3202_v58, %v12400_v61  ;;  %v1660_v61 = vld [vmem:[%s19210_s25 + $0x1dd8] sm:$0xff]  ;;  %v1611_v39 = vld [vmem:[%s19210_s25 + $0x1c50] sm:$0xff] }
 0x2d2   :  { %3803 = vmatprep.subr.mxu0 %v1876_v54  ;;  %3622 = vmatprep.subr.mxu1 %v916_v55  ;;  %v2176_v43 = vld [vmem:[%s19210_s25 + $0x2df8] sm:$0xff]  ;;  %v2175_v54 = vld [vmem:[%s19210_s25 + $0x2df0] sm:$0xff] }
 0x2d3   :  { %3804 = vmatpush1.msra.mxu0 %v1875_v56  ;;  %3623 = vmatpush2.msra.mxu1 %v915_v57  ;;  %v1600_v44 = vld [vmem:[%s19210_s25 + $0x1bf8] sm:$0xff]  ;;  %v1599_v55 = vld [vmem:[%s19210_s25 + $0x1bf0] sm:$0xff] }
 0x2d4   :  { %3805 = vmatprep.subr.mxu0 %v1864_v60  ;;  %3624 = vmatprep.subr.mxu1 %v904_v7  ;;  %v2164_v56 = vld [vmem:[%s19210_s25 + $0x2d98] sm:$0xff]  ;;  %v2163_v58 = vld [vmem:[%s19210_s25 + $0x2d90] sm:$0xff] }
 0x2d5   :  { %3806 = vmatpush1.msra.mxu0 %v1863_v63  ;;  %3625 = vmatpush2.msra.mxu1 %v903_v6  ;;  %v1588_v57 = vld [vmem:[%s19210_s25 + $0x1b98] sm:$0xff]  ;;  %v1587_v60 = vld [vmem:[%s19210_s25 + $0x1b90] sm:$0xff] }
 0x2d6   :  { %3807 = vmatprep.subr.mxu0 %v2236_v9  ;;  %3627 = vmatmul.mubr.f32.vlgmr.msra.gmra.mxu1 %v9809_v4  ;;  %v2152_v7 = vld [vmem:[%s19210_s25 + $0x2d38] sm:$0xff]  ;;  %v2151_v6 = vld [vmem:[%s19210_s25 + $0x2d30] sm:$0xff] }
 0x2d7   :  { %3704 = vmatprep.subr.mxu1 %v1660_v61  ;;  %3808 = vmatpush2.msra.mxu0 %v2235_v10  ;;  %v1576_v63 = vld [vmem:[%s19210_s25 + $0x1b38] sm:$0xff]  ;;  %v1575_v9 = vld [vmem:[%s19210_s25 + $0x1b30] sm:$0xff] }
 0x2d8   :  { %3705 = vmatpush1.msra.mxu1 %v1659_v14  ;;  %3768 = vmatprep.mubr.f32.mxu1 %v10119_v5  ;;  %v2140_v61 = vld [vmem:[%s19210_s25 + $0x2cd8] sm:$0xff]  ;;  %v2139_v14 = vld [vmem:[%s19210_s25 + $0x2cd0] sm:$0xff] }
 0x2d9   :  { %3809 = vmatprep.subr.mxu0 %v2224_v15  ;;  %3706 = vmatprep.subr.mxu1 %v1648_v17  ;;  %v1564_v10 = vld [vmem:[%s19210_s25 + $0x1ad8] sm:$0xff]  ;;  %v1563_v15 = vld [vmem:[%s19210_s25 + $0x1ad0] sm:$0xff] }
 0x2da   :  { %3810 = vmatpush2.msra.mxu0 %v2223_v18  ;;  %3707 = vmatpush1.msra.mxu1 %v1647_v47  ;;  %v2128_v17 = vld [vmem:[%s19210_s25 + $0x2c78] sm:$0xff]  ;;  %v2127_v47 = vld [vmem:[%s19210_s25 + $0x2c70] sm:$0xff] }
 0x2db   :  { %3811 = vmatprep.subr.mxu0 %v2212_v20  ;;  %3708 = vmatprep.subr.mxu1 %v1636_v22  ;;  %v1552_v18 = vld [vmem:[%s19210_s25 + $0x1a78] sm:$0xff]  ;;  %v1551_v20 = vld [vmem:[%s19210_s25 + $0x1a70] sm:$0xff] }
 0x2dc   :  { %3812 = vmatpush2.msra.mxu0 %v2211_v23  ;;  %3709 = vmatpush1.msra.mxu1 %v1635_v26  ;;  %v2116_v22 = vld [vmem:[%s19210_s25 + $0x2c18] sm:$0xff]  ;;  %v2115_v26 = vld [vmem:[%s19210_s25 + $0x2c10] sm:$0xff] }
 0x2dd   :  { %3813 = vmatprep.subr.mxu0 %v2200_v27  ;;  %3710 = vmatprep.subr.mxu1 %v1624_v29  ;;  %v1540_v23 = vld [vmem:[%s19210_s25 + $0x1a18] sm:$0xff]  ;;  %v1539_v27 = vld [vmem:[%s19210_s25 + $0x1a10] sm:$0xff] }
 0x2de   :  { %3814 = vmatpush2.msra.mxu0 %v2199_v30  ;;  %3711 = vmatpush1.msra.mxu1 %v1623_v50  ;;  %v2104_v29 = vld [vmem:[%s19210_s25 + $0x2bb8] sm:$0xff]  ;;  %v2103_v50 = vld [vmem:[%s19210_s25 + $0x2bb0] sm:$0xff] }
 0x2df   :  { %3815 = vmatprep.subr.mxu0 %v2188_v32  ;;  %3712 = vmatprep.subr.mxu1 %v1612_v33  ;;  %v1528_v30 = vld [vmem:[%s19210_s25 + $0x19b8] sm:$0xff]  ;;  %v1527_v32 = vld [vmem:[%s19210_s25 + $0x19b0] sm:$0xff] }
 0x2e0   :  { %3816 = vmatpush2.msra.mxu0 %v2187_v34  ;;  %3713 = vmatpush1.msra.mxu1 %v1611_v39  ;;  %v2092_v33 = vld [vmem:[%s19210_s25 + $0x2b58] sm:$0xff]  ;;  %v2091_v39 = vld [vmem:[%s19210_s25 + $0x2b50] sm:$0xff] }
 0x2e1   :  { %3817 = vmatprep.subr.mxu0 %v2176_v43  ;;  %3714 = vmatprep.subr.mxu1 %v1600_v44  ;;  %v1516_v34 = vld [vmem:[%s19210_s25 + $0x1958] sm:$0xff]  ;;  %v1515_v43 = vld [vmem:[%s19210_s25 + $0x1950] sm:$0xff] }
 0x2e2   :  { %3818 = vmatpush2.msra.mxu0 %v2175_v54  ;;  %3715 = vmatpush1.msra.mxu1 %v1599_v55  ;;  %v2080_v44 = vld [vmem:[%s19210_s25 + $0x2af8] sm:$0xff]  ;;  %v2079_v55 = vld [vmem:[%s19210_s25 + $0x2af0] sm:$0xff] }
 0x2e3   :  { %3819 = vmatprep.subr.mxu0 %v2164_v56  ;;  %3716 = vmatprep.subr.mxu1 %v1588_v57  ;;  %v1504_v54 = vld [vmem:[%s19210_s25 + $0x18f8] sm:$0xff]  ;;  %v1503_v56 = vld [vmem:[%s19210_s25 + $0x18f0] sm:$0xff] }
 0x2e4   :  { %3820 = vmatpush2.msra.mxu0 %v2163_v58  ;;  %3717 = vmatpush1.msra.mxu1 %v1587_v60  ;;  %v2068_v57 = vld [vmem:[%s19210_s25 + $0x2a98] sm:$0xff]  ;;  %v2067_v60 = vld [vmem:[%s19210_s25 + $0x2a90] sm:$0xff] }
 0x2e5   :  { %3821 = vmatprep.subr.mxu0 %v2152_v7  ;;  %3718 = vmatprep.subr.mxu1 %v1576_v63  ;;  %v1492_v58 = vld [vmem:[%s19210_s25 + $0x1898] sm:$0xff]  ;;  %v1491_v7 = vld [vmem:[%s19210_s25 + $0x1890] sm:$0xff] }
 0x2e6   :  { %3822 = vmatpush2.msra.mxu0 %v2151_v6  ;;  %3719 = vmatpush1.msra.mxu1 %v1575_v9  ;;  %v2056_v63 = vld [vmem:[%s19210_s25 + $0x2a38] sm:$0xff]  ;;  %v2055_v9 = vld [vmem:[%s19210_s25 + $0x2a30] sm:$0xff] }
 0x2e7   :  { %3823 = vmatprep.subr.mxu0 %v2140_v61  ;;  %3720 = vmatprep.subr.mxu1 %v1564_v10  ;;  %v1480_v6 = vld [vmem:[%s19210_s25 + $0x1838] sm:$0xff]  ;;  %v1479_v61 = vld [vmem:[%s19210_s25 + $0x1830] sm:$0xff]  ;;  %v894_v10 = vld [vmem:[%s19210_s25 + $0x5e8] sm:$0xff] }
 0x2e8   :  { %3824 = vmatpush2.msra.mxu0 %v2139_v14  ;;  %3721 = vmatpush1.msra.mxu1 %v1563_v15  ;;  %v1852_v14 = vld [vmem:[%s19210_s25 + $0x23d8] sm:$0xff]  ;;  %v893_v15 = vld [vmem:[%s19210_s25 + $0x5e0] sm:$0xff] }
 0x2e9   :  { %3825 = vmatprep.subr.mxu0 %v2128_v17  ;;  %3722 = vmatprep.subr.mxu1 %v1552_v18  ;;  %v1851_v17 = vld [vmem:[%s19210_s25 + $0x23d0] sm:$0xff]  ;;  %v882_v18 = vld [vmem:[%s19210_s25 + $0x588] sm:$0xff] }
 0x2ea   :  { %3826 = vmatpush2.msra.mxu0 %v2127_v47  ;;  %3723 = vmatpush1.msra.mxu1 %v1551_v20  ;;  %v1840_v47 = vld [vmem:[%s19210_s25 + $0x2378] sm:$0xff]  ;;  %v881_v20 = vld [vmem:[%s19210_s25 + $0x580] sm:$0xff] }
 0x2eb   :  { %3827 = vmatprep.subr.mxu0 %v2116_v22  ;;  %3724 = vmatprep.subr.mxu1 %v1540_v23  ;;  %v1839_v22 = vld [vmem:[%s19210_s25 + $0x2370] sm:$0xff]  ;;  %v870_v23 = vld [vmem:[%s19210_s25 + $0x528] sm:$0xff] }
 0x2ec   :  { %3828 = vmatpush2.msra.mxu0 %v2115_v26  ;;  %3725 = vmatpush1.msra.mxu1 %v1539_v27  ;;  %v1828_v26 = vld [vmem:[%s19210_s25 + $0x2318] sm:$0xff]  ;;  %v869_v27 = vld [vmem:[%s19210_s25 + $0x520] sm:$0xff] }
 0x2ed   :  { %3829 = vmatprep.subr.mxu0 %v2104_v29  ;;  %3726 = vmatprep.subr.mxu1 %v1528_v30  ;;  %v1827_v29 = vld [vmem:[%s19210_s25 + $0x2310] sm:$0xff]  ;;  %v858_v30 = vld [vmem:[%s19210_s25 + $0x4c8] sm:$0xff] }
 0x2ee   :  { %3830 = vmatpush2.msra.mxu0 %v2103_v50  ;;  %3727 = vmatpush1.msra.mxu1 %v1527_v32  ;;  %v1816_v50 = vld [vmem:[%s19210_s25 + $0x22b8] sm:$0xff]  ;;  %v857_v32 = vld [vmem:[%s19210_s25 + $0x4c0] sm:$0xff] }
 0x2ef   :  { %3831 = vmatprep.subr.mxu0 %v2092_v33  ;;  %3728 = vmatprep.subr.mxu1 %v1516_v34  ;;  %v1815_v33 = vld [vmem:[%s19210_s25 + $0x22b0] sm:$0xff]  ;;  %v846_v34 = vld [vmem:[%s19210_s25 + $0x468] sm:$0xff] }
 0x2f0   :  { %3832 = vmatpush2.msra.mxu0 %v2091_v39  ;;  %3729 = vmatpush1.msra.mxu1 %v1515_v43  ;;  %v1804_v39 = vld [vmem:[%s19210_s25 + $0x2258] sm:$0xff]  ;;  %v845_v43 = vld [vmem:[%s19210_s25 + $0x460] sm:$0xff] }
 0x2f1   :  { %3833 = vmatprep.subr.mxu0 %v2080_v44  ;;  %3730 = vmatprep.subr.mxu1 %v1504_v54  ;;  %v1803_v44 = vld [vmem:[%s19210_s25 + $0x2250] sm:$0xff]  ;;  %v834_v54 = vld [vmem:[%s19210_s25 + $0x408] sm:$0xff] }
 0x2f2   :  { %3834 = vmatpush2.msra.mxu0 %v2079_v55  ;;  %3731 = vmatpush1.msra.mxu1 %v1503_v56  ;;  %v1792_v55 = vld [vmem:[%s19210_s25 + $0x21f8] sm:$0xff]  ;;  %v833_v56 = vld [vmem:[%s19210_s25 + $0x400] sm:$0xff] }
 0x2f3   :  { %3835 = vmatprep.subr.mxu0 %v2068_v57  ;;  %3732 = vmatprep.subr.mxu1 %v1492_v58  ;;  %v1791_v57 = vld [vmem:[%s19210_s25 + $0x21f0] sm:$0xff]  ;;  %v822_v58 = vld [vmem:[%s19210_s25 + $0x3a8] sm:$0xff] }
 0x2f4   :  { %3836 = vmatpush2.msra.mxu0 %v2067_v60  ;;  %3733 = vmatpush1.msra.mxu1 %v1491_v7  ;;  %v1780_v60 = vld [vmem:[%s19210_s25 + $0x2198] sm:$0xff]  ;;  %v821_v7 = vld [vmem:[%s19210_s25 + $0x3a0] sm:$0xff] }
 0x2f5   :  { %3837 = vmatprep.subr.mxu0 %v2056_v63  ;;  %3734 = vmatprep.subr.mxu1 %v1480_v6  ;;  %v1779_v63 = vld [vmem:[%s19210_s25 + $0x2190] sm:$0xff]  ;;  %v810_v6 = vld [vmem:[%s19210_s25 + $0x348] sm:$0xff] }
 0x2f6   :  { %3838 = vmatpush2.msra.mxu0 %v2055_v9  ;;  %3735 = vmatpush1.msra.mxu1 %v1479_v61  ;;  %v1768_v9 = vld [vmem:[%s19210_s25 + $0x2138] sm:$0xff]  ;;  %v809_v61 = vld [vmem:[%s19210_s25 + $0x340] sm:$0xff] }
 0x2f7   :  { %3840 = vmatmul.mubr.f32.vlgmr.msra.gmra.mxu0 %v10218_v45  ;;  %3917 = vmatprep.subr.mxu0 %v894_v10  ;;  %v1767_v10 = vld [vmem:[%s19210_s25 + $0x2130] sm:$0xff] }
 0x2f8   :  { %3736 = vmatprep.subr.mxu1 %v1852_v14  ;;  %3918 = vmatpush1.msra.mxu0 %v893_v15  ;;  %v798_v14 = vld [vmem:[%s19210_s25 + $0x2e8] sm:$0xff]  ;;  %v1756_v15 = vld [vmem:[%s19210_s25 + $0x20d8] sm:$0xff] }
 0x2f9   :  { %3981 = vmatprep.mubr.f32.mxu0 %v9805_v2  ;;  %3737 = vmatpush2.msra.mxu1 %v1851_v17  ;;  %v797_v17 = vld [vmem:[%s19210_s25 + $0x2e0] sm:$0xff] }
 0x2fa   :  { %3919 = vmatprep.subr.mxu0 %v882_v18  ;;  %3738 = vmatprep.subr.mxu1 %v1840_v47  ;;  %v1755_v18 = vld [vmem:[%s19210_s25 + $0x20d0] sm:$0xff]  ;;  %v786_v47 = vld [vmem:[%s19210_s25 + $0x288] sm:$0xff] }
 0x2fb   :  { %3920 = vmatpush1.msra.mxu0 %v881_v20  ;;  %3739 = vmatpush2.msra.mxu1 %v1839_v22  ;;  %v1744_v20 = vld [vmem:[%s19210_s25 + $0x2078] sm:$0xff]  ;;  %v785_v22 = vld [vmem:[%s19210_s25 + $0x280] sm:$0xff] }
 0x2fc   :  { %3921 = vmatprep.subr.mxu0 %v870_v23  ;;  %3740 = vmatprep.subr.mxu1 %v1828_v26  ;;  %v1743_v23 = vld [vmem:[%s19210_s25 + $0x2070] sm:$0xff]  ;;  %v774_v26 = vld [vmem:[%s19210_s25 + $0x228] sm:$0xff] }
 0x2fd   :  { %3922 = vmatpush1.msra.mxu0 %v869_v27  ;;  %3741 = vmatpush2.msra.mxu1 %v1827_v29  ;;  %v1732_v27 = vld [vmem:[%s19210_s25 + $0x2018] sm:$0xff]  ;;  %v773_v29 = vld [vmem:[%s19210_s25 + $0x220] sm:$0xff] }
 0x2fe   :  { %3923 = vmatprep.subr.mxu0 %v858_v30  ;;  %3742 = vmatprep.subr.mxu1 %v1816_v50  ;;  %v1731_v30 = vld [vmem:[%s19210_s25 + $0x2010] sm:$0xff]  ;;  %v762_v50 = vld [vmem:[%s19210_s25 + $0x1c8] sm:$0xff] }
 0x2ff   :  { %3924 = vmatpush1.msra.mxu0 %v857_v32  ;;  %3743 = vmatpush2.msra.mxu1 %v1815_v33  ;;  %v1720_v32 = vld [vmem:[%s19210_s25 + $0x1fb8] sm:$0xff]  ;;  %v761_v33 = vld [vmem:[%s19210_s25 + $0x1c0] sm:$0xff] }
 0x300   :  { %3925 = vmatprep.subr.mxu0 %v846_v34  ;;  %3744 = vmatprep.subr.mxu1 %v1804_v39  ;;  %v1719_v34 = vld [vmem:[%s19210_s25 + $0x1fb0] sm:$0xff]  ;;  %v750_v39 = vld [vmem:[%s19210_s25 + $0x168] sm:$0xff] }
 0x301   :  { %3926 = vmatpush1.msra.mxu0 %v845_v43  ;;  %3745 = vmatpush2.msra.mxu1 %v1803_v44  ;;  %v1708_v43 = vld [vmem:[%s19210_s25 + $0x1f58] sm:$0xff]  ;;  %v749_v44 = vld [vmem:[%s19210_s25 + $0x160] sm:$0xff] }
 0x302   :  { %3927 = vmatprep.subr.mxu0 %v834_v54  ;;  %3746 = vmatprep.subr.mxu1 %v1792_v55  ;;  %v1707_v54 = vld [vmem:[%s19210_s25 + $0x1f50] sm:$0xff]  ;;  %v738_v55 = vld [vmem:[%s19210_s25 + $0x108] sm:$0xff] }
 0x303   :  { %3928 = vmatpush1.msra.mxu0 %v833_v56  ;;  %3747 = vmatpush2.msra.mxu1 %v1791_v57  ;;  %v1696_v56 = vld [vmem:[%s19210_s25 + $0x1ef8] sm:$0xff]  ;;  %v737_v57 = vld [vmem:[%s19210_s25 + $0x100] sm:$0xff] }
 0x304   :  { %3929 = vmatprep.subr.mxu0 %v822_v58  ;;  %3748 = vmatprep.subr.mxu1 %v1780_v60  ;;  %v1695_v58 = vld [vmem:[%s19210_s25 + $0x1ef0] sm:$0xff]  ;;  %v726_v60 = vld [vmem:[%s19210_s25 + $0xa8] sm:$0xff] }
 0x305   :  { %3930 = vmatpush1.msra.mxu0 %v821_v7  ;;  %3749 = vmatpush2.msra.mxu1 %v1779_v63  ;;  %v1684_v7 = vld [vmem:[%s19210_s25 + $0x1e98] sm:$0xff]  ;;  %v725_v63 = vld [vmem:[%s19210_s25 + $0xa0] sm:$0xff] }
 0x306   :  { %3931 = vmatprep.subr.mxu0 %v810_v6  ;;  %3750 = vmatprep.subr.mxu1 %v1768_v9  ;;  %v1683_v6 = vld [vmem:[%s19210_s25 + $0x1e90] sm:$0xff]  ;;  %v714_v9 = vld [vmem:[%s19210_s25 + $0x48] sm:$0xff] }
 0x307   :  { %3932 = vmatpush1.msra.mxu0 %v809_v61  ;;  %3751 = vmatpush2.msra.mxu1 %v1767_v10  ;;  %v1672_v61 = vld [vmem:[%s19210_s25 + $0x1e38] sm:$0xff]  ;;  %v713_v10 = vld [vmem:[%s19210_s25 + $0x40] sm:$0xff] }
 0x308   :  { %3933 = vmatprep.subr.mxu0 %v798_v14  ;;  %3752 = vmatprep.subr.mxu1 %v1756_v15  ;;  %v1671_v14 = vld [vmem:[%s19210_s25 + $0x1e30] sm:$0xff]  ;;  %v1086_v15 = vld [vmem:[%s19210_s25 + $0xbe8] sm:$0xff] }
 0x309   :  { %3934 = vmatpush1.msra.mxu0 %v797_v17  ;;  %3753 = vmatpush2.msra.mxu1 %v1755_v18  ;;  %v2428_v17 = vld [vmem:[%s19210_s25 + $0x35d8] sm:$0xff]  ;;  %v1085_v18 = vld [vmem:[%s19210_s25 + $0xbe0] sm:$0xff] }
 0x30a   :  { %3935 = vmatprep.subr.mxu0 %v786_v47  ;;  %3754 = vmatprep.subr.mxu1 %v1744_v20  ;;  %v2427_v47 = vld [vmem:[%s19210_s25 + $0x35d0] sm:$0xff]  ;;  %v1074_v20 = vld [vmem:[%s19210_s25 + $0xb88] sm:$0xff] }
 0x30b   :  { %3936 = vmatpush1.msra.mxu0 %v785_v22  ;;  %3755 = vmatpush2.msra.mxu1 %v1743_v23  ;;  %v2416_v22 = vld [vmem:[%s19210_s25 + $0x3578] sm:$0xff]  ;;  %v1073_v23 = vld [vmem:[%s19210_s25 + $0xb80] sm:$0xff] }
 0x30c   :  { %3937 = vmatprep.subr.mxu0 %v774_v26  ;;  %3756 = vmatprep.subr.mxu1 %v1732_v27  ;;  %v2415_v26 = vld [vmem:[%s19210_s25 + $0x3570] sm:$0xff]  ;;  %v1062_v27 = vld [vmem:[%s19210_s25 + $0xb28] sm:$0xff] }
 0x30d   :  { %3938 = vmatpush1.msra.mxu0 %v773_v29  ;;  %3757 = vmatpush2.msra.mxu1 %v1731_v30  ;;  %v2404_v29 = vld [vmem:[%s19210_s25 + $0x3518] sm:$0xff]  ;;  %v1061_v30 = vld [vmem:[%s19210_s25 + $0xb20] sm:$0xff] }
 0x30e   :  { %3939 = vmatprep.subr.mxu0 %v762_v50  ;;  %3758 = vmatprep.subr.mxu1 %v1720_v32  ;;  %v2403_v50 = vld [vmem:[%s19210_s25 + $0x3510] sm:$0xff]  ;;  %v1050_v32 = vld [vmem:[%s19210_s25 + $0xac8] sm:$0xff] }
 0x30f   :  { %3940 = vmatpush1.msra.mxu0 %v761_v33  ;;  %3759 = vmatpush2.msra.mxu1 %v1719_v34  ;;  %v2392_v33 = vld [vmem:[%s19210_s25 + $0x34b8] sm:$0xff]  ;;  %v1049_v34 = vld [vmem:[%s19210_s25 + $0xac0] sm:$0xff] }
 0x310   :  { %3941 = vmatprep.subr.mxu0 %v750_v39  ;;  %3760 = vmatprep.subr.mxu1 %v1708_v43  ;;  %v2391_v39 = vld [vmem:[%s19210_s25 + $0x34b0] sm:$0xff]  ;;  %v1038_v43 = vld [vmem:[%s19210_s25 + $0xa68] sm:$0xff] }
 0x311   :  { %3942 = vmatpush1.msra.mxu0 %v749_v44  ;;  %3761 = vmatpush2.msra.mxu1 %v1707_v54  ;;  %v2380_v44 = vld [vmem:[%s19210_s25 + $0x3458] sm:$0xff]  ;;  %v1037_v54 = vld [vmem:[%s19210_s25 + $0xa60] sm:$0xff] }
 0x312   :  { %3943 = vmatprep.subr.mxu0 %v738_v55  ;;  %3762 = vmatprep.subr.mxu1 %v1696_v56  ;;  %v2379_v55 = vld [vmem:[%s19210_s25 + $0x3450] sm:$0xff]  ;;  %v1026_v56 = vld [vmem:[%s19210_s25 + $0xa08] sm:$0xff] }
 0x313   :  { %3944 = vmatpush1.msra.mxu0 %v737_v57  ;;  %3763 = vmatpush2.msra.mxu1 %v1695_v58  ;;  %v2368_v57 = vld [vmem:[%s19210_s25 + $0x33f8] sm:$0xff]  ;;  %v1025_v58 = vld [vmem:[%s19210_s25 + $0xa00] sm:$0xff] }
 0x314   :  { %3945 = vmatprep.subr.mxu0 %v726_v60  ;;  %3764 = vmatprep.subr.mxu1 %v1684_v7  ;;  %v2367_v60 = vld [vmem:[%s19210_s25 + $0x33f0] sm:$0xff]  ;;  %v1014_v7 = vld [vmem:[%s19210_s25 + $0x9a8] sm:$0xff] }
 0x315   :  { %3946 = vmatpush1.msra.mxu0 %v725_v63  ;;  %3765 = vmatpush2.msra.mxu1 %v1683_v6  ;;  %v2356_v63 = vld [vmem:[%s19210_s25 + $0x3398] sm:$0xff]  ;;  %v1013_v6 = vld [vmem:[%s19210_s25 + $0x9a0] sm:$0xff] }
 0x316   :  { %3947 = vmatprep.subr.mxu0 %v714_v9  ;;  %3766 = vmatprep.subr.mxu1 %v1672_v61  ;;  %v2355_v9 = vld [vmem:[%s19210_s25 + $0x3390] sm:$0xff]  ;;  %v1002_v61 = vld [vmem:[%s19210_s25 + $0x948] sm:$0xff] }
 0x317   :  { %3948 = vmatpush1.msra.mxu0 %v713_v10  ;;  %3767 = vmatpush2.msra.mxu1 %v1671_v14  ;;  %v2344_v10 = vld [vmem:[%s19210_s25 + $0x3338] sm:$0xff]  ;;  %v1001_v14 = vld [vmem:[%s19210_s25 + $0x940] sm:$0xff] }
 0x318   :  { %3949 = vmatprep.subr.mxu0 %v1086_v15  ;;  %3769 = vmatmul.mubr.f32.vlgmr.msra.gmra.mxu1 %v10223_v53  ;;  %v2343_v15 = vld [vmem:[%s19210_s25 + $0x3330] sm:$0xff] }
 0x319   :  { %3846 = vmatprep.subr.mxu1 %v2428_v17  ;;  %3950 = vmatpush2.msra.mxu0 %v1085_v18  ;;  %v990_v17 = vld [vmem:[%s19210_s25 + $0x8e8] sm:$0xff]  ;;  %v2332_v18 = vld [vmem:[%s19210_s25 + $0x32d8] sm:$0xff] }
 0x31a   :  { %3847 = vmatpush1.msra.mxu1 %v2427_v47  ;;  %3951 = vmatprep.subr.mxu0 %v1074_v20  ;;  %v989_v47 = vld [vmem:[%s19210_s25 + $0x8e0] sm:$0xff]  ;;  %v2331_v20 = vld [vmem:[%s19210_s25 + $0x32d0] sm:$0xff] }
 0x31b   :  { %3848 = vmatprep.subr.mxu1 %v2416_v22  ;;  %3952 = vmatpush2.msra.mxu0 %v1073_v23  ;;  %v978_v22 = vld [vmem:[%s19210_s25 + $0x888] sm:$0xff]  ;;  %v2320_v23 = vld [vmem:[%s19210_s25 + $0x3278] sm:$0xff] }
 0x31c   :  { %3849 = vmatpush1.msra.mxu1 %v2415_v26  ;;  %3953 = vmatprep.subr.mxu0 %v1062_v27  ;;  %v977_v26 = vld [vmem:[%s19210_s25 + $0x880] sm:$0xff]  ;;  %v2319_v27 = vld [vmem:[%s19210_s25 + $0x3270] sm:$0xff] }
 0x31d   :  { %3850 = vmatprep.subr.mxu1 %v2404_v29  ;;  %3954 = vmatpush2.msra.mxu0 %v1061_v30  ;;  %v966_v29 = vld [vmem:[%s19210_s25 + $0x828] sm:$0xff]  ;;  %v2308_v30 = vld [vmem:[%s19210_s25 + $0x3218] sm:$0xff] }
 0x31e   :  { %3851 = vmatpush1.msra.mxu1 %v2403_v50  ;;  %3955 = vmatprep.subr.mxu0 %v1050_v32  ;;  %v965_v50 = vld [vmem:[%s19210_s25 + $0x820] sm:$0xff]  ;;  %v2307_v32 = vld [vmem:[%s19210_s25 + $0x3210] sm:$0xff] }
 0x31f   :  { %3852 = vmatprep.subr.mxu1 %v2392_v33  ;;  %3956 = vmatpush2.msra.mxu0 %v1049_v34  ;;  %v954_v33 = vld [vmem:[%s19210_s25 + $0x7c8] sm:$0xff]  ;;  %v2296_v34 = vld [vmem:[%s19210_s25 + $0x31b8] sm:$0xff] }
 0x320   :  { %3853 = vmatpush1.msra.mxu1 %v2391_v39  ;;  %3957 = vmatprep.subr.mxu0 %v1038_v43  ;;  %v953_v39 = vld [vmem:[%s19210_s25 + $0x7c0] sm:$0xff]  ;;  %v2295_v43 = vld [vmem:[%s19210_s25 + $0x31b0] sm:$0xff] }
 0x321   :  { %3854 = vmatprep.subr.mxu1 %v2380_v44  ;;  %3958 = vmatpush2.msra.mxu0 %v1037_v54  ;;  %v942_v44 = vld [vmem:[%s19210_s25 + $0x768] sm:$0xff]  ;;  %v2284_v54 = vld [vmem:[%s19210_s25 + $0x3158] sm:$0xff] }
 0x322   :  { %3855 = vmatpush1.msra.mxu1 %v2379_v55  ;;  %3959 = vmatprep.subr.mxu0 %v1026_v56  ;;  %v941_v55 = vld [vmem:[%s19210_s25 + $0x760] sm:$0xff]  ;;  %v2283_v56 = vld [vmem:[%s19210_s25 + $0x3150] sm:$0xff] }
 0x323   :  { %3856 = vmatprep.subr.mxu1 %v2368_v57  ;;  %3960 = vmatpush2.msra.mxu0 %v1025_v58  ;;  %v930_v57 = vld [vmem:[%s19210_s25 + $0x708] sm:$0xff]  ;;  %v2272_v58 = vld [vmem:[%s19210_s25 + $0x30f8] sm:$0xff] }
 0x324   :  { %3857 = vmatpush1.msra.mxu1 %v2367_v60  ;;  %3961 = vmatprep.subr.mxu0 %v1014_v7  ;;  %v929_v60 = vld [vmem:[%s19210_s25 + $0x700] sm:$0xff]  ;;  %v2271_v7 = vld [vmem:[%s19210_s25 + $0x30f0] sm:$0xff] }
 0x325   :  { %3858 = vmatprep.subr.mxu1 %v2356_v63  ;;  %3962 = vmatpush2.msra.mxu0 %v1013_v6  ;;  %v918_v63 = vld [vmem:[%s19210_s25 + $0x6a8] sm:$0xff]  ;;  %v2260_v6 = vld [vmem:[%s19210_s25 + $0x3098] sm:$0xff] }
 0x326   :  { %3859 = vmatpush1.msra.mxu1 %v2355_v9  ;;  %3963 = vmatprep.subr.mxu0 %v1002_v61  ;;  %v917_v9 = vld [vmem:[%s19210_s25 + $0x6a0] sm:$0xff]  ;;  %v2259_v61 = vld [vmem:[%s19210_s25 + $0x3090] sm:$0xff] }
 0x327   :  { %3860 = vmatprep.subr.mxu1 %v2344_v10  ;;  %3964 = vmatpush2.msra.mxu0 %v1001_v14  ;;  %v906_v10 = vld [vmem:[%s19210_s25 + $0x648] sm:$0xff]  ;;  %v2248_v14 = vld [vmem:[%s19210_s25 + $0x3038] sm:$0xff] }
 0x328   :  { %3861 = vmatpush1.msra.mxu1 %v2343_v15  ;;  %3965 = vmatprep.subr.mxu0 %v990_v17  ;;  %v905_v15 = vld [vmem:[%s19210_s25 + $0x640] sm:$0xff]  ;;  %v2247_v17 = vld [vmem:[%s19210_s25 + $0x3030] sm:$0xff] }
 0x329   :  { %3862 = vmatprep.subr.mxu1 %v2332_v18  ;;  %3966 = vmatpush2.msra.mxu0 %v989_v47  ;;  %v1662_v18 = vld [vmem:[%s19210_s25 + $0x1de8] sm:$0xff] }
 0x32a   :  { %3863 = vmatpush1.msra.mxu1 %v2331_v20  ;;  %3967 = vmatprep.subr.mxu0 %v978_v22  ;;  %v1278_v47 = vld [vmem:[%s19210_s25 + $0x11e8] sm:$0xff]  ;;  %v1661_v20 = vld [vmem:[%s19210_s25 + $0x1de0] sm:$0xff] }
 0x32b   :  { %3864 = vmatprep.subr.mxu1 %v2320_v23  ;;  %3968 = vmatpush2.msra.mxu0 %v977_v26  ;;  %v1277_v22 = vld [vmem:[%s19210_s25 + $0x11e0] sm:$0xff]  ;;  %v1650_v23 = vld [vmem:[%s19210_s25 + $0x1d88] sm:$0xff] }
 0x32c   :  { %3865 = vmatpush1.msra.mxu1 %v2319_v27  ;;  %3969 = vmatprep.subr.mxu0 %v966_v29  ;;  %v1266_v26 = vld [vmem:[%s19210_s25 + $0x1188] sm:$0xff]  ;;  %v1649_v27 = vld [vmem:[%s19210_s25 + $0x1d80] sm:$0xff] }
 0x32d   :  { %3866 = vmatprep.subr.mxu1 %v2308_v30  ;;  %3970 = vmatpush2.msra.mxu0 %v965_v50  ;;  %v1265_v29 = vld [vmem:[%s19210_s25 + $0x1180] sm:$0xff]  ;;  %v1638_v30 = vld [vmem:[%s19210_s25 + $0x1d28] sm:$0xff] }
 0x32e   :  { %3867 = vmatpush1.msra.mxu1 %v2307_v32  ;;  %3971 = vmatprep.subr.mxu0 %v954_v33  ;;  %v1254_v50 = vld [vmem:[%s19210_s25 + $0x1128] sm:$0xff]  ;;  %v1637_v32 = vld [vmem:[%s19210_s25 + $0x1d20] sm:$0xff] }
 0x32f   :  { %3868 = vmatprep.subr.mxu1 %v2296_v34  ;;  %3972 = vmatpush2.msra.mxu0 %v953_v39  ;;  %v1253_v33 = vld [vmem:[%s19210_s25 + $0x1120] sm:$0xff]  ;;  %v1626_v34 = vld [vmem:[%s19210_s25 + $0x1cc8] sm:$0xff] }
 0x330   :  { %3869 = vmatpush1.msra.mxu1 %v2295_v43  ;;  %3973 = vmatprep.subr.mxu0 %v942_v44  ;;  %v1242_v39 = vld [vmem:[%s19210_s25 + $0x10c8] sm:$0xff]  ;;  %v1625_v43 = vld [vmem:[%s19210_s25 + $0x1cc0] sm:$0xff] }
 0x331   :  { %3870 = vmatprep.subr.mxu1 %v2284_v54  ;;  %3974 = vmatpush2.msra.mxu0 %v941_v55  ;;  %v1241_v44 = vld [vmem:[%s19210_s25 + $0x10c0] sm:$0xff]  ;;  %v1614_v54 = vld [vmem:[%s19210_s25 + $0x1c68] sm:$0xff] }
 0x332   :  { %3871 = vmatpush1.msra.mxu1 %v2283_v56  ;;  %3975 = vmatprep.subr.mxu0 %v930_v57  ;;  %v1230_v55 = vld [vmem:[%s19210_s25 + $0x1068] sm:$0xff]  ;;  %v1613_v56 = vld [vmem:[%s19210_s25 + $0x1c60] sm:$0xff] }
 0x333   :  { %3872 = vmatprep.subr.mxu1 %v2272_v58  ;;  %3976 = vmatpush2.msra.mxu0 %v929_v60  ;;  %v1229_v57 = vld [vmem:[%s19210_s25 + $0x1060] sm:$0xff]  ;;  %v1602_v58 = vld [vmem:[%s19210_s25 + $0x1c08] sm:$0xff] }
 0x334   :  { %3873 = vmatpush1.msra.mxu1 %v2271_v7  ;;  %3977 = vmatprep.subr.mxu0 %v918_v63  ;;  %v1218_v60 = vld [vmem:[%s19210_s25 + $0x1008] sm:$0xff]  ;;  %v1601_v7 = vld [vmem:[%s19210_s25 + $0x1c00] sm:$0xff] }
 0x335   :  { %3874 = vmatprep.subr.mxu1 %v2260_v6  ;;  %3978 = vmatpush2.msra.mxu0 %v917_v9  ;;  %v1217_v63 = vld [vmem:[%s19210_s25 + $0x1000] sm:$0xff]  ;;  %v1590_v6 = vld [vmem:[%s19210_s25 + $0x1ba8] sm:$0xff] }
 0x336   :  { %3875 = vmatpush1.msra.mxu1 %v2259_v61  ;;  %3979 = vmatprep.subr.mxu0 %v906_v10  ;;  %v1206_v9 = vld [vmem:[%s19210_s25 + $0xfa8] sm:$0xff]  ;;  %v1589_v61 = vld [vmem:[%s19210_s25 + $0x1ba0] sm:$0xff] }
 0x337   :  { %3876 = vmatprep.subr.mxu1 %v2248_v14  ;;  %3980 = vmatpush2.msra.mxu0 %v905_v15  ;;  %v1205_v10 = vld [vmem:[%s19210_s25 + $0xfa0] sm:$0xff]  ;;  %v1578_v14 = vld [vmem:[%s19210_s25 + $0x1b48] sm:$0xff] }
 0x338   :  { %3877 = vmatpush1.msra.mxu1 %v2247_v17  ;;  %3910 = vmatprep.mubr.f32.mxu1 %v8560_v13  ;;  %v1194_v15 = vld [vmem:[%s19210_s25 + $0xf48] sm:$0xff]  ;;  %v1577_v17 = vld [vmem:[%s19210_s25 + $0x1b40] sm:$0xff] }
 0x339   :  { %3982 = vmatmul.mubr.f32.vlgmr.msra.gmra.mxu0 %v9809_v4  ;;  %4059 = vmatprep.subr.mxu0 %v1662_v18  ;;  %v1193_v18 = vld [vmem:[%s19210_s25 + $0xf40] sm:$0xff] }
 0x33a   :  { %3911 = vmatmul.mubr.f32.vlgmr.msra.gmra.mxu1 %v10427_v21  ;;  %3988 = vmatprep.subr.mxu1 %v1278_v47  ;;  %v1566_v47 = vld [vmem:[%s19210_s25 + $0x1ae8] sm:$0xff] }
 0x33b   :  { %4060 = vmatpush1.msra.mxu0 %v1661_v20  ;;  %4123 = vmatprep.mubr.f32.mxu0 %v10119_v5  ;;  %v1182_v20 = vld [vmem:[%s19210_s25 + $0xee8] sm:$0xff] }
 0x33c   :  { %3989 = vmatpush1.msra.mxu1 %v1277_v22  ;;  %4052 = vmatprep.mubr.f32.mxu1 %v9807_v3  ;;  %v1565_v22 = vld [vmem:[%s19210_s25 + $0x1ae0] sm:$0xff] }
 0x33d   :  { %4061 = vmatprep.subr.mxu0 %v1650_v23  ;;  %3990 = vmatprep.subr.mxu1 %v1266_v26  ;;  %v1181_v23 = vld [vmem:[%s19210_s25 + $0xee0] sm:$0xff]  ;;  %v1554_v26 = vld [vmem:[%s19210_s25 + $0x1a88] sm:$0xff] }
 0x33e   :  { %4062 = vmatpush1.msra.mxu0 %v1649_v27  ;;  %3991 = vmatpush1.msra.mxu1 %v1265_v29  ;;  %v1170_v27 = vld [vmem:[%s19210_s25 + $0xe88] sm:$0xff]  ;;  %v1553_v29 = vld [vmem:[%s19210_s25 + $0x1a80] sm:$0xff] }
 0x33f   :  { %4063 = vmatprep.subr.mxu0 %v1638_v30  ;;  %3992 = vmatprep.subr.mxu1 %v1254_v50  ;;  %v1169_v30 = vld [vmem:[%s19210_s25 + $0xe80] sm:$0xff]  ;;  %v1542_v50 = vld [vmem:[%s19210_s25 + $0x1a28] sm:$0xff] }
 0x340   :  { %4064 = vmatpush1.msra.mxu0 %v1637_v32  ;;  %3993 = vmatpush1.msra.mxu1 %v1253_v33  ;;  %v1158_v32 = vld [vmem:[%s19210_s25 + $0xe28] sm:$0xff]  ;;  %v1541_v33 = vld [vmem:[%s19210_s25 + $0x1a20] sm:$0xff] }
 0x341   :  { %4065 = vmatprep.subr.mxu0 %v1626_v34  ;;  %3994 = vmatprep.subr.mxu1 %v1242_v39  ;;  %v1157_v34 = vld [vmem:[%s19210_s25 + $0xe20] sm:$0xff]  ;;  %v1530_v39 = vld [vmem:[%s19210_s25 + $0x19c8] sm:$0xff] }
 0x342   :  { %4066 = vmatpush1.msra.mxu0 %v1625_v43  ;;  %3995 = vmatpush1.msra.mxu1 %v1241_v44  ;;  %v1146_v43 = vld [vmem:[%s19210_s25 + $0xdc8] sm:$0xff]  ;;  %v1529_v44 = vld [vmem:[%s19210_s25 + $0x19c0] sm:$0xff] }
 0x343   :  { %4067 = vmatprep.subr.mxu0 %v1614_v54  ;;  %3996 = vmatprep.subr.mxu1 %v1230_v55  ;;  %v1145_v54 = vld [vmem:[%s19210_s25 + $0xdc0] sm:$0xff]  ;;  %v1518_v55 = vld [vmem:[%s19210_s25 + $0x1968] sm:$0xff] }
 0x344   :  { %4068 = vmatpush1.msra.mxu0 %v1613_v56  ;;  %3997 = vmatpush1.msra.mxu1 %v1229_v57  ;;  %v1134_v56 = vld [vmem:[%s19210_s25 + $0xd68] sm:$0xff]  ;;  %v1517_v57 = vld [vmem:[%s19210_s25 + $0x1960] sm:$0xff] }
 0x345   :  { %4069 = vmatprep.subr.mxu0 %v1602_v58  ;;  %3998 = vmatprep.subr.mxu1 %v1218_v60  ;;  %v1133_v58 = vld [vmem:[%s19210_s25 + $0xd60] sm:$0xff]  ;;  %v1506_v60 = vld [vmem:[%s19210_s25 + $0x1908] sm:$0xff] }
 0x346   :  { %4070 = vmatpush1.msra.mxu0 %v1601_v7  ;;  %3999 = vmatpush1.msra.mxu1 %v1217_v63  ;;  %v1122_v7 = vld [vmem:[%s19210_s25 + $0xd08] sm:$0xff]  ;;  %v1505_v63 = vld [vmem:[%s19210_s25 + $0x1900] sm:$0xff] }
 0x347   :  { %4071 = vmatprep.subr.mxu0 %v1590_v6  ;;  %4000 = vmatprep.subr.mxu1 %v1206_v9  ;;  %v1121_v6 = vld [vmem:[%s19210_s25 + $0xd00] sm:$0xff]  ;;  %v1494_v9 = vld [vmem:[%s19210_s25 + $0x18a8] sm:$0xff] }
 0x348   :  { %4072 = vmatpush1.msra.mxu0 %v1589_v61  ;;  %4001 = vmatpush1.msra.mxu1 %v1205_v10  ;;  %v1110_v61 = vld [vmem:[%s19210_s25 + $0xca8] sm:$0xff]  ;;  %v1493_v10 = vld [vmem:[%s19210_s25 + $0x18a0] sm:$0xff] }
 0x349   :  { %4073 = vmatprep.subr.mxu0 %v1578_v14  ;;  %4002 = vmatprep.subr.mxu1 %v1194_v15  ;;  %v1109_v14 = vld [vmem:[%s19210_s25 + $0xca0] sm:$0xff]  ;;  %v1482_v15 = vld [vmem:[%s19210_s25 + $0x1848] sm:$0xff] }
 0x34a   :  { %4074 = vmatpush1.msra.mxu0 %v1577_v17  ;;  %4003 = vmatpush1.msra.mxu1 %v1193_v18  ;;  %v1098_v17 = vld [vmem:[%s19210_s25 + $0xc48] sm:$0xff]  ;;  %v1481_v18 = vld [vmem:[%s19210_s25 + $0x1840] sm:$0xff] }
 0x34b   :  { %4075 = vmatprep.subr.mxu0 %v1566_v47  ;;  %4004 = vmatprep.subr.mxu1 %v1182_v20  ;;  %v1097_v47 = vld [vmem:[%s19210_s25 + $0xc40] sm:$0xff]  ;;  %v1854_v20 = vld [vmem:[%s19210_s25 + $0x23e8] sm:$0xff] }
 0x34c   :  { %4076 = vmatpush1.msra.mxu0 %v1565_v22  ;;  %4005 = vmatpush1.msra.mxu1 %v1181_v23  ;;  %v1470_v22 = vld [vmem:[%s19210_s25 + $0x17e8] sm:$0xff]  ;;  %v1853_v23 = vld [vmem:[%s19210_s25 + $0x23e0] sm:$0xff] }
 0x34d   :  { %4077 = vmatprep.subr.mxu0 %v1554_v26  ;;  %4006 = vmatprep.subr.mxu1 %v1170_v27  ;;  %v1469_v26 = vld [vmem:[%s19210_s25 + $0x17e0] sm:$0xff]  ;;  %v1842_v27 = vld [vmem:[%s19210_s25 + $0x2388] sm:$0xff] }
 0x34e   :  { %4078 = vmatpush1.msra.mxu0 %v1553_v29  ;;  %4007 = vmatpush1.msra.mxu1 %v1169_v30  ;;  %v1458_v29 = vld [vmem:[%s19210_s25 + $0x1788] sm:$0xff]  ;;  %v1841_v30 = vld [vmem:[%s19210_s25 + $0x2380] sm:$0xff] }
 0x34f   :  { %4079 = vmatprep.subr.mxu0 %v1542_v50  ;;  %4008 = vmatprep.subr.mxu1 %v1158_v32  ;;  %v1457_v50 = vld [vmem:[%s19210_s25 + $0x1780] sm:$0xff]  ;;  %v1830_v32 = vld [vmem:[%s19210_s25 + $0x2328] sm:$0xff] }
 0x350   :  { %4080 = vmatpush1.msra.mxu0 %v1541_v33  ;;  %4009 = vmatpush1.msra.mxu1 %v1157_v34  ;;  %v1446_v33 = vld [vmem:[%s19210_s25 + $0x1728] sm:$0xff]  ;;  %v1829_v34 = vld [vmem:[%s19210_s25 + $0x2320] sm:$0xff] }
 0x351   :  { %4081 = vmatprep.subr.mxu0 %v1530_v39  ;;  %4010 = vmatprep.subr.mxu1 %v1146_v43  ;;  %v1445_v39 = vld [vmem:[%s19210_s25 + $0x1720] sm:$0xff]  ;;  %v1818_v43 = vld [vmem:[%s19210_s25 + $0x22c8] sm:$0xff] }
 0x352   :  { %4082 = vmatpush1.msra.mxu0 %v1529_v44  ;;  %4011 = vmatpush1.msra.mxu1 %v1145_v54  ;;  %v1434_v44 = vld [vmem:[%s19210_s25 + $0x16c8] sm:$0xff]  ;;  %v1817_v54 = vld [vmem:[%s19210_s25 + $0x22c0] sm:$0xff] }
 0x353   :  { %4083 = vmatprep.subr.mxu0 %v1518_v55  ;;  %4012 = vmatprep.subr.mxu1 %v1134_v56  ;;  %v1433_v55 = vld [vmem:[%s19210_s25 + $0x16c0] sm:$0xff]  ;;  %v1806_v56 = vld [vmem:[%s19210_s25 + $0x2268] sm:$0xff] }
 0x354   :  { %4084 = vmatpush1.msra.mxu0 %v1517_v57  ;;  %4013 = vmatpush1.msra.mxu1 %v1133_v58  ;;  %v1422_v57 = vld [vmem:[%s19210_s25 + $0x1668] sm:$0xff]  ;;  %v1805_v58 = vld [vmem:[%s19210_s25 + $0x2260] sm:$0xff] }
 0x355   :  { %4085 = vmatprep.subr.mxu0 %v1506_v60  ;;  %4014 = vmatprep.subr.mxu1 %v1122_v7  ;;  %v1421_v60 = vld [vmem:[%s19210_s25 + $0x1660] sm:$0xff]  ;;  %v1794_v7 = vld [vmem:[%s19210_s25 + $0x2208] sm:$0xff] }
 0x356   :  { %4086 = vmatpush1.msra.mxu0 %v1505_v63  ;;  %4015 = vmatpush1.msra.mxu1 %v1121_v6  ;;  %v1410_v63 = vld [vmem:[%s19210_s25 + $0x1608] sm:$0xff]  ;;  %v1793_v6 = vld [vmem:[%s19210_s25 + $0x2200] sm:$0xff] }
 0x357   :  { %4087 = vmatprep.subr.mxu0 %v1494_v9  ;;  %4016 = vmatprep.subr.mxu1 %v1110_v61  ;;  %v1409_v9 = vld [vmem:[%s19210_s25 + $0x1600] sm:$0xff]  ;;  %v1782_v61 = vld [vmem:[%s19210_s25 + $0x21a8] sm:$0xff] }
 0x358   :  { %4088 = vmatpush1.msra.mxu0 %v1493_v10  ;;  %4017 = vmatpush1.msra.mxu1 %v1109_v14  ;;  %v1398_v10 = vld [vmem:[%s19210_s25 + $0x15a8] sm:$0xff]  ;;  %v1781_v14 = vld [vmem:[%s19210_s25 + $0x21a0] sm:$0xff] }
 0x359   :  { %4089 = vmatprep.subr.mxu0 %v1482_v15  ;;  %4018 = vmatprep.subr.mxu1 %v1098_v17  ;;  %v1397_v15 = vld [vmem:[%s19210_s25 + $0x15a0] sm:$0xff]  ;;  %v1770_v17 = vld [vmem:[%s19210_s25 + $0x2148] sm:$0xff] }
 0x35a   :  { %4090 = vmatpush1.msra.mxu0 %v1481_v18  ;;  %4019 = vmatpush1.msra.mxu1 %v1097_v47  ;;  %v1386_v18 = vld [vmem:[%s19210_s25 + $0x1548] sm:$0xff]  ;;  %v1769_v47 = vld [vmem:[%s19210_s25 + $0x2140] sm:$0xff] }
 0x35b   :  { %4091 = vmatprep.subr.mxu0 %v1854_v20  ;;  %4020 = vmatprep.subr.mxu1 %v1470_v22  ;;  %v1385_v20 = vld [vmem:[%s19210_s25 + $0x1540] sm:$0xff]  ;;  %v1758_v22 = vld [vmem:[%s19210_s25 + $0x20e8] sm:$0xff] }
 0x35c   :  { %4092 = vmatpush2.msra.mxu0 %v1853_v23  ;;  %4021 = vmatpush2.msra.mxu1 %v1469_v26  ;;  %v1374_v23 = vld [vmem:[%s19210_s25 + $0x14e8] sm:$0xff]  ;;  %v1757_v26 = vld [vmem:[%s19210_s25 + $0x20e0] sm:$0xff] }
 0x35d   :  { %4093 = vmatprep.subr.mxu0 %v1842_v27  ;;  %4022 = vmatprep.subr.mxu1 %v1458_v29  ;;  %v1373_v27 = vld [vmem:[%s19210_s25 + $0x14e0] sm:$0xff]  ;;  %v1746_v29 = vld [vmem:[%s19210_s25 + $0x2088] sm:$0xff] }
 0x35e   :  { %4094 = vmatpush2.msra.mxu0 %v1841_v30  ;;  %4023 = vmatpush2.msra.mxu1 %v1457_v50  ;;  %v1362_v30 = vld [vmem:[%s19210_s25 + $0x1488] sm:$0xff]  ;;  %v1745_v50 = vld [vmem:[%s19210_s25 + $0x2080] sm:$0xff] }
 0x35f   :  { %4095 = vmatprep.subr.mxu0 %v1830_v32  ;;  %4024 = vmatprep.subr.mxu1 %v1446_v33  ;;  %v1361_v32 = vld [vmem:[%s19210_s25 + $0x1480] sm:$0xff]  ;;  %v1734_v33 = vld [vmem:[%s19210_s25 + $0x2028] sm:$0xff] }
 0x360   :  { %4096 = vmatpush2.msra.mxu0 %v1829_v34  ;;  %4025 = vmatpush2.msra.mxu1 %v1445_v39  ;;  %v1350_v34 = vld [vmem:[%s19210_s25 + $0x1428] sm:$0xff]  ;;  %v1733_v39 = vld [vmem:[%s19210_s25 + $0x2020] sm:$0xff] }
 0x361   :  { %4097 = vmatprep.subr.mxu0 %v1818_v43  ;;  %4026 = vmatprep.subr.mxu1 %v1434_v44  ;;  %v1349_v43 = vld [vmem:[%s19210_s25 + $0x1420] sm:$0xff]  ;;  %v1722_v44 = vld [vmem:[%s19210_s25 + $0x1fc8] sm:$0xff] }
 0x362   :  { %4098 = vmatpush2.msra.mxu0 %v1817_v54  ;;  %4027 = vmatpush2.msra.mxu1 %v1433_v55  ;;  %v1338_v54 = vld [vmem:[%s19210_s25 + $0x13c8] sm:$0xff]  ;;  %v1721_v55 = vld [vmem:[%s19210_s25 + $0x1fc0] sm:$0xff] }
 0x363   :  { %4099 = vmatprep.subr.mxu0 %v1806_v56  ;;  %4028 = vmatprep.subr.mxu1 %v1422_v57  ;;  %v1337_v56 = vld [vmem:[%s19210_s25 + $0x13c0] sm:$0xff]  ;;  %v1710_v57 = vld [vmem:[%s19210_s25 + $0x1f68] sm:$0xff] }
 0x364   :  { %4100 = vmatpush2.msra.mxu0 %v1805_v58  ;;  %4029 = vmatpush2.msra.mxu1 %v1421_v60  ;;  %v1326_v58 = vld [vmem:[%s19210_s25 + $0x1368] sm:$0xff]  ;;  %v1709_v60 = vld [vmem:[%s19210_s25 + $0x1f60] sm:$0xff] }
 0x365   :  { %4101 = vmatprep.subr.mxu0 %v1794_v7  ;;  %4030 = vmatprep.subr.mxu1 %v1410_v63  ;;  %v1325_v7 = vld [vmem:[%s19210_s25 + $0x1360] sm:$0xff]  ;;  %v1698_v63 = vld [vmem:[%s19210_s25 + $0x1f08] sm:$0xff] }
 0x366   :  { %4102 = vmatpush2.msra.mxu0 %v1793_v6  ;;  %4031 = vmatpush2.msra.mxu1 %v1409_v9  ;;  %v1314_v6 = vld [vmem:[%s19210_s25 + $0x1308] sm:$0xff]  ;;  %v1697_v9 = vld [vmem:[%s19210_s25 + $0x1f00] sm:$0xff] }
 0x367   :  { %4103 = vmatprep.subr.mxu0 %v1782_v61  ;;  %4032 = vmatprep.subr.mxu1 %v1398_v10  ;;  %v1313_v61 = vld [vmem:[%s19210_s25 + $0x1300] sm:$0xff]  ;;  %v1686_v10 = vld [vmem:[%s19210_s25 + $0x1ea8] sm:$0xff] }
 0x368   :  { %4104 = vmatpush2.msra.mxu0 %v1781_v14  ;;  %4033 = vmatpush2.msra.mxu1 %v1397_v15  ;;  %v1302_v14 = vld [vmem:[%s19210_s25 + $0x12a8] sm:$0xff]  ;;  %v1685_v15 = vld [vmem:[%s19210_s25 + $0x1ea0] sm:$0xff] }
 0x369   :  { %4105 = vmatprep.subr.mxu0 %v1770_v17  ;;  %4034 = vmatprep.subr.mxu1 %v1386_v18  ;;  %v1301_v17 = vld [vmem:[%s19210_s25 + $0x12a0] sm:$0xff]  ;;  %v1674_v18 = vld [vmem:[%s19210_s25 + $0x1e48] sm:$0xff] }
 0x36a   :  { %4106 = vmatpush2.msra.mxu0 %v1769_v47  ;;  %4035 = vmatpush2.msra.mxu1 %v1385_v20  ;;  %v1290_v47 = vld [vmem:[%s19210_s25 + $0x1248] sm:$0xff]  ;;  %v1673_v20 = vld [vmem:[%s19210_s25 + $0x1e40] sm:$0xff] }
 0x36b   :  { %4107 = vmatprep.subr.mxu0 %v1758_v22  ;;  %4036 = vmatprep.subr.mxu1 %v1374_v23  ;;  %v1289_v22 = vld [vmem:[%s19210_s25 + $0x1240] sm:$0xff]  ;;  %v2430_v23 = vld [vmem:[%s19210_s25 + $0x35e8] sm:$0xff] }
 0x36c   :  { %4108 = vmatpush2.msra.mxu0 %v1757_v26  ;;  %4037 = vmatpush2.msra.mxu1 %v1373_v27  ;;  %v2046_v26 = vld [vmem:[%s19210_s25 + $0x29e8] sm:$0xff]  ;;  %v2429_v27 = vld [vmem:[%s19210_s25 + $0x35e0] sm:$0xff] }
 0x36d   :  { %4109 = vmatprep.subr.mxu0 %v1746_v29  ;;  %4038 = vmatprep.subr.mxu1 %v1362_v30  ;;  %v2045_v29 = vld [vmem:[%s19210_s25 + $0x29e0] sm:$0xff]  ;;  %v2418_v30 = vld [vmem:[%s19210_s25 + $0x3588] sm:$0xff] }
 0x36e   :  { %4110 = vmatpush2.msra.mxu0 %v1745_v50  ;;  %4039 = vmatpush2.msra.mxu1 %v1361_v32  ;;  %v2034_v50 = vld [vmem:[%s19210_s25 + $0x2988] sm:$0xff]  ;;  %v2417_v32 = vld [vmem:[%s19210_s25 + $0x3580] sm:$0xff] }
 0x36f   :  { %4111 = vmatprep.subr.mxu0 %v1734_v33  ;;  %4040 = vmatprep.subr.mxu1 %v1350_v34  ;;  %v2033_v33 = vld [vmem:[%s19210_s25 + $0x2980] sm:$0xff]  ;;  %v2406_v34 = vld [vmem:[%s19210_s25 + $0x3528] sm:$0xff] }
 0x370   :  { %4112 = vmatpush2.msra.mxu0 %v1733_v39  ;;  %4041 = vmatpush2.msra.mxu1 %v1349_v43  ;;  %v2022_v39 = vld [vmem:[%s19210_s25 + $0x2928] sm:$0xff]  ;;  %v2405_v43 = vld [vmem:[%s19210_s25 + $0x3520] sm:$0xff] }
 0x371   :  { %4113 = vmatprep.subr.mxu0 %v1722_v44  ;;  %4042 = vmatprep.subr.mxu1 %v1338_v54  ;;  %v2021_v44 = vld [vmem:[%s19210_s25 + $0x2920] sm:$0xff]  ;;  %v2394_v54 = vld [vmem:[%s19210_s25 + $0x34c8] sm:$0xff] }
 0x372   :  { %4114 = vmatpush2.msra.mxu0 %v1721_v55  ;;  %4043 = vmatpush2.msra.mxu1 %v1337_v56  ;;  %v2010_v55 = vld [vmem:[%s19210_s25 + $0x28c8] sm:$0xff]  ;;  %v2393_v56 = vld [vmem:[%s19210_s25 + $0x34c0] sm:$0xff] }
 0x373   :  { %4115 = vmatprep.subr.mxu0 %v1710_v57  ;;  %4044 = vmatprep.subr.mxu1 %v1326_v58  ;;  %v2009_v57 = vld [vmem:[%s19210_s25 + $0x28c0] sm:$0xff]  ;;  %v2382_v58 = vld [vmem:[%s19210_s25 + $0x3468] sm:$0xff] }
 0x374   :  { %4116 = vmatpush2.msra.mxu0 %v1709_v60  ;;  %4045 = vmatpush2.msra.mxu1 %v1325_v7  ;;  %v1998_v60 = vld [vmem:[%s19210_s25 + $0x2868] sm:$0xff]  ;;  %v2381_v7 = vld [vmem:[%s19210_s25 + $0x3460] sm:$0xff] }
 0x375   :  { %4117 = vmatprep.subr.mxu0 %v1698_v63  ;;  %4046 = vmatprep.subr.mxu1 %v1314_v6  ;;  %v1997_v63 = vld [vmem:[%s19210_s25 + $0x2860] sm:$0xff]  ;;  %v2370_v6 = vld [vmem:[%s19210_s25 + $0x3408] sm:$0xff] }
 0x376   :  { %4118 = vmatpush2.msra.mxu0 %v1697_v9  ;;  %4047 = vmatpush2.msra.mxu1 %v1313_v61  ;;  %v1986_v9 = vld [vmem:[%s19210_s25 + $0x2808] sm:$0xff]  ;;  %v2369_v61 = vld [vmem:[%s19210_s25 + $0x3400] sm:$0xff] }
 0x377   :  { %4119 = vmatprep.subr.mxu0 %v1686_v10  ;;  %4048 = vmatprep.subr.mxu1 %v1302_v14  ;;  %v1985_v10 = vld [vmem:[%s19210_s25 + $0x2800] sm:$0xff]  ;;  %v2358_v14 = vld [vmem:[%s19210_s25 + $0x33a8] sm:$0xff] }
 0x378   :  { %4120 = vmatpush2.msra.mxu0 %v1685_v15  ;;  %4049 = vmatpush2.msra.mxu1 %v1301_v17  ;;  %v1974_v15 = vld [vmem:[%s19210_s25 + $0x27a8] sm:$0xff]  ;;  %v2357_v17 = vld [vmem:[%s19210_s25 + $0x33a0] sm:$0xff] }
 0x379   :  { %4121 = vmatprep.subr.mxu0 %v1674_v18  ;;  %4050 = vmatprep.subr.mxu1 %v1290_v47  ;;  %v1973_v18 = vld [vmem:[%s19210_s25 + $0x27a0] sm:$0xff]  ;;  %v2346_v47 = vld [vmem:[%s19210_s25 + $0x3348] sm:$0xff] }
 0x37a   :  { %4122 = vmatpush2.msra.mxu0 %v1673_v20  ;;  %4051 = vmatpush2.msra.mxu1 %v1289_v22  ;;  %v1962_v20 = vld [vmem:[%s19210_s25 + $0x2748] sm:$0xff]  ;;  %v2345_v22 = vld [vmem:[%s19210_s25 + $0x3340] sm:$0xff] }
 0x37b   :  { %4124 = vmatmul.mubr.f32.vlgmr.msra.gmra.mxu0 %v10223_v53  ;;  %4201 = vmatprep.subr.mxu0 %v2430_v23  ;;  %v1961_v23 = vld [vmem:[%s19210_s25 + $0x2740] sm:$0xff] }
 0x37c   :  { %4053 = vmatmul.mubr.f32.vlgmr.msra.gmra.mxu1 %v9803_v1  ;;  %4130 = vmatprep.subr.mxu1 %v2046_v26  ;;  %v2334_v26 = vld [vmem:[%s19210_s25 + $0x32e8] sm:$0xff] }
 0x37d   :  { %4202 = vmatpush1.msra.mxu0 %v2429_v27  ;;  %4131 = vmatpush1.msra.mxu1 %v2045_v29  ;;  %v1950_v27 = vld [vmem:[%s19210_s25 + $0x26e8] sm:$0xff]  ;;  %v2333_v29 = vld [vmem:[%s19210_s25 + $0x32e0] sm:$0xff] }
 0x37e   :  { %4194 = vmatprep.mubr.f32.mxu1 %v10210_v42  ;;  %4203 = vmatprep.subr.mxu0 %v2418_v30  ;;  %v1949_v30 = vld [vmem:[%s19210_s25 + $0x26e0] sm:$0xff] }
 0x37f   :  { %4132 = vmatprep.subr.mxu1 %v2034_v50  ;;  %4204 = vmatpush1.msra.mxu0 %v2417_v32  ;;  %v2322_v50 = vld [vmem:[%s19210_s25 + $0x3288] sm:$0xff] }
 0x380   :  { %4133 = vmatpush1.msra.mxu1 %v2033_v33  ;;  %4205 = vmatprep.subr.mxu0 %v2406_v34  ;;  %v1938_v32 = vld [vmem:[%s19210_s25 + $0x2688] sm:$0xff]  ;;  %v2321_v33 = vld [vmem:[%s19210_s25 + $0x3280] sm:$0xff] }
 0x381   :  { %4134 = vmatprep.subr.mxu1 %v2022_v39  ;;  %4206 = vmatpush1.msra.mxu0 %v2405_v43  ;;  %v1937_v34 = vld [vmem:[%s19210_s25 + $0x2680] sm:$0xff]  ;;  %v2310_v39 = vld [vmem:[%s19210_s25 + $0x3228] sm:$0xff] }
 0x382   :  { %4135 = vmatpush1.msra.mxu1 %v2021_v44  ;;  %4207 = vmatprep.subr.mxu0 %v2394_v54  ;;  %v1926_v43 = vld [vmem:[%s19210_s25 + $0x2628] sm:$0xff]  ;;  %v2309_v44 = vld [vmem:[%s19210_s25 + $0x3220] sm:$0xff] }
 0x383   :  { %4136 = vmatprep.subr.mxu1 %v2010_v55  ;;  %4208 = vmatpush1.msra.mxu0 %v2393_v56  ;;  %v1925_v54 = vld [vmem:[%s19210_s25 + $0x2620] sm:$0xff]  ;;  %v2298_v55 = vld [vmem:[%s19210_s25 + $0x31c8] sm:$0xff] }
 0x384   :  { %4137 = vmatpush1.msra.mxu1 %v2009_v57  ;;  %4209 = vmatprep.subr.mxu0 %v2382_v58  ;;  %v1914_v56 = vld [vmem:[%s19210_s25 + $0x25c8] sm:$0xff]  ;;  %v2297_v57 = vld [vmem:[%s19210_s25 + $0x31c0] sm:$0xff] }
 0x385   :  { %4138 = vmatprep.subr.mxu1 %v1998_v60  ;;  %4210 = vmatpush1.msra.mxu0 %v2381_v7  ;;  %v1913_v58 = vld [vmem:[%s19210_s25 + $0x25c0] sm:$0xff]  ;;  %v2286_v60 = vld [vmem:[%s19210_s25 + $0x3168] sm:$0xff] }
 0x386   :  { %4139 = vmatpush1.msra.mxu1 %v1997_v63  ;;  %4211 = vmatprep.subr.mxu0 %v2370_v6  ;;  %v1902_v7 = vld [vmem:[%s19210_s25 + $0x2568] sm:$0xff]  ;;  %v2285_v63 = vld [vmem:[%s19210_s25 + $0x3160] sm:$0xff] }
 0x387   :  { %4140 = vmatprep.subr.mxu1 %v1986_v9  ;;  %4212 = vmatpush1.msra.mxu0 %v2369_v61  ;;  %v1901_v6 = vld [vmem:[%s19210_s25 + $0x2560] sm:$0xff]  ;;  %v2274_v9 = vld [vmem:[%s19210_s25 + $0x3108] sm:$0xff] }
 0x388   :  { %4141 = vmatpush1.msra.mxu1 %v1985_v10  ;;  %4213 = vmatprep.subr.mxu0 %v2358_v14  ;;  %v1890_v61 = vld [vmem:[%s19210_s25 + $0x2508] sm:$0xff]  ;;  %v2273_v10 = vld [vmem:[%s19210_s25 + $0x3100] sm:$0xff] }
 0x389   :  { %4142 = vmatprep.subr.mxu1 %v1974_v15  ;;  %4214 = vmatpush1.msra.mxu0 %v2357_v17  ;;  %v1889_v14 = vld [vmem:[%s19210_s25 + $0x2500] sm:$0xff]  ;;  %v2262_v15 = vld [vmem:[%s19210_s25 + $0x30a8] sm:$0xff] }
 0x38a   :  { %4143 = vmatpush1.msra.mxu1 %v1973_v18  ;;  %4215 = vmatprep.subr.mxu0 %v2346_v47  ;;  %v1878_v17 = vld [vmem:[%s19210_s25 + $0x24a8] sm:$0xff]  ;;  %v2261_v18 = vld [vmem:[%s19210_s25 + $0x30a0] sm:$0xff] }
 0x38b   :  { %4144 = vmatprep.subr.mxu1 %v1962_v20  ;;  %4216 = vmatpush1.msra.mxu0 %v2345_v22  ;;  %v1877_v47 = vld [vmem:[%s19210_s25 + $0x24a0] sm:$0xff]  ;;  %v2250_v20 = vld [vmem:[%s19210_s25 + $0x3048] sm:$0xff] }
 0x38c   :  { %4145 = vmatpush1.msra.mxu1 %v1961_v23  ;;  %4217 = vmatprep.subr.mxu0 %v2334_v26  ;;  %v1866_v22 = vld [vmem:[%s19210_s25 + $0x2448] sm:$0xff]  ;;  %v2249_v23 = vld [vmem:[%s19210_s25 + $0x3040] sm:$0xff] }
 0x38d   :  { %4146 = vmatprep.subr.mxu1 %v1950_v27  ;;  %4218 = vmatpush1.msra.mxu0 %v2333_v29  ;;  %v1865_v26 = vld [vmem:[%s19210_s25 + $0x2440] sm:$0xff]  ;;  %v1280_v27 = vld [vmem:[%s19210_s25 + $0x11f8] sm:$0xff]  ;;  %v2238_v29 = vld [vmem:[%s19210_s25 + $0x2fe8] sm:$0xff] }
 0x38e   :  { %4147 = vmatpush1.msra.mxu1 %v1949_v30  ;;  %4219 = vmatprep.subr.mxu0 %v2322_v50  ;;  %v1279_v30 = vld [vmem:[%s19210_s25 + $0x11f0] sm:$0xff]  ;;  %v2237_v50 = vld [vmem:[%s19210_s25 + $0x2fe0] sm:$0xff] }
 0x38f   :  { %4148 = vmatprep.subr.mxu1 %v1938_v32  ;;  %4220 = vmatpush1.msra.mxu0 %v2321_v33  ;;  %v1268_v32 = vld [vmem:[%s19210_s25 + $0x1198] sm:$0xff]  ;;  %v2226_v33 = vld [vmem:[%s19210_s25 + $0x2f88] sm:$0xff] }
 0x390   :  { %4149 = vmatpush1.msra.mxu1 %v1937_v34  ;;  %4221 = vmatprep.subr.mxu0 %v2310_v39  ;;  %v1267_v34 = vld [vmem:[%s19210_s25 + $0x1190] sm:$0xff]  ;;  %v2225_v39 = vld [vmem:[%s19210_s25 + $0x2f80] sm:$0xff] }
 0x391   :  { %4150 = vmatprep.subr.mxu1 %v1926_v43  ;;  %4222 = vmatpush1.msra.mxu0 %v2309_v44  ;;  %v1256_v43 = vld [vmem:[%s19210_s25 + $0x1138] sm:$0xff]  ;;  %v2214_v44 = vld [vmem:[%s19210_s25 + $0x2f28] sm:$0xff] }
 0x392   :  { %4151 = vmatpush1.msra.mxu1 %v1925_v54  ;;  %4223 = vmatprep.subr.mxu0 %v2298_v55  ;;  %v1255_v54 = vld [vmem:[%s19210_s25 + $0x1130] sm:$0xff]  ;;  %v2213_v55 = vld [vmem:[%s19210_s25 + $0x2f20] sm:$0xff] }
 0x393   :  { %4152 = vmatprep.subr.mxu1 %v1914_v56  ;;  %4224 = vmatpush1.msra.mxu0 %v2297_v57  ;;  %v2202_v56 = vld [vmem:[%s19210_s25 + $0x2ec8] sm:$0xff]  ;;  %v1243_v57 = vld [vmem:[%s19210_s25 + $0x10d0] sm:$0xff] }
 0x394   :  { %4153 = vmatpush1.msra.mxu1 %v1913_v58  ;;  %4225 = vmatprep.subr.mxu0 %v2286_v60  ;;  %v2201_v58 = vld [vmem:[%s19210_s25 + $0x2ec0] sm:$0xff]  ;;  %v1232_v60 = vld [vmem:[%s19210_s25 + $0x1078] sm:$0xff] }
 0x395   :  { %4154 = vmatprep.subr.mxu1 %v1902_v7  ;;  %4226 = vmatpush1.msra.mxu0 %v2285_v63  ;;  %v2190_v7 = vld [vmem:[%s19210_s25 + $0x2e68] sm:$0xff]  ;;  %v1231_v63 = vld [vmem:[%s19210_s25 + $0x1070] sm:$0xff] }
 0x396   :  { %4155 = vmatpush1.msra.mxu1 %v1901_v6  ;;  %4227 = vmatprep.subr.mxu0 %v2274_v9  ;;  %v2189_v6 = vld [vmem:[%s19210_s25 + $0x2e60] sm:$0xff]  ;;  %v1220_v9 = vld [vmem:[%s19210_s25 + $0x1018] sm:$0xff] }
 0x397   :  { %4156 = vmatprep.subr.mxu1 %v1890_v61  ;;  %4228 = vmatpush1.msra.mxu0 %v2273_v10  ;;  %v2178_v61 = vld [vmem:[%s19210_s25 + $0x2e08] sm:$0xff]  ;;  %v1219_v10 = vld [vmem:[%s19210_s25 + $0x1010] sm:$0xff] }
 0x398   :  { %4157 = vmatpush1.msra.mxu1 %v1889_v14  ;;  %4229 = vmatprep.subr.mxu0 %v2262_v15  ;;  %v2177_v14 = vld [vmem:[%s19210_s25 + $0x2e00] sm:$0xff]  ;;  %v1208_v15 = vld [vmem:[%s19210_s25 + $0xfb8] sm:$0xff] }
 0x399   :  { %4158 = vmatprep.subr.mxu1 %v1878_v17  ;;  %4230 = vmatpush1.msra.mxu0 %v2261_v18  ;;  %v2166_v17 = vld [vmem:[%s19210_s25 + $0x2da8] sm:$0xff]  ;;  %v1207_v18 = vld [vmem:[%s19210_s25 + $0xfb0] sm:$0xff] }
 0x39a   :  { %4159 = vmatpush1.msra.mxu1 %v1877_v47  ;;  %4231 = vmatprep.subr.mxu0 %v2250_v20  ;;  %v2165_v47 = vld [vmem:[%s19210_s25 + $0x2da0] sm:$0xff]  ;;  %v1196_v20 = vld [vmem:[%s19210_s25 + $0xf58] sm:$0xff] }
 0x39b   :  { %4160 = vmatprep.subr.mxu1 %v1866_v22  ;;  %4232 = vmatpush1.msra.mxu0 %v2249_v23  ;;  %v2154_v22 = vld [vmem:[%s19210_s25 + $0x2d48] sm:$0xff]  ;;  %v1195_v23 = vld [vmem:[%s19210_s25 + $0xf50] sm:$0xff] }
 0x39c   :  { %4265 = vmatprep.mubr.f32.mxu0 %v8560_v13  ;;  %4161 = vmatpush1.msra.mxu1 %v1865_v26  ;;  %v2153_v26 = vld [vmem:[%s19210_s25 + $0x2d40] sm:$0xff] }
 0x39d   :  { %4266 = vmatmul.mubr.f32.vlgmr.msra.gmra.mxu0 %v10427_v21  ;;  %4343 = vmatprep.subr.mxu0 %v1280_v27  ;;  %v1184_v27 = vld [vmem:[%s19210_s25 + $0xef8] sm:$0xff] }
 0x39e   :  { %4162 = vmatprep.subr.mxu1 %v2238_v29  ;;  %4344 = vmatpush1.msra.mxu0 %v1279_v30  ;;  %v2142_v29 = vld [vmem:[%s19210_s25 + $0x2ce8] sm:$0xff]  ;;  %v1183_v30 = vld [vmem:[%s19210_s25 + $0xef0] sm:$0xff] }
 0x39f   :  { %4407 = vmatprep.mubr.f32.mxu0 %v9807_v3  ;;  %4163 = vmatpush2.msra.mxu1 %v2237_v50  ;;  %v1244_v3 = vld [vmem:[%s19210_s25 + $0x10d8] sm:$0xff]  ;;  %v2141_v50 = vld [vmem:[%s19210_s25 + $0x2ce0] sm:$0xff] }
 0x3a0   :  { %4345 = vmatprep.subr.mxu0 %v1268_v32  ;;  %4164 = vmatprep.subr.mxu1 %v2226_v33  ;;  %v1172_v32 = vld [vmem:[%s19210_s25 + $0xe98] sm:$0xff]  ;;  %v2130_v33 = vld [vmem:[%s19210_s25 + $0x2c88] sm:$0xff] }
 0x3a1   :  { %4346 = vmatpush1.msra.mxu0 %v1267_v34  ;;  %4165 = vmatpush2.msra.mxu1 %v2225_v39  ;;  %v1171_v34 = vld [vmem:[%s19210_s25 + $0xe90] sm:$0xff]  ;;  %v2129_v39 = vld [vmem:[%s19210_s25 + $0x2c80] sm:$0xff] }
 0x3a2   :  { %4347 = vmatprep.subr.mxu0 %v1256_v43  ;;  %4166 = vmatprep.subr.mxu1 %v2214_v44  ;;  %v1160_v43 = vld [vmem:[%s19210_s25 + $0xe38] sm:$0xff]  ;;  %v2118_v44 = vld [vmem:[%s19210_s25 + $0x2c28] sm:$0xff] }
 0x3a3   :  { %4348 = vmatpush1.msra.mxu0 %v1255_v54  ;;  %4167 = vmatpush2.msra.mxu1 %v2213_v55  ;;  %v1159_v54 = vld [vmem:[%s19210_s25 + $0xe30] sm:$0xff]  ;;  %v2117_v55 = vld [vmem:[%s19210_s25 + $0x2c20] sm:$0xff] }
 0x3a4   :  { %4349 = vmatprep.subr.mxu0 %v1244_v3  ;;  %4168 = vmatprep.subr.mxu1 %v2202_v56  ;;  %v1148_v3 = vld [vmem:[%s19210_s25 + $0xdd8] sm:$0xff]  ;;  %v2106_v56 = vld [vmem:[%s19210_s25 + $0x2bc8] sm:$0xff] }
 0x3a5   :  { %4350 = vmatpush1.msra.mxu0 %v1243_v57  ;;  %4169 = vmatpush2.msra.mxu1 %v2201_v58  ;;  %v1147_v57 = vld [vmem:[%s19210_s25 + $0xdd0] sm:$0xff]  ;;  %v2105_v58 = vld [vmem:[%s19210_s25 + $0x2bc0] sm:$0xff] }
 0x3a6   :  { %4351 = vmatprep.subr.mxu0 %v1232_v60  ;;  %4170 = vmatprep.subr.mxu1 %v2190_v7  ;;  %v1136_v60 = vld [vmem:[%s19210_s25 + $0xd78] sm:$0xff]  ;;  %v2094_v7 = vld [vmem:[%s19210_s25 + $0x2b68] sm:$0xff] }
 0x3a7   :  { %4352 = vmatpush1.msra.mxu0 %v1231_v63  ;;  %4171 = vmatpush2.msra.mxu1 %v2189_v6  ;;  %v1135_v63 = vld [vmem:[%s19210_s25 + $0xd70] sm:$0xff]  ;;  %v2093_v6 = vld [vmem:[%s19210_s25 + $0x2b60] sm:$0xff] }
 0x3a8   :  { %4353 = vmatprep.subr.mxu0 %v1220_v9  ;;  %4172 = vmatprep.subr.mxu1 %v2178_v61  ;;  %v1124_v9 = vld [vmem:[%s19210_s25 + $0xd18] sm:$0xff]  ;;  %v2082_v61 = vld [vmem:[%s19210_s25 + $0x2b08] sm:$0xff] }
 0x3a9   :  { %4354 = vmatpush1.msra.mxu0 %v1219_v10  ;;  %4173 = vmatpush2.msra.mxu1 %v2177_v14  ;;  %v1123_v10 = vld [vmem:[%s19210_s25 + $0xd10] sm:$0xff]  ;;  %v2081_v14 = vld [vmem:[%s19210_s25 + $0x2b00] sm:$0xff] }
 0x3aa   :  { %4355 = vmatprep.subr.mxu0 %v1208_v15  ;;  %4174 = vmatprep.subr.mxu1 %v2166_v17  ;;  %v1112_v15 = vld [vmem:[%s19210_s25 + $0xcb8] sm:$0xff]  ;;  %v2070_v17 = vld [vmem:[%s19210_s25 + $0x2aa8] sm:$0xff] }
 0x3ab   :  { %4356 = vmatpush1.msra.mxu0 %v1207_v18  ;;  %4175 = vmatpush2.msra.mxu1 %v2165_v47  ;;  %v1111_v18 = vld [vmem:[%s19210_s25 + $0xcb0] sm:$0xff]  ;;  %v2069_v47 = vld [vmem:[%s19210_s25 + $0x2aa0] sm:$0xff] }
 0x3ac   :  { %4357 = vmatprep.subr.mxu0 %v1196_v20  ;;  %4176 = vmatprep.subr.mxu1 %v2154_v22  ;;  %v1100_v20 = vld [vmem:[%s19210_s25 + $0xc58] sm:$0xff]  ;;  %v2058_v22 = vld [vmem:[%s19210_s25 + $0x2a48] sm:$0xff] }
 0x3ad   :  { %4358 = vmatpush1.msra.mxu0 %v1195_v23  ;;  %4177 = vmatpush2.msra.mxu1 %v2153_v26  ;;  %v1099_v23 = vld [vmem:[%s19210_s25 + $0xc50] sm:$0xff]  ;;  %v2057_v26 = vld [vmem:[%s19210_s25 + $0x2a40] sm:$0xff] }
 0x3ae   :  { %4359 = vmatprep.subr.mxu0 %v1184_v27  ;;  %4178 = vmatprep.subr.mxu1 %v2142_v29  ;;  %v1472_v27 = vld [vmem:[%s19210_s25 + $0x17f8] sm:$0xff] }
 0x3af   :  { %4360 = vmatpush1.msra.mxu0 %v1183_v30  ;;  %4179 = vmatpush2.msra.mxu1 %v2141_v50  ;;  %v896_v29 = vld [vmem:[%s19210_s25 + $0x5f8] sm:$0xff]  ;;  %v1471_v30 = vld [vmem:[%s19210_s25 + $0x17f0] sm:$0xff] }
 0x3b0   :  { %4361 = vmatprep.subr.mxu0 %v1172_v32  ;;  %4180 = vmatprep.subr.mxu1 %v2130_v33  ;;  %v895_v50 = vld [vmem:[%s19210_s25 + $0x5f0] sm:$0xff]  ;;  %v1460_v32 = vld [vmem:[%s19210_s25 + $0x1798] sm:$0xff] }
 0x3b1   :  { %4362 = vmatpush1.msra.mxu0 %v1171_v34  ;;  %4181 = vmatpush2.msra.mxu1 %v2129_v39  ;;  %v884_v33 = vld [vmem:[%s19210_s25 + $0x598] sm:$0xff]  ;;  %v1459_v34 = vld [vmem:[%s19210_s25 + $0x1790] sm:$0xff] }
 0x3b2   :  { %4363 = vmatprep.subr.mxu0 %v1160_v43  ;;  %4182 = vmatprep.subr.mxu1 %v2118_v44  ;;  %v883_v39 = vld [vmem:[%s19210_s25 + $0x590] sm:$0xff]  ;;  %v1448_v43 = vld [vmem:[%s19210_s25 + $0x1738] sm:$0xff] }
 0x3b3   :  { %4364 = vmatpush1.msra.mxu0 %v1159_v54  ;;  %4183 = vmatpush2.msra.mxu1 %v2117_v55  ;;  %v872_v44 = vld [vmem:[%s19210_s25 + $0x538] sm:$0xff]  ;;  %v1447_v54 = vld [vmem:[%s19210_s25 + $0x1730] sm:$0xff] }
 0x3b4   :  { %4365 = vmatprep.subr.mxu0 %v1148_v3  ;;  %4184 = vmatprep.subr.mxu1 %v2106_v56  ;;  %v871_v55 = vld [vmem:[%s19210_s25 + $0x530] sm:$0xff]  ;;  %v860_v3 = vld [vmem:[%s19210_s25 + $0x4d8] sm:$0xff] }
 0x3b5   :  { %4366 = vmatpush1.msra.mxu0 %v1147_v57  ;;  %4185 = vmatpush2.msra.mxu1 %v2105_v58  ;;  %v1435_v56 = vld [vmem:[%s19210_s25 + $0x16d0] sm:$0xff]  ;;  %v1424_v58 = vld [vmem:[%s19210_s25 + $0x1678] sm:$0xff] }
 0x3b6   :  { %4367 = vmatprep.subr.mxu0 %v1136_v60  ;;  %4186 = vmatprep.subr.mxu1 %v2094_v7  ;;  %v859_v57 = vld [vmem:[%s19210_s25 + $0x4d0] sm:$0xff]  ;;  %v848_v60 = vld [vmem:[%s19210_s25 + $0x478] sm:$0xff] }
 0x3b7   :  { %4368 = vmatpush1.msra.mxu0 %v1135_v63  ;;  %4187 = vmatpush2.msra.mxu1 %v2093_v6  ;;  %v1423_v7 = vld [vmem:[%s19210_s25 + $0x1670] sm:$0xff]  ;;  %v1412_v6 = vld [vmem:[%s19210_s25 + $0x1618] sm:$0xff] }
 0x3b8   :  { %4369 = vmatprep.subr.mxu0 %v1124_v9  ;;  %4188 = vmatprep.subr.mxu1 %v2082_v61  ;;  %v847_v63 = vld [vmem:[%s19210_s25 + $0x470] sm:$0xff]  ;;  %v836_v9 = vld [vmem:[%s19210_s25 + $0x418] sm:$0xff] }
 0x3b9   :  { %4370 = vmatpush1.msra.mxu0 %v1123_v10  ;;  %4189 = vmatpush2.msra.mxu1 %v2081_v14  ;;  %v1411_v61 = vld [vmem:[%s19210_s25 + $0x1610] sm:$0xff]  ;;  %v1400_v14 = vld [vmem:[%s19210_s25 + $0x15b8] sm:$0xff] }
 0x3ba   :  { %4371 = vmatprep.subr.mxu0 %v1112_v15  ;;  %4190 = vmatprep.subr.mxu1 %v2070_v17  ;;  %v835_v10 = vld [vmem:[%s19210_s25 + $0x410] sm:$0xff]  ;;  %v824_v15 = vld [vmem:[%s19210_s25 + $0x3b8] sm:$0xff] }
 0x3bb   :  { %4372 = vmatpush1.msra.mxu0 %v1111_v18  ;;  %4191 = vmatpush2.msra.mxu1 %v2069_v47  ;;  %v1399_v17 = vld [vmem:[%s19210_s25 + $0x15b0] sm:$0xff]  ;;  %v1388_v47 = vld [vmem:[%s19210_s25 + $0x1558] sm:$0xff] }
 0x3bc   :  { %4373 = vmatprep.subr.mxu0 %v1100_v20  ;;  %4192 = vmatprep.subr.mxu1 %v2058_v22  ;;  %v823_v18 = vld [vmem:[%s19210_s25 + $0x3b0] sm:$0xff]  ;;  %v812_v20 = vld [vmem:[%s19210_s25 + $0x358] sm:$0xff] }
 0x3bd   :  { %4374 = vmatpush1.msra.mxu0 %v1099_v23  ;;  %4193 = vmatpush2.msra.mxu1 %v2057_v26  ;;  %v1387_v22 = vld [vmem:[%s19210_s25 + $0x1550] sm:$0xff]  ;;  %v1376_v26 = vld [vmem:[%s19210_s25 + $0x14f8] sm:$0xff] }
 0x3be   :  { %4375 = vmatprep.subr.mxu0 %v1472_v27  ;;  %4195 = vmatmul.mubr.f32.vlgmr.msra.gmra.mxu1 %v10218_v45  ;;  %v811_v23 = vld [vmem:[%s19210_s25 + $0x350] sm:$0xff]  ;;  %v800_v27 = vld [vmem:[%s19210_s25 + $0x2f8] sm:$0xff] }
 0x3bf   :  { %4272 = vmatprep.subr.mxu1 %v896_v29  ;;  %4376 = vmatpush2.msra.mxu0 %v1471_v30  ;;  %v1375_v29 = vld [vmem:[%s19210_s25 + $0x14f0] sm:$0xff] }
 0x3c0   :  { %4273 = vmatpush1.msra.mxu1 %v895_v50  ;;  %4336 = vmatprep.mubr.f32.mxu1 %v9805_v2  ;;  %v1436_v2 = vld [vmem:[%s19210_s25 + $0x16d8] sm:$0xff]  ;;  %v799_v30 = vld [vmem:[%s19210_s25 + $0x2f0] sm:$0xff] }
 0x3c1   :  { %4377 = vmatprep.subr.mxu0 %v1460_v32  ;;  %4274 = vmatprep.subr.mxu1 %v884_v33  ;;  %v1364_v50 = vld [vmem:[%s19210_s25 + $0x1498] sm:$0xff]  ;;  %v1363_v33 = vld [vmem:[%s19210_s25 + $0x1490] sm:$0xff] }
 0x3c2   :  { %4378 = vmatpush2.msra.mxu0 %v1459_v34  ;;  %4275 = vmatpush1.msra.mxu1 %v883_v39  ;;  %v788_v32 = vld [vmem:[%s19210_s25 + $0x298] sm:$0xff]  ;;  %v787_v34 = vld [vmem:[%s19210_s25 + $0x290] sm:$0xff] }
 0x3c3   :  { %4379 = vmatprep.subr.mxu0 %v1448_v43  ;;  %4276 = vmatprep.subr.mxu1 %v872_v44  ;;  %v1352_v39 = vld [vmem:[%s19210_s25 + $0x1438] sm:$0xff]  ;;  %v1351_v44 = vld [vmem:[%s19210_s25 + $0x1430] sm:$0xff] }
 0x3c4   :  { %4380 = vmatpush2.msra.mxu0 %v1447_v54  ;;  %4277 = vmatpush1.msra.mxu1 %v871_v55  ;;  %v776_v43 = vld [vmem:[%s19210_s25 + $0x238] sm:$0xff]  ;;  %v775_v54 = vld [vmem:[%s19210_s25 + $0x230] sm:$0xff] }
 0x3c5   :  { %4381 = vmatprep.subr.mxu0 %v1436_v2  ;;  %4278 = vmatprep.subr.mxu1 %v860_v3  ;;  %v1340_v55 = vld [vmem:[%s19210_s25 + $0x13d8] sm:$0xff]  ;;  %v1339_v3 = vld [vmem:[%s19210_s25 + $0x13d0] sm:$0xff] }
 0x3c6   :  { %4382 = vmatpush2.msra.mxu0 %v1435_v56  ;;  %4279 = vmatpush1.msra.mxu1 %v859_v57  ;;  %v764_v2 = vld [vmem:[%s19210_s25 + $0x1d8] sm:$0xff]  ;;  %v763_v56 = vld [vmem:[%s19210_s25 + $0x1d0] sm:$0xff] }
 0x3c7   :  { %4383 = vmatprep.subr.mxu0 %v1424_v58  ;;  %4280 = vmatprep.subr.mxu1 %v848_v60  ;;  %v1328_v57 = vld [vmem:[%s19210_s25 + $0x1378] sm:$0xff]  ;;  %v1327_v60 = vld [vmem:[%s19210_s25 + $0x1370] sm:$0xff] }
 0x3c8   :  { %4384 = vmatpush2.msra.mxu0 %v1423_v7  ;;  %4281 = vmatpush1.msra.mxu1 %v847_v63  ;;  %v752_v58 = vld [vmem:[%s19210_s25 + $0x178] sm:$0xff]  ;;  %v751_v7 = vld [vmem:[%s19210_s25 + $0x170] sm:$0xff] }
 0x3c9   :  { %4385 = vmatprep.subr.mxu0 %v1412_v6  ;;  %4282 = vmatprep.subr.mxu1 %v836_v9  ;;  %v1316_v63 = vld [vmem:[%s19210_s25 + $0x1318] sm:$0xff]  ;;  %v1315_v9 = vld [vmem:[%s19210_s25 + $0x1310] sm:$0xff] }
 0x3ca   :  { %4386 = vmatpush2.msra.mxu0 %v1411_v61  ;;  %4283 = vmatpush1.msra.mxu1 %v835_v10  ;;  %v740_v6 = vld [vmem:[%s19210_s25 + $0x118] sm:$0xff]  ;;  %v739_v61 = vld [vmem:[%s19210_s25 + $0x110] sm:$0xff] }
 0x3cb   :  { %4387 = vmatprep.subr.mxu0 %v1400_v14  ;;  %4284 = vmatprep.subr.mxu1 %v824_v15  ;;  %v1304_v10 = vld [vmem:[%s19210_s25 + $0x12b8] sm:$0xff]  ;;  %v1303_v15 = vld [vmem:[%s19210_s25 + $0x12b0] sm:$0xff] }
 0x3cc   :  { %4388 = vmatpush2.msra.mxu0 %v1399_v17  ;;  %4285 = vmatpush1.msra.mxu1 %v823_v18  ;;  %v728_v14 = vld [vmem:[%s19210_s25 + $0xb8] sm:$0xff]  ;;  %v727_v17 = vld [vmem:[%s19210_s25 + $0xb0] sm:$0xff] }
 0x3cd   :  { %4389 = vmatprep.subr.mxu0 %v1388_v47  ;;  %4286 = vmatprep.subr.mxu1 %v812_v20  ;;  %v1292_v18 = vld [vmem:[%s19210_s25 + $0x1258] sm:$0xff]  ;;  %v1291_v20 = vld [vmem:[%s19210_s25 + $0x1250] sm:$0xff] }
 0x3ce   :  { %4390 = vmatpush2.msra.mxu0 %v1387_v22  ;;  %4287 = vmatpush1.msra.mxu1 %v811_v23  ;;  %v716_v47 = vld [vmem:[%s19210_s25 + $0x58] sm:$0xff]  ;;  %v715_v22 = vld [vmem:[%s19210_s25 + $0x50] sm:$0xff] }
 0x3cf   :  { %4391 = vmatprep.subr.mxu0 %v1376_v26  ;;  %4288 = vmatprep.subr.mxu1 %v800_v27  ;;  %v2048_v23 = vld [vmem:[%s19210_s25 + $0x29f8] sm:$0xff]  ;;  %v2047_v27 = vld [vmem:[%s19210_s25 + $0x29f0] sm:$0xff] }
 0x3d0   :  { %4392 = vmatpush2.msra.mxu0 %v1375_v29  ;;  %4289 = vmatpush1.msra.mxu1 %v799_v30  ;;  %v1088_v26 = vld [vmem:[%s19210_s25 + $0xbf8] sm:$0xff]  ;;  %v1087_v29 = vld [vmem:[%s19210_s25 + $0xbf0] sm:$0xff] }
 0x3d1   :  { %4393 = vmatprep.subr.mxu0 %v1364_v50  ;;  %4290 = vmatprep.subr.mxu1 %v788_v32  ;;  %v2036_v30 = vld [vmem:[%s19210_s25 + $0x2998] sm:$0xff]  ;;  %v2035_v32 = vld [vmem:[%s19210_s25 + $0x2990] sm:$0xff] }
 0x3d2   :  { %4394 = vmatpush2.msra.mxu0 %v1363_v33  ;;  %4291 = vmatpush1.msra.mxu1 %v787_v34  ;;  %v1076_v50 = vld [vmem:[%s19210_s25 + $0xb98] sm:$0xff]  ;;  %v1075_v33 = vld [vmem:[%s19210_s25 + $0xb90] sm:$0xff] }
 0x3d3   :  { %4395 = vmatprep.subr.mxu0 %v1352_v39  ;;  %4292 = vmatprep.subr.mxu1 %v776_v43  ;;  %v1064_v34 = vld [vmem:[%s19210_s25 + $0xb38] sm:$0xff]  ;;  %v2023_v39 = vld [vmem:[%s19210_s25 + $0x2930] sm:$0xff] }
 0x3d4   :  { %4396 = vmatpush2.msra.mxu0 %v1351_v44  ;;  %4293 = vmatpush1.msra.mxu1 %v775_v54  ;;  %v1063_v43 = vld [vmem:[%s19210_s25 + $0xb30] sm:$0xff]  ;;  %v1052_v44 = vld [vmem:[%s19210_s25 + $0xad8] sm:$0xff] }
 0x3d5   :  { %4397 = vmatprep.subr.mxu0 %v1340_v55  ;;  %4294 = vmatprep.subr.mxu1 %v764_v2  ;;  %v2011_v54 = vld [vmem:[%s19210_s25 + $0x28d0] sm:$0xff]  ;;  %v2000_v2 = vld [vmem:[%s19210_s25 + $0x2878] sm:$0xff] }
 0x3d6   :  { %4398 = vmatpush2.msra.mxu0 %v1339_v3  ;;  %4295 = vmatpush1.msra.mxu1 %v763_v56  ;;  %v1051_v55 = vld [vmem:[%s19210_s25 + $0xad0] sm:$0xff]  ;;  %v1040_v3 = vld [vmem:[%s19210_s25 + $0xa78] sm:$0xff] }
 0x3d7   :  { %4399 = vmatprep.subr.mxu0 %v1328_v57  ;;  %4296 = vmatprep.subr.mxu1 %v752_v58  ;;  %v1999_v56 = vld [vmem:[%s19210_s25 + $0x2870] sm:$0xff]  ;;  %v1988_v58 = vld [vmem:[%s19210_s25 + $0x2818] sm:$0xff] }
 0x3d8   :  { %4400 = vmatpush2.msra.mxu0 %v1327_v60  ;;  %4297 = vmatpush1.msra.mxu1 %v751_v7  ;;  %v1039_v57 = vld [vmem:[%s19210_s25 + $0xa70] sm:$0xff]  ;;  %v1028_v60 = vld [vmem:[%s19210_s25 + $0xa18] sm:$0xff] }
 0x3d9   :  { %4401 = vmatprep.subr.mxu0 %v1316_v63  ;;  %4298 = vmatprep.subr.mxu1 %v740_v6  ;;  %v1987_v7 = vld [vmem:[%s19210_s25 + $0x2810] sm:$0xff]  ;;  %v1976_v6 = vld [vmem:[%s19210_s25 + $0x27b8] sm:$0xff] }
 0x3da   :  { %4402 = vmatpush2.msra.mxu0 %v1315_v9  ;;  %4299 = vmatpush1.msra.mxu1 %v739_v61  ;;  %v1027_v63 = vld [vmem:[%s19210_s25 + $0xa10] sm:$0xff]  ;;  %v1016_v9 = vld [vmem:[%s19210_s25 + $0x9b8] sm:$0xff] }
 0x3db   :  { %4403 = vmatprep.subr.mxu0 %v1304_v10  ;;  %4300 = vmatprep.subr.mxu1 %v728_v14  ;;  %v1975_v61 = vld [vmem:[%s19210_s25 + $0x27b0] sm:$0xff]  ;;  %v1964_v14 = vld [vmem:[%s19210_s25 + $0x2758] sm:$0xff] }
 0x3dc   :  { %4404 = vmatpush2.msra.mxu0 %v1303_v15  ;;  %4301 = vmatpush1.msra.mxu1 %v727_v17  ;;  %v1015_v10 = vld [vmem:[%s19210_s25 + $0x9b0] sm:$0xff]  ;;  %v1004_v15 = vld [vmem:[%s19210_s25 + $0x958] sm:$0xff] }
 0x3dd   :  { %4405 = vmatprep.subr.mxu0 %v1292_v18  ;;  %4302 = vmatprep.subr.mxu1 %v716_v47  ;;  %v1963_v17 = vld [vmem:[%s19210_s25 + $0x2750] sm:$0xff]  ;;  %v1952_v47 = vld [vmem:[%s19210_s25 + $0x26f8] sm:$0xff] }
 0x3de   :  { %4406 = vmatpush2.msra.mxu0 %v1291_v20  ;;  %4303 = vmatpush1.msra.mxu1 %v715_v22  ;;  %v1003_v18 = vld [vmem:[%s19210_s25 + $0x950] sm:$0xff]  ;;  %v992_v20 = vld [vmem:[%s19210_s25 + $0x8f8] sm:$0xff] }
 0x3df   :  { %4408 = vmatmul.mubr.f32.vlgmr.msra.gmra.mxu0 %v9803_v1  ;;  %4485 = vmatprep.subr.mxu0 %v2048_v23  ;;  %v2024_v1 = vld [vmem:[%s19210_s25 + $0x2938] sm:$0xff]  ;;  %v1951_v22 = vld [vmem:[%s19210_s25 + $0x26f0] sm:$0xff] }
 0x3e0   :  { %4304 = vmatprep.subr.mxu1 %v1088_v26  ;;  %4486 = vmatpush1.msra.mxu0 %v2047_v27  ;;  %v991_v23 = vld [vmem:[%s19210_s25 + $0x8f0] sm:$0xff]  ;;  %v1940_v26 = vld [vmem:[%s19210_s25 + $0x2698] sm:$0xff] }
 0x3e1   :  { %4549 = vmatprep.mubr.f32.mxu0 %v10210_v42  ;;  %4305 = vmatpush2.msra.mxu1 %v1087_v29  ;;  %v2012_v42 = vld [vmem:[%s19210_s25 + $0x28d8] sm:$0xff]  ;;  %v1939_v29 = vld [vmem:[%s19210_s25 + $0x2690] sm:$0xff] }
 0x3e2   :  { %4487 = vmatprep.subr.mxu0 %v2036_v30  ;;  %4306 = vmatprep.subr.mxu1 %v1076_v50  ;;  %v980_v27 = vld [vmem:[%s19210_s25 + $0x898] sm:$0xff]  ;;  %v979_v30 = vld [vmem:[%s19210_s25 + $0x890] sm:$0xff] }
 0x3e3   :  { %4488 = vmatpush1.msra.mxu0 %v2035_v32  ;;  %4307 = vmatpush2.msra.mxu1 %v1075_v33  ;;  %v1928_v50 = vld [vmem:[%s19210_s25 + $0x2638] sm:$0xff]  ;;  %v1927_v33 = vld [vmem:[%s19210_s25 + $0x2630] sm:$0xff] }
 0x3e4   :  { %4489 = vmatprep.subr.mxu0 %v2024_v1  ;;  %4308 = vmatprep.subr.mxu1 %v1064_v34  ;;  %v968_v32 = vld [vmem:[%s19210_s25 + $0x838] sm:$0xff]  ;;  %v967_v1 = vld [vmem:[%s19210_s25 + $0x830] sm:$0xff] }
 0x3e5   :  { %4490 = vmatpush1.msra.mxu0 %v2023_v39  ;;  %4309 = vmatpush2.msra.mxu1 %v1063_v43  ;;  %v1916_v34 = vld [vmem:[%s19210_s25 + $0x25d8] sm:$0xff]  ;;  %v1915_v43 = vld [vmem:[%s19210_s25 + $0x25d0] sm:$0xff] }
 0x3e6   :  { %4491 = vmatprep.subr.mxu0 %v2012_v42  ;;  %4310 = vmatprep.subr.mxu1 %v1052_v44  ;;  %v956_v39 = vld [vmem:[%s19210_s25 + $0x7d8] sm:$0xff]  ;;  %v955_v42 = vld [vmem:[%s19210_s25 + $0x7d0] sm:$0xff] }
 0x3e7   :  { %4492 = vmatpush1.msra.mxu0 %v2011_v54  ;;  %4311 = vmatpush2.msra.mxu1 %v1051_v55  ;;  %v1904_v44 = vld [vmem:[%s19210_s25 + $0x2578] sm:$0xff]  ;;  %v1903_v55 = vld [vmem:[%s19210_s25 + $0x2570] sm:$0xff] }
 0x3e8   :  { %4493 = vmatprep.subr.mxu0 %v2000_v2  ;;  %4312 = vmatprep.subr.mxu1 %v1040_v3  ;;  %v944_v54 = vld [vmem:[%s19210_s25 + $0x778] sm:$0xff]  ;;  %v943_v2 = vld [vmem:[%s19210_s25 + $0x770] sm:$0xff] }
 0x3e9   :  { %4494 = vmatpush1.msra.mxu0 %v1999_v56  ;;  %4313 = vmatpush2.msra.mxu1 %v1039_v57  ;;  %v1892_v3 = vld [vmem:[%s19210_s25 + $0x2518] sm:$0xff]  ;;  %v1891_v57 = vld [vmem:[%s19210_s25 + $0x2510] sm:$0xff] }
 0x3ea   :  { %4495 = vmatprep.subr.mxu0 %v1988_v58  ;;  %4314 = vmatprep.subr.mxu1 %v1028_v60  ;;  %v932_v56 = vld [vmem:[%s19210_s25 + $0x718] sm:$0xff]  ;;  %v931_v58 = vld [vmem:[%s19210_s25 + $0x710] sm:$0xff] }
 0x3eb   :  { %4496 = vmatpush1.msra.mxu0 %v1987_v7  ;;  %4315 = vmatpush2.msra.mxu1 %v1027_v63  ;;  %v1880_v60 = vld [vmem:[%s19210_s25 + $0x24b8] sm:$0xff]  ;;  %v1879_v63 = vld [vmem:[%s19210_s25 + $0x24b0] sm:$0xff] }
 0x3ec   :  { %4497 = vmatprep.subr.mxu0 %v1976_v6  ;;  %4316 = vmatprep.subr.mxu1 %v1016_v9  ;;  %v920_v7 = vld [vmem:[%s19210_s25 + $0x6b8] sm:$0xff]  ;;  %v919_v6 = vld [vmem:[%s19210_s25 + $0x6b0] sm:$0xff] }
 0x3ed   :  { %4498 = vmatpush1.msra.mxu0 %v1975_v61  ;;  %4317 = vmatpush2.msra.mxu1 %v1015_v10  ;;  %v1868_v9 = vld [vmem:[%s19210_s25 + $0x2458] sm:$0xff]  ;;  %v1867_v10 = vld [vmem:[%s19210_s25 + $0x2450] sm:$0xff] }
 0x3ee   :  { %4499 = vmatprep.subr.mxu0 %v1964_v14  ;;  %4318 = vmatprep.subr.mxu1 %v1004_v15  ;;  %v908_v61 = vld [vmem:[%s19210_s25 + $0x658] sm:$0xff]  ;;  %v907_v14 = vld [vmem:[%s19210_s25 + $0x650] sm:$0xff] }
 0x3ef   :  { %4500 = vmatpush1.msra.mxu0 %v1963_v17  ;;  %4319 = vmatpush2.msra.mxu1 %v1003_v18  ;;  %v2240_v15 = vld [vmem:[%s19210_s25 + $0x2ff8] sm:$0xff]  ;;  %v2239_v18 = vld [vmem:[%s19210_s25 + $0x2ff0] sm:$0xff] }
 0x3f0   :  { %4501 = vmatprep.subr.mxu0 %v1952_v47  ;;  %4320 = vmatprep.subr.mxu1 %v992_v20  ;;  %v1664_v17 = vld [vmem:[%s19210_s25 + $0x1df8] sm:$0xff]  ;;  %v1663_v47 = vld [vmem:[%s19210_s25 + $0x1df0] sm:$0xff] }
 0x3f1   :  { %4502 = vmatpush1.msra.mxu0 %v1951_v22  ;;  %4321 = vmatpush2.msra.mxu1 %v991_v23  ;;  %v2228_v20 = vld [vmem:[%s19210_s25 + $0x2f98] sm:$0xff]  ;;  %v2227_v23 = vld [vmem:[%s19210_s25 + $0x2f90] sm:$0xff] }
 0x3f2   :  { %4503 = vmatprep.subr.mxu0 %v1940_v26  ;;  %4322 = vmatprep.subr.mxu1 %v980_v27  ;;  %v1652_v22 = vld [vmem:[%s19210_s25 + $0x1d98] sm:$0xff]  ;;  %v1651_v26 = vld [vmem:[%s19210_s25 + $0x1d90] sm:$0xff] }
 0x3f3   :  { %4504 = vmatpush1.msra.mxu0 %v1939_v29  ;;  %4323 = vmatpush2.msra.mxu1 %v979_v30  ;;  %v1640_v27 = vld [vmem:[%s19210_s25 + $0x1d38] sm:$0xff]  ;;  %v2215_v29 = vld [vmem:[%s19210_s25 + $0x2f30] sm:$0xff] }
 0x3f4   :  { %4505 = vmatprep.subr.mxu0 %v1928_v50  ;;  %4324 = vmatprep.subr.mxu1 %v968_v32  ;;  %v1639_v30 = vld [vmem:[%s19210_s25 + $0x1d30] sm:$0xff]  ;;  %v1628_v50 = vld [vmem:[%s19210_s25 + $0x1cd8] sm:$0xff] }
 0x3f5   :  { %4506 = vmatpush1.msra.mxu0 %v1927_v33  ;;  %4325 = vmatpush2.msra.mxu1 %v967_v1  ;;  %v2203_v32 = vld [vmem:[%s19210_s25 + $0x2ed0] sm:$0xff]  ;;  %v2192_v1 = vld [vmem:[%s19210_s25 + $0x2e78] sm:$0xff] }
 0x3f6   :  { %4507 = vmatprep.subr.mxu0 %v1916_v34  ;;  %4326 = vmatprep.subr.mxu1 %v956_v39  ;;  %v1627_v33 = vld [vmem:[%s19210_s25 + $0x1cd0] sm:$0xff]  ;;  %v1616_v34 = vld [vmem:[%s19210_s25 + $0x1c78] sm:$0xff] }
 0x3f7   :  { %4508 = vmatpush1.msra.mxu0 %v1915_v43  ;;  %4327 = vmatpush2.msra.mxu1 %v955_v42  ;;  %v2191_v39 = vld [vmem:[%s19210_s25 + $0x2e70] sm:$0xff]  ;;  %v2180_v42 = vld [vmem:[%s19210_s25 + $0x2e18] sm:$0xff] }
 0x3f8   :  { %4509 = vmatprep.subr.mxu0 %v1904_v44  ;;  %4328 = vmatprep.subr.mxu1 %v944_v54  ;;  %v1615_v43 = vld [vmem:[%s19210_s25 + $0x1c70] sm:$0xff]  ;;  %v1604_v44 = vld [vmem:[%s19210_s25 + $0x1c18] sm:$0xff] }
 0x3f9   :  { %4510 = vmatpush1.msra.mxu0 %v1903_v55  ;;  %4329 = vmatpush2.msra.mxu1 %v943_v2  ;;  %v2179_v54 = vld [vmem:[%s19210_s25 + $0x2e10] sm:$0xff]  ;;  %v2168_v2 = vld [vmem:[%s19210_s25 + $0x2db8] sm:$0xff] }
 0x3fa   :  { %4511 = vmatprep.subr.mxu0 %v1892_v3  ;;  %4330 = vmatprep.subr.mxu1 %v932_v56  ;;  %v1603_v55 = vld [vmem:[%s19210_s25 + $0x1c10] sm:$0xff]  ;;  %v1592_v3 = vld [vmem:[%s19210_s25 + $0x1bb8] sm:$0xff] }
 0x3fb   :  { %4512 = vmatpush1.msra.mxu0 %v1891_v57  ;;  %4331 = vmatpush2.msra.mxu1 %v931_v58  ;;  %v2167_v56 = vld [vmem:[%s19210_s25 + $0x2db0] sm:$0xff]  ;;  %v2156_v58 = vld [vmem:[%s19210_s25 + $0x2d58] sm:$0xff] }
 0x3fc   :  { %4513 = vmatprep.subr.mxu0 %v1880_v60  ;;  %4332 = vmatprep.subr.mxu1 %v920_v7  ;;  %v1591_v57 = vld [vmem:[%s19210_s25 + $0x1bb0] sm:$0xff]  ;;  %v1580_v60 = vld [vmem:[%s19210_s25 + $0x1b58] sm:$0xff]  ;;  %v14444_v7 = vld [vmem:[%s19184_s4] sm:$0xff] }
 0x3fd   :  { %4514 = vmatpush1.msra.mxu0 %v1879_v63  ;;  %4333 = vmatpush2.msra.mxu1 %v919_v6  ;;  %v2444_v63 = vrot.slane %v14444_v7, %v9790_v51  ;;  %v2155_v6 = vld [vmem:[%s19210_s25 + $0x2d50] sm:$0xff] }
 0x3fe   :  { %4515 = vmatprep.subr.mxu0 %v1868_v9  ;;  %4334 = vmatprep.subr.mxu1 %v908_v61  ;;  %v1579_v9 = vld [vmem:[%s19210_s25 + $0x1b50] sm:$0xff]  ;;  %v2144_v61 = vld [vmem:[%s19210_s25 + $0x2cf8] sm:$0xff] }
 0x3ff   :  { %4516 = vmatpush1.msra.mxu0 %v1867_v10  ;;  %4335 = vmatpush2.msra.mxu1 %v907_v14  ;;  %v1568_v10 = vld [vmem:[%s19210_s25 + $0x1af8] sm:$0xff]  ;;  %v2143_v14 = vld [vmem:[%s19210_s25 + $0x2cf0] sm:$0xff] }
 0x400   :  { %4517 = vmatprep.subr.mxu0 %v2240_v15  ;;  %4337 = vmatmul.mubr.f32.vlgmr.msra.gmra.mxu1 %v9809_v4  ;;  %v2216_v4 = vld [vmem:[%s19210_s25 + $0x2f38] sm:$0xff]  ;;  %v1567_v15 = vld [vmem:[%s19210_s25 + $0x1af0] sm:$0xff] }
 0x401   :  { %4414 = vmatprep.subr.mxu1 %v1664_v17  ;;  %4518 = vmatpush2.msra.mxu0 %v2239_v18  ;;  %v2132_v17 = vld [vmem:[%s19210_s25 + $0x2c98] sm:$0xff] }
 0x402   :  { %4415 = vmatpush1.msra.mxu1 %v1663_v47  ;;  %4478 = vmatprep.mubr.f32.mxu1 %v10119_v5  ;;  %v2204_v5 = vld [vmem:[%s19210_s25 + $0x2ed8] sm:$0xff]  ;;  %v2566_v47 = vadd.f32 %v11877_v59, %v2444_v63 }
 0x403   :  { %4519 = vmatprep.subr.mxu0 %v2228_v20  ;;  %4416 = vmatprep.subr.mxu1 %v1652_v22  ;;  %v1556_v18 = vld [vmem:[%s19210_s25 + $0x1a98] sm:$0xff]  ;;  %v2131_v20 = vld [vmem:[%s19210_s25 + $0x2c90] sm:$0xff] }
 0x404   :  { %4520 = vmatpush2.msra.mxu0 %v2227_v23  ;;  %4417 = vmatpush1.msra.mxu1 %v1651_v26  ;;  %v1555_v22 = vld [vmem:[%s19210_s25 + $0x1a90] sm:$0xff]  ;;  %v2120_v23 = vld [vmem:[%s19210_s25 + $0x2c38] sm:$0xff] }
 0x405   :  { %4521 = vmatprep.subr.mxu0 %v2216_v4  ;;  %4418 = vmatprep.subr.mxu1 %v1640_v27  ;;  %v1544_v59 = vld [vmem:[%s19210_s25 + $0x1a38] sm:$0xff]  ;;  %v2119_v26 = vld [vmem:[%s19210_s25 + $0x2c30] sm:$0xff] }
 0x406   :  { %4522 = vmatpush2.msra.mxu0 %v2215_v29  ;;  %4419 = vmatpush1.msra.mxu1 %v1639_v30  ;;  %v1543_v4 = vld [vmem:[%s19210_s25 + $0x1a30] sm:$0xff]  ;;  %v2108_v27 = vld [vmem:[%s19210_s25 + $0x2bd8] sm:$0xff]  ;;  %v2637_v30 = vadd.f32 %v11933_v24, %v2566_v47  ;;  %v4652_v47 = vld [vmem:[%s19185_s5 + $0x68] sm:$0xff] }
 0x407   :  { %4523 = vmatprep.subr.mxu0 %v2204_v5  ;;  %4420 = vmatprep.subr.mxu1 %v1628_v50  ;;  %v1532_v29 = vld [vmem:[%s19210_s25 + $0x19d8] sm:$0xff]  ;;  %v2107_v5 = vld [vmem:[%s19210_s25 + $0x2bd0] sm:$0xff] }
 0x408   :  { %4524 = vmatpush2.msra.mxu0 %v2203_v32  ;;  %4421 = vmatpush1.msra.mxu1 %v1627_v33  ;;  %v1531_v50 = vld [vmem:[%s19210_s25 + $0x19d0] sm:$0xff]  ;;  %v2096_v32 = vld [vmem:[%s19210_s25 + $0x2b78] sm:$0xff]  ;;  %v2708_v33 = vadd.f32 %v11919_v19, %v2637_v30 }
 0x409   :  { %4525 = vmatprep.subr.mxu0 %v2192_v1  ;;  %4422 = vmatprep.subr.mxu1 %v1616_v34  ;;  %v1520_v24 = vld [vmem:[%s19210_s25 + $0x1978] sm:$0xff]  ;;  %v2095_v1 = vld [vmem:[%s19210_s25 + $0x2b70] sm:$0xff] }
 0x40a   :  { %4526 = vmatpush2.msra.mxu0 %v2191_v39  ;;  %4423 = vmatpush1.msra.mxu1 %v1615_v43  ;;  %v1519_v34 = vld [vmem:[%s19210_s25 + $0x1970] sm:$0xff]  ;;  %v2084_v39 = vld [vmem:[%s19210_s25 + $0x2b18] sm:$0xff] }
 0x40b   :  { %4527 = vmatprep.subr.mxu0 %v2180_v42  ;;  %4424 = vmatprep.subr.mxu1 %v1604_v44  ;;  %v1508_v19 = vld [vmem:[%s19210_s25 + $0x1918] sm:$0xff]  ;;  %v2083_v43 = vld [vmem:[%s19210_s25 + $0x2b10] sm:$0xff] }
 0x40c   :  { %4528 = vmatpush2.msra.mxu0 %v2179_v54  ;;  %4425 = vmatpush1.msra.mxu1 %v1603_v55  ;;  %v1507_v42 = vld [vmem:[%s19210_s25 + $0x1910] sm:$0xff]  ;;  %v2072_v44 = vld [vmem:[%s19210_s25 + $0x2ab8] sm:$0xff]  ;;  %v2779_v55 = vadd.f32 %v11981_v46, %v2708_v33 }
 0x40d   :  { %4529 = vmatprep.subr.mxu0 %v2168_v2  ;;  %4426 = vmatprep.subr.mxu1 %v1592_v3  ;;  %v1496_v54 = vld [vmem:[%s19210_s25 + $0x18b8] sm:$0xff]  ;;  %v2071_v2 = vld [vmem:[%s19210_s25 + $0x2ab0] sm:$0xff] }
 0x40e   :  { %4530 = vmatpush2.msra.mxu0 %v2167_v56  ;;  %4427 = vmatpush1.msra.mxu1 %v1591_v57  ;;  %v1495_v3 = vld [vmem:[%s19210_s25 + $0x18b0] sm:$0xff]  ;;  %v2060_v56 = vld [vmem:[%s19210_s25 + $0x2a58] sm:$0xff]  ;;  %v2850_v57 = vadd.f32 %v11967_v38, %v2779_v55  ;;  %v4663_v55 = vld [vmem:[%s19185_s5 + $0xc0] sm:$0xff] }
 0x40f   :  { %4531 = vmatprep.subr.mxu0 %v2156_v58  ;;  %4428 = vmatprep.subr.mxu1 %v1580_v60  ;;  %v1484_v46 = vld [vmem:[%s19210_s25 + $0x1858] sm:$0xff]  ;;  %v2059_v58 = vld [vmem:[%s19210_s25 + $0x2a50] sm:$0xff] }
 0x410   :  { %4532 = vmatpush2.msra.mxu0 %v2155_v6  ;;  %4429 = vmatpush1.msra.mxu1 %v1579_v9  ;;  %v1483_v60 = vld [vmem:[%s19210_s25 + $0x1850] sm:$0xff]  ;;  %v4670_v63 = vld [vmem:[%s19185_s5 + $0xf8] sm:$0xff] }
 0x411   :  { %4533 = vmatprep.subr.mxu0 %v2144_v61  ;;  %4430 = vmatprep.subr.mxu1 %v1568_v10  ;;  %v1856_v38 = vld [vmem:[%s19210_s25 + $0x23f8] sm:$0xff]  ;;  %v1855_v9 = vld [vmem:[%s19210_s25 + $0x23f0] sm:$0xff]  ;;  %v4628_v61 = vmax.f32 %v2850_v57, 0.0 }
 0x412   :  { %4534 = vmatpush2.msra.mxu0 %v2143_v14  ;;  %4431 = vmatpush1.msra.mxu1 %v1567_v15  ;;  %v4654_v6 = vld [vmem:[%s19185_s5 + $0x78] sm:$0xff]  ;;  %v4669_v10 = vld [vmem:[%s19185_s5 + $0xf0] sm:$0xff] }
 0x413   :  { %4535 = vmatprep.subr.mxu0 %v2132_v17  ;;  %4432 = vmatprep.subr.mxu1 %v1556_v18  ;;  %v1844_v14 = vld [vmem:[%s19210_s25 + $0x2398] sm:$0xff]  ;;  %v4653_v15 = vld [vmem:[%s19185_s5 + $0x70] sm:$0xff] }
 0x414   :  { %4536 = vmatpush2.msra.mxu0 %v2131_v20  ;;  %4433 = vmatpush1.msra.mxu1 %v1555_v22  ;;  %v1843_v17 = vld [vmem:[%s19210_s25 + $0x2390] sm:$0xff]  ;;  %v1832_v18 = vld [vmem:[%s19210_s25 + $0x2338] sm:$0xff]  ;;  %v4667_v22 = vld [vmem:[%s19185_s5 + $0xe0] sm:$0xff] }
 0x415   :  { %4537 = vmatprep.subr.mxu0 %v2120_v23  ;;  %4434 = vmatprep.subr.mxu1 %v1544_v59  ;;  %v1831_v20 = vld [vmem:[%s19210_s25 + $0x2330] sm:$0xff]  ;;  %v1820_v23 = vld [vmem:[%s19210_s25 + $0x22d8] sm:$0xff]  ;;  %v4651_v59 = vld [vmem:[%s19185_s5 + $0x60] sm:$0xff] }
 0x416   :  { %4538 = vmatpush2.msra.mxu0 %v2119_v26  ;;  %4435 = vmatpush1.msra.mxu1 %v1543_v4  ;;  %v1819_v26 = vld [vmem:[%s19210_s25 + $0x22d0] sm:$0xff]  ;;  %v4666_v4 = vld [vmem:[%s19185_s5 + $0xd8] sm:$0xff] }
 0x417   :  { %4539 = vmatprep.subr.mxu0 %v2108_v27  ;;  %4436 = vmatprep.subr.mxu1 %v1532_v29  ;;  %v1808_v27 = vld [vmem:[%s19210_s25 + $0x2278] sm:$0xff]  ;;  %v1807_v30 = vld [vmem:[%s19210_s25 + $0x2270] sm:$0xff] }
 0x418   :  { %4540 = vmatpush2.msra.mxu0 %v2107_v5  ;;  %4437 = vmatpush1.msra.mxu1 %v1531_v50  ;;  %v4650_v29 = vld [vmem:[%s19185_s5 + $0x58] sm:$0xff]  ;;  %v14616_v5 = vpop.f32.mrf.mxu0  ;;  %v4665_v50 = vld [vmem:[%s19185_s5 + $0xd0] sm:$0xff] }
 0x419   :  { %4541 = vmatprep.subr.mxu0 %v2096_v32  ;;  %4438 = vmatprep.subr.mxu1 %v1520_v24  ;;  %v1796_v32 = vld [vmem:[%s19210_s25 + $0x2218] sm:$0xff]  ;;  %v4649_v24 = vld [vmem:[%s19185_s5 + $0x50] sm:$0xff] }
 0x41a   :  { %4542 = vmatpush2.msra.mxu0 %v2095_v1  ;;  %4439 = vmatpush1.msra.mxu1 %v1519_v34  ;;  %v1795_v33 = vld [vmem:[%s19210_s25 + $0x2210] sm:$0xff]  ;;  %v14630_v1 = vpop.f32.mrf.mxu0  ;;  %v14632_v34 = vpop.f32.mrf.mxu1 }
 0x41b   :  { %4543 = vmatprep.subr.mxu0 %v2084_v39  ;;  %4440 = vmatprep.subr.mxu1 %v1508_v19  ;;  %v4664_v39 = vld [vmem:[%s19185_s5 + $0xc8] sm:$0xff]  ;;  %v1784_v19 = vld [vmem:[%s19210_s25 + $0x21b8] sm:$0xff] }
 0x41c   :  { %4544 = vmatpush2.msra.mxu0 %v2083_v43  ;;  %4441 = vmatpush1.msra.mxu1 %v1507_v42  ;;  %v2440_v43 = vrot.slane %v14444_v7, %v9782_v49  ;;  %v4648_v42 = vld [vmem:[%s19185_s5 + $0x48] sm:$0xff]  ;;  %v3275_v57 = vpop.f32.mrf.mxu0 }
 0x41d   :  { %4545 = vmatprep.subr.mxu0 %v2072_v44  ;;  %4442 = vmatprep.subr.mxu1 %v1496_v54  ;;  %v1783_v44 = vld [vmem:[%s19210_s25 + $0x21b0] sm:$0xff]  ;;  %v14648_v54 = vpop.f32.mrf.mxu1 }
 0x41e   :  { %4546 = vmatpush2.msra.mxu0 %v2071_v2  ;;  %4443 = vmatpush1.msra.mxu1 %v1495_v3  ;;  %v1772_v2 = vld [vmem:[%s19210_s25 + $0x2158] sm:$0xff]  ;;  %v2460_v3 = vrot.slane %v14444_v7, %v10062_v37 }
 0x41f   :  { %4547 = vmatprep.subr.mxu0 %v2060_v56  ;;  %4444 = vmatprep.subr.mxu1 %v1484_v46  ;;  %v4647_v56 = vld [vmem:[%s19185_s5 + $0x40] sm:$0xff]  ;;  %v1771_v46 = vld [vmem:[%s19210_s25 + $0x2150] sm:$0xff] }
 0x420   :  { %4548 = vmatpush2.msra.mxu0 %v2059_v58  ;;  %4445 = vmatpush1.msra.mxu1 %v1483_v60  ;;  %v4662_v58 = vld [vmem:[%s19185_s5 + $0xb8] sm:$0xff] }
 0x421   :  { %4550 = vmatmul.mubr.f32.vlgmr.msra.gmra.mxu0 %v10218_v45  ;;  %8265 = vmatprep.subr.mxu0 %v4670_v63  ;;  %v4668_v45 = vld [vmem:[%s19185_s5 + $0xe8] sm:$0xff]  ;;  %v1760_v60 = vld [vmem:[%s19210_s25 + $0x20f8] sm:$0xff]  ;;  %v2564_v63 = vadd.f32 %v11851_v41, %v2440_v43  ;;  %v4657_v43 = vld [vmem:[%s19185_s5 + $0x90] sm:$0xff] }
 0x422   :  { %4446 = vmatprep.subr.mxu1 %v1856_v38  ;;  %8266 = vmatpush3.msra.mxu0 %v4654_v6  ;;  %v4646_v38 = vld [vmem:[%s19185_s5 + $0x38] sm:$0xff]  ;;  %v1759_v6 = vld [vmem:[%s19210_s25 + $0x20f0] sm:$0xff] }
 0x423   :  { %4902 = vmatprep.mubr.f32.mxu0 %v4628_v61  ;;  %4447 = vmatpush2.msra.mxu1 %v1855_v9  ;;  %v3346_v9 = vpop.f32.mrf.mxu1  ;;  %v4661_v61 = vld [vmem:[%s19185_s5 + $0xb0] sm:$0xff]  ;;  %v1748_v41 = vld [vmem:[%s19210_s25 + $0x2098] sm:$0xff] }
 0x424   :  { %8267 = vmatprep.subr.mxu0 %v4669_v10  ;;  %4448 = vmatprep.subr.mxu1 %v1844_v14  ;;  %v3276_v10 = vadd.f32 %v3275_v57, %v2460_v3  ;;  %v4645_v14 = vld [vmem:[%s19185_s5 + $0x30] sm:$0xff]  ;;  %v4640_v57 = vld [vmem:[%s19185_s5 + $0x8] sm:$0xff] }
 0x425   :  { %8268 = vmatpush3.msra.mxu0 %v4653_v15  ;;  %4449 = vmatpush2.msra.mxu1 %v1843_v17  ;;  %v1747_v15 = vld [vmem:[%s19210_s25 + $0x2090] sm:$0xff]  ;;  %v14689_v17 = vpop.f32.mrf.mxu0 }
 0x426   :  { %8269 = vmatprep.subr.mxu0 %v4668_v45  ;;  %4450 = vmatprep.subr.mxu1 %v1832_v18  ;;  %v14691_v45 = vpop.f32.mrf.mxu1  ;;  %v4660_v18 = vld [vmem:[%s19185_s5 + $0xa8] sm:$0xff]  ;;  %v1699_v3 = vld [vmem:[%s19210_s25 + $0x1f10] sm:$0xff] }
 0x427   :  { %8270 = vmatpush3.msra.mxu0 %v4652_v47  ;;  %4451 = vmatpush2.msra.mxu1 %v1831_v20  ;;  %v1736_v47 = vld [vmem:[%s19210_s25 + $0x2038] sm:$0xff]  ;;  %v2635_v20 = vadd.f32 %v11905_v12, %v2564_v63  ;;  %v4655_v63 = vld [vmem:[%s19185_s5 + $0x80] sm:$0xff] }
 0x428   :  { %8271 = vmatprep.subr.mxu0 %v4667_v22  ;;  %4452 = vmatprep.subr.mxu1 %v1820_v23  ;;  %v3347_v22 = vadd.f32 %v3346_v9, %v3276_v10  ;;  %v4644_v23 = vld [vmem:[%s19185_s5 + $0x28] sm:$0xff]  ;;  %v1724_v12 = vld [vmem:[%s19210_s25 + $0x1fd8] sm:$0xff]  ;;  %v1675_v9 = vld [vmem:[%s19210_s25 + $0x1e50] sm:$0xff] }
 0x429   :  { %8272 = vmatpush3.msra.mxu0 %v4651_v59  ;;  %4453 = vmatpush2.msra.mxu1 %v1819_v26  ;;  %v1735_v59 = vld [vmem:[%s19210_s25 + $0x2030] sm:$0xff]  ;;  %v4659_v26 = vld [vmem:[%s19185_s5 + $0xa0] sm:$0xff]  ;;  %v2432_v10 = vld [vmem:[%s19210_s25 + $0x35f8] sm:$0xff] }
 0x42a   :  { %8273 = vmatprep.subr.mxu0 %v4666_v4  ;;  %4454 = vmatprep.subr.mxu1 %v1808_v27  ;;  %v2706_v4 = vadd.f32 %v11891_v0, %v2635_v20  ;;  %v4643_v27 = vld [vmem:[%s19185_s5 + $0x20] sm:$0xff]  ;;  %v1712_v0 = vld [vmem:[%s19210_s25 + $0x1f78] sm:$0xff] }
 0x42b   :  { %8274 = vmatpush3.msra.mxu0 %v4650_v29  ;;  %4455 = vmatpush2.msra.mxu1 %v1807_v30  ;;  %v1723_v29 = vld [vmem:[%s19210_s25 + $0x1fd0] sm:$0xff]  ;;  %v3417_v30 = vpop.f32.mrf.mxu0  ;;  %v2420_v20 = vld [vmem:[%s19210_s25 + $0x3598] sm:$0xff] }
 0x42c   :  { %8275 = vmatprep.subr.mxu0 %v4665_v50  ;;  %4456 = vmatprep.subr.mxu1 %v1796_v32  ;;  %v3488_v50 = vpop.f32.mrf.mxu1  ;;  %v4658_v32 = vld [vmem:[%s19185_s5 + $0x98] sm:$0xff] }
 0x42d   :  { %8276 = vmatpush3.msra.mxu0 %v4649_v24  ;;  %4457 = vmatpush2.msra.mxu1 %v1795_v33  ;;  %v3418_v24 = vadd.f32 %v3417_v30, %v3347_v22  ;;  %v4642_v33 = vld [vmem:[%s19185_s5 + $0x18] sm:$0xff]  ;;  %v4717_v22 = vld [vmem:[%s19185_s5 + $0x270] sm:$0xff] }
 0x42e   :  { %8277 = vmatprep.subr.mxu0 %v4664_v39  ;;  %4458 = vmatprep.subr.mxu1 %v1784_v19  ;;  %v1711_v39 = vld [vmem:[%s19210_s25 + $0x1f70] sm:$0xff]  ;;  %v14731_v19 = vpop.f32.mrf.mxu0 }
 0x42f   :  { %8278 = vmatpush3.msra.mxu0 %v4648_v42  ;;  %4459 = vmatpush2.msra.mxu1 %v1783_v44  ;;  %v1700_v42 = vld [vmem:[%s19210_s25 + $0x1f18] sm:$0xff]  ;;  %v2777_v44 = vadd.f32 %v11952_v28, %v2706_v4  ;;  %v4731_v4 = vld [vmem:[%s19185_s5 + $0x2e0] sm:$0xff]  ;;  %v2395_v30 = vld [vmem:[%s19210_s25 + $0x34d0] sm:$0xff] }
 0x430   :  { %8279 = vmatprep.subr.mxu0 %v4663_v55  ;;  %4460 = vmatprep.subr.mxu1 %v1772_v2  ;;  %v3489_v55 = vadd.f32 %v3488_v50, %v3418_v24  ;;  %v4641_v2 = vld [vmem:[%s19185_s5 + $0x10] sm:$0xff]  ;;  %v1688_v28 = vld [vmem:[%s19210_s25 + $0x1eb8] sm:$0xff] }
 0x431   :  { %8280 = vmatpush3.msra.mxu0 %v4647_v56  ;;  %4461 = vmatpush2.msra.mxu1 %v1771_v46  ;;  %v4656_v56 = vld [vmem:[%s19185_s5 + $0x88] sm:$0xff]  ;;  %v2848_v46 = vadd.f32 %v11935_v25, %v2777_v44  ;;  %v1676_v25 = vld [vmem:[%s19210_s25 + $0x1e58] sm:$0xff]  ;;  %v2383_v24 = vld [vmem:[%s19210_s25 + $0x3470] sm:$0xff] }
 0x432   :  { %8281 = vmatprep.subr.mxu0 %v4662_v58  ;;  %4462 = vmatprep.subr.mxu1 %v1760_v60  ;;  %v1687_v58 = vld [vmem:[%s19210_s25 + $0x1eb0] sm:$0xff]  ;;  %v3559_v60 = vpop.f32.mrf.mxu0  ;;  %v4730_v50 = vld [vmem:[%s19185_s5 + $0x2d8] sm:$0xff]  ;;  %v4728_v44 = vld [vmem:[%s19185_s5 + $0x2c8] sm:$0xff] }
 0x433   :  { %8282 = vmatpush3.msra.mxu0 %v4646_v38  ;;  %4463 = vmatpush2.msra.mxu1 %v1759_v6  ;;  %v3560_v38 = vadd.f32 %v3559_v60, %v3489_v55  ;;  %v4639_v6 = vld [vmem:[%s19185_s5] sm:$0xff]  ;;  %v2360_v55 = vld [vmem:[%s19210_s25 + $0x33b8] sm:$0xff]  ;;  %v2347_v60 = vld [vmem:[%s19210_s25 + $0x3350] sm:$0xff] }
 0x434   :  { %8283 = vmatprep.subr.mxu0 %v4661_v61  ;;  %4464 = vmatprep.subr.mxu1 %v1748_v41  ;;  %v4734_v61 = vld [vmem:[%s19185_s5 + $0x2f8] sm:$0xff]  ;;  %v4627_v41 = vmax.f32 %v2848_v46, 0.0  ;;  %v2452_v46 = vrot.slane %v14444_v7, %v9793_v52 }
 0x435   :  { %8284 = vmatpush3.msra.mxu0 %v4645_v14  ;;  %4465 = vmatpush2.msra.mxu1 %v1747_v15  ;;  %v4718_v14 = vld [vmem:[%s19185_s5 + $0x278] sm:$0xff]  ;;  %v4632_v15 = vmax.f32 %v3560_v38, 0.0 }
 0x436   :  { %8285 = vmatprep.subr.mxu0 %v4660_v18  ;;  %4466 = vmatprep.subr.mxu1 %v1736_v47  ;;  %v2431_v18 = vld [vmem:[%s19210_s25 + $0x35f0] sm:$0xff]  ;;  %v4710_v38 = vld [vmem:[%s19185_s5 + $0x238] sm:$0xff] }
 0x437   :  { %8286 = vmatpush3.msra.mxu0 %v4644_v23  ;;  %4467 = vmatpush2.msra.mxu1 %v1735_v59  ;;  %v4733_v47 = vld [vmem:[%s19185_s5 + $0x2f0] sm:$0xff]  ;;  %v4732_v59 = vld [vmem:[%s19185_s5 + $0x2e8] sm:$0xff] }
 0x438   :  { %8287 = vmatprep.subr.mxu0 %v4659_v26  ;;  %4468 = vmatprep.subr.mxu1 %v1724_v12  ;;  %v2419_v23 = vld [vmem:[%s19210_s25 + $0x3590] sm:$0xff]  ;;  %v4716_v26 = vld [vmem:[%s19185_s5 + $0x268] sm:$0xff] }
 0x439   :  { %8288 = vmatpush3.msra.mxu0 %v4643_v27  ;;  %4469 = vmatpush2.msra.mxu1 %v1723_v29  ;;  %v2407_v12 = vld [vmem:[%s19210_s25 + $0x3530] sm:$0xff]  ;;  %v2396_v27 = vld [vmem:[%s19210_s25 + $0x34d8] sm:$0xff]  ;;  %v4715_v29 = vld [vmem:[%s19185_s5 + $0x260] sm:$0xff] }
 0x43a   :  { %8289 = vmatprep.subr.mxu0 %v4658_v32  ;;  %4470 = vmatprep.subr.mxu1 %v1712_v0  ;;  %v2384_v32 = vld [vmem:[%s19210_s25 + $0x3478] sm:$0xff] }
 0x43b   :  { %8290 = vmatpush3.msra.mxu0 %v4642_v33  ;;  %4471 = vmatpush2.msra.mxu1 %v1711_v39  ;;  %v4714_v0 = vld [vmem:[%s19185_s5 + $0x258] sm:$0xff]  ;;  %v4729_v33 = vld [vmem:[%s19185_s5 + $0x2d0] sm:$0xff] }
 0x43c   :  { %8291 = vmatprep.subr.mxu0 %v4657_v43  ;;  %4472 = vmatprep.subr.mxu1 %v1700_v42  ;;  %v2372_v39 = vld [vmem:[%s19210_s25 + $0x3418] sm:$0xff]  ;;  %v4713_v43 = vld [vmem:[%s19185_s5 + $0x250] sm:$0xff] }
 0x43d   :  { %8292 = vmatpush3.msra.mxu0 %v4641_v2  ;;  %4473 = vmatpush2.msra.mxu1 %v1699_v3  ;;  %v2371_v42 = vld [vmem:[%s19210_s25 + $0x3410] sm:$0xff]  ;;  %v4712_v2 = vld [vmem:[%s19185_s5 + $0x248] sm:$0xff]  ;;  %v2456_v3 = vrot.slane %v14444_v7, %v10147_v16 }
 0x43e   :  { %8293 = vmatprep.subr.mxu0 %v4656_v56  ;;  %4474 = vmatprep.subr.mxu1 %v1688_v28  ;;  %v2359_v56 = vld [vmem:[%s19210_s25 + $0x33b0] sm:$0xff]  ;;  %v4727_v28 = vld [vmem:[%s19185_s5 + $0x2c0] sm:$0xff] }
 0x43f   :  { %8294 = vmatpush3.msra.mxu0 %v4640_v57  ;;  %4475 = vmatpush2.msra.mxu1 %v1687_v58  ;;  %v2348_v57 = vld [vmem:[%s19210_s25 + $0x3358] sm:$0xff]  ;;  %v4711_v58 = vld [vmem:[%s19185_s5 + $0x240] sm:$0xff] }
 0x440   :  { %8295 = vmatprep.subr.mxu0 %v4655_v63  ;;  %4476 = vmatprep.subr.mxu1 %v1676_v25  ;;  %v4726_v63 = vld [vmem:[%s19185_s5 + $0x2b8] sm:$0xff] }
 0x441   :  { %8296 = vmatpush3.msra.mxu0 %v4639_v6  ;;  %4477 = vmatpush2.msra.mxu1 %v1675_v9  ;;  %v2336_v25 = vld [vmem:[%s19210_s25 + $0x32f8] sm:$0xff]  ;;  %v3274_v6 = vadd.f32 %v14630_v1, %v2456_v3  ;;  %v2335_v9 = vld [vmem:[%s19210_s25 + $0x32f0] sm:$0xff] }
 0x442   :  { %4903 = vmatmul.mubr.f32.vlgmr.msra.gmra.mxu0 %v4627_v41  ;;  %8335 = vmatprep.subr.mxu0 %v4734_v61  ;;  %v4725_v61 = vld [vmem:[%s19185_s5 + $0x2b0] sm:$0xff]  ;;  %v2921_v41 = vadd.f32 %v12359_v31, %v2452_v46  ;;  %v4724_v31 = vld [vmem:[%s19185_s5 + $0x2a8] sm:$0xff]  ;;  %v4702_v3 = vld [vmem:[%s19185_s5 + $0x1f8] sm:$0xff] }
 0x443   :  { %4479 = vmatmul.mubr.f32.vlgmr.msra.gmra.mxu1 %v10223_v53  ;;  %4556 = vmatprep.subr.mxu1 %v2432_v10  ;;  %v2408_v53 = vld [vmem:[%s19210_s25 + $0x3538] sm:$0xff]  ;;  %v4709_v1 = vld [vmem:[%s19185_s5 + $0x230] sm:$0xff] }
 0x444   :  { %8336 = vmatpush3.msra.mxu0 %v4718_v14  ;;  %5042 = vmatprep.mubr.f32.mxu0 %v4632_v15  ;;  %v2324_v10 = vld [vmem:[%s19210_s25 + $0x3298] sm:$0xff]  ;;  %v3345_v14 = vadd.f32 %v14648_v54, %v3274_v6  ;;  %v2323_v15 = vld [vmem:[%s19210_s25 + $0x3290] sm:$0xff]  ;;  %v4708_v54 = vld [vmem:[%s19185_s5 + $0x228] sm:$0xff] }
 0x445   :  { %4557 = vmatpush1.msra.mxu1 %v2431_v18  ;;  %8337 = vmatprep.subr.mxu0 %v4733_v47  ;;  %v2312_v18 = vld [vmem:[%s19210_s25 + $0x3238] sm:$0xff]  ;;  %v2311_v47 = vld [vmem:[%s19210_s25 + $0x3230] sm:$0xff] }
 0x446   :  { %4558 = vmatprep.subr.mxu1 %v2420_v20  ;;  %8338 = vmatpush3.msra.mxu0 %v4717_v22  ;;  %v4723_v20 = vld [vmem:[%s19185_s5 + $0x2a0] sm:$0xff]  ;;  %v2992_v22 = vadd.f32 %v12373_v36, %v2921_v41  ;;  %v4722_v36 = vld [vmem:[%s19185_s5 + $0x298] sm:$0xff]  ;;  %v4781_v6 = vld [vmem:[%s19185_s5 + $0x470] sm:$0xff] }
 0x447   :  { %4559 = vmatpush1.msra.mxu1 %v2419_v23  ;;  %8339 = vmatprep.subr.mxu0 %v4732_v59  ;;  %v2300_v23 = vld [vmem:[%s19210_s25 + $0x31d8] sm:$0xff]  ;;  %v4707_v59 = vld [vmem:[%s19185_s5 + $0x220] sm:$0xff] }
 0x448   :  { %4560 = vmatprep.subr.mxu1 %v2408_v53  ;;  %8340 = vmatpush3.msra.mxu0 %v4716_v26  ;;  %v3416_v53 = vadd.f32 %v14689_v17, %v3345_v14  ;;  %v2299_v26 = vld [vmem:[%s19210_s25 + $0x31d0] sm:$0xff]  ;;  %v4706_v17 = vld [vmem:[%s19185_s5 + $0x218] sm:$0xff]  ;;  %v4683_v14 = vld [vmem:[%s19185_s5 + $0x160] sm:$0xff] }
 0x449   :  { %4561 = vmatpush1.msra.mxu1 %v2407_v12  ;;  %8341 = vmatprep.subr.mxu0 %v4731_v4  ;;  %v3063_v12 = vadd.f32 %v12566_v40, %v2992_v22  ;;  %v2288_v4 = vld [vmem:[%s19210_s25 + $0x3178] sm:$0xff]  ;;  %v4721_v40 = vld [vmem:[%s19185_s5 + $0x290] sm:$0xff] }
 0x44a   :  { %4562 = vmatprep.subr.mxu1 %v2396_v27  ;;  %8342 = vmatpush3.msra.mxu0 %v4715_v29  ;;  %v3487_v27 = vadd.f32 %v14691_v45, %v3416_v53  ;;  %v2287_v29 = vld [vmem:[%s19210_s25 + $0x3170] sm:$0xff]  ;;  %v4798_v46 = vld [vmem:[%s19185_s5 + $0x4f8] sm:$0xff] }
 0x44b   :  { %4563 = vmatpush1.msra.mxu1 %v2395_v30  ;;  %8343 = vmatprep.subr.mxu0 %v4730_v50  ;;  %v2276_v30 = vld [vmem:[%s19210_s25 + $0x3118] sm:$0xff]  ;;  %v4705_v45 = vld [vmem:[%s19185_s5 + $0x210] sm:$0xff] }
 0x44c   :  { %4564 = vmatprep.subr.mxu1 %v2384_v32  ;;  %8344 = vmatpush3.msra.mxu0 %v4714_v0  ;;  %v2275_v50 = vld [vmem:[%s19210_s25 + $0x3110] sm:$0xff]  ;;  %v4720_v32 = vld [vmem:[%s19185_s5 + $0x288] sm:$0xff]  ;;  %v3134_v0 = vadd.f32 %v14616_v5, %v3063_v12  ;;  %v4719_v5 = vld [vmem:[%s19185_s5 + $0x280] sm:$0xff] }
 0x44d   :  { %4565 = vmatpush1.msra.mxu1 %v2383_v24  ;;  %8345 = vmatprep.subr.mxu0 %v4729_v33  ;;  %v2264_v24 = vld [vmem:[%s19210_s25 + $0x30b8] sm:$0xff]  ;;  %v4704_v33 = vld [vmem:[%s19185_s5 + $0x208] sm:$0xff] }
 0x44e   :  { %4566 = vmatprep.subr.mxu1 %v2372_v39  ;;  %8346 = vmatpush3.msra.mxu0 %v4713_v43  ;;  %v3558_v39 = vadd.f32 %v14731_v19, %v3487_v27  ;;  %v2263_v43 = vld [vmem:[%s19210_s25 + $0x30b0] sm:$0xff]  ;;  %v4703_v19 = vld [vmem:[%s19185_s5 + $0x200] sm:$0xff]  ;;  %v4778_v53 = vld [vmem:[%s19185_s5 + $0x458] sm:$0xff] }
 0x44f   :  { %4567 = vmatpush1.msra.mxu1 %v2371_v42  ;;  %8347 = vmatprep.subr.mxu0 %v4728_v44  ;;  %v3205_v42 = vadd.f32 %v14632_v34, %v3134_v0  ;;  %v2252_v44 = vld [vmem:[%s19210_s25 + $0x3058] sm:$0xff]  ;;  %v14978_v34 = vpop.f32.mrf.mxu1  ;;  %v4680_v27 = vld [vmem:[%s19185_s5 + $0x148] sm:$0xff]  ;;  %v4791_v0 = vld [vmem:[%s19185_s5 + $0x4c0] sm:$0xff] }
 0x450   :  { %4568 = vmatprep.subr.mxu1 %v2360_v55  ;;  %8348 = vmatpush3.msra.mxu0 %v4712_v2  ;;  %v2251_v55 = vld [vmem:[%s19210_s25 + $0x3050] sm:$0xff]  ;;  %v4631_v2 = vmax.f32 %v3558_v39, 0.0  ;;  %v4694_v39 = vld [vmem:[%s19185_s5 + $0x1b8] sm:$0xff] }
 0x451   :  { %4569 = vmatpush1.msra.mxu1 %v2359_v56  ;;  %8349 = vmatprep.subr.mxu0 %v4727_v28  ;;  %v4630_v56 = vmax.f32 %v3205_v42, 0.0  ;;  %v4686_v28 = vld [vmem:[%s19185_s5 + $0x178] sm:$0xff] }
 0x452   :  { %4570 = vmatprep.subr.mxu1 %v2348_v57  ;;  %8350 = vmatpush3.msra.mxu0 %v4711_v58  ;;  %v4701_v57 = vld [vmem:[%s19185_s5 + $0x1f0] sm:$0xff]  ;;  %v4782_v58 = vld [vmem:[%s19185_s5 + $0x478] sm:$0xff] }
 0x453   :  { %4571 = vmatpush1.msra.mxu1 %v2347_v60  ;;  %8351 = vmatprep.subr.mxu0 %v4726_v63  ;;  %v4685_v60 = vld [vmem:[%s19185_s5 + $0x170] sm:$0xff]  ;;  %v4678_v42 = vld [vmem:[%s19185_s5 + $0x138] sm:$0xff] }
 0x454   :  { %4572 = vmatprep.subr.mxu1 %v2336_v25  ;;  %8352 = vmatpush3.msra.mxu0 %v4710_v38  ;;  %v4797_v63 = vld [vmem:[%s19185_s5 + $0x4f0] sm:$0xff]  ;;  %v15003_v25 = vpop.f32.mrf.mxu0  ;;  %v4700_v38 = vld [vmem:[%s19185_s5 + $0x1e8] sm:$0xff] }
 0x455   :  { %4573 = vmatpush1.msra.mxu1 %v2335_v9  ;;  %8353 = vmatprep.subr.mxu0 %v4725_v61  ;;  %v4684_v9 = vld [vmem:[%s19185_s5 + $0x168] sm:$0xff] }
 0x456   :  { %4574 = vmatprep.subr.mxu1 %v2324_v10  ;;  %8354 = vmatpush3.msra.mxu0 %v4709_v1  ;;  %v4796_v61 = vld [vmem:[%s19185_s5 + $0x4e8] sm:$0xff]  ;;  %v4699_v10 = vld [vmem:[%s19185_s5 + $0x1e0] sm:$0xff] }
 0x457   :  { %4575 = vmatpush1.msra.mxu1 %v2323_v15  ;;  %8355 = vmatprep.subr.mxu0 %v4724_v31  ;;  %v4780_v1 = vld [vmem:[%s19185_s5 + $0x468] sm:$0xff]  ;;  %v4795_v15 = vld [vmem:[%s19185_s5 + $0x4e0] sm:$0xff]  ;;  %v15033_v31 = vpop.f32.mrf.mxu0 }
 0x458   :  { %4576 = vmatprep.subr.mxu1 %v2312_v18  ;;  %8356 = vmatpush3.msra.mxu0 %v4708_v54  ;;  %v4698_v18 = vld [vmem:[%s19185_s5 + $0x1d8] sm:$0xff]  ;;  %v4779_v54 = vld [vmem:[%s19185_s5 + $0x460] sm:$0xff] }
 0x459   :  { %4577 = vmatpush1.msra.mxu1 %v2311_v47  ;;  %8357 = vmatprep.subr.mxu0 %v4723_v20  ;;  %v4682_v47 = vld [vmem:[%s19185_s5 + $0x158] sm:$0xff]  ;;  %v15047_v22 = vpop.f32.mrf.mxu0 }
 0x45a   :  { %4578 = vmatprep.subr.mxu1 %v2300_v23  ;;  %8358 = vmatpush3.msra.mxu0 %v4707_v59  ;;  %v4794_v20 = vld [vmem:[%s19185_s5 + $0x4d8] sm:$0xff]  ;;  %v4697_v59 = vld [vmem:[%s19185_s5 + $0x1d0] sm:$0xff] }
 0x45b   :  { %4579 = vmatpush1.msra.mxu1 %v2299_v26  ;;  %8359 = vmatprep.subr.mxu0 %v4722_v36  ;;  %v4681_v26 = vld [vmem:[%s19185_s5 + $0x150] sm:$0xff] }
 0x45c   :  { %4580 = vmatprep.subr.mxu1 %v2288_v4  ;;  %8360 = vmatpush3.msra.mxu0 %v4706_v17  ;;  %v4793_v36 = vld [vmem:[%s19185_s5 + $0x4d0] sm:$0xff]  ;;  %v4696_v4 = vld [vmem:[%s19185_s5 + $0x1c8] sm:$0xff] }
 0x45d   :  { %4581 = vmatpush1.msra.mxu1 %v2287_v29  ;;  %8361 = vmatprep.subr.mxu0 %v4721_v40  ;;  %v4777_v17 = vld [vmem:[%s19185_s5 + $0x450] sm:$0xff]  ;;  %v4792_v29 = vld [vmem:[%s19185_s5 + $0x4c8] sm:$0xff]  ;;  %v2468_v40 = vrot.slane %v14444_v7, %v10128_v8  ;;  %v4679_v7 = vld [vmem:[%s19185_s5 + $0x140] sm:$0xff] }
 0x45e   :  { %4582 = vmatprep.subr.mxu1 %v2276_v30  ;;  %8362 = vmatpush3.msra.mxu0 %v4705_v45  ;;  %v15079_v30 = vpop.f32.mrf.mxu0  ;;  %v15084_v45 = vld [vmem:[%s19184_s4 + $0x8] sm:$0xf] }
 0x45f   :  { %4583 = vmatpush1.msra.mxu1 %v2275_v50  ;;  %8363 = vmatprep.subr.mxu0 %v4720_v32  ;;  %v4695_v50 = vld [vmem:[%s19185_s5 + $0x1c0] sm:$0xff]  ;;  %v4776_v32 = vld [vmem:[%s19185_s5 + $0x448] sm:$0xff] }
 0x460   :  { %4584 = vmatprep.subr.mxu1 %v2264_v24  ;;  %8364 = vmatpush3.msra.mxu0 %v4704_v33  ;;  %v3983_v24 = vpop.f32.mrf.mxu0 }
 0x461   :  { %4585 = vmatpush1.msra.mxu1 %v2263_v43  ;;  %8365 = vmatprep.subr.mxu0 %v4719_v5  ;;  %v4775_v43 = vld [vmem:[%s19185_s5 + $0x440] sm:$0xff]  ;;  %v2472_v5 = vrot.slane %v15084_v45, %v9782_v49 }
 0x462   :  { %4586 = vmatprep.subr.mxu1 %v2252_v44  ;;  %8366 = vmatpush3.msra.mxu0 %v4703_v19  ;;  %v4790_v44 = vld [vmem:[%s19185_s5 + $0x4b8] sm:$0xff] }
 0x463   :  { %4587 = vmatpush1.msra.mxu1 %v2251_v55  ;;  %4620 = vmatprep.mubr.f32.mxu1 %v8560_v13 }
 0x464   :  { %5043 = vmatmul.mubr.f32.vlgmr.msra.gmra.mxu0 %v4631_v2  ;;  %4621 = vmatmul.mubr.f32.vlgmr.msra.gmra.mxu1 %v10427_v21  ;;  %v15005_v21 = vpop.f32.mrf.mxu1  ;;  %v4693_v2 = vld [vmem:[%s19185_s5 + $0x1b0] sm:$0xff] }
 0x465   :  { %8300 = vmatprep.subr.mxu1 %v4702_v3  ;;  %4972 = vmatprep.mubr.f32.mxu1 %v4630_v56  ;;  %v3631_v19 = vadd.f32 %v15005_v21, %v2468_v40  ;;  %v4774_v3 = vld [vmem:[%s19185_s5 + $0x438] sm:$0xff]  ;;  %v2476_v56 = vrot.slane %v15084_v45, %v9790_v51  ;;  %v4676_v21 = vld [vmem:[%s19185_s5 + $0x128] sm:$0xff] }
 0x466   :  { %8301 = vmatpush3.msra.mxu1 %v4686_v28  ;;  %8405 = vmatprep.subr.mxu0 %v4798_v46  ;;  %v15019_v41 = vpop.f32.mrf.mxu1  ;;  %v4677_v28 = vld [vmem:[%s19185_s5 + $0x130] sm:$0xff] }
 0x467   :  { %8302 = vmatprep.subr.mxu1 %v4701_v57  ;;  %8406 = vmatpush3.msra.mxu0 %v4782_v58  ;;  %v4789_v46 = vld [vmem:[%s19185_s5 + $0x4b0] sm:$0xff]  ;;  %v3985_v57 = vpop.f32.mrf.mxu0  ;;  %v4692_v58 = vld [vmem:[%s19185_s5 + $0x1a8] sm:$0xff] }
 0x468   :  { %8303 = vmatpush3.msra.mxu1 %v4685_v60  ;;  %8407 = vmatprep.subr.mxu0 %v4797_v63  ;;  %v15049_v23 = vpop.f32.mrf.mxu1  ;;  %v4773_v60 = vld [vmem:[%s19185_s5 + $0x430] sm:$0xff]  ;;  %v3984_v63 = vadd.f32 %v3983_v24, %v2472_v5  ;;  %v4672_v24 = vld [vmem:[%s19185_s5 + $0x108] sm:$0xff] }
 0x469   :  { %8304 = vmatprep.subr.mxu1 %v4700_v38  ;;  %8408 = vmatpush3.msra.mxu0 %v4781_v6  ;;  %v4788_v38 = vld [vmem:[%s19185_s5 + $0x4a8] sm:$0xff]  ;;  %v3702_v6 = vadd.f32 %v15033_v31, %v3631_v19  ;;  %v4787_v31 = vld [vmem:[%s19185_s5 + $0x4a0] sm:$0xff] }
 0x46a   :  { %8305 = vmatpush3.msra.mxu1 %v4684_v9  ;;  %8409 = vmatprep.subr.mxu0 %v4796_v61  ;;  %v15063_v12 = vpop.f32.mrf.mxu1  ;;  %v4125_v9 = vpop.f32.mrf.mxu0  ;;  %v4768_v19 = vld [vmem:[%s19185_s5 + $0x408] sm:$0xff] }
 0x46b   :  { %8306 = vmatprep.subr.mxu1 %v4699_v10  ;;  %8410 = vmatpush3.msra.mxu0 %v4780_v1  ;;  %v4691_v10 = vld [vmem:[%s19185_s5 + $0x1a0] sm:$0xff]  ;;  %v4772_v1 = vld [vmem:[%s19185_s5 + $0x428] sm:$0xff] }
 0x46c   :  { %8307 = vmatpush3.msra.mxu1 %v4683_v14  ;;  %8411 = vmatprep.subr.mxu0 %v4795_v15  ;;  %v15098_v33 = vpop.f32.mrf.mxu1  ;;  %v3986_v14 = vadd.f32 %v3985_v57, %v2476_v56  ;;  %v4766_v56 = vld [vmem:[%s19185_s5 + $0x3f8] sm:$0xff] }
 0x46d   :  { %8308 = vmatprep.subr.mxu1 %v4698_v18  ;;  %8412 = vmatpush3.msra.mxu0 %v4779_v54  ;;  %v4675_v18 = vld [vmem:[%s19185_s5 + $0x120] sm:$0xff]  ;;  %v3773_v54 = vadd.f32 %v15049_v23, %v3702_v6  ;;  %v4786_v23 = vld [vmem:[%s19185_s5 + $0x498] sm:$0xff]  ;;  %v4764_v6 = vld [vmem:[%s19185_s5 + $0x3e8] sm:$0xff] }
 0x46e   :  { %8309 = vmatpush3.msra.mxu1 %v4682_v47  ;;  %8413 = vmatprep.subr.mxu0 %v4794_v20  ;;  %v4054_v55 = vpop.f32.mrf.mxu1  ;;  %v4690_v47 = vld [vmem:[%s19185_s5 + $0x198] sm:$0xff]  ;;  %v4771_v20 = vld [vmem:[%s19185_s5 + $0x420] sm:$0xff] }
 0x46f   :  { %8310 = vmatprep.subr.mxu1 %v4697_v59  ;;  %8414 = vmatpush3.msra.mxu0 %v4778_v53  ;;  %v4055_v15 = vadd.f32 %v4054_v55, %v3984_v63  ;;  %v4674_v53 = vld [vmem:[%s19185_s5 + $0x118] sm:$0xff]  ;;  %v3844_v40 = vadd.f32 %v15079_v30, %v3773_v54  ;;  %v4784_v30 = vld [vmem:[%s19185_s5 + $0x488] sm:$0xff]  ;;  %v4671_v55 = vld [vmem:[%s19185_s5 + $0x100] sm:$0xff] }
 0x470   :  { %8311 = vmatpush3.msra.mxu1 %v4681_v26  ;;  %8415 = vmatprep.subr.mxu0 %v4793_v36  ;;  %v4056_v61 = vpop.f32.mrf.mxu1  ;;  %v4127_v26 = vpop.f32.mrf.mxu0  ;;  %v4689_v36 = vld [vmem:[%s19185_s5 + $0x190] sm:$0xff]  ;;  %v4750_v57 = vld [vmem:[%s19185_s5 + $0x378] sm:$0xff]  ;;  %v4760_v54 = vld [vmem:[%s19185_s5 + $0x3c8] sm:$0xff] }
 0x471   :  { %8312 = vmatprep.subr.mxu1 %v4696_v4  ;;  %8416 = vmatpush3.msra.mxu0 %v4777_v17  ;;  %v4057_v59 = vadd.f32 %v4056_v61, %v3986_v14  ;;  %v4770_v4 = vld [vmem:[%s19185_s5 + $0x418] sm:$0xff]  ;;  %v4673_v17 = vld [vmem:[%s19185_s5 + $0x110] sm:$0xff]  ;;  %v3915_v5 = vadd.f32 %v15098_v33, %v3844_v40  ;;  %v4783_v33 = vld [vmem:[%s19185_s5 + $0x480] sm:$0xff] }
 0x472   :  { %8313 = vmatpush3.msra.mxu1 %v4680_v27  ;;  %8417 = vmatprep.subr.mxu0 %v4792_v29  ;;  %v4126_v27 = vadd.f32 %v4125_v9, %v4055_v15  ;;  %v4785_v29 = vld [vmem:[%s19185_s5 + $0x490] sm:$0xff]  ;;  %v4748_v61 = vld [vmem:[%s19185_s5 + $0x368] sm:$0xff]  ;;  %v4762_v14 = vld [vmem:[%s19185_s5 + $0x3d8] sm:$0xff] }
 0x473   :  { %8314 = vmatprep.subr.mxu1 %v4695_v50  ;;  %8418 = vmatpush3.msra.mxu0 %v4776_v32  ;;  %v4267_v50 = vpop.f32.mrf.mxu0  ;;  %v4688_v32 = vld [vmem:[%s19185_s5 + $0x188] sm:$0xff]  ;;  %v4765_v63 = vld [vmem:[%s19185_s5 + $0x3f0] sm:$0xff]  ;;  %v4746_v15 = vld [vmem:[%s19185_s5 + $0x358] sm:$0xff] }
 0x474   :  { %8315 = vmatpush3.msra.mxu1 %v4679_v7  ;;  %8419 = vmatprep.subr.mxu0 %v4791_v0  ;;  %v4769_v0 = vld [vmem:[%s19185_s5 + $0x410] sm:$0xff]  ;;  %v4740_v40 = vld [vmem:[%s19185_s5 + $0x328] sm:$0xff] }
 0x475   :  { %8316 = vmatprep.subr.mxu1 %v4694_v39  ;;  %8420 = vmatpush3.msra.mxu0 %v4775_v43  ;;  %v4128_v43 = vadd.f32 %v4127_v26, %v4057_v59  ;;  %v4744_v59 = vld [vmem:[%s19185_s5 + $0x348] sm:$0xff]  ;;  %v4758_v26 = vld [vmem:[%s19185_s5 + $0x3b8] sm:$0xff] }
 0x476   :  { %8317 = vmatpush3.msra.mxu1 %v4678_v42  ;;  %8421 = vmatprep.subr.mxu0 %v4790_v44  ;;  %v4687_v42 = vld [vmem:[%s19185_s5 + $0x180] sm:$0xff] }
 0x477   :  { %8318 = vmatprep.subr.mxu1 %v4693_v2  ;;  %8422 = vmatpush3.msra.mxu0 %v4774_v3  ;;  %v4269_v3 = vpop.f32.mrf.mxu0 }
 0x478   :  { %8319 = vmatpush3.msra.mxu1 %v4677_v28  ;;  %8423 = vmatprep.subr.mxu0 %v4789_v46  ;;  %v4629_v28 = vmax.f32 %v12593_v62, 0.0 }
 0x479   :  { %8320 = vmatprep.subr.mxu1 %v4692_v58  ;;  %8424 = vmatpush3.msra.mxu0 %v4773_v60  ;;  %v4634_v60 = vmax.f32 %v3915_v5, 0.0  ;;  %v4736_v5 = vld [vmem:[%s19185_s5 + $0x308] sm:$0xff] }
 0x47a   :  { %8321 = vmatpush3.msra.mxu1 %v4676_v21  ;;  %8425 = vmatprep.subr.mxu0 %v4788_v38  ;;  %v4767_v21 = vld [vmem:[%s19185_s5 + $0x400] sm:$0xff]  ;;  %v4749_v38 = vld [vmem:[%s19185_s5 + $0x370] sm:$0xff] }
 0x47b   :  { %8322 = vmatprep.subr.mxu1 %v4691_v10  ;;  %8426 = vmatpush3.msra.mxu0 %v4772_v1  ;;  %v4763_v10 = vld [vmem:[%s19185_s5 + $0x3e0] sm:$0xff] }
 0x47c   :  { %8323 = vmatpush3.msra.mxu1 %v4675_v18  ;;  %8427 = vmatprep.subr.mxu0 %v4787_v31  ;;  %v4747_v1 = vld [vmem:[%s19185_s5 + $0x360] sm:$0xff]  ;;  %v4761_v18 = vld [vmem:[%s19185_s5 + $0x3d0] sm:$0xff] }
 0x47d   :  { %8324 = vmatprep.subr.mxu1 %v4690_v47  ;;  %8428 = vmatpush3.msra.mxu0 %v4771_v20  ;;  %v4745_v31 = vld [vmem:[%s19185_s5 + $0x350] sm:$0xff]  ;;  %v8557_v47 = vld [vmem:[%s19184_s4] sm:$0xff] }
 0x47e   :  { %8325 = vmatpush3.msra.mxu1 %v4674_v53  ;;  %v4196_v7 = vpop.f32.mrf.mxu1  ;;  %8429 = vmatprep.subr.mxu0 %v4786_v23  ;;  %v2464_v20 = vrot.slane %v8557_v47, %v10137_v11  ;;  %v4759_v53 = vld [vmem:[%s19185_s5 + $0x3c0] sm:$0xff]  ;;  %v4817_v47 = vld [vmem:[%s19185_s5 + $0x590] sm:$0xff] }
 0x47f   :  { %8326 = vmatprep.subr.mxu1 %v4689_v36  ;;  %v4197_v39 = vadd.f32 %v4196_v7, %v4126_v27  ;;  %8430 = vmatpush3.msra.mxu0 %v4770_v4  ;;  %v4743_v23 = vld [vmem:[%s19185_s5 + $0x340] sm:$0xff]  ;;  %v4742_v4 = vld [vmem:[%s19185_s5 + $0x338] sm:$0xff]  ;;  %v4741_v27 = vld [vmem:[%s19185_s5 + $0x330] sm:$0xff] }
 0x480   :  { %8327 = vmatpush3.msra.mxu1 %v4673_v17  ;;  %v4198_v44 = vpop.f32.mrf.mxu1  ;;  %8431 = vmatprep.subr.mxu0 %v4785_v29  ;;  %v3629_v36 = vadd.f32 %v14978_v34, %v2464_v20  ;;  %v4757_v17 = vld [vmem:[%s19185_s5 + $0x3b0] sm:$0xff]  ;;  %v4756_v34 = vld [vmem:[%s19185_s5 + $0x3a8] sm:$0xff]  ;;  %v4739_v7 = vld [vmem:[%s19185_s5 + $0x320] sm:$0xff] }
 0x481   :  { %8328 = vmatprep.subr.mxu1 %v4688_v32  ;;  %v4199_v2 = vadd.f32 %v4198_v44, %v4128_v43  ;;  %8432 = vmatpush3.msra.mxu0 %v4769_v0  ;;  %v4268_v46 = vadd.f32 %v4267_v50, %v4197_v39  ;;  %v4755_v50 = vld [vmem:[%s19185_s5 + $0x3a0] sm:$0xff]  ;;  %v4738_v0 = vld [vmem:[%s19185_s5 + $0x318] sm:$0xff]  ;;  %v4737_v39 = vld [vmem:[%s19185_s5 + $0x310] sm:$0xff] }
 0x482   :  { %8329 = vmatpush3.msra.mxu1 %v4672_v24  ;;  %8433 = vmatprep.subr.mxu0 %v4784_v30  ;;  %v3700_v29 = vadd.f32 %v15003_v25, %v3629_v36  ;;  %v4754_v25 = vld [vmem:[%s19185_s5 + $0x398] sm:$0xff]  ;;  %v4752_v43 = vld [vmem:[%s19185_s5 + $0x388] sm:$0xff]  ;;  %v4801_v20 = vld [vmem:[%s19185_s5 + $0x510] sm:$0xff] }
 0x483   :  { %8330 = vmatprep.subr.mxu1 %v4687_v42  ;;  %v4270_v58 = vadd.f32 %v4269_v3, %v4199_v2  ;;  %8434 = vmatpush3.msra.mxu0 %v4768_v19  ;;  %v4635_v9 = vmax.f32 %v4268_v46, 0.0  ;;  %v4735_v42 = vld [vmem:[%s19185_s5 + $0x300] sm:$0xff]  ;;  %v4814_v19 = vld [vmem:[%s19185_s5 + $0x578] sm:$0xff]  ;;  %v4813_v2 = vld [vmem:[%s19185_s5 + $0x570] sm:$0xff] }
 0x484   :  { %8331 = vmatpush3.msra.mxu1 %v4671_v55  ;;  %8435 = vmatprep.subr.mxu0 %v4783_v33  ;;  %v3771_v32 = vadd.f32 %v15019_v41, %v3700_v29  ;;  %v4753_v41 = vld [vmem:[%s19185_s5 + $0x390] sm:$0xff]  ;;  %v4828_v33 = vld [vmem:[%s19185_s5 + $0x5e8] sm:$0xff]  ;;  %v4826_v46 = vld [vmem:[%s19185_s5 + $0x5d8] sm:$0xff] }
 0x485   :  { %4973 = vmatmul.mubr.f32.vlgmr.msra.gmra.mxu1 %v4629_v28  ;;  %8370 = vmatprep.subr.mxu1 %v4766_v56  ;;  %v4636_v62 = vmax.f32 %v4270_v58, 0.0  ;;  %v4829_v55 = vld [vmem:[%s19185_s5 + $0x5f0] sm:$0xff]  ;;  %v4812_v3 = vld [vmem:[%s19185_s5 + $0x568] sm:$0xff]  ;;  %v4827_v56 = vld [vmem:[%s19185_s5 + $0x5e0] sm:$0xff] }
 0x486   :  { %8371 = vmatpush3.msra.mxu1 %v4750_v57  ;;  %5112 = vmatprep.mubr.f32.mxu1 %v4634_v60  ;;  %v3842_v24 = vadd.f32 %v15047_v22, %v3771_v32  ;;  %v4751_v22 = vld [vmem:[%s19185_s5 + $0x380] sm:$0xff]  ;;  %v4810_v57 = vld [vmem:[%s19185_s5 + $0x558] sm:$0xff]  ;;  %v4825_v58 = vld [vmem:[%s19185_s5 + $0x5d0] sm:$0xff] }
 0x487   :  { %8372 = vmatprep.subr.mxu1 %v4765_v63  ;;  %8436 = vmatpush3.msra.mxu0 %v4767_v21  ;;  %v4811_v28 = vld [vmem:[%s19185_s5 + $0x560] sm:$0xff]  ;;  %v4809_v60 = vld [vmem:[%s19185_s5 + $0x550] sm:$0xff]  ;;  %v4824_v63 = vld [vmem:[%s19185_s5 + $0x5c8] sm:$0xff] }
 0x488   :  { %8373 = vmatpush3.msra.mxu1 %v4749_v38  ;;  %5182 = vmatprep.mubr.f32.mxu0 %v4636_v62  ;;  %v3913_v30 = vadd.f32 %v15063_v12, %v3842_v24  ;;  %v4830_v12 = vld [vmem:[%s19185_s5 + $0x5f8] sm:$0xff]  ;;  %v4808_v21 = vld [vmem:[%s19185_s5 + $0x548] sm:$0xff]  ;;  %v4823_v62 = vld [vmem:[%s19185_s5 + $0x5c0] sm:$0xff] }
 0x489   :  { %8374 = vmatprep.subr.mxu1 %v4764_v6  ;;  %5183 = vmatmul.mubr.f32.vlgmr.msra.gmra.mxu0 %v4635_v9  ;;  %v4807_v38 = vld [vmem:[%s19185_s5 + $0x540] sm:$0xff]  ;;  %v4822_v6 = vld [vmem:[%s19185_s5 + $0x5b8] sm:$0xff]  ;;  %v5268_v29 = vld [vmem:[%s19186_s7 + $0x50] sm:$0xff] }
 0x48a   :  { %8375 = vmatpush3.msra.mxu1 %v4748_v61  ;;  %5354 = vmatprep.mubr.f32.mxu0 %v8560_v13  ;;  %v4633_v44 = vmax.f32 %v3913_v30, 0.0  ;;  %v4806_v9 = vld [vmem:[%s19185_s5 + $0x538] sm:$0xff]  ;;  %v4821_v61 = vld [vmem:[%s19185_s5 + $0x5b0] sm:$0xff] }
 0x48b   :  { %8376 = vmatprep.subr.mxu1 %v4763_v10  ;;  %v4805_v10 = vld [vmem:[%s19185_s5 + $0x530] sm:$0xff]  ;;  %v5273_v36 = vld [vmem:[%s19186_s7 + $0x78] sm:$0xff] }
 0x48c   :  { %8377 = vmatpush3.msra.mxu1 %v4747_v1  ;;  %v4820_v1 = vld [vmem:[%s19185_s5 + $0x5a8] sm:$0xff]  ;;  %5306 = vmatprep.subr.mxu0 %v5273_v36  ;;  %v5265_v32 = vld [vmem:[%s19186_s7 + $0x38] sm:$0xff]  ;;  %v5399_v36 = vld [vmem:[%s19187_s9 + $0x120] sm:$0xff] }
 0x48d   :  { %8378 = vmatprep.subr.mxu1 %v4762_v14  ;;  %v4804_v14 = vld [vmem:[%s19185_s5 + $0x528] sm:$0xff] }
 0x48e   :  { %8379 = vmatpush3.msra.mxu1 %v4746_v15  ;;  %v4819_v15 = vld [vmem:[%s19185_s5 + $0x5a0] sm:$0xff] }
 0x48f   :  { %8380 = vmatprep.subr.mxu1 %v4761_v18  ;;  %v4803_v18 = vld [vmem:[%s19185_s5 + $0x520] sm:$0xff] }
 0x490   :  { %8381 = vmatpush3.msra.mxu1 %v4745_v31  ;;  %v4818_v31 = vld [vmem:[%s19185_s5 + $0x598] sm:$0xff] }
 0x491   :  { %8382 = vmatprep.subr.mxu1 %v4760_v54  ;;  %v4802_v54 = vld [vmem:[%s19185_s5 + $0x518] sm:$0xff] }
 0x492   :  { %8383 = vmatpush3.msra.mxu1 %v4744_v59  ;;  %v4816_v59 = vld [vmem:[%s19185_s5 + $0x588] sm:$0xff] }
 0x493   :  { %8384 = vmatprep.subr.mxu1 %v4759_v53  ;;  %v4800_v53 = vld [vmem:[%s19185_s5 + $0x508] sm:$0xff] }
 0x494   :  { %8385 = vmatpush3.msra.mxu1 %v4743_v23  ;;  %v4815_v23 = vld [vmem:[%s19185_s5 + $0x580] sm:$0xff] }
 0x495   :  { %8386 = vmatprep.subr.mxu1 %v4758_v26  ;;  %v4799_v26 = vld [vmem:[%s19185_s5 + $0x500] sm:$0xff] }
 0x496   :  { %8387 = vmatpush3.msra.mxu1 %v4742_v4  ;;  %v5272_v4 = vld [vmem:[%s19186_s7 + $0x70] sm:$0xff] }
 0x497   :  { %8388 = vmatprep.subr.mxu1 %v4757_v17  ;;  %v5271_v17 = vld [vmem:[%s19186_s7 + $0x68] sm:$0xff]  ;;  %5307 = vmatpush1.msra.mxu0 %v5272_v4 }
 0x498   :  { %8389 = vmatpush3.msra.mxu1 %v4741_v27  ;;  %v5270_v27 = vld [vmem:[%s19186_s7 + $0x60] sm:$0xff]  ;;  %5308 = vmatprep.subr.mxu0 %v5271_v17  ;;  %v5396_v4 = vld [vmem:[%s19187_s9 + $0x108] sm:$0xff] }
 0x499   :  { %8390 = vmatprep.subr.mxu1 %v4756_v34  ;;  %v5269_v34 = vld [vmem:[%s19186_s7 + $0x58] sm:$0xff]  ;;  %5309 = vmatpush1.msra.mxu0 %v5270_v27  ;;  %v5395_v17 = vld [vmem:[%s19187_s9 + $0x100] sm:$0xff]  ;;  %v5392_v27 = vld [vmem:[%s19187_s9 + $0xe8] sm:$0xff] }
 0x49a   :  { %8391 = vmatpush3.msra.mxu1 %v4740_v40  ;;  %v5267_v40 = vld [vmem:[%s19186_s7 + $0x48] sm:$0xff]  ;;  %5310 = vmatprep.subr.mxu0 %v5269_v34  ;;  %v5391_v34 = vld [vmem:[%s19187_s9 + $0xe0] sm:$0xff] }
 0x49b   :  { %8392 = vmatprep.subr.mxu1 %v4755_v50  ;;  %v5266_v50 = vld [vmem:[%s19186_s7 + $0x40] sm:$0xff]  ;;  %5311 = vmatpush1.msra.mxu0 %v5268_v29  ;;  %v5388_v29 = vld [vmem:[%s19187_s9 + $0xc8] sm:$0xff] }
 0x49c   :  { %8393 = vmatpush3.msra.mxu1 %v4739_v7  ;;  %5312 = vmatprep.subr.mxu0 %v5267_v40  ;;  %v5387_v40 = vld [vmem:[%s19187_s9 + $0xc0] sm:$0xff] }
 0x49d   :  { %8394 = vmatprep.subr.mxu1 %v4754_v25  ;;  %5313 = vmatpush1.msra.mxu0 %v5266_v50  ;;  %v2480_v25 = vrot.slane %v15084_v45, %v9779_v48  ;;  %v5384_v50 = vld [vmem:[%s19187_s9 + $0xa8] sm:$0xff] }
 0x49e   :  { %8395 = vmatpush3.msra.mxu1 %v4738_v0  ;;  %5314 = vmatprep.subr.mxu0 %v5265_v32  ;;  %v2484_v0 = vrot.slane %v15084_v45, %v9793_v52  ;;  %v5383_v32 = vld [vmem:[%s19187_s9 + $0xa0] sm:$0xff] }
 0x49f   :  { %8396 = vmatprep.subr.mxu1 %v4753_v41  ;;  %v4409_v24 = vpop.f32.mrf.mxu0 }
 0x4a0   :  { %8397 = vmatpush3.msra.mxu1 %v4737_v39 }
 0x4a1   :  { %8398 = vmatprep.subr.mxu1 %v4752_v43 }
 0x4a2   :  { %8399 = vmatpush3.msra.mxu1 %v4736_v5  ;;  %v4411_v5 = vpop.f32.mrf.mxu0 }
 0x4a3   :  { %8400 = vmatprep.subr.mxu1 %v4751_v22 }
 0x4a4   :  { %8401 = vmatpush3.msra.mxu1 %v4735_v42 }
 0x4a5   :  { %5113 = vmatmul.mubr.f32.vlgmr.msra.gmra.mxu1 %v4633_v44  ;;  %8440 = vmatprep.subr.mxu1 %v4830_v12 }
 0x4a6   :  { %8441 = vmatpush3.msra.mxu1 %v4814_v19 }
 0x4a7   :  { %8442 = vmatprep.subr.mxu1 %v4829_v55 }
 0x4a8   :  { %8443 = vmatpush3.msra.mxu1 %v4813_v2 }
 0x4a9   :  { %8444 = vmatprep.subr.mxu1 %v4828_v33 }
 0x4aa   :  { %8445 = vmatpush3.msra.mxu1 %v4812_v3 }
 0x4ab   :  { %8446 = vmatprep.subr.mxu1 %v4827_v56 }
 0x4ac   :  { %8447 = vmatpush3.msra.mxu1 %v4811_v28 }
 0x4ad   :  { %8448 = vmatprep.subr.mxu1 %v4826_v46 }
 0x4ae   :  { %8449 = vmatpush3.msra.mxu1 %v4810_v57 }
 0x4af   :  { %8450 = vmatprep.subr.mxu1 %v4825_v58 }
 0x4b0   :  { %8451 = vmatpush3.msra.mxu1 %v4809_v60  ;;  %v5264_v60 = vld [vmem:[%s19186_s7 + $0x30] sm:$0xff] }
 0x4b1   :  { %8452 = vmatprep.subr.mxu1 %v4824_v63  ;;  %v5263_v63 = vld [vmem:[%s19186_s7 + $0x28] sm:$0xff]  ;;  %5315 = vmatpush1.msra.mxu0 %v5264_v60 }
 0x4b2   :  { %8453 = vmatpush3.msra.mxu1 %v4808_v21  ;;  %5316 = vmatprep.subr.mxu0 %v5263_v63  ;;  %v5262_v21 = vld [vmem:[%s19186_s7 + $0x20] sm:$0xff] }
 0x4b3   :  { %8454 = vmatprep.subr.mxu1 %v4823_v62  ;;  %5317 = vmatpush1.msra.mxu0 %v5262_v21  ;;  %v5261_v62 = vld [vmem:[%s19186_s7 + $0x18] sm:$0xff] }
 0x4b4   :  { %8455 = vmatpush3.msra.mxu1 %v4807_v38  ;;  %5318 = vmatprep.subr.mxu0 %v5261_v62  ;;  %v5260_v38 = vld [vmem:[%s19186_s7 + $0x10] sm:$0xff] }
 0x4b5   :  { %8456 = vmatprep.subr.mxu1 %v4822_v6  ;;  %5319 = vmatpush1.msra.mxu0 %v5260_v38  ;;  %v5259_v6 = vld [vmem:[%s19186_s7 + $0x8] sm:$0xff] }
 0x4b6   :  { %8457 = vmatpush3.msra.mxu1 %v4806_v9  ;;  %v5258_v9 = vld [vmem:[%s19186_s7] sm:$0xff]  ;;  %5320 = vmatprep.subr.mxu0 %v5259_v6 }
 0x4b7   :  { %8458 = vmatprep.subr.mxu1 %v4821_v61  ;;  %5321 = vmatpush1.msra.mxu0 %v5258_v9  ;;  %v5424_v61 = vld [vmem:[%s19187_s9 + $0x1e8] sm:$0xff] }
 0x4b8   :  { %8459 = vmatpush3.msra.mxu1 %v4805_v10  ;;  %v5426_v10 = vld [vmem:[%s19187_s9 + $0x1f8] sm:$0xff] }
 0x4b9   :  { %8460 = vmatprep.subr.mxu1 %v4820_v1  ;;  %v5423_v1 = vld [vmem:[%s19187_s9 + $0x1e0] sm:$0xff]  ;;  %5555 = vmatprep.subr.mxu0 %v5426_v10 }
 0x4ba   :  { %8461 = vmatpush3.msra.mxu1 %v4804_v14  ;;  %v5420_v14 = vld [vmem:[%s19187_s9 + $0x1c8] sm:$0xff] }
 0x4bb   :  { %8462 = vmatprep.subr.mxu1 %v4819_v15  ;;  %v5419_v15 = vld [vmem:[%s19187_s9 + $0x1c0] sm:$0xff] }
 0x4bc   :  { %8463 = vmatpush3.msra.mxu1 %v4803_v18  ;;  %v5416_v18 = vld [vmem:[%s19187_s9 + $0x1a8] sm:$0xff] }
 0x4bd   :  { %8464 = vmatprep.subr.mxu1 %v4818_v31  ;;  %v5415_v31 = vld [vmem:[%s19187_s9 + $0x1a0] sm:$0xff] }
 0x4be   :  { %8465 = vmatpush3.msra.mxu1 %v4802_v54  ;;  %v5412_v54 = vld [vmem:[%s19187_s9 + $0x188] sm:$0xff] }
 0x4bf   :  { %8466 = vmatprep.subr.mxu1 %v4817_v47  ;;  %v5411_v47 = vld [vmem:[%s19187_s9 + $0x180] sm:$0xff] }
 0x4c0   :  { %8467 = vmatpush3.msra.mxu1 %v4801_v20  ;;  %v4338_v7 = vpop.f32.mrf.mxu1  ;;  %v5408_v20 = vld [vmem:[%s19187_s9 + $0x168] sm:$0xff] }
 0x4c1   :  { %8468 = vmatprep.subr.mxu1 %v4816_v59  ;;  %v4339_v39 = vadd.f32 %v4338_v7, %v2480_v25  ;;  %v5407_v59 = vld [vmem:[%s19187_s9 + $0x160] sm:$0xff]  ;;  %v5380_v7 = vld [vmem:[%s19187_s9 + $0x88] sm:$0xff] }
 0x4c2   :  { %8469 = vmatpush3.msra.mxu1 %v4800_v53  ;;  %v4340_v41 = vpop.f32.mrf.mxu1  ;;  %v5404_v53 = vld [vmem:[%s19187_s9 + $0x148] sm:$0xff]  ;;  %v5379_v25 = vld [vmem:[%s19187_s9 + $0x80] sm:$0xff] }
 0x4c3   :  { %8470 = vmatprep.subr.mxu1 %v4815_v23  ;;  %v4341_v30 = vadd.f32 %v4340_v41, %v2484_v0  ;;  %v4410_v22 = vadd.f32 %v4409_v24, %v4339_v39  ;;  %v5403_v23 = vld [vmem:[%s19187_s9 + $0x140] sm:$0xff]  ;;  %v5376_v0 = vld [vmem:[%s19187_s9 + $0x68] sm:$0xff] }
 0x4c4   :  { %8471 = vmatpush3.msra.mxu1 %v4799_v26  ;;  %v5400_v26 = vld [vmem:[%s19187_s9 + $0x128] sm:$0xff]  ;;  %v5375_v41 = vld [vmem:[%s19187_s9 + $0x60] sm:$0xff] }
 0x4c5   :  { %v4412_v12 = vadd.f32 %v4411_v5, %v4341_v30  ;;  %5484 = vmatprep.subr.mxu1 %v5424_v61  ;;  %v5372_v24 = vld [vmem:[%s19187_s9 + $0x48] sm:$0xff]  ;;  %v5371_v39 = vld [vmem:[%s19187_s9 + $0x40] sm:$0xff] }
 0x4c6   :  { %v5367_v30 = vld [vmem:[%s19187_s9 + $0x20] sm:$0xff]  ;;  %v5364_v5 = vld [vmem:[%s19187_s9 + $0x8] sm:$0xff] }
 0x4e1   :  { %v4551_v44 = vpop.f32.mrf.mxu0 }
 0x4e3   :  { %v4553_v2 = vpop.f32.mrf.mxu0 }
 0x503   :  { %v4480_v43 = vpop.f32.mrf.mxu1 }
 0x504   :  { %v4481_v19 = vadd.f32 %v4480_v43, %v4410_v22  ;;  %v5368_v43 = vld [vmem:[%s19187_s9 + $0x28] sm:$0xff]  ;;  %v5363_v22 = vld [vmem:[%s19187_s9] sm:$0xff] }
 0x505   :  { %v4482_v42 = vpop.f32.mrf.mxu1 }
 0x506   :  { %v4483_v55 = vadd.f32 %v4482_v42, %v4412_v12  ;;  %v4552_v33 = vadd.f32 %v4551_v44, %v4481_v19  ;;  %v5456_v42 = vld [vmem:[%s19187_s9 + $0x2e8] sm:$0xff]  ;;  %v5455_v12 = vld [vmem:[%s19187_s9 + $0x2e0] sm:$0xff] }
 0x507   :  { %v5452_v44 = vld [vmem:[%s19187_s9 + $0x2c8] sm:$0xff]  ;;  %v5451_v19 = vld [vmem:[%s19187_s9 + $0x2c0] sm:$0xff] }
 0x508   :  { %v4554_v56 = vadd.f32 %v4553_v2, %v4483_v55  ;;  %v5448_v55 = vld [vmem:[%s19187_s9 + $0x2a8] sm:$0xff]  ;;  %v5447_v2 = vld [vmem:[%s19187_s9 + $0x2a0] sm:$0xff] }
 0x524   :  { %v4622_v3 = vpop.f32.mrf.mxu1 }
 0x525   :  { %v4623_v28 = vadd.f32 %v4622_v3, %v4552_v33  ;;  %v5444_v33 = vld [vmem:[%s19187_s9 + $0x288] sm:$0xff]  ;;  %v5443_v3 = vld [vmem:[%s19187_s9 + $0x280] sm:$0xff] }
 0x526   :  { %v4624_v46 = vpop.f32.mrf.mxu1 }
 0x527   :  { %v4625_v57 = vadd.f32 %v4624_v46, %v4554_v56  ;;  %v4637_v58 = vmax.f32 %v4623_v28, 0.0  ;;  %v8297_v56 = vpop.f32.mrf.mxu0 }
 0x529   :  { %v4638_v45 = vmax.f32 %v4625_v57, 0.0  ;;  %v8298_v46 = vpop.f32.mrf.mxu0 }
 0x52b   :  { %5252 = vmatprep.mubr.f32.mxu1 %v4638_v45  ;;  %v8299_v45 = vadd.f32 %v8298_v46, %v8297_v56  ;;  %v8367_v60 = vpop.f32.mrf.mxu0  ;;  %v5366_v56 = vld [vmem:[%s19187_s9 + $0x18] sm:$0xff] }
 0x52c   :  { %5253 = vmatmul.mubr.f32.vlgmr.msra.gmra.mxu1 %v4637_v58  ;;  %v8249_v58 = vld [vmem:[%s19188_s6] ss:$0 sm:$0xff]  ;;  %v5458_v46 = vld [vmem:[%s19187_s9 + $0x2f8] sm:$0xff] }
 0x52d   :  { %5485 = vmatpush1.msra.mxu1 %v5423_v1  ;;  %v4905_v62 = vadd.f32 %v8299_v45, %v8249_v58  ;;  %v8368_v38 = vpop.f32.mrf.mxu0  ;;  %v5454_v45 = vld [vmem:[%s19187_s9 + $0x2d8] sm:$0xff]  ;;  %v5453_v58 = vld [vmem:[%s19187_s9 + $0x2d0] sm:$0xff] }
 0x52e   :  { %5486 = vmatprep.subr.mxu1 %v5420_v14  ;;  %v8369_v10 = vadd.f32 %v8368_v38, %v8367_v60  ;;  %v5450_v60 = vld [vmem:[%s19187_s9 + $0x2b8] sm:$0xff]  ;;  %v5440_v38 = vld [vmem:[%s19187_s9 + $0x268] sm:$0xff] }
 0x52f   :  { %5487 = vmatpush1.msra.mxu1 %v5419_v15 }
 0x530   :  { %5488 = vmatprep.subr.mxu1 %v5416_v18 }
 0x531   :  { %5489 = vmatpush1.msra.mxu1 %v5415_v31 }
 0x532   :  { %5490 = vmatprep.subr.mxu1 %v5412_v54 }
 0x533   :  { %5491 = vmatpush1.msra.mxu1 %v5411_v47 }
 0x534   :  { %5492 = vmatprep.subr.mxu1 %v5408_v20 }
 0x535   :  { %5493 = vmatpush1.msra.mxu1 %v5407_v59 }
 0x536   :  { %5494 = vmatprep.subr.mxu1 %v5404_v53 }
 0x537   :  { %5495 = vmatpush1.msra.mxu1 %v5403_v23  ;;  %v5425_v23 = vld [vmem:[%s19187_s9 + $0x1f0] sm:$0xff] }
 0x538   :  { %5496 = vmatprep.subr.mxu1 %v5400_v26  ;;  %v5422_v26 = vld [vmem:[%s19187_s9 + $0x1d8] sm:$0xff] }
 0x539   :  { %5497 = vmatpush1.msra.mxu1 %v5399_v36  ;;  %v5421_v36 = vld [vmem:[%s19187_s9 + $0x1d0] sm:$0xff] }
 0x53a   :  { %5498 = vmatprep.subr.mxu1 %v5396_v4  ;;  %v5418_v4 = vld [vmem:[%s19187_s9 + $0x1b8] sm:$0xff] }
 0x53b   :  { %5499 = vmatpush1.msra.mxu1 %v5395_v17  ;;  %v5417_v17 = vld [vmem:[%s19187_s9 + $0x1b0] sm:$0xff] }
 0x53c   :  { %5500 = vmatprep.subr.mxu1 %v5392_v27  ;;  %v5414_v27 = vld [vmem:[%s19187_s9 + $0x198] sm:$0xff] }
 0x53d   :  { %5501 = vmatpush1.msra.mxu1 %v5391_v34  ;;  %v5413_v34 = vld [vmem:[%s19187_s9 + $0x190] sm:$0xff] }
 0x53e   :  { %5502 = vmatprep.subr.mxu1 %v5388_v29  ;;  %v5410_v29 = vld [vmem:[%s19187_s9 + $0x178] sm:$0xff] }
 0x53f   :  { %5503 = vmatpush1.msra.mxu1 %v5387_v40  ;;  %v5409_v40 = vld [vmem:[%s19187_s9 + $0x170] sm:$0xff] }
 0x540   :  { %5504 = vmatprep.subr.mxu1 %v5384_v50  ;;  %v5406_v50 = vld [vmem:[%s19187_s9 + $0x158] sm:$0xff] }
 0x541   :  { %5505 = vmatpush1.msra.mxu1 %v5383_v32  ;;  %v5405_v32 = vld [vmem:[%s19187_s9 + $0x150] sm:$0xff] }
 0x542   :  { %5506 = vmatprep.subr.mxu1 %v5380_v7  ;;  %v5402_v7 = vld [vmem:[%s19187_s9 + $0x138] sm:$0xff] }
 0x543   :  { %5507 = vmatpush1.msra.mxu1 %v5379_v25  ;;  %v5401_v25 = vld [vmem:[%s19187_s9 + $0x130] sm:$0xff] }
 0x544   :  { %5508 = vmatprep.subr.mxu1 %v5376_v0  ;;  %v5398_v0 = vld [vmem:[%s19187_s9 + $0x118] sm:$0xff] }
 0x545   :  { %5509 = vmatpush1.msra.mxu1 %v5375_v41  ;;  %v8332_v28 = vpop.f32.mrf.mxu1  ;;  %v5397_v41 = vld [vmem:[%s19187_s9 + $0x110] sm:$0xff] }
 0x546   :  { %5510 = vmatprep.subr.mxu1 %v5372_v24  ;;  %v5394_v24 = vld [vmem:[%s19187_s9 + $0xf8] sm:$0xff] }
 0x547   :  { %5511 = vmatpush1.msra.mxu1 %v5371_v39  ;;  %v8333_v57 = vpop.f32.mrf.mxu1  ;;  %v5393_v39 = vld [vmem:[%s19187_s9 + $0xf0] sm:$0xff] }
 0x548   :  { %5512 = vmatprep.subr.mxu1 %v5368_v43  ;;  %v8334_v21 = vadd.f32 %v8333_v57, %v8332_v28  ;;  %v5390_v43 = vld [vmem:[%s19187_s9 + $0xd8] sm:$0xff]  ;;  %v5365_v28 = vld [vmem:[%s19187_s9 + $0x10] sm:$0xff] }
 0x549   :  { %5513 = vmatpush1.msra.mxu1 %v5367_v30  ;;  %v8437_v61 = vpop.f32.mrf.mxu0  ;;  %v5389_v30 = vld [vmem:[%s19187_s9 + $0xd0] sm:$0xff] }
 0x54a   :  { %5514 = vmatprep.subr.mxu1 %v5364_v5  ;;  %v4975_v9 = vadd.f32 %v8334_v21, %v4905_v62  ;;  %v5386_v5 = vld [vmem:[%s19187_s9 + $0xb8] sm:$0xff]  ;;  %v5457_v57 = vld [vmem:[%s19187_s9 + $0x2f0] sm:$0xff] }
 0x54b   :  { %5515 = vmatpush1.msra.mxu1 %v5363_v22  ;;  %v8438_v15 = vpop.f32.mrf.mxu0  ;;  %v5385_v22 = vld [vmem:[%s19187_s9 + $0xb0] sm:$0xff]  ;;  %v5446_v21 = vld [vmem:[%s19187_s9 + $0x298] sm:$0xff] }
 0x54c   :  { %5532 = vmatprep.subr.mxu1 %v5456_v42  ;;  %v5045_v14 = vadd.f32 %v8369_v10, %v4975_v9  ;;  %v8439_v54 = vadd.f32 %v8438_v15, %v8437_v61  ;;  %v5382_v42 = vld [vmem:[%s19187_s9 + $0x98] sm:$0xff]  ;;  %v5445_v62 = vld [vmem:[%s19187_s9 + $0x290] sm:$0xff]  ;;  %v5439_v9 = vld [vmem:[%s19187_s9 + $0x260] sm:$0xff] }
 0x54d   :  { %5533 = vmatpush2.msra.mxu1 %v5455_v12  ;;  %v5381_v12 = vld [vmem:[%s19187_s9 + $0x90] sm:$0xff]  ;;  %v5436_v10 = vld [vmem:[%s19187_s9 + $0x248] sm:$0xff] }
 0x54e   :  { %5534 = vmatprep.subr.mxu1 %v5452_v44  ;;  %v5378_v44 = vld [vmem:[%s19187_s9 + $0x78] sm:$0xff]  ;;  %v5441_v61 = vld [vmem:[%s19187_s9 + $0x270] sm:$0xff] }
 0x54f   :  { %5535 = vmatpush2.msra.mxu1 %v5451_v19  ;;  %v5377_v19 = vld [vmem:[%s19187_s9 + $0x70] sm:$0xff] }
 0x550   :  { %5536 = vmatprep.subr.mxu1 %v5448_v55  ;;  %v5374_v55 = vld [vmem:[%s19187_s9 + $0x58] sm:$0xff]  ;;  %v5437_v15 = vld [vmem:[%s19187_s9 + $0x250] sm:$0xff] }
 0x551   :  { %5537 = vmatpush2.msra.mxu1 %v5447_v2  ;;  %v5373_v2 = vld [vmem:[%s19187_s9 + $0x50] sm:$0xff] }
 0x552   :  { %5538 = vmatprep.subr.mxu1 %v5444_v33  ;;  %v5370_v33 = vld [vmem:[%s19187_s9 + $0x38] sm:$0xff] }
 0x553   :  { %5539 = vmatpush2.msra.mxu1 %v5443_v3  ;;  %v5369_v3 = vld [vmem:[%s19187_s9 + $0x30] sm:$0xff] }
 0x554   :  { %5540 = vmatprep.subr.mxu1 %v5440_v38  ;;  %v6071_v38 = vld [vmem:[%s19189_s11 + $0xdc8] sm:$0xff] }
 0x555   :  { %5541 = vmatpush2.msra.mxu1 %v5439_v9  ;;  %v6070_v9 = vld [vmem:[%s19189_s11 + $0xdc0] sm:$0xff] }
 0x556   :  { %5542 = vmatprep.subr.mxu1 %v5436_v10  ;;  %v6060_v10 = vld [vmem:[%s19189_s11 + $0xd70] sm:$0xff] }
 0x565   :  { %v8402_v63 = vpop.f32.mrf.mxu1 }
 0x567   :  { %v8403_v6 = vpop.f32.mrf.mxu1 }
 0x568   :  { %v8404_v1 = vadd.f32 %v8403_v6, %v8402_v63  ;;  %v5449_v63 = vld [vmem:[%s19187_s9 + $0x2b0] sm:$0xff]  ;;  %v5442_v6 = vld [vmem:[%s19187_s9 + $0x278] sm:$0xff] }
 0x56a   :  { %v5115_v18 = vadd.f32 %v8404_v1, %v5045_v14  ;;  %v5438_v1 = vld [vmem:[%s19187_s9 + $0x258] sm:$0xff]  ;;  %v5435_v14 = vld [vmem:[%s19187_s9 + $0x240] sm:$0xff] }
 0x56b   :  { %5543 = vmatpush2.msra.mxu1 %v5435_v14  ;;  %v6059_v14 = vld [vmem:[%s19189_s11 + $0xd68] sm:$0xff] }
 0x56c   :  { %v5185_v20 = vadd.f32 %v8439_v54, %v5115_v18  ;;  %v5432_v18 = vld [vmem:[%s19187_s9 + $0x228] sm:$0xff]  ;;  %v5431_v54 = vld [vmem:[%s19187_s9 + $0x220] sm:$0xff] }
 0x56d   :  { %5544 = vmatprep.subr.mxu1 %v5432_v18  ;;  %v6049_v18 = vld [vmem:[%s19189_s11 + $0xd18] sm:$0xff] }
 0x56e   :  { %5545 = vmatpush2.msra.mxu1 %v5431_v54  ;;  %v6048_v54 = vld [vmem:[%s19189_s11 + $0xd10] sm:$0xff] }
 0x5ec   :  { %v8472_v31 = vpop.f32.mrf.mxu1 }
 0x5ee   :  { %v8473_v47 = vpop.f32.mrf.mxu1 }
 0x5ef   :  { %v8474_v59 = vadd.f32 %v8473_v47, %v8472_v31  ;;  %v5434_v31 = vld [vmem:[%s19187_s9 + $0x238] sm:$0xff]  ;;  %v5433_v47 = vld [vmem:[%s19187_s9 + $0x230] sm:$0xff] }
 0x5f1   :  { %v5255_v53 = vadd.f32 %v8474_v59, %v5185_v20  ;;  %v5428_v20 = vld [vmem:[%s19187_s9 + $0x208] sm:$0xff]  ;;  %v5430_v59 = vld [vmem:[%s19187_s9 + $0x218] sm:$0xff] }
 0x5f2   :  { %5546 = vmatprep.subr.mxu1 %v5428_v20  ;;  %v6038_v20 = vld [vmem:[%s19189_s11 + $0xcc0] sm:$0xff] }
 0x5f3   :  { %8250 = vmatmul.mubr.msk.f32.vlgmr.msra.gmra.mxu0 %vm5286_vm1, %v5255_v53  ;;  %v5427_v53 = vld [vmem:[%s19187_s9 + $0x200] sm:$0xff] }
 0x5f4   :  { %5556 = vmatpush1.msra.mxu0 %v5425_v23  ;;  %v5429_v23 = vld [vmem:[%s19187_s9 + $0x210] sm:$0xff]  ;;  %5547 = vmatpush2.msra.mxu1 %v5427_v53  ;;  %v6037_v53 = vld [vmem:[%s19189_s11 + $0xcb8] sm:$0xff] }
 0x5f5   :  { %5557 = vmatprep.subr.mxu0 %v5422_v26  ;;  %v5796_v26 = vld [vmem:[%s19189_s11 + $0x530] sm:$0xff] }
 0x5f6   :  { %5558 = vmatpush1.msra.mxu0 %v5421_v36  ;;  %6386 = vmatprep.subr.mxu1 %v5796_v26  ;;  %v6148_v36 = vld [vmem:[%s19189_s11 + $0x1030] sm:$0xff]  ;;  %v6027_v26 = vld [vmem:[%s19189_s11 + $0xc68] sm:$0xff] }
 0x5f7   :  { %5559 = vmatprep.subr.mxu0 %v5418_v4  ;;  %v5274_v4 = vld [vmem:[%s19190_s8] sm:$0x3] }
 0x5f8   :  { %5560 = vmatpush1.msra.mxu0 %v5417_v17  ;;  %v5279_v17 = vrot.slane %v5274_v4, %v9782_v49 }
 0x5f9   :  { %5561 = vmatprep.subr.mxu0 %v5414_v27  ;;  %v5283_v27 = vrot.slane %v5274_v4, %v9790_v51  ;;  %v6026_v4 = vld [vmem:[%s19189_s11 + $0xc60] sm:$0xff] }
 0x5fa   :  { %5562 = vmatpush1.msra.mxu0 %v5413_v34 }
 0x5fb   :  { %5563 = vmatprep.subr.mxu0 %v5410_v29 }
 0x5fc   :  { %5564 = vmatpush1.msra.mxu0 %v5409_v40 }
 0x5fd   :  { %5565 = vmatprep.subr.mxu0 %v5406_v50 }
 0x5fe   :  { %5566 = vmatpush1.msra.mxu0 %v5405_v32 }
 0x5ff   :  { %5567 = vmatprep.subr.mxu0 %v5402_v7 }
 0x600   :  { %5568 = vmatpush1.msra.mxu0 %v5401_v25  ;;  %v5795_v25 = vld [vmem:[%s19189_s11 + $0x528] sm:$0xff] }
 0x601   :  { %5569 = vmatprep.subr.mxu0 %v5398_v0  ;;  %v6147_v0 = vld [vmem:[%s19189_s11 + $0x1028] sm:$0xff] }
 0x602   :  { %5570 = vmatpush1.msra.mxu0 %v5397_v41  ;;  %v5785_v41 = vld [vmem:[%s19189_s11 + $0x4d8] sm:$0xff] }
 0x603   :  { %5571 = vmatprep.subr.mxu0 %v5394_v24  ;;  %v6137_v24 = vld [vmem:[%s19189_s11 + $0xfd8] sm:$0xff] }
 0x604   :  { %5572 = vmatpush1.msra.mxu0 %v5393_v39  ;;  %v5784_v39 = vld [vmem:[%s19189_s11 + $0x4d0] sm:$0xff] }
 0x605   :  { %5573 = vmatprep.subr.mxu0 %v5390_v43  ;;  %v6136_v43 = vld [vmem:[%s19189_s11 + $0xfd0] sm:$0xff] }
 0x606   :  { %5574 = vmatpush1.msra.mxu0 %v5389_v30  ;;  %v5774_v30 = vld [vmem:[%s19189_s11 + $0x480] sm:$0xff] }
 0x607   :  { %5575 = vmatprep.subr.mxu0 %v5386_v5  ;;  %v6126_v5 = vld [vmem:[%s19189_s11 + $0xf80] sm:$0xff] }
 0x608   :  { %5576 = vmatpush1.msra.mxu0 %v5385_v22  ;;  %v5773_v22 = vld [vmem:[%s19189_s11 + $0x478] sm:$0xff] }
 0x609   :  { %5577 = vmatprep.subr.mxu0 %v5382_v42  ;;  %v6125_v42 = vld [vmem:[%s19189_s11 + $0xf78] sm:$0xff] }
 0x60a   :  { %5578 = vmatpush1.msra.mxu0 %v5381_v12  ;;  %v5763_v12 = vld [vmem:[%s19189_s11 + $0x428] sm:$0xff] }
 0x60b   :  { %5579 = vmatprep.subr.mxu0 %v5378_v44  ;;  %v6115_v44 = vld [vmem:[%s19189_s11 + $0xf28] sm:$0xff] }
 0x60c   :  { %5580 = vmatpush1.msra.mxu0 %v5377_v19  ;;  %v5762_v19 = vld [vmem:[%s19189_s11 + $0x420] sm:$0xff] }
 0x60d   :  { %5581 = vmatprep.subr.mxu0 %v5374_v55  ;;  %v6114_v55 = vld [vmem:[%s19189_s11 + $0xf20] sm:$0xff] }
 0x60e   :  { %5582 = vmatpush1.msra.mxu0 %v5373_v2  ;;  %v5752_v2 = vld [vmem:[%s19189_s11 + $0x3d0] sm:$0xff] }
 0x60f   :  { %5583 = vmatprep.subr.mxu0 %v5370_v33  ;;  %v6104_v33 = vld [vmem:[%s19189_s11 + $0xed0] sm:$0xff] }
 0x610   :  { %5584 = vmatpush1.msra.mxu0 %v5369_v3  ;;  %v5751_v3 = vld [vmem:[%s19189_s11 + $0x3c8] sm:$0xff] }
 0x611   :  { %5585 = vmatprep.subr.mxu0 %v5366_v56  ;;  %v6103_v56 = vld [vmem:[%s19189_s11 + $0xec8] sm:$0xff] }
 0x612   :  { %5586 = vmatpush1.msra.mxu0 %v5365_v28  ;;  %v5741_v28 = vld [vmem:[%s19189_s11 + $0x378] sm:$0xff] }
 0x613   :  { %5603 = vmatprep.subr.mxu0 %v5458_v46  ;;  %v6093_v46 = vld [vmem:[%s19189_s11 + $0xe78] sm:$0xff] }
 0x614   :  { %5604 = vmatpush2.msra.mxu0 %v5457_v57  ;;  %v5740_v57 = vld [vmem:[%s19189_s11 + $0x370] sm:$0xff] }
 0x615   :  { %5605 = vmatprep.subr.mxu0 %v5454_v45  ;;  %v6092_v45 = vld [vmem:[%s19189_s11 + $0xe70] sm:$0xff] }
 0x616   :  { %5606 = vmatpush2.msra.mxu0 %v5453_v58  ;;  %v5730_v58 = vld [vmem:[%s19189_s11 + $0x320] sm:$0xff] }
 0x617   :  { %5607 = vmatprep.subr.mxu0 %v5450_v60  ;;  %v6082_v60 = vld [vmem:[%s19189_s11 + $0xe20] sm:$0xff] }
 0x618   :  { %5608 = vmatpush2.msra.mxu0 %v5449_v63  ;;  %v5729_v63 = vld [vmem:[%s19189_s11 + $0x318] sm:$0xff] }
 0x619   :  { %5609 = vmatprep.subr.mxu0 %v5446_v21  ;;  %v6081_v21 = vld [vmem:[%s19189_s11 + $0xe18] sm:$0xff] }
 0x61a   :  { %5610 = vmatpush2.msra.mxu0 %v5445_v62  ;;  %v5719_v62 = vld [vmem:[%s19189_s11 + $0x2c8] sm:$0xff] }
 0x61b   :  { %5611 = vmatprep.subr.mxu0 %v5442_v6  ;;  %v5718_v6 = vld [vmem:[%s19189_s11 + $0x2c0] sm:$0xff] }
 0x61c   :  { %5612 = vmatpush2.msra.mxu0 %v5441_v61  ;;  %v5708_v61 = vld [vmem:[%s19189_s11 + $0x270] sm:$0xff] }
 0x61d   :  { %5613 = vmatprep.subr.mxu0 %v5438_v1  ;;  %v5707_v1 = vld [vmem:[%s19189_s11 + $0x268] sm:$0xff] }
 0x61e   :  { %5614 = vmatpush2.msra.mxu0 %v5437_v15  ;;  %v5697_v15 = vld [vmem:[%s19189_s11 + $0x218] sm:$0xff] }
 0x61f   :  { %5615 = vmatprep.subr.mxu0 %v5434_v31  ;;  %v5696_v31 = vld [vmem:[%s19189_s11 + $0x210] sm:$0xff] }
 0x620   :  { %5616 = vmatpush2.msra.mxu0 %v5433_v47  ;;  %v5686_v47 = vld [vmem:[%s19189_s11 + $0x1c0] sm:$0xff] }
 0x621   :  { %5617 = vmatprep.subr.mxu0 %v5430_v59  ;;  %v5685_v59 = vld [vmem:[%s19189_s11 + $0x1b8] sm:$0xff] }
 0x622   :  { %5618 = vmatpush2.msra.mxu0 %v5429_v23  ;;  %v5675_v23 = vld [vmem:[%s19189_s11 + $0x168] sm:$0xff] }
 0x623   :  { %6457 = vmatprep.subr.mxu0 %v6148_v36  ;;  %v5674_v36 = vld [vmem:[%s19189_s11 + $0x160] sm:$0xff] }
 0x6b3   :  { %v5356_v34 = vpop.f32.mrf.mxu0 }
 0x6b4   :  { %v5357_v29 = vadd.f32 %v5356_v34, %v5279_v17  ;;  %v5664_v17 = vld [vmem:[%s19189_s11 + $0x110] sm:$0xff]  ;;  %v5663_v34 = vld [vmem:[%s19189_s11 + $0x108] sm:$0xff] }
 0x6b5   :  { %v5358_v40 = vpop.f32.mrf.mxu0 }
 0x6b6   :  { %v5359_v50 = vadd.f32 %v5358_v40, %v5283_v27  ;;  %v5361_v7 = vmax.f32 %v5357_v29, 0.0  ;;  %v6016_v27 = vld [vmem:[%s19189_s11 + $0xc10] sm:$0xff]  ;;  %v6015_v29 = vld [vmem:[%s19189_s11 + $0xc08] sm:$0xff]  ;;  %v5653_v40 = vld [vmem:[%s19189_s11 + $0xb8] sm:$0xff] }
 0x6b8   :  { %v5362_v32 = vmax.f32 %v5359_v50, 0.0  ;;  %v6005_v50 = vld [vmem:[%s19189_s11 + $0xbb8] sm:$0xff] }
 0x6ba   :  { %8251 = vmatprep.mubr.msk.f32.mxu1 %vm5286_vm1, %v5362_v32  ;;  %8252 = vmatprep.mubr.msk.f32.mxu0 %vm5286_vm1, %v5362_v32  ;;  %v5652_v32 = vld [vmem:[%s19189_s11 + $0xb0] sm:$0xff] }
 0x6bb   :  { %5549 = vmatmul.mubr.f32.vlgmr.msra.gmra.mxu1 %v5361_v7  ;;  %5620 = vmatmul.mubr.f32.vlgmr.msra.gmra.mxu0 %v5361_v7  ;;  %v6004_v7 = vld [vmem:[%s19189_s11 + $0xbb0] sm:$0xff] }
 0x6bc   :  { %6387 = vmatpush1.msra.mxu1 %v5795_v25  ;;  %6458 = vmatpush1.msra.mxu0 %v6147_v0  ;;  %v5642_v25 = vld [vmem:[%s19189_s11 + $0x60] sm:$0xff] }
 0x6bd   :  { %6388 = vmatprep.subr.mxu1 %v5785_v41  ;;  %6459 = vmatprep.subr.mxu0 %v6137_v24  ;;  %v5994_v0 = vld [vmem:[%s19189_s11 + $0xb60] sm:$0xff]  ;;  %v5641_v41 = vld [vmem:[%s19189_s11 + $0x58] sm:$0xff] }
 0x6be   :  { %6389 = vmatpush1.msra.mxu1 %v5784_v39  ;;  %6460 = vmatpush1.msra.mxu0 %v6136_v43  ;;  %v5993_v24 = vld [vmem:[%s19189_s11 + $0xb58] sm:$0xff]  ;;  %v5631_v39 = vld [vmem:[%s19189_s11 + $0x8] sm:$0xff] }
 0x6bf   :  { %6390 = vmatprep.subr.mxu1 %v5774_v30  ;;  %6461 = vmatprep.subr.mxu0 %v6126_v5  ;;  %v5983_v43 = vld [vmem:[%s19189_s11 + $0xb08] sm:$0xff]  ;;  %v5630_v30 = vld [vmem:[%s19189_s11] sm:$0xff] }
 0x6c0   :  { %6391 = vmatpush1.msra.mxu1 %v5773_v22  ;;  %6462 = vmatpush1.msra.mxu0 %v6125_v42  ;;  %v5982_v5 = vld [vmem:[%s19189_s11 + $0xb00] sm:$0xff]  ;;  %v5972_v22 = vld [vmem:[%s19189_s11 + $0xab0] sm:$0xff]  ;;  %v6313_v42 = vld [vmem:[%s19189_s11 + $0x1558] sm:$0xff] }
 0x6c1   :  { %6392 = vmatprep.subr.mxu1 %v5763_v12  ;;  %6463 = vmatprep.subr.mxu0 %v6115_v44  ;;  %v5971_v12 = vld [vmem:[%s19189_s11 + $0xaa8] sm:$0xff]  ;;  %v6312_v44 = vld [vmem:[%s19189_s11 + $0x1550] sm:$0xff] }
 0x6c2   :  { %6393 = vmatpush1.msra.mxu1 %v5762_v19  ;;  %6464 = vmatpush1.msra.mxu0 %v6114_v55  ;;  %v5961_v19 = vld [vmem:[%s19189_s11 + $0xa58] sm:$0xff]  ;;  %v6302_v55 = vld [vmem:[%s19189_s11 + $0x1500] sm:$0xff] }
 0x6c3   :  { %6394 = vmatprep.subr.mxu1 %v5752_v2  ;;  %6465 = vmatprep.subr.mxu0 %v6104_v33  ;;  %v5960_v2 = vld [vmem:[%s19189_s11 + $0xa50] sm:$0xff]  ;;  %v6301_v33 = vld [vmem:[%s19189_s11 + $0x14f8] sm:$0xff] }
 0x6c4   :  { %6395 = vmatpush1.msra.mxu1 %v5751_v3  ;;  %6466 = vmatpush1.msra.mxu0 %v6103_v56  ;;  %v5950_v3 = vld [vmem:[%s19189_s11 + $0xa00] sm:$0xff]  ;;  %v6291_v56 = vld [vmem:[%s19189_s11 + $0x14a8] sm:$0xff] }
 0x6c5   :  { %6396 = vmatprep.subr.mxu1 %v5741_v28  ;;  %6467 = vmatprep.subr.mxu0 %v6093_v46  ;;  %v5949_v28 = vld [vmem:[%s19189_s11 + $0x9f8] sm:$0xff]  ;;  %v6290_v46 = vld [vmem:[%s19189_s11 + $0x14a0] sm:$0xff] }
 0x6c6   :  { %6397 = vmatpush1.msra.mxu1 %v5740_v57  ;;  %6468 = vmatpush1.msra.mxu0 %v6092_v45  ;;  %v5939_v57 = vld [vmem:[%s19189_s11 + $0x9a8] sm:$0xff]  ;;  %v6280_v45 = vld [vmem:[%s19189_s11 + $0x1450] sm:$0xff] }
 0x6c7   :  { %6398 = vmatprep.subr.mxu1 %v5730_v58  ;;  %6469 = vmatprep.subr.mxu0 %v6082_v60  ;;  %v5938_v58 = vld [vmem:[%s19189_s11 + $0x9a0] sm:$0xff]  ;;  %v6279_v60 = vld [vmem:[%s19189_s11 + $0x1448] sm:$0xff] }
 0x6c8   :  { %6399 = vmatpush1.msra.mxu1 %v5729_v63  ;;  %6470 = vmatpush1.msra.mxu0 %v6081_v21  ;;  %v5928_v63 = vld [vmem:[%s19189_s11 + $0x950] sm:$0xff]  ;;  %v6269_v21 = vld [vmem:[%s19189_s11 + $0x13f8] sm:$0xff] }
 0x6c9   :  { %6400 = vmatprep.subr.mxu1 %v5719_v62  ;;  %6471 = vmatprep.subr.mxu0 %v6071_v38  ;;  %v5927_v62 = vld [vmem:[%s19189_s11 + $0x948] sm:$0xff]  ;;  %v6268_v38 = vld [vmem:[%s19189_s11 + $0x13f0] sm:$0xff] }
 0x6ca   :  { %6401 = vmatpush1.msra.mxu1 %v5718_v6  ;;  %6472 = vmatpush1.msra.mxu0 %v6070_v9  ;;  %v5917_v6 = vld [vmem:[%s19189_s11 + $0x8f8] sm:$0xff]  ;;  %v6258_v9 = vld [vmem:[%s19189_s11 + $0x13a0] sm:$0xff] }
 0x6cb   :  { %6402 = vmatprep.subr.mxu1 %v5708_v61  ;;  %6473 = vmatprep.subr.mxu0 %v6060_v10  ;;  %v5916_v61 = vld [vmem:[%s19189_s11 + $0x8f0] sm:$0xff]  ;;  %v6257_v10 = vld [vmem:[%s19189_s11 + $0x1398] sm:$0xff] }
 0x6cc   :  { %6403 = vmatpush1.msra.mxu1 %v5707_v1  ;;  %6474 = vmatpush1.msra.mxu0 %v6059_v14  ;;  %v5906_v1 = vld [vmem:[%s19189_s11 + $0x8a0] sm:$0xff]  ;;  %v6247_v14 = vld [vmem:[%s19189_s11 + $0x1348] sm:$0xff] }
 0x6cd   :  { %6404 = vmatprep.subr.mxu1 %v5697_v15  ;;  %6475 = vmatprep.subr.mxu0 %v6049_v18  ;;  %v5905_v15 = vld [vmem:[%s19189_s11 + $0x898] sm:$0xff]  ;;  %v6246_v18 = vld [vmem:[%s19189_s11 + $0x1340] sm:$0xff] }
 0x6ce   :  { %6405 = vmatpush1.msra.mxu1 %v5696_v31  ;;  %6476 = vmatpush1.msra.mxu0 %v6048_v54  ;;  %v5895_v31 = vld [vmem:[%s19189_s11 + $0x848] sm:$0xff]  ;;  %v6236_v54 = vld [vmem:[%s19189_s11 + $0x12f0] sm:$0xff] }
 0x6cf   :  { %6406 = vmatprep.subr.mxu1 %v5686_v47  ;;  %6477 = vmatprep.subr.mxu0 %v6038_v20  ;;  %v5894_v47 = vld [vmem:[%s19189_s11 + $0x840] sm:$0xff]  ;;  %v6235_v20 = vld [vmem:[%s19189_s11 + $0x12e8] sm:$0xff] }
 0x6d0   :  { %6407 = vmatpush1.msra.mxu1 %v5685_v59  ;;  %6478 = vmatpush1.msra.mxu0 %v6037_v53  ;;  %v5884_v59 = vld [vmem:[%s19189_s11 + $0x7f0] sm:$0xff]  ;;  %v6225_v53 = vld [vmem:[%s19189_s11 + $0x1298] sm:$0xff] }
 0x6d1   :  { %6408 = vmatprep.subr.mxu1 %v5675_v23  ;;  %6479 = vmatprep.subr.mxu0 %v6027_v26  ;;  %v5883_v23 = vld [vmem:[%s19189_s11 + $0x7e8] sm:$0xff]  ;;  %v6224_v26 = vld [vmem:[%s19189_s11 + $0x1290] sm:$0xff] }
 0x6d2   :  { %6409 = vmatpush1.msra.mxu1 %v5674_v36  ;;  %6480 = vmatpush1.msra.mxu0 %v6026_v4  ;;  %v5873_v36 = vld [vmem:[%s19189_s11 + $0x798] sm:$0xff]  ;;  %v6214_v4 = vld [vmem:[%s19189_s11 + $0x1240] sm:$0xff] }
 0x6d3   :  { %6410 = vmatprep.subr.mxu1 %v5664_v17  ;;  %6481 = vmatprep.subr.mxu0 %v6016_v27  ;;  %v5872_v17 = vld [vmem:[%s19189_s11 + $0x790] sm:$0xff]  ;;  %v6213_v27 = vld [vmem:[%s19189_s11 + $0x1238] sm:$0xff] }
 0x6d4   :  { %6411 = vmatpush1.msra.mxu1 %v5663_v34  ;;  %6482 = vmatpush1.msra.mxu0 %v6015_v29  ;;  %v5862_v34 = vld [vmem:[%s19189_s11 + $0x740] sm:$0xff]  ;;  %v6203_v29 = vld [vmem:[%s19189_s11 + $0x11e8] sm:$0xff] }
 0x6d5   :  { %6412 = vmatprep.subr.mxu1 %v5653_v40  ;;  %6483 = vmatprep.subr.mxu0 %v6005_v50  ;;  %v5861_v40 = vld [vmem:[%s19189_s11 + $0x738] sm:$0xff]  ;;  %v6202_v50 = vld [vmem:[%s19189_s11 + $0x11e0] sm:$0xff] }
 0x6d6   :  { %6413 = vmatpush1.msra.mxu1 %v5652_v32  ;;  %6484 = vmatpush1.msra.mxu0 %v6004_v7  ;;  %v5851_v32 = vld [vmem:[%s19189_s11 + $0x6e8] sm:$0xff]  ;;  %v6192_v7 = vld [vmem:[%s19189_s11 + $0x1190] sm:$0xff] }
 0x6d7   :  { %6414 = vmatprep.subr.mxu1 %v5642_v25  ;;  %6485 = vmatprep.subr.mxu0 %v5994_v0  ;;  %v5850_v25 = vld [vmem:[%s19189_s11 + $0x6e0] sm:$0xff]  ;;  %v5840_v0 = vld [vmem:[%s19189_s11 + $0x690] sm:$0xff] }
 0x6d8   :  { %6415 = vmatpush1.msra.mxu1 %v5641_v41  ;;  %6486 = vmatpush1.msra.mxu0 %v5993_v24  ;;  %v5839_v41 = vld [vmem:[%s19189_s11 + $0x688] sm:$0xff] }
 0x6d9   :  { %6416 = vmatprep.subr.mxu1 %v5631_v39  ;;  %6487 = vmatprep.subr.mxu0 %v5983_v43  ;;  %v6191_v24 = vld [vmem:[%s19189_s11 + $0x1188] sm:$0xff]  ;;  %v5829_v39 = vld [vmem:[%s19189_s11 + $0x638] sm:$0xff] }
 0x6da   :  { %6417 = vmatpush1.msra.mxu1 %v5630_v30  ;;  %6488 = vmatpush1.msra.mxu0 %v5982_v5  ;;  %v6181_v43 = vld [vmem:[%s19189_s11 + $0x1138] sm:$0xff]  ;;  %v5828_v30 = vld [vmem:[%s19189_s11 + $0x630] sm:$0xff] }
 0x6db   :  { %6418 = vmatprep.subr.mxu1 %v5972_v22  ;;  %6491 = vmatprep.subr.mxu0 %v6313_v42  ;;  %v6180_v5 = vld [vmem:[%s19189_s11 + $0x1130] sm:$0xff]  ;;  %v5818_v22 = vld [vmem:[%s19189_s11 + $0x5e0] sm:$0xff] }
 0x6dc   :  { %6419 = vmatpush2.msra.mxu1 %v5971_v12  ;;  %6492 = vmatpush2.msra.mxu0 %v6312_v44  ;;  %v6170_v42 = vld [vmem:[%s19189_s11 + $0x10e0] sm:$0xff]  ;;  %v5817_v12 = vld [vmem:[%s19189_s11 + $0x5d8] sm:$0xff] }
 0x6dd   :  { %6420 = vmatprep.subr.mxu1 %v5961_v19  ;;  %6493 = vmatprep.subr.mxu0 %v6302_v55  ;;  %v6169_v44 = vld [vmem:[%s19189_s11 + $0x10d8] sm:$0xff]  ;;  %v5807_v19 = vld [vmem:[%s19189_s11 + $0x588] sm:$0xff] }
 0x6de   :  { %6421 = vmatpush2.msra.mxu1 %v5960_v2  ;;  %6494 = vmatpush2.msra.mxu0 %v6301_v33  ;;  %v6159_v55 = vld [vmem:[%s19189_s11 + $0x1088] sm:$0xff]  ;;  %v5806_v2 = vld [vmem:[%s19189_s11 + $0x580] sm:$0xff] }
 0x6df   :  { %6422 = vmatprep.subr.mxu1 %v5950_v3  ;;  %6495 = vmatprep.subr.mxu0 %v6291_v56  ;;  %v6158_v33 = vld [vmem:[%s19189_s11 + $0x1080] sm:$0xff] }
 0x6e0   :  { %6423 = vmatpush2.msra.mxu1 %v5949_v28  ;;  %6496 = vmatpush2.msra.mxu0 %v6290_v46  ;;  %v5798_v3 = vld [vmem:[%s19189_s11 + $0x540] sm:$0xff] }
 0x6e1   :  { %6424 = vmatprep.subr.mxu1 %v5939_v57  ;;  %6497 = vmatprep.subr.mxu0 %v6280_v45  ;;  %v6150_v56 = vld [vmem:[%s19189_s11 + $0x1040] sm:$0xff] }
 0x6e2   :  { %6425 = vmatpush2.msra.mxu1 %v5938_v58  ;;  %6498 = vmatpush2.msra.mxu0 %v6279_v60  ;;  %v5459_v28 = vld [vmem:[%s19191_s10] sm:$0xf] }
 0x6e3   :  { %6426 = vmatprep.subr.mxu1 %v5928_v63  ;;  %6499 = vmatprep.subr.mxu0 %v6269_v21  ;;  %v5464_v46 = vrot.slane %v5459_v28, %v9782_v49  ;;  %v5472_v57 = vrot.slane %v5459_v28, %v9779_v48  ;;  %v5468_v45 = vrot.slane %v5459_v28, %v9790_v51 }
 0x6e4   :  { %6427 = vmatpush2.msra.mxu1 %v5927_v62  ;;  %6500 = vmatpush2.msra.mxu0 %v6268_v38  ;;  %v5476_v58 = vrot.slane %v5459_v28, %v9793_v52  ;;  %v6050_v28 = vld [vmem:[%s19189_s11 + $0xd20] sm:$0xff] }
 0x6e5   :  { %6428 = vmatprep.subr.mxu1 %v5917_v6  ;;  %6501 = vmatprep.subr.mxu0 %v6258_v9 }
 0x6e6   :  { %6429 = vmatpush2.msra.mxu1 %v5916_v61  ;;  %6502 = vmatpush2.msra.mxu0 %v6257_v10 }
 0x6e7   :  { %6430 = vmatprep.subr.mxu1 %v5906_v1  ;;  %6503 = vmatprep.subr.mxu0 %v6247_v14 }
 0x6e8   :  { %6431 = vmatpush2.msra.mxu1 %v5905_v15  ;;  %6504 = vmatpush2.msra.mxu0 %v6246_v18  ;;  %v5797_v18 = vld [vmem:[%s19189_s11 + $0x538] sm:$0xff] }
 0x6e9   :  { %6432 = vmatprep.subr.mxu1 %v5895_v31  ;;  %6505 = vmatprep.subr.mxu0 %v6236_v54  ;;  %v6149_v31 = vld [vmem:[%s19189_s11 + $0x1038] sm:$0xff]  ;;  %v5787_v54 = vld [vmem:[%s19189_s11 + $0x4e8] sm:$0xff] }
 0x6ea   :  { %6433 = vmatpush2.msra.mxu1 %v5894_v47  ;;  %6506 = vmatpush2.msra.mxu0 %v6235_v20  ;;  %v6139_v47 = vld [vmem:[%s19189_s11 + $0xfe8] sm:$0xff]  ;;  %v5786_v20 = vld [vmem:[%s19189_s11 + $0x4e0] sm:$0xff] }
 0x6eb   :  { %6434 = vmatprep.subr.mxu1 %v5884_v59  ;;  %6507 = vmatprep.subr.mxu0 %v6225_v53  ;;  %v6138_v59 = vld [vmem:[%s19189_s11 + $0xfe0] sm:$0xff]  ;;  %v5776_v53 = vld [vmem:[%s19189_s11 + $0x490] sm:$0xff] }
 0x6ec   :  { %6435 = vmatpush2.msra.mxu1 %v5883_v23  ;;  %6508 = vmatpush2.msra.mxu0 %v6224_v26  ;;  %v6128_v23 = vld [vmem:[%s19189_s11 + $0xf90] sm:$0xff]  ;;  %v5775_v26 = vld [vmem:[%s19189_s11 + $0x488] sm:$0xff] }
 0x6ed   :  { %6436 = vmatprep.subr.mxu1 %v5873_v36  ;;  %6509 = vmatprep.subr.mxu0 %v6214_v4  ;;  %v6127_v36 = vld [vmem:[%s19189_s11 + $0xf88] sm:$0xff]  ;;  %v5765_v4 = vld [vmem:[%s19189_s11 + $0x438] sm:$0xff] }
 0x6ee   :  { %6437 = vmatpush2.msra.mxu1 %v5872_v17  ;;  %6510 = vmatpush2.msra.mxu0 %v6213_v27  ;;  %v6117_v17 = vld [vmem:[%s19189_s11 + $0xf38] sm:$0xff]  ;;  %v5764_v27 = vld [vmem:[%s19189_s11 + $0x430] sm:$0xff] }
 0x6ef   :  { %6438 = vmatprep.subr.mxu1 %v5862_v34  ;;  %6511 = vmatprep.subr.mxu0 %v6203_v29  ;;  %v6116_v34 = vld [vmem:[%s19189_s11 + $0xf30] sm:$0xff]  ;;  %v5754_v29 = vld [vmem:[%s19189_s11 + $0x3e0] sm:$0xff] }
 0x6f0   :  { %6439 = vmatpush2.msra.mxu1 %v5861_v40  ;;  %6512 = vmatpush2.msra.mxu0 %v6202_v50  ;;  %v6106_v40 = vld [vmem:[%s19189_s11 + $0xee0] sm:$0xff]  ;;  %v5753_v50 = vld [vmem:[%s19189_s11 + $0x3d8] sm:$0xff] }
 0x6f1   :  { %6440 = vmatprep.subr.mxu1 %v5851_v32  ;;  %6513 = vmatprep.subr.mxu0 %v6192_v7  ;;  %v6105_v32 = vld [vmem:[%s19189_s11 + $0xed8] sm:$0xff]  ;;  %v5743_v7 = vld [vmem:[%s19189_s11 + $0x388] sm:$0xff] }
 0x6f2   :  { %6441 = vmatpush2.msra.mxu1 %v5850_v25  ;;  %6514 = vmatpush2.msra.mxu0 %v6191_v24  ;;  %v6095_v25 = vld [vmem:[%s19189_s11 + $0xe88] sm:$0xff]  ;;  %v5732_v24 = vld [vmem:[%s19189_s11 + $0x330] sm:$0xff] }
 0x6f3   :  { %6442 = vmatprep.subr.mxu1 %v5840_v0  ;;  %6515 = vmatprep.subr.mxu0 %v6181_v43  ;;  %v5742_v0 = vld [vmem:[%s19189_s11 + $0x380] sm:$0xff]  ;;  %v5731_v43 = vld [vmem:[%s19189_s11 + $0x328] sm:$0xff] }
 0x6f4   :  { %6443 = vmatpush2.msra.mxu1 %v5839_v41  ;;  %6516 = vmatpush2.msra.mxu0 %v6180_v5  ;;  %v6094_v41 = vld [vmem:[%s19189_s11 + $0xe80] sm:$0xff]  ;;  %v5721_v5 = vld [vmem:[%s19189_s11 + $0x2d8] sm:$0xff] }
 0x6f5   :  { %6444 = vmatprep.subr.mxu1 %v5829_v39  ;;  %6517 = vmatprep.subr.mxu0 %v6170_v42  ;;  %v6084_v39 = vld [vmem:[%s19189_s11 + $0xe30] sm:$0xff] }
 0x6f6   :  { %6445 = vmatpush2.msra.mxu1 %v5828_v30  ;;  %6518 = vmatpush2.msra.mxu0 %v6169_v44  ;;  %v6083_v30 = vld [vmem:[%s19189_s11 + $0xe28] sm:$0xff]  ;;  %v5720_v42 = vld [vmem:[%s19189_s11 + $0x2d0] sm:$0xff]  ;;  %v5710_v44 = vld [vmem:[%s19189_s11 + $0x280] sm:$0xff] }
 0x6f7   :  { %6446 = vmatprep.subr.mxu1 %v5818_v22  ;;  %6519 = vmatprep.subr.mxu0 %v6159_v55  ;;  %v6073_v22 = vld [vmem:[%s19189_s11 + $0xdd8] sm:$0xff] }
 0x6f8   :  { %6447 = vmatpush2.msra.mxu1 %v5817_v12  ;;  %6520 = vmatpush2.msra.mxu0 %v6158_v33  ;;  %v6072_v12 = vld [vmem:[%s19189_s11 + $0xdd0] sm:$0xff]  ;;  %v5709_v55 = vld [vmem:[%s19189_s11 + $0x278] sm:$0xff]  ;;  %v5699_v33 = vld [vmem:[%s19189_s11 + $0x228] sm:$0xff] }
 0x6f9   :  { %6448 = vmatprep.subr.mxu1 %v5807_v19  ;;  %6528 = vmatprep.subr.mxu0 %v5798_v3  ;;  %v6062_v19 = vld [vmem:[%s19189_s11 + $0xd80] sm:$0xff]  ;;  %v6051_v3 = vld [vmem:[%s19189_s11 + $0xd28] sm:$0xff] }
 0x6fa   :  { %6449 = vmatpush2.msra.mxu1 %v5806_v2  ;;  %v6061_v2 = vld [vmem:[%s19189_s11 + $0xd78] sm:$0xff] }
 0x6fb   :  { %6599 = vmatprep.subr.mxu1 %v6150_v56  ;;  %v5698_v56 = vld [vmem:[%s19189_s11 + $0x220] sm:$0xff] }
 0x77b   :  { %v5550_v60 = vpop.f32.mrf.mxu1  ;;  %v5621_v63 = vpop.f32.mrf.mxu0 }
 0x77c   :  { %v5551_v21 = vadd.f32 %v5550_v60, %v5464_v46  ;;  %v5622_v62 = vadd.f32 %v5621_v63, %v5472_v57  ;;  %v5688_v46 = vld [vmem:[%s19189_s11 + $0x1d0] sm:$0xff]  ;;  %v5677_v60 = vld [vmem:[%s19189_s11 + $0x178] sm:$0xff] }
 0x77d   :  { %v5552_v38 = vpop.f32.mrf.mxu1  ;;  %v5623_v6 = vpop.f32.mrf.mxu0  ;;  %v6040_v57 = vld [vmem:[%s19189_s11 + $0xcd0] sm:$0xff]  ;;  %v6029_v63 = vld [vmem:[%s19189_s11 + $0xc78] sm:$0xff] }
 0x77e   :  { %v5553_v9 = vadd.f32 %v5552_v38, %v5468_v45  ;;  %v5624_v61 = vadd.f32 %v5623_v6, %v5476_v58  ;;  %v16157_v14 = vmax.f32 %v5551_v21, 0.0  ;;  %v16159_v15 = vmax.f32 %v5622_v62, 0.0  ;;  %v5687_v45 = vld [vmem:[%s19189_s11 + $0x1c8] sm:$0xff]  ;;  %v5676_v21 = vld [vmem:[%s19189_s11 + $0x170] sm:$0xff]  ;;  %v5666_v38 = vld [vmem:[%s19189_s11 + $0x120] sm:$0xff] }
 0x77f   :  { %v6039_v58 = vld [vmem:[%s19189_s11 + $0xcc8] sm:$0xff]  ;;  %v6028_v62 = vld [vmem:[%s19189_s11 + $0xc70] sm:$0xff]  ;;  %v6018_v6 = vld [vmem:[%s19189_s11 + $0xc20] sm:$0xff] }
 0x780   :  { %v16153_v10 = vmax.f32 %v5553_v9, 0.0  ;;  %v16155_v1 = vmax.f32 %v5624_v61, 0.0  ;;  %v5665_v9 = vld [vmem:[%s19189_s11 + $0x118] sm:$0xff] }
 0x781   :  { %v6017_v61 = vld [vmem:[%s19189_s11 + $0xc18] sm:$0xff] }
 0x782   :  { %6450 = vmatprep.mubr.f32.mxu1 %v16153_v10  ;;  %8253 = vmatprep.mubr.msk.f32.mxu0 %vm6382_vm2, %v16155_v1 }
 0x783   :  { %6451 = vmatmul.mubr.f32.vlgmr.msra.gmra.mxu1 %v16157_v14  ;;  %6522 = vmatmul.mubr.f32.vlgmr.msra.gmra.mxu0 %v16159_v15 }
 0x784   :  { %6529 = vmatpush1.msra.mxu0 %v5797_v18  ;;  %6600 = vmatpush1.msra.mxu1 %v6149_v31  ;;  %v5655_v18 = vld [vmem:[%s19189_s11 + $0xc8] sm:$0xff] }
 0x785   :  { %6530 = vmatprep.subr.mxu0 %v5787_v54  ;;  %6592 = vmatprep.mubr.f32.mxu0 %v16153_v10  ;;  %v6007_v31 = vld [vmem:[%s19189_s11 + $0xbc8] sm:$0xff]  ;;  %v5654_v54 = vld [vmem:[%s19189_s11 + $0xc0] sm:$0xff] }
 0x786   :  { %6601 = vmatprep.subr.mxu1 %v6139_v47  ;;  %8254 = vmatprep.mubr.msk.f32.mxu1 %vm6382_vm2, %v16155_v1  ;;  %v6006_v47 = vld [vmem:[%s19189_s11 + $0xbc0] sm:$0xff] }
 0x787   :  { %6531 = vmatpush1.msra.mxu0 %v5786_v20  ;;  %6602 = vmatpush1.msra.mxu1 %v6138_v59  ;;  %v5644_v20 = vld [vmem:[%s19189_s11 + $0x70] sm:$0xff] }
 0x788   :  { %6532 = vmatprep.subr.mxu0 %v5776_v53  ;;  %6603 = vmatprep.subr.mxu1 %v6128_v23  ;;  %v5996_v59 = vld [vmem:[%s19189_s11 + $0xb70] sm:$0xff]  ;;  %v5643_v53 = vld [vmem:[%s19189_s11 + $0x68] sm:$0xff] }
 0x789   :  { %6533 = vmatpush1.msra.mxu0 %v5775_v26  ;;  %6604 = vmatpush1.msra.mxu1 %v6127_v36  ;;  %v5995_v23 = vld [vmem:[%s19189_s11 + $0xb68] sm:$0xff]  ;;  %v5633_v26 = vld [vmem:[%s19189_s11 + $0x18] sm:$0xff] }
 0x78a   :  { %6534 = vmatprep.subr.mxu0 %v5765_v4  ;;  %6605 = vmatprep.subr.mxu1 %v6117_v17  ;;  %v5985_v36 = vld [vmem:[%s19189_s11 + $0xb18] sm:$0xff]  ;;  %v5632_v4 = vld [vmem:[%s19189_s11 + $0x10] sm:$0xff] }
 0x78b   :  { %6535 = vmatpush1.msra.mxu0 %v5764_v27  ;;  %6606 = vmatpush1.msra.mxu1 %v6116_v34  ;;  %v5984_v17 = vld [vmem:[%s19189_s11 + $0xb10] sm:$0xff]  ;;  %v5974_v27 = vld [vmem:[%s19189_s11 + $0xac0] sm:$0xff]  ;;  %v6315_v34 = vld [vmem:[%s19189_s11 + $0x1568] sm:$0xff] }
 0x78c   :  { %6536 = vmatprep.subr.mxu0 %v5754_v29  ;;  %6607 = vmatprep.subr.mxu1 %v6106_v40  ;;  %v5973_v29 = vld [vmem:[%s19189_s11 + $0xab8] sm:$0xff]  ;;  %v6314_v40 = vld [vmem:[%s19189_s11 + $0x1560] sm:$0xff] }
 0x78d   :  { %6537 = vmatpush1.msra.mxu0 %v5753_v50  ;;  %6608 = vmatpush1.msra.mxu1 %v6105_v32  ;;  %v5963_v50 = vld [vmem:[%s19189_s11 + $0xa68] sm:$0xff]  ;;  %v6304_v32 = vld [vmem:[%s19189_s11 + $0x1510] sm:$0xff] }
 0x78e   :  { %6538 = vmatprep.subr.mxu0 %v5743_v7  ;;  %6609 = vmatprep.subr.mxu1 %v6095_v25  ;;  %v5962_v7 = vld [vmem:[%s19189_s11 + $0xa60] sm:$0xff]  ;;  %v6303_v25 = vld [vmem:[%s19189_s11 + $0x1508] sm:$0xff] }
 0x78f   :  { %6539 = vmatpush1.msra.mxu0 %v5742_v0  ;;  %6610 = vmatpush1.msra.mxu1 %v6094_v41  ;;  %v5952_v0 = vld [vmem:[%s19189_s11 + $0xa10] sm:$0xff]  ;;  %v6293_v41 = vld [vmem:[%s19189_s11 + $0x14b8] sm:$0xff] }
 0x790   :  { %6540 = vmatprep.subr.mxu0 %v5732_v24  ;;  %6611 = vmatprep.subr.mxu1 %v6084_v39  ;;  %v5951_v24 = vld [vmem:[%s19189_s11 + $0xa08] sm:$0xff]  ;;  %v6292_v39 = vld [vmem:[%s19189_s11 + $0x14b0] sm:$0xff] }
 0x791   :  { %6541 = vmatpush1.msra.mxu0 %v5731_v43  ;;  %6612 = vmatpush1.msra.mxu1 %v6083_v30  ;;  %v5941_v43 = vld [vmem:[%s19189_s11 + $0x9b8] sm:$0xff]  ;;  %v6282_v30 = vld [vmem:[%s19189_s11 + $0x1460] sm:$0xff] }
 0x792   :  { %6542 = vmatprep.subr.mxu0 %v5721_v5  ;;  %6613 = vmatprep.subr.mxu1 %v6073_v22  ;;  %v5940_v5 = vld [vmem:[%s19189_s11 + $0x9b0] sm:$0xff]  ;;  %v6281_v22 = vld [vmem:[%s19189_s11 + $0x1458] sm:$0xff] }
 0x793   :  { %6543 = vmatpush1.msra.mxu0 %v5720_v42  ;;  %6614 = vmatpush1.msra.mxu1 %v6072_v12  ;;  %v5930_v42 = vld [vmem:[%s19189_s11 + $0x960] sm:$0xff]  ;;  %v6271_v12 = vld [vmem:[%s19189_s11 + $0x1408] sm:$0xff] }
 0x794   :  { %6544 = vmatprep.subr.mxu0 %v5710_v44  ;;  %6615 = vmatprep.subr.mxu1 %v6062_v19  ;;  %v5929_v44 = vld [vmem:[%s19189_s11 + $0x958] sm:$0xff]  ;;  %v6270_v19 = vld [vmem:[%s19189_s11 + $0x1400] sm:$0xff] }
 0x795   :  { %6545 = vmatpush1.msra.mxu0 %v5709_v55  ;;  %6616 = vmatpush1.msra.mxu1 %v6061_v2  ;;  %v5919_v55 = vld [vmem:[%s19189_s11 + $0x908] sm:$0xff]  ;;  %v6260_v2 = vld [vmem:[%s19189_s11 + $0x13b0] sm:$0xff] }
 0x796   :  { %6546 = vmatprep.subr.mxu0 %v5699_v33  ;;  %6617 = vmatprep.subr.mxu1 %v6051_v3  ;;  %v5918_v33 = vld [vmem:[%s19189_s11 + $0x900] sm:$0xff]  ;;  %v6259_v3 = vld [vmem:[%s19189_s11 + $0x13a8] sm:$0xff] }
 0x797   :  { %6547 = vmatpush1.msra.mxu0 %v5698_v56  ;;  %6618 = vmatpush1.msra.mxu1 %v6050_v28  ;;  %v5908_v56 = vld [vmem:[%s19189_s11 + $0x8b0] sm:$0xff]  ;;  %v6249_v28 = vld [vmem:[%s19189_s11 + $0x1358] sm:$0xff] }
 0x798   :  { %6548 = vmatprep.subr.mxu0 %v5688_v46  ;;  %6619 = vmatprep.subr.mxu1 %v6040_v57  ;;  %v5907_v46 = vld [vmem:[%s19189_s11 + $0x8a8] sm:$0xff]  ;;  %v6248_v57 = vld [vmem:[%s19189_s11 + $0x1350] sm:$0xff] }
 0x799   :  { %6549 = vmatpush1.msra.mxu0 %v5687_v45  ;;  %6620 = vmatpush1.msra.mxu1 %v6039_v58  ;;  %v5897_v45 = vld [vmem:[%s19189_s11 + $0x858] sm:$0xff]  ;;  %v6238_v58 = vld [vmem:[%s19189_s11 + $0x1300] sm:$0xff] }
 0x79a   :  { %6550 = vmatprep.subr.mxu0 %v5677_v60  ;;  %6621 = vmatprep.subr.mxu1 %v6029_v63  ;;  %v5896_v60 = vld [vmem:[%s19189_s11 + $0x850] sm:$0xff]  ;;  %v6237_v63 = vld [vmem:[%s19189_s11 + $0x12f8] sm:$0xff] }
 0x79b   :  { %6551 = vmatpush1.msra.mxu0 %v5676_v21  ;;  %6622 = vmatpush1.msra.mxu1 %v6028_v62  ;;  %v5886_v21 = vld [vmem:[%s19189_s11 + $0x800] sm:$0xff]  ;;  %v6227_v62 = vld [vmem:[%s19189_s11 + $0x12a8] sm:$0xff] }
 0x79c   :  { %6552 = vmatprep.subr.mxu0 %v5666_v38  ;;  %6623 = vmatprep.subr.mxu1 %v6018_v6  ;;  %v5885_v38 = vld [vmem:[%s19189_s11 + $0x7f8] sm:$0xff]  ;;  %v6226_v6 = vld [vmem:[%s19189_s11 + $0x12a0] sm:$0xff] }
 0x79d   :  { %6553 = vmatpush1.msra.mxu0 %v5665_v9  ;;  %6624 = vmatpush1.msra.mxu1 %v6017_v61  ;;  %v5875_v9 = vld [vmem:[%s19189_s11 + $0x7a8] sm:$0xff]  ;;  %v6216_v61 = vld [vmem:[%s19189_s11 + $0x1250] sm:$0xff] }
 0x79e   :  { %6554 = vmatprep.subr.mxu0 %v5655_v18  ;;  %6625 = vmatprep.subr.mxu1 %v6007_v31  ;;  %v5874_v18 = vld [vmem:[%s19189_s11 + $0x7a0] sm:$0xff]  ;;  %v6215_v31 = vld [vmem:[%s19189_s11 + $0x1248] sm:$0xff] }
 0x79f   :  { %6555 = vmatpush1.msra.mxu0 %v5654_v54  ;;  %6626 = vmatpush1.msra.mxu1 %v6006_v47  ;;  %v5864_v54 = vld [vmem:[%s19189_s11 + $0x750] sm:$0xff]  ;;  %v6205_v47 = vld [vmem:[%s19189_s11 + $0x11f8] sm:$0xff] }
 0x7a0   :  { %6556 = vmatprep.subr.mxu0 %v5644_v20  ;;  %6627 = vmatprep.subr.mxu1 %v5996_v59  ;;  %v5863_v20 = vld [vmem:[%s19189_s11 + $0x748] sm:$0xff]  ;;  %v6204_v59 = vld [vmem:[%s19189_s11 + $0x11f0] sm:$0xff] }
 0x7a1   :  { %6557 = vmatpush1.msra.mxu0 %v5643_v53  ;;  %6628 = vmatpush1.msra.mxu1 %v5995_v23  ;;  %v5853_v53 = vld [vmem:[%s19189_s11 + $0x6f8] sm:$0xff]  ;;  %v6194_v23 = vld [vmem:[%s19189_s11 + $0x11a0] sm:$0xff] }
 0x7a2   :  { %6558 = vmatprep.subr.mxu0 %v5633_v26  ;;  %6629 = vmatprep.subr.mxu1 %v5985_v36  ;;  %v5852_v26 = vld [vmem:[%s19189_s11 + $0x6f0] sm:$0xff]  ;;  %v6193_v36 = vld [vmem:[%s19189_s11 + $0x1198] sm:$0xff] }
 0x7a3   :  { %6559 = vmatpush1.msra.mxu0 %v5632_v4  ;;  %6630 = vmatpush1.msra.mxu1 %v5984_v17  ;;  %v5842_v4 = vld [vmem:[%s19189_s11 + $0x6a0] sm:$0xff]  ;;  %v6183_v17 = vld [vmem:[%s19189_s11 + $0x1148] sm:$0xff] }
 0x7a4   :  { %6560 = vmatprep.subr.mxu0 %v5974_v27  ;;  %6633 = vmatprep.subr.mxu1 %v6315_v34  ;;  %v5841_v27 = vld [vmem:[%s19189_s11 + $0x698] sm:$0xff]  ;;  %v6182_v34 = vld [vmem:[%s19189_s11 + $0x1140] sm:$0xff] }
 0x7a5   :  { %6561 = vmatpush2.msra.mxu0 %v5973_v29  ;;  %6634 = vmatpush2.msra.mxu1 %v6314_v40  ;;  %v5831_v29 = vld [vmem:[%s19189_s11 + $0x648] sm:$0xff]  ;;  %v6172_v40 = vld [vmem:[%s19189_s11 + $0x10f0] sm:$0xff] }
 0x7a6   :  { %6562 = vmatprep.subr.mxu0 %v5963_v50  ;;  %6635 = vmatprep.subr.mxu1 %v6304_v32  ;;  %v5830_v50 = vld [vmem:[%s19189_s11 + $0x640] sm:$0xff]  ;;  %v6171_v32 = vld [vmem:[%s19189_s11 + $0x10e8] sm:$0xff] }
 0x7a7   :  { %6563 = vmatpush2.msra.mxu0 %v5962_v7  ;;  %6636 = vmatpush2.msra.mxu1 %v6303_v25  ;;  %v5820_v7 = vld [vmem:[%s19189_s11 + $0x5f0] sm:$0xff]  ;;  %v6161_v25 = vld [vmem:[%s19189_s11 + $0x1098] sm:$0xff] }
 0x7a8   :  { %6564 = vmatprep.subr.mxu0 %v5952_v0  ;;  %6637 = vmatprep.subr.mxu1 %v6293_v41  ;;  %v5819_v0 = vld [vmem:[%s19189_s11 + $0x5e8] sm:$0xff]  ;;  %v6160_v41 = vld [vmem:[%s19189_s11 + $0x1090] sm:$0xff] }
 0x7a9   :  { %6565 = vmatpush2.msra.mxu0 %v5951_v24  ;;  %6638 = vmatpush2.msra.mxu1 %v6292_v39  ;;  %v5809_v24 = vld [vmem:[%s19189_s11 + $0x598] sm:$0xff]  ;;  %v5800_v39 = vld [vmem:[%s19189_s11 + $0x550] sm:$0xff] }
 0x7aa   :  { %6566 = vmatprep.subr.mxu0 %v5941_v43  ;;  %6639 = vmatprep.subr.mxu1 %v6282_v30  ;;  %v5808_v43 = vld [vmem:[%s19189_s11 + $0x590] sm:$0xff]  ;;  %v5799_v30 = vld [vmem:[%s19189_s11 + $0x548] sm:$0xff] }
 0x7ab   :  { %6567 = vmatpush2.msra.mxu0 %v5940_v5  ;;  %6640 = vmatpush2.msra.mxu1 %v6281_v22  ;;  %v5789_v5 = vld [vmem:[%s19189_s11 + $0x4f8] sm:$0xff]  ;;  %v6152_v22 = vld [vmem:[%s19189_s11 + $0x1050] sm:$0xff] }
 0x7ac   :  { %6568 = vmatprep.subr.mxu0 %v5930_v42  ;;  %6641 = vmatprep.subr.mxu1 %v6271_v12  ;;  %v5788_v42 = vld [vmem:[%s19189_s11 + $0x4f0] sm:$0xff]  ;;  %v6151_v12 = vld [vmem:[%s19189_s11 + $0x1048] sm:$0xff] }
 0x7ad   :  { %6569 = vmatpush2.msra.mxu0 %v5929_v44  ;;  %6642 = vmatpush2.msra.mxu1 %v6270_v19  ;;  %v5778_v44 = vld [vmem:[%s19189_s11 + $0x4a0] sm:$0xff]  ;;  %v6141_v19 = vld [vmem:[%s19189_s11 + $0xff8] sm:$0xff] }
 0x7ae   :  { %6570 = vmatprep.subr.mxu0 %v5919_v55  ;;  %6643 = vmatprep.subr.mxu1 %v6260_v2  ;;  %v5777_v55 = vld [vmem:[%s19189_s11 + $0x498] sm:$0xff]  ;;  %v6140_v2 = vld [vmem:[%s19189_s11 + $0xff0] sm:$0xff] }
 0x7af   :  { %6571 = vmatpush2.msra.mxu0 %v5918_v33  ;;  %6644 = vmatpush2.msra.mxu1 %v6259_v3  ;;  %v5767_v33 = vld [vmem:[%s19189_s11 + $0x448] sm:$0xff]  ;;  %v6130_v3 = vld [vmem:[%s19189_s11 + $0xfa0] sm:$0xff] }
 0x7b0   :  { %6572 = vmatprep.subr.mxu0 %v5908_v56  ;;  %6645 = vmatprep.subr.mxu1 %v6249_v28  ;;  %v5766_v56 = vld [vmem:[%s19189_s11 + $0x440] sm:$0xff]  ;;  %v6129_v28 = vld [vmem:[%s19189_s11 + $0xf98] sm:$0xff] }
 0x7b1   :  { %6573 = vmatpush2.msra.mxu0 %v5907_v46  ;;  %6646 = vmatpush2.msra.mxu1 %v6248_v57  ;;  %v5756_v46 = vld [vmem:[%s19189_s11 + $0x3f0] sm:$0xff]  ;;  %v6119_v57 = vld [vmem:[%s19189_s11 + $0xf48] sm:$0xff] }
 0x7b2   :  { %6574 = vmatprep.subr.mxu0 %v5897_v45  ;;  %6647 = vmatprep.subr.mxu1 %v6238_v58  ;;  %v5755_v45 = vld [vmem:[%s19189_s11 + $0x3e8] sm:$0xff]  ;;  %v6118_v58 = vld [vmem:[%s19189_s11 + $0xf40] sm:$0xff] }
 0x7b3   :  { %6575 = vmatpush2.msra.mxu0 %v5896_v60  ;;  %6648 = vmatpush2.msra.mxu1 %v6237_v63  ;;  %v5745_v60 = vld [vmem:[%s19189_s11 + $0x398] sm:$0xff]  ;;  %v6108_v63 = vld [vmem:[%s19189_s11 + $0xef0] sm:$0xff] }
 0x7b4   :  { %6576 = vmatprep.subr.mxu0 %v5886_v21  ;;  %6649 = vmatprep.subr.mxu1 %v6227_v62  ;;  %v5744_v21 = vld [vmem:[%s19189_s11 + $0x390] sm:$0xff]  ;;  %v6107_v62 = vld [vmem:[%s19189_s11 + $0xee8] sm:$0xff] }
 0x7b5   :  { %6577 = vmatpush2.msra.mxu0 %v5885_v38  ;;  %6650 = vmatpush2.msra.mxu1 %v6226_v6  ;;  %v5734_v38 = vld [vmem:[%s19189_s11 + $0x340] sm:$0xff]  ;;  %v6097_v6 = vld [vmem:[%s19189_s11 + $0xe98] sm:$0xff] }
 0x7b6   :  { %6578 = vmatprep.subr.mxu0 %v5875_v9  ;;  %6651 = vmatprep.subr.mxu1 %v6216_v61  ;;  %v5733_v9 = vld [vmem:[%s19189_s11 + $0x338] sm:$0xff]  ;;  %v6096_v61 = vld [vmem:[%s19189_s11 + $0xe90] sm:$0xff] }
 0x7b7   :  { %6579 = vmatpush2.msra.mxu0 %v5874_v18  ;;  %6652 = vmatpush2.msra.mxu1 %v6215_v31  ;;  %v5723_v18 = vld [vmem:[%s19189_s11 + $0x2e8] sm:$0xff]  ;;  %v6086_v31 = vld [vmem:[%s19189_s11 + $0xe40] sm:$0xff] }
 0x7b8   :  { %6580 = vmatprep.subr.mxu0 %v5864_v54  ;;  %6653 = vmatprep.subr.mxu1 %v6205_v47  ;;  %v5722_v54 = vld [vmem:[%s19189_s11 + $0x2e0] sm:$0xff]  ;;  %v6085_v47 = vld [vmem:[%s19189_s11 + $0xe38] sm:$0xff] }
 0x7b9   :  { %6581 = vmatpush2.msra.mxu0 %v5863_v20  ;;  %6654 = vmatpush2.msra.mxu1 %v6204_v59  ;;  %v5712_v20 = vld [vmem:[%s19189_s11 + $0x290] sm:$0xff]  ;;  %v6075_v59 = vld [vmem:[%s19189_s11 + $0xde8] sm:$0xff] }
 0x7ba   :  { %6582 = vmatprep.subr.mxu0 %v5853_v53  ;;  %6655 = vmatprep.subr.mxu1 %v6194_v23  ;;  %v5711_v53 = vld [vmem:[%s19189_s11 + $0x288] sm:$0xff]  ;;  %v6074_v23 = vld [vmem:[%s19189_s11 + $0xde0] sm:$0xff] }
 0x7bb   :  { %6583 = vmatpush2.msra.mxu0 %v5852_v26  ;;  %6656 = vmatpush2.msra.mxu1 %v6193_v36  ;;  %v5701_v26 = vld [vmem:[%s19189_s11 + $0x238] sm:$0xff]  ;;  %v6064_v36 = vld [vmem:[%s19189_s11 + $0xd90] sm:$0xff] }
 0x7bc   :  { %6584 = vmatprep.subr.mxu0 %v5842_v4  ;;  %6657 = vmatprep.subr.mxu1 %v6183_v17  ;;  %v5700_v4 = vld [vmem:[%s19189_s11 + $0x230] sm:$0xff]  ;;  %v6063_v17 = vld [vmem:[%s19189_s11 + $0xd88] sm:$0xff] }
 0x7bd   :  { %6585 = vmatpush2.msra.mxu0 %v5841_v27  ;;  %6658 = vmatpush2.msra.mxu1 %v6182_v34  ;;  %v5690_v27 = vld [vmem:[%s19189_s11 + $0x1e0] sm:$0xff]  ;;  %v6053_v34 = vld [vmem:[%s19189_s11 + $0xd38] sm:$0xff] }
 0x7be   :  { %6586 = vmatprep.subr.mxu0 %v5831_v29  ;;  %6659 = vmatprep.subr.mxu1 %v6172_v40  ;;  %v5689_v29 = vld [vmem:[%s19189_s11 + $0x1d8] sm:$0xff]  ;;  %v6052_v40 = vld [vmem:[%s19189_s11 + $0xd30] sm:$0xff] }
 0x7bf   :  { %6587 = vmatpush2.msra.mxu0 %v5830_v50  ;;  %6660 = vmatpush2.msra.mxu1 %v6171_v32  ;;  %v5679_v50 = vld [vmem:[%s19189_s11 + $0x188] sm:$0xff]  ;;  %v6042_v32 = vld [vmem:[%s19189_s11 + $0xce0] sm:$0xff] }
 0x7c0   :  { %6588 = vmatprep.subr.mxu0 %v5820_v7  ;;  %6661 = vmatprep.subr.mxu1 %v6161_v25  ;;  %v5678_v7 = vld [vmem:[%s19189_s11 + $0x180] sm:$0xff]  ;;  %v6041_v25 = vld [vmem:[%s19189_s11 + $0xcd8] sm:$0xff] }
 0x7c1   :  { %6589 = vmatpush2.msra.mxu0 %v5819_v0  ;;  %6662 = vmatpush2.msra.mxu1 %v6160_v41  ;;  %v5668_v0 = vld [vmem:[%s19189_s11 + $0x130] sm:$0xff]  ;;  %v6031_v41 = vld [vmem:[%s19189_s11 + $0xc88] sm:$0xff] }
 0x7c2   :  { %6590 = vmatprep.subr.mxu0 %v5809_v24  ;;  %6664 = vmatmul.mubr.f32.vlgmr.msra.gmra.mxu1 %v16159_v15  ;;  %v5667_v24 = vld [vmem:[%s19189_s11 + $0x128] sm:$0xff] }
 0x7c3   :  { %6670 = vmatprep.subr.mxu1 %v5800_v39  ;;  %6591 = vmatpush2.msra.mxu0 %v5808_v43  ;;  %v6030_v39 = vld [vmem:[%s19189_s11 + $0xc80] sm:$0xff]  ;;  %v5657_v43 = vld [vmem:[%s19189_s11 + $0xd8] sm:$0xff] }
 0x7c4   :  { %6671 = vmatpush1.msra.mxu1 %v5799_v30  ;;  %6734 = vmatprep.mubr.f32.mxu1 %v16153_v10  ;;  %v6020_v30 = vld [vmem:[%s19189_s11 + $0xc30] sm:$0xff] }
 0x7c5   :  { %6593 = vmatmul.mubr.f32.vlgmr.msra.gmra.mxu0 %v16157_v14  ;;  %6672 = vmatprep.subr.mxu1 %v5789_v5  ;;  %v5656_v5 = vld [vmem:[%s19189_s11 + $0xd0] sm:$0xff] }
 0x7c6   :  { %6741 = vmatprep.subr.mxu0 %v6152_v22  ;;  %6673 = vmatpush1.msra.mxu1 %v5788_v42  ;;  %v6019_v22 = vld [vmem:[%s19189_s11 + $0xc28] sm:$0xff]  ;;  %v5646_v42 = vld [vmem:[%s19189_s11 + $0x80] sm:$0xff] }
 0x7c7   :  { %6742 = vmatpush1.msra.mxu0 %v6151_v12  ;;  %8255 = vmatprep.mubr.msk.f32.mxu0 %vm6382_vm2, %v16155_v1  ;;  %v6009_v12 = vld [vmem:[%s19189_s11 + $0xbd8] sm:$0xff] }
 0x7c8   :  { %6674 = vmatprep.subr.mxu1 %v5778_v44  ;;  %6743 = vmatprep.subr.mxu0 %v6141_v19  ;;  %v5645_v44 = vld [vmem:[%s19189_s11 + $0x78] sm:$0xff]  ;;  %v6008_v19 = vld [vmem:[%s19189_s11 + $0xbd0] sm:$0xff] }
 0x7c9   :  { %6675 = vmatpush1.msra.mxu1 %v5777_v55  ;;  %6744 = vmatpush1.msra.mxu0 %v6140_v2  ;;  %v5635_v55 = vld [vmem:[%s19189_s11 + $0x28] sm:$0xff]  ;;  %v5998_v2 = vld [vmem:[%s19189_s11 + $0xb80] sm:$0xff] }
 0x7ca   :  { %6676 = vmatprep.subr.mxu1 %v5767_v33  ;;  %6745 = vmatprep.subr.mxu0 %v6130_v3  ;;  %v5634_v33 = vld [vmem:[%s19189_s11 + $0x20] sm:$0xff]  ;;  %v5997_v3 = vld [vmem:[%s19189_s11 + $0xb78] sm:$0xff] }
 0x7cb   :  { %6677 = vmatpush1.msra.mxu1 %v5766_v56  ;;  %6746 = vmatpush1.msra.mxu0 %v6129_v28  ;;  %v5976_v56 = vld [vmem:[%s19189_s11 + $0xad0] sm:$0xff]  ;;  %v5987_v28 = vld [vmem:[%s19189_s11 + $0xb28] sm:$0xff] }
 0x7cc   :  { %6678 = vmatprep.subr.mxu1 %v5756_v46  ;;  %6747 = vmatprep.subr.mxu0 %v6119_v57  ;;  %v5975_v46 = vld [vmem:[%s19189_s11 + $0xac8] sm:$0xff]  ;;  %v5986_v57 = vld [vmem:[%s19189_s11 + $0xb20] sm:$0xff] }
 0x7cd   :  { %6679 = vmatpush1.msra.mxu1 %v5755_v45  ;;  %6748 = vmatpush1.msra.mxu0 %v6118_v58  ;;  %v5965_v45 = vld [vmem:[%s19189_s11 + $0xa78] sm:$0xff] }
 0x7ce   :  { %6680 = vmatprep.subr.mxu1 %v5745_v60  ;;  %6749 = vmatprep.subr.mxu0 %v6108_v63  ;;  %v6317_v58 = vld [vmem:[%s19189_s11 + $0x1578] sm:$0xff]  ;;  %v5964_v60 = vld [vmem:[%s19189_s11 + $0xa70] sm:$0xff] }
 0x7cf   :  { %6681 = vmatpush1.msra.mxu1 %v5744_v21  ;;  %6750 = vmatpush1.msra.mxu0 %v6107_v62  ;;  %v6316_v63 = vld [vmem:[%s19189_s11 + $0x1570] sm:$0xff]  ;;  %v5954_v21 = vld [vmem:[%s19189_s11 + $0xa20] sm:$0xff] }
 0x7d0   :  { %6682 = vmatprep.subr.mxu1 %v5734_v38  ;;  %6751 = vmatprep.subr.mxu0 %v6097_v6  ;;  %v6306_v62 = vld [vmem:[%s19189_s11 + $0x1520] sm:$0xff]  ;;  %v5953_v38 = vld [vmem:[%s19189_s11 + $0xa18] sm:$0xff] }
 0x7d1   :  { %6683 = vmatpush1.msra.mxu1 %v5733_v9  ;;  %6752 = vmatpush1.msra.mxu0 %v6096_v61  ;;  %v6305_v6 = vld [vmem:[%s19189_s11 + $0x1518] sm:$0xff]  ;;  %v5943_v9 = vld [vmem:[%s19189_s11 + $0x9c8] sm:$0xff] }
 0x7d2   :  { %6684 = vmatprep.subr.mxu1 %v5723_v18  ;;  %6753 = vmatprep.subr.mxu0 %v6086_v31  ;;  %v6295_v61 = vld [vmem:[%s19189_s11 + $0x14c8] sm:$0xff]  ;;  %v5942_v18 = vld [vmem:[%s19189_s11 + $0x9c0] sm:$0xff] }
 0x7d3   :  { %6685 = vmatpush1.msra.mxu1 %v5722_v54  ;;  %6754 = vmatpush1.msra.mxu0 %v6085_v47  ;;  %v6294_v31 = vld [vmem:[%s19189_s11 + $0x14c0] sm:$0xff]  ;;  %v5932_v54 = vld [vmem:[%s19189_s11 + $0x970] sm:$0xff] }
 0x7d4   :  { %6686 = vmatprep.subr.mxu1 %v5712_v20  ;;  %6755 = vmatprep.subr.mxu0 %v6075_v59  ;;  %v6284_v47 = vld [vmem:[%s19189_s11 + $0x1470] sm:$0xff]  ;;  %v5931_v20 = vld [vmem:[%s19189_s11 + $0x968] sm:$0xff] }
 0x7d5   :  { %6687 = vmatpush1.msra.mxu1 %v5711_v53  ;;  %6756 = vmatpush1.msra.mxu0 %v6074_v23  ;;  %v6283_v59 = vld [vmem:[%s19189_s11 + $0x1468] sm:$0xff]  ;;  %v5921_v53 = vld [vmem:[%s19189_s11 + $0x918] sm:$0xff] }
 0x7d6   :  { %6688 = vmatprep.subr.mxu1 %v5701_v26  ;;  %6757 = vmatprep.subr.mxu0 %v6064_v36  ;;  %v6273_v23 = vld [vmem:[%s19189_s11 + $0x1418] sm:$0xff]  ;;  %v5920_v26 = vld [vmem:[%s19189_s11 + $0x910] sm:$0xff] }
 0x7d7   :  { %6689 = vmatpush1.msra.mxu1 %v5700_v4  ;;  %6758 = vmatpush1.msra.mxu0 %v6063_v17  ;;  %v6272_v36 = vld [vmem:[%s19189_s11 + $0x1410] sm:$0xff]  ;;  %v5910_v4 = vld [vmem:[%s19189_s11 + $0x8c0] sm:$0xff] }
 0x7d8   :  { %6690 = vmatprep.subr.mxu1 %v5690_v27  ;;  %6759 = vmatprep.subr.mxu0 %v6053_v34  ;;  %v6262_v17 = vld [vmem:[%s19189_s11 + $0x13c0] sm:$0xff]  ;;  %v5909_v27 = vld [vmem:[%s19189_s11 + $0x8b8] sm:$0xff] }
 0x7d9   :  { %6691 = vmatpush1.msra.mxu1 %v5689_v29  ;;  %6760 = vmatpush1.msra.mxu0 %v6052_v40  ;;  %v6261_v34 = vld [vmem:[%s19189_s11 + $0x13b8] sm:$0xff]  ;;  %v5899_v29 = vld [vmem:[%s19189_s11 + $0x868] sm:$0xff] }
 0x7da   :  { %6692 = vmatprep.subr.mxu1 %v5679_v50  ;;  %6761 = vmatprep.subr.mxu0 %v6042_v32  ;;  %v6251_v40 = vld [vmem:[%s19189_s11 + $0x1368] sm:$0xff]  ;;  %v5898_v50 = vld [vmem:[%s19189_s11 + $0x860] sm:$0xff] }
 0x7db   :  { %6693 = vmatpush1.msra.mxu1 %v5678_v7  ;;  %6762 = vmatpush1.msra.mxu0 %v6041_v25  ;;  %v6250_v32 = vld [vmem:[%s19189_s11 + $0x1360] sm:$0xff]  ;;  %v5888_v7 = vld [vmem:[%s19189_s11 + $0x810] sm:$0xff] }
 0x7dc   :  { %6694 = vmatprep.subr.mxu1 %v5668_v0  ;;  %6763 = vmatprep.subr.mxu0 %v6031_v41  ;;  %v6240_v25 = vld [vmem:[%s19189_s11 + $0x1310] sm:$0xff]  ;;  %v5887_v0 = vld [vmem:[%s19189_s11 + $0x808] sm:$0xff] }
 0x7dd   :  { %6695 = vmatpush1.msra.mxu1 %v5667_v24  ;;  %6764 = vmatpush1.msra.mxu0 %v6030_v39  ;;  %v6239_v41 = vld [vmem:[%s19189_s11 + $0x1308] sm:$0xff]  ;;  %v5877_v24 = vld [vmem:[%s19189_s11 + $0x7b8] sm:$0xff] }
 0x7de   :  { %6696 = vmatprep.subr.mxu1 %v5657_v43  ;;  %6765 = vmatprep.subr.mxu0 %v6020_v30  ;;  %v6229_v39 = vld [vmem:[%s19189_s11 + $0x12b8] sm:$0xff]  ;;  %v5876_v43 = vld [vmem:[%s19189_s11 + $0x7b0] sm:$0xff] }
 0x7df   :  { %6697 = vmatpush1.msra.mxu1 %v5656_v5  ;;  %6766 = vmatpush1.msra.mxu0 %v6019_v22  ;;  %v6228_v30 = vld [vmem:[%s19189_s11 + $0x12b0] sm:$0xff]  ;;  %v5866_v5 = vld [vmem:[%s19189_s11 + $0x760] sm:$0xff] }
 0x7e0   :  { %6698 = vmatprep.subr.mxu1 %v5646_v42  ;;  %6767 = vmatprep.subr.mxu0 %v6009_v12  ;;  %v6218_v22 = vld [vmem:[%s19189_s11 + $0x1260] sm:$0xff]  ;;  %v5865_v42 = vld [vmem:[%s19189_s11 + $0x758] sm:$0xff] }
 0x7e1   :  { %6699 = vmatpush1.msra.mxu1 %v5645_v44  ;;  %6768 = vmatpush1.msra.mxu0 %v6008_v19  ;;  %v6217_v12 = vld [vmem:[%s19189_s11 + $0x1258] sm:$0xff]  ;;  %v5855_v44 = vld [vmem:[%s19189_s11 + $0x708] sm:$0xff] }
 0x7e2   :  { %6700 = vmatprep.subr.mxu1 %v5635_v55  ;;  %6769 = vmatprep.subr.mxu0 %v5998_v2  ;;  %v6207_v19 = vld [vmem:[%s19189_s11 + $0x1208] sm:$0xff]  ;;  %v5854_v55 = vld [vmem:[%s19189_s11 + $0x700] sm:$0xff] }
 0x7e3   :  { %6701 = vmatpush1.msra.mxu1 %v5634_v33  ;;  %6770 = vmatpush1.msra.mxu0 %v5997_v3  ;;  %v6206_v2 = vld [vmem:[%s19189_s11 + $0x1200] sm:$0xff]  ;;  %v5844_v33 = vld [vmem:[%s19189_s11 + $0x6b0] sm:$0xff] }
 0x7e4   :  { %6702 = vmatprep.subr.mxu1 %v5976_v56  ;;  %6771 = vmatprep.subr.mxu0 %v5987_v28  ;;  %v6196_v3 = vld [vmem:[%s19189_s11 + $0x11b0] sm:$0xff]  ;;  %v5843_v56 = vld [vmem:[%s19189_s11 + $0x6a8] sm:$0xff] }
 0x7e5   :  { %6703 = vmatpush2.msra.mxu1 %v5975_v46  ;;  %6772 = vmatpush1.msra.mxu0 %v5986_v57  ;;  %v6195_v28 = vld [vmem:[%s19189_s11 + $0x11a8] sm:$0xff]  ;;  %v5833_v46 = vld [vmem:[%s19189_s11 + $0x658] sm:$0xff] }
 0x7e6   :  { %6704 = vmatprep.subr.mxu1 %v5965_v45  ;;  %6775 = vmatprep.subr.mxu0 %v6317_v58  ;;  %v6185_v57 = vld [vmem:[%s19189_s11 + $0x1158] sm:$0xff]  ;;  %v5832_v45 = vld [vmem:[%s19189_s11 + $0x650] sm:$0xff] }
 0x7e7   :  { %6705 = vmatpush2.msra.mxu1 %v5964_v60  ;;  %6776 = vmatpush2.msra.mxu0 %v6316_v63  ;;  %v6184_v58 = vld [vmem:[%s19189_s11 + $0x1150] sm:$0xff]  ;;  %v5822_v60 = vld [vmem:[%s19189_s11 + $0x600] sm:$0xff] }
 0x7e8   :  { %6706 = vmatprep.subr.mxu1 %v5954_v21  ;;  %6777 = vmatprep.subr.mxu0 %v6306_v62  ;;  %v6174_v63 = vld [vmem:[%s19189_s11 + $0x1100] sm:$0xff]  ;;  %v5821_v21 = vld [vmem:[%s19189_s11 + $0x5f8] sm:$0xff] }
 0x7e9   :  { %6707 = vmatpush2.msra.mxu1 %v5953_v38  ;;  %6778 = vmatpush2.msra.mxu0 %v6305_v6  ;;  %v6173_v62 = vld [vmem:[%s19189_s11 + $0x10f8] sm:$0xff]  ;;  %v5811_v38 = vld [vmem:[%s19189_s11 + $0x5a8] sm:$0xff] }
 0x7ea   :  { %6708 = vmatprep.subr.mxu1 %v5943_v9  ;;  %6779 = vmatprep.subr.mxu0 %v6295_v61  ;;  %v6163_v6 = vld [vmem:[%s19189_s11 + $0x10a8] sm:$0xff]  ;;  %v5810_v9 = vld [vmem:[%s19189_s11 + $0x5a0] sm:$0xff] }
 0x7eb   :  { %6709 = vmatpush2.msra.mxu1 %v5942_v18  ;;  %6780 = vmatpush2.msra.mxu0 %v6294_v31  ;;  %v6162_v61 = vld [vmem:[%s19189_s11 + $0x10a0] sm:$0xff] }
 0x7ec   :  { %6710 = vmatprep.subr.mxu1 %v5932_v54  ;;  %6781 = vmatprep.subr.mxu0 %v6284_v47  ;;  %v5802_v18 = vld [vmem:[%s19189_s11 + $0x560] sm:$0xff]  ;;  %v5801_v54 = vld [vmem:[%s19189_s11 + $0x558] sm:$0xff] }
 0x7ed   :  { %6711 = vmatpush2.msra.mxu1 %v5931_v20  ;;  %6782 = vmatpush2.msra.mxu0 %v6283_v59  ;;  %v6154_v31 = vld [vmem:[%s19189_s11 + $0x1060] sm:$0xff]  ;;  %v6153_v47 = vld [vmem:[%s19189_s11 + $0x1058] sm:$0xff]  ;;  %v5791_v20 = vld [vmem:[%s19189_s11 + $0x508] sm:$0xff] }
 0x7ee   :  { %6712 = vmatprep.subr.mxu1 %v5921_v53  ;;  %6783 = vmatprep.subr.mxu0 %v6273_v23  ;;  %v6143_v59 = vld [vmem:[%s19189_s11 + $0x1008] sm:$0xff]  ;;  %v5790_v53 = vld [vmem:[%s19189_s11 + $0x500] sm:$0xff] }
 0x7ef   :  { %6713 = vmatpush2.msra.mxu1 %v5920_v26  ;;  %6784 = vmatpush2.msra.mxu0 %v6272_v36  ;;  %v6142_v23 = vld [vmem:[%s19189_s11 + $0x1000] sm:$0xff]  ;;  %v5780_v26 = vld [vmem:[%s19189_s11 + $0x4b0] sm:$0xff] }
 0x7f0   :  { %6714 = vmatprep.subr.mxu1 %v5910_v4  ;;  %6785 = vmatprep.subr.mxu0 %v6262_v17  ;;  %v6132_v36 = vld [vmem:[%s19189_s11 + $0xfb0] sm:$0xff]  ;;  %v5779_v4 = vld [vmem:[%s19189_s11 + $0x4a8] sm:$0xff] }
 0x7f1   :  { %6715 = vmatpush2.msra.mxu1 %v5909_v27  ;;  %6786 = vmatpush2.msra.mxu0 %v6261_v34  ;;  %v6131_v17 = vld [vmem:[%s19189_s11 + $0xfa8] sm:$0xff]  ;;  %v5769_v27 = vld [vmem:[%s19189_s11 + $0x458] sm:$0xff] }
 0x7f2   :  { %6716 = vmatprep.subr.mxu1 %v5899_v29  ;;  %6787 = vmatprep.subr.mxu0 %v6251_v40  ;;  %v6121_v34 = vld [vmem:[%s19189_s11 + $0xf58] sm:$0xff]  ;;  %v5768_v29 = vld [vmem:[%s19189_s11 + $0x450] sm:$0xff] }
 0x7f3   :  { %6717 = vmatpush2.msra.mxu1 %v5898_v50  ;;  %6788 = vmatpush2.msra.mxu0 %v6250_v32  ;;  %v6120_v40 = vld [vmem:[%s19189_s11 + $0xf50] sm:$0xff]  ;;  %v5758_v50 = vld [vmem:[%s19189_s11 + $0x400] sm:$0xff] }
 0x7f4   :  { %6718 = vmatprep.subr.mxu1 %v5888_v7  ;;  %6789 = vmatprep.subr.mxu0 %v6240_v25  ;;  %v6110_v32 = vld [vmem:[%s19189_s11 + $0xf00] sm:$0xff]  ;;  %v5757_v7 = vld [vmem:[%s19189_s11 + $0x3f8] sm:$0xff] }
 0x7f5   :  { %6719 = vmatpush2.msra.mxu1 %v5887_v0  ;;  %6790 = vmatpush2.msra.mxu0 %v6239_v41  ;;  %v6109_v25 = vld [vmem:[%s19189_s11 + $0xef8] sm:$0xff]  ;;  %v5747_v0 = vld [vmem:[%s19189_s11 + $0x3a8] sm:$0xff] }
 0x7f6   :  { %6720 = vmatprep.subr.mxu1 %v5877_v24  ;;  %6791 = vmatprep.subr.mxu0 %v6229_v39  ;;  %v6099_v41 = vld [vmem:[%s19189_s11 + $0xea8] sm:$0xff]  ;;  %v5746_v24 = vld [vmem:[%s19189_s11 + $0x3a0] sm:$0xff] }
 0x7f7   :  { %6721 = vmatpush2.msra.mxu1 %v5876_v43  ;;  %6792 = vmatpush2.msra.mxu0 %v6228_v30  ;;  %v6098_v39 = vld [vmem:[%s19189_s11 + $0xea0] sm:$0xff]  ;;  %v5736_v43 = vld [vmem:[%s19189_s11 + $0x350] sm:$0xff] }
 0x7f8   :  { %6722 = vmatprep.subr.mxu1 %v5866_v5  ;;  %6793 = vmatprep.subr.mxu0 %v6218_v22  ;;  %v6088_v30 = vld [vmem:[%s19189_s11 + $0xe50] sm:$0xff]  ;;  %v5735_v5 = vld [vmem:[%s19189_s11 + $0x348] sm:$0xff] }
 0x7f9   :  { %6723 = vmatpush2.msra.mxu1 %v5865_v42  ;;  %6794 = vmatpush2.msra.mxu0 %v6217_v12  ;;  %v6087_v22 = vld [vmem:[%s19189_s11 + $0xe48] sm:$0xff]  ;;  %v5725_v42 = vld [vmem:[%s19189_s11 + $0x2f8] sm:$0xff] }
 0x7fa   :  { %6724 = vmatprep.subr.mxu1 %v5855_v44  ;;  %6795 = vmatprep.subr.mxu0 %v6207_v19  ;;  %v6077_v12 = vld [vmem:[%s19189_s11 + $0xdf8] sm:$0xff]  ;;  %v5724_v44 = vld [vmem:[%s19189_s11 + $0x2f0] sm:$0xff] }
 0x7fb   :  { %6725 = vmatpush2.msra.mxu1 %v5854_v55  ;;  %6796 = vmatpush2.msra.mxu0 %v6206_v2  ;;  %v6076_v19 = vld [vmem:[%s19189_s11 + $0xdf0] sm:$0xff]  ;;  %v5714_v55 = vld [vmem:[%s19189_s11 + $0x2a0] sm:$0xff] }
 0x7fc   :  { %6726 = vmatprep.subr.mxu1 %v5844_v33  ;;  %6797 = vmatprep.subr.mxu0 %v6196_v3  ;;  %v6066_v2 = vld [vmem:[%s19189_s11 + $0xda0] sm:$0xff]  ;;  %v5713_v33 = vld [vmem:[%s19189_s11 + $0x298] sm:$0xff] }
 0x7fd   :  { %6727 = vmatpush2.msra.mxu1 %v5843_v56  ;;  %6798 = vmatpush2.msra.mxu0 %v6195_v28  ;;  %v6065_v3 = vld [vmem:[%s19189_s11 + $0xd98] sm:$0xff]  ;;  %v5703_v56 = vld [vmem:[%s19189_s11 + $0x248] sm:$0xff] }
 0x7fe   :  { %6728 = vmatprep.subr.mxu1 %v5833_v46  ;;  %6799 = vmatprep.subr.mxu0 %v6185_v57  ;;  %v6055_v28 = vld [vmem:[%s19189_s11 + $0xd48] sm:$0xff]  ;;  %v5702_v46 = vld [vmem:[%s19189_s11 + $0x240] sm:$0xff] }
 0x7ff   :  { %6729 = vmatpush2.msra.mxu1 %v5832_v45  ;;  %6800 = vmatpush2.msra.mxu0 %v6184_v58  ;;  %v6054_v57 = vld [vmem:[%s19189_s11 + $0xd40] sm:$0xff]  ;;  %v5692_v45 = vld [vmem:[%s19189_s11 + $0x1f0] sm:$0xff] }
 0x800   :  { %6730 = vmatprep.subr.mxu1 %v5822_v60  ;;  %6801 = vmatprep.subr.mxu0 %v6174_v63  ;;  %v6044_v58 = vld [vmem:[%s19189_s11 + $0xcf0] sm:$0xff]  ;;  %v5691_v60 = vld [vmem:[%s19189_s11 + $0x1e8] sm:$0xff] }
 0x801   :  { %6731 = vmatpush2.msra.mxu1 %v5821_v21  ;;  %6802 = vmatpush2.msra.mxu0 %v6173_v62  ;;  %v6043_v63 = vld [vmem:[%s19189_s11 + $0xce8] sm:$0xff]  ;;  %v5681_v21 = vld [vmem:[%s19189_s11 + $0x198] sm:$0xff] }
 0x802   :  { %6732 = vmatprep.subr.mxu1 %v5811_v38  ;;  %6803 = vmatprep.subr.mxu0 %v6163_v6  ;;  %v6033_v62 = vld [vmem:[%s19189_s11 + $0xc98] sm:$0xff]  ;;  %v5680_v38 = vld [vmem:[%s19189_s11 + $0x190] sm:$0xff] }
 0x803   :  { %6733 = vmatpush2.msra.mxu1 %v5810_v9  ;;  %6804 = vmatpush2.msra.mxu0 %v6162_v61  ;;  %v6032_v6 = vld [vmem:[%s19189_s11 + $0xc90] sm:$0xff]  ;;  %v5670_v9 = vld [vmem:[%s19189_s11 + $0x140] sm:$0xff] }
 0x804   :  { %6735 = vmatmul.mubr.f32.vlgmr.msra.gmra.mxu1 %v16157_v14  ;;  %6806 = vmatmul.mubr.f32.vlgmr.msra.gmra.mxu0 %v16159_v15  ;;  %v6022_v61 = vld [vmem:[%s19189_s11 + $0xc40] sm:$0xff] }
 0x805   :  { %6812 = vmatprep.subr.mxu0 %v5802_v18  ;;  %6883 = vmatprep.subr.mxu1 %v6154_v31  ;;  %v5669_v18 = vld [vmem:[%s19189_s11 + $0x138] sm:$0xff] }
 0x806   :  { %6813 = vmatpush1.msra.mxu0 %v5801_v54  ;;  %6876 = vmatprep.mubr.f32.mxu0 %v16153_v10  ;;  %v6021_v31 = vld [vmem:[%s19189_s11 + $0xc38] sm:$0xff]  ;;  %v5659_v54 = vld [vmem:[%s19189_s11 + $0xe8] sm:$0xff] }
 0x807   :  { %6884 = vmatpush1.msra.mxu1 %v6153_v47  ;;  %8256 = vmatprep.mubr.msk.f32.mxu1 %vm6382_vm2, %v16155_v1  ;;  %v6011_v47 = vld [vmem:[%s19189_s11 + $0xbe8] sm:$0xff] }
 0x808   :  { %6814 = vmatprep.subr.mxu0 %v5791_v20  ;;  %6885 = vmatprep.subr.mxu1 %v6143_v59  ;;  %v5658_v20 = vld [vmem:[%s19189_s11 + $0xe0] sm:$0xff] }
 0x809   :  { %6815 = vmatpush1.msra.mxu0 %v5790_v53  ;;  %6886 = vmatpush1.msra.mxu1 %v6142_v23  ;;  %v6010_v59 = vld [vmem:[%s19189_s11 + $0xbe0] sm:$0xff]  ;;  %v5648_v53 = vld [vmem:[%s19189_s11 + $0x90] sm:$0xff] }
 0x80a   :  { %6816 = vmatprep.subr.mxu0 %v5780_v26  ;;  %6887 = vmatprep.subr.mxu1 %v6132_v36  ;;  %v6000_v23 = vld [vmem:[%s19189_s11 + $0xb90] sm:$0xff]  ;;  %v5647_v26 = vld [vmem:[%s19189_s11 + $0x88] sm:$0xff] }
 0x80b   :  { %6817 = vmatpush1.msra.mxu0 %v5779_v4  ;;  %6888 = vmatpush1.msra.mxu1 %v6131_v17  ;;  %v5999_v36 = vld [vmem:[%s19189_s11 + $0xb88] sm:$0xff]  ;;  %v5637_v4 = vld [vmem:[%s19189_s11 + $0x38] sm:$0xff] }
 0x80c   :  { %6818 = vmatprep.subr.mxu0 %v5769_v27  ;;  %6889 = vmatprep.subr.mxu1 %v6121_v34  ;;  %v5989_v17 = vld [vmem:[%s19189_s11 + $0xb38] sm:$0xff]  ;;  %v5636_v27 = vld [vmem:[%s19189_s11 + $0x30] sm:$0xff] }
 0x80d   :  { %6819 = vmatpush1.msra.mxu0 %v5768_v29  ;;  %6890 = vmatpush1.msra.mxu1 %v6120_v40  ;;  %v5988_v34 = vld [vmem:[%s19189_s11 + $0xb30] sm:$0xff]  ;;  %v5978_v29 = vld [vmem:[%s19189_s11 + $0xae0] sm:$0xff]  ;;  %v6319_v40 = vld [vmem:[%s19189_s11 + $0x1588] sm:$0xff] }
 0x80e   :  { %6820 = vmatprep.subr.mxu0 %v5758_v50  ;;  %6891 = vmatprep.subr.mxu1 %v6110_v32  ;;  %v5977_v50 = vld [vmem:[%s19189_s11 + $0xad8] sm:$0xff]  ;;  %v6318_v32 = vld [vmem:[%s19189_s11 + $0x1580] sm:$0xff] }
 0x80f   :  { %6821 = vmatpush1.msra.mxu0 %v5757_v7  ;;  %6892 = vmatpush1.msra.mxu1 %v6109_v25  ;;  %v5967_v7 = vld [vmem:[%s19189_s11 + $0xa88] sm:$0xff]  ;;  %v6308_v25 = vld [vmem:[%s19189_s11 + $0x1530] sm:$0xff] }
 0x810   :  { %6822 = vmatprep.subr.mxu0 %v5747_v0  ;;  %6893 = vmatprep.subr.mxu1 %v6099_v41  ;;  %v5966_v0 = vld [vmem:[%s19189_s11 + $0xa80] sm:$0xff]  ;;  %v6307_v41 = vld [vmem:[%s19189_s11 + $0x1528] sm:$0xff] }
 0x811   :  { %6823 = vmatpush1.msra.mxu0 %v5746_v24  ;;  %6894 = vmatpush1.msra.mxu1 %v6098_v39  ;;  %v5956_v24 = vld [vmem:[%s19189_s11 + $0xa30] sm:$0xff]  ;;  %v6297_v39 = vld [vmem:[%s19189_s11 + $0x14d8] sm:$0xff] }
 0x812   :  { %6824 = vmatprep.subr.mxu0 %v5736_v43  ;;  %6895 = vmatprep.subr.mxu1 %v6088_v30  ;;  %v5955_v43 = vld [vmem:[%s19189_s11 + $0xa28] sm:$0xff]  ;;  %v6296_v30 = vld [vmem:[%s19189_s11 + $0x14d0] sm:$0xff] }
 0x813   :  { %6825 = vmatpush1.msra.mxu0 %v5735_v5  ;;  %6896 = vmatpush1.msra.mxu1 %v6087_v22  ;;  %v5945_v5 = vld [vmem:[%s19189_s11 + $0x9d8] sm:$0xff]  ;;  %v6286_v22 = vld [vmem:[%s19189_s11 + $0x1480] sm:$0xff] }
 0x814   :  { %6826 = vmatprep.subr.mxu0 %v5725_v42  ;;  %6897 = vmatprep.subr.mxu1 %v6077_v12  ;;  %v5944_v42 = vld [vmem:[%s19189_s11 + $0x9d0] sm:$0xff]  ;;  %v6285_v12 = vld [vmem:[%s19189_s11 + $0x1478] sm:$0xff] }
 0x815   :  { %6827 = vmatpush1.msra.mxu0 %v5724_v44  ;;  %6898 = vmatpush1.msra.mxu1 %v6076_v19  ;;  %v5934_v44 = vld [vmem:[%s19189_s11 + $0x980] sm:$0xff]  ;;  %v6275_v19 = vld [vmem:[%s19189_s11 + $0x1428] sm:$0xff] }
 0x816   :  { %6828 = vmatprep.subr.mxu0 %v5714_v55  ;;  %6899 = vmatprep.subr.mxu1 %v6066_v2  ;;  %v5933_v55 = vld [vmem:[%s19189_s11 + $0x978] sm:$0xff]  ;;  %v6274_v2 = vld [vmem:[%s19189_s11 + $0x1420] sm:$0xff] }
 0x817   :  { %6829 = vmatpush1.msra.mxu0 %v5713_v33  ;;  %6900 = vmatpush1.msra.mxu1 %v6065_v3  ;;  %v5923_v33 = vld [vmem:[%s19189_s11 + $0x928] sm:$0xff]  ;;  %v6264_v3 = vld [vmem:[%s19189_s11 + $0x13d0] sm:$0xff] }
 0x818   :  { %6830 = vmatprep.subr.mxu0 %v5703_v56  ;;  %6901 = vmatprep.subr.mxu1 %v6055_v28  ;;  %v5922_v56 = vld [vmem:[%s19189_s11 + $0x920] sm:$0xff]  ;;  %v6263_v28 = vld [vmem:[%s19189_s11 + $0x13c8] sm:$0xff] }
 0x819   :  { %6831 = vmatpush1.msra.mxu0 %v5702_v46  ;;  %6902 = vmatpush1.msra.mxu1 %v6054_v57  ;;  %v5912_v46 = vld [vmem:[%s19189_s11 + $0x8d0] sm:$0xff]  ;;  %v6253_v57 = vld [vmem:[%s19189_s11 + $0x1378] sm:$0xff] }
 0x81a   :  { %6832 = vmatprep.subr.mxu0 %v5692_v45  ;;  %6903 = vmatprep.subr.mxu1 %v6044_v58  ;;  %v5911_v45 = vld [vmem:[%s19189_s11 + $0x8c8] sm:$0xff]  ;;  %v6252_v58 = vld [vmem:[%s19189_s11 + $0x1370] sm:$0xff] }
 0x81b   :  { %6833 = vmatpush1.msra.mxu0 %v5691_v60  ;;  %6904 = vmatpush1.msra.mxu1 %v6043_v63  ;;  %v5901_v60 = vld [vmem:[%s19189_s11 + $0x878] sm:$0xff]  ;;  %v6242_v63 = vld [vmem:[%s19189_s11 + $0x1320] sm:$0xff] }
 0x81c   :  { %6834 = vmatprep.subr.mxu0 %v5681_v21  ;;  %6905 = vmatprep.subr.mxu1 %v6033_v62  ;;  %v5900_v21 = vld [vmem:[%s19189_s11 + $0x870] sm:$0xff]  ;;  %v6241_v62 = vld [vmem:[%s19189_s11 + $0x1318] sm:$0xff] }
 0x81d   :  { %6835 = vmatpush1.msra.mxu0 %v5680_v38  ;;  %6906 = vmatpush1.msra.mxu1 %v6032_v6  ;;  %v5890_v38 = vld [vmem:[%s19189_s11 + $0x820] sm:$0xff]  ;;  %v6231_v6 = vld [vmem:[%s19189_s11 + $0x12c8] sm:$0xff] }
 0x81e   :  { %6836 = vmatprep.subr.mxu0 %v5670_v9  ;;  %6907 = vmatprep.subr.mxu1 %v6022_v61  ;;  %v5889_v9 = vld [vmem:[%s19189_s11 + $0x818] sm:$0xff]  ;;  %v6230_v61 = vld [vmem:[%s19189_s11 + $0x12c0] sm:$0xff] }
 0x81f   :  { %6837 = vmatpush1.msra.mxu0 %v5669_v18  ;;  %6908 = vmatpush1.msra.mxu1 %v6021_v31  ;;  %v5879_v18 = vld [vmem:[%s19189_s11 + $0x7c8] sm:$0xff]  ;;  %v6220_v31 = vld [vmem:[%s19189_s11 + $0x1270] sm:$0xff] }
 0x820   :  { %6838 = vmatprep.subr.mxu0 %v5659_v54  ;;  %6909 = vmatprep.subr.mxu1 %v6011_v47  ;;  %v5878_v54 = vld [vmem:[%s19189_s11 + $0x7c0] sm:$0xff]  ;;  %v6219_v47 = vld [vmem:[%s19189_s11 + $0x1268] sm:$0xff] }
 0x821   :  { %6839 = vmatpush1.msra.mxu0 %v5658_v20  ;;  %6910 = vmatpush1.msra.mxu1 %v6010_v59  ;;  %v5868_v20 = vld [vmem:[%s19189_s11 + $0x770] sm:$0xff]  ;;  %v6209_v59 = vld [vmem:[%s19189_s11 + $0x1218] sm:$0xff] }
 0x822   :  { %6840 = vmatprep.subr.mxu0 %v5648_v53  ;;  %6911 = vmatprep.subr.mxu1 %v6000_v23  ;;  %v5867_v53 = vld [vmem:[%s19189_s11 + $0x768] sm:$0xff]  ;;  %v6208_v23 = vld [vmem:[%s19189_s11 + $0x1210] sm:$0xff] }
 0x823   :  { %6841 = vmatpush1.msra.mxu0 %v5647_v26  ;;  %6912 = vmatpush1.msra.mxu1 %v5999_v36  ;;  %v5857_v26 = vld [vmem:[%s19189_s11 + $0x718] sm:$0xff]  ;;  %v6198_v36 = vld [vmem:[%s19189_s11 + $0x11c0] sm:$0xff] }
 0x824   :  { %6842 = vmatprep.subr.mxu0 %v5637_v4  ;;  %6913 = vmatprep.subr.mxu1 %v5989_v17  ;;  %v5856_v4 = vld [vmem:[%s19189_s11 + $0x710] sm:$0xff]  ;;  %v6197_v17 = vld [vmem:[%s19189_s11 + $0x11b8] sm:$0xff] }
 0x825   :  { %6843 = vmatpush1.msra.mxu0 %v5636_v27  ;;  %6914 = vmatpush1.msra.mxu1 %v5988_v34  ;;  %v5846_v27 = vld [vmem:[%s19189_s11 + $0x6c0] sm:$0xff]  ;;  %v6187_v34 = vld [vmem:[%s19189_s11 + $0x1168] sm:$0xff] }
 0x826   :  { %6844 = vmatprep.subr.mxu0 %v5978_v29  ;;  %6917 = vmatprep.subr.mxu1 %v6319_v40  ;;  %v5845_v29 = vld [vmem:[%s19189_s11 + $0x6b8] sm:$0xff]  ;;  %v6186_v40 = vld [vmem:[%s19189_s11 + $0x1160] sm:$0xff] }
 0x827   :  { %6845 = vmatpush2.msra.mxu0 %v5977_v50  ;;  %6918 = vmatpush2.msra.mxu1 %v6318_v32  ;;  %v5835_v50 = vld [vmem:[%s19189_s11 + $0x668] sm:$0xff]  ;;  %v6176_v32 = vld [vmem:[%s19189_s11 + $0x1110] sm:$0xff] }
 0x828   :  { %6846 = vmatprep.subr.mxu0 %v5967_v7  ;;  %6919 = vmatprep.subr.mxu1 %v6308_v25  ;;  %v17286_v7 = vld [vmem:[%s19192_s12] sm:$0xff] }
 0x829   :  { %6847 = vmatpush2.msra.mxu0 %v5966_v0  ;;  %6920 = vmatpush2.msra.mxu1 %v6307_v41  ;;  %v5834_v25 = vld [vmem:[%s19189_s11 + $0x660] sm:$0xff]  ;;  %v6175_v0 = vld [vmem:[%s19189_s11 + $0x1108] sm:$0xff]  ;;  %v5824_v41 = vld [vmem:[%s19189_s11 + $0x610] sm:$0xff] }
 0x82a   :  { %6848 = vmatprep.subr.mxu0 %v5956_v24  ;;  %6921 = vmatprep.subr.mxu1 %v6297_v39  ;;  %v6165_v24 = vld [vmem:[%s19189_s11 + $0x10b8] sm:$0xff]  ;;  %v5823_v39 = vld [vmem:[%s19189_s11 + $0x608] sm:$0xff] }
 0x82b   :  { %6849 = vmatpush2.msra.mxu0 %v5955_v43  ;;  %6922 = vmatpush2.msra.mxu1 %v6296_v30  ;;  %v6164_v43 = vld [vmem:[%s19189_s11 + $0x10b0] sm:$0xff]  ;;  %v6330_v30 = vrot.slane %v17286_v7, %v9782_v49 }
 0x82c   :  { %6850 = vmatprep.subr.mxu0 %v5945_v5  ;;  %6923 = vmatprep.subr.mxu1 %v6286_v22  ;;  %v5813_v5 = vld [vmem:[%s19189_s11 + $0x5b8] sm:$0xff]  ;;  %v5804_v22 = vld [vmem:[%s19189_s11 + $0x570] sm:$0xff] }
 0x82d   :  { %6851 = vmatpush2.msra.mxu0 %v5944_v42  ;;  %6924 = vmatpush2.msra.mxu1 %v6285_v12  ;;  %v5812_v42 = vld [vmem:[%s19189_s11 + $0x5b0] sm:$0xff]  ;;  %v5803_v12 = vld [vmem:[%s19189_s11 + $0x568] sm:$0xff] }
 0x82e   :  { %6852 = vmatprep.subr.mxu0 %v5934_v44  ;;  %6925 = vmatprep.subr.mxu1 %v6275_v19  ;;  %v5793_v19 = vld [vmem:[%s19189_s11 + $0x518] sm:$0xff] }
 0x82f   :  { %6853 = vmatpush2.msra.mxu0 %v5933_v55  ;;  %6926 = vmatpush2.msra.mxu1 %v6274_v2  ;;  %v6156_v2 = vld [vmem:[%s19189_s11 + $0x1070] sm:$0xff] }
 0x830   :  { %6854 = vmatprep.subr.mxu0 %v5923_v33  ;;  %6927 = vmatprep.subr.mxu1 %v6264_v3  ;;  %v5792_v33 = vld [vmem:[%s19189_s11 + $0x510] sm:$0xff] }
 0x831   :  { %6855 = vmatpush2.msra.mxu0 %v5922_v56  ;;  %6928 = vmatpush2.msra.mxu1 %v6263_v28  ;;  %v6155_v56 = vld [vmem:[%s19189_s11 + $0x1068] sm:$0xff] }
 0x832   :  { %6856 = vmatprep.subr.mxu0 %v5912_v46  ;;  %6929 = vmatprep.subr.mxu1 %v6253_v57  ;;  %v5782_v46 = vld [vmem:[%s19189_s11 + $0x4c0] sm:$0xff]  ;;  %v6145_v57 = vld [vmem:[%s19189_s11 + $0x1018] sm:$0xff] }
 0x833   :  { %6857 = vmatpush2.msra.mxu0 %v5911_v45  ;;  %6930 = vmatpush2.msra.mxu1 %v6252_v58  ;;  %v5781_v45 = vld [vmem:[%s19189_s11 + $0x4b8] sm:$0xff]  ;;  %v6144_v58 = vld [vmem:[%s19189_s11 + $0x1010] sm:$0xff] }
 0x834   :  { %6858 = vmatprep.subr.mxu0 %v5901_v60  ;;  %6931 = vmatprep.subr.mxu1 %v6242_v63  ;;  %v5771_v60 = vld [vmem:[%s19189_s11 + $0x468] sm:$0xff]  ;;  %v6134_v63 = vld [vmem:[%s19189_s11 + $0xfc0] sm:$0xff] }
 0x835   :  { %6859 = vmatpush2.msra.mxu0 %v5900_v21  ;;  %6932 = vmatpush2.msra.mxu1 %v6241_v62  ;;  %v5770_v21 = vld [vmem:[%s19189_s11 + $0x460] sm:$0xff]  ;;  %v6133_v62 = vld [vmem:[%s19189_s11 + $0xfb8] sm:$0xff] }
 0x836   :  { %6860 = vmatprep.subr.mxu0 %v5890_v38  ;;  %6933 = vmatprep.subr.mxu1 %v6231_v6  ;;  %v5760_v38 = vld [vmem:[%s19189_s11 + $0x410] sm:$0xff]  ;;  %v6123_v6 = vld [vmem:[%s19189_s11 + $0xf68] sm:$0xff] }
 0x837   :  { %6861 = vmatpush2.msra.mxu0 %v5889_v9  ;;  %6934 = vmatpush2.msra.mxu1 %v6230_v61  ;;  %v5759_v9 = vld [vmem:[%s19189_s11 + $0x408] sm:$0xff]  ;;  %v6122_v61 = vld [vmem:[%s19189_s11 + $0xf60] sm:$0xff] }
 0x838   :  { %6862 = vmatprep.subr.mxu0 %v5879_v18  ;;  %6935 = vmatprep.subr.mxu1 %v6220_v31  ;;  %v5749_v18 = vld [vmem:[%s19189_s11 + $0x3b8] sm:$0xff]  ;;  %v6112_v31 = vld [vmem:[%s19189_s11 + $0xf10] sm:$0xff] }
 0x839   :  { %6863 = vmatpush2.msra.mxu0 %v5878_v54  ;;  %6936 = vmatpush2.msra.mxu1 %v6219_v47  ;;  %v5748_v54 = vld [vmem:[%s19189_s11 + $0x3b0] sm:$0xff]  ;;  %v6111_v47 = vld [vmem:[%s19189_s11 + $0xf08] sm:$0xff] }
 0x83a   :  { %6864 = vmatprep.subr.mxu0 %v5868_v20  ;;  %6937 = vmatprep.subr.mxu1 %v6209_v59  ;;  %v5738_v20 = vld [vmem:[%s19189_s11 + $0x360] sm:$0xff]  ;;  %v6101_v59 = vld [vmem:[%s19189_s11 + $0xeb8] sm:$0xff] }
 0x83b   :  { %6865 = vmatpush2.msra.mxu0 %v5867_v53  ;;  %6938 = vmatpush2.msra.mxu1 %v6208_v23  ;;  %v5737_v53 = vld [vmem:[%s19189_s11 + $0x358] sm:$0xff]  ;;  %v6100_v23 = vld [vmem:[%s19189_s11 + $0xeb0] sm:$0xff] }
 0x83c   :  { %6866 = vmatprep.subr.mxu0 %v5857_v26  ;;  %6939 = vmatprep.subr.mxu1 %v6198_v36  ;;  %v5727_v26 = vld [vmem:[%s19189_s11 + $0x308] sm:$0xff]  ;;  %v6090_v36 = vld [vmem:[%s19189_s11 + $0xe60] sm:$0xff] }
 0x83d   :  { %6867 = vmatpush2.msra.mxu0 %v5856_v4  ;;  %6940 = vmatpush2.msra.mxu1 %v6197_v17  ;;  %v5726_v4 = vld [vmem:[%s19189_s11 + $0x300] sm:$0xff]  ;;  %v6089_v17 = vld [vmem:[%s19189_s11 + $0xe58] sm:$0xff] }
 0x83e   :  { %6868 = vmatprep.subr.mxu0 %v5846_v27  ;;  %6941 = vmatprep.subr.mxu1 %v6187_v34  ;;  %v5716_v27 = vld [vmem:[%s19189_s11 + $0x2b0] sm:$0xff]  ;;  %v6079_v34 = vld [vmem:[%s19189_s11 + $0xe08] sm:$0xff] }
 0x83f   :  { %6869 = vmatpush2.msra.mxu0 %v5845_v29  ;;  %6942 = vmatpush2.msra.mxu1 %v6186_v40  ;;  %v5715_v29 = vld [vmem:[%s19189_s11 + $0x2a8] sm:$0xff]  ;;  %v6078_v40 = vld [vmem:[%s19189_s11 + $0xe00] sm:$0xff] }
 0x840   :  { %6870 = vmatprep.subr.mxu0 %v5835_v50  ;;  %6943 = vmatprep.subr.mxu1 %v6176_v32  ;;  %v5705_v50 = vld [vmem:[%s19189_s11 + $0x258] sm:$0xff]  ;;  %v6068_v32 = vld [vmem:[%s19189_s11 + $0xdb0] sm:$0xff] }
 0x841   :  { %6871 = vmatpush2.msra.mxu0 %v5834_v25  ;;  %6944 = vmatpush2.msra.mxu1 %v6175_v0  ;;  %v5704_v25 = vld [vmem:[%s19189_s11 + $0x250] sm:$0xff]  ;;  %v6067_v0 = vld [vmem:[%s19189_s11 + $0xda8] sm:$0xff] }
 0x842   :  { %6872 = vmatprep.subr.mxu0 %v5824_v41  ;;  %6945 = vmatprep.subr.mxu1 %v6165_v24  ;;  %v5694_v41 = vld [vmem:[%s19189_s11 + $0x200] sm:$0xff]  ;;  %v6057_v24 = vld [vmem:[%s19189_s11 + $0xd58] sm:$0xff] }
 0x843   :  { %6873 = vmatpush2.msra.mxu0 %v5823_v39  ;;  %6946 = vmatpush2.msra.mxu1 %v6164_v43  ;;  %v6452_v44 = vpop.f32.mrf.mxu1  ;;  %v6523_v3 = vpop.f32.mrf.mxu0  ;;  %v5693_v39 = vld [vmem:[%s19189_s11 + $0x1f8] sm:$0xff]  ;;  %v6056_v43 = vld [vmem:[%s19189_s11 + $0xd50] sm:$0xff] }
 0x844   :  { %6874 = vmatprep.subr.mxu0 %v5813_v5  ;;  %6948 = vmatmul.mubr.f32.vlgmr.msra.gmra.mxu1 %v16159_v15  ;;  %v6453_v55 = vadd.f32 %v6452_v44, %v6330_v30  ;;  %v5683_v30 = vld [vmem:[%s19189_s11 + $0x1a8] sm:$0xff]  ;;  %v6046_v5 = vld [vmem:[%s19189_s11 + $0xd00] sm:$0xff] }
 0x845   :  { %6954 = vmatprep.subr.mxu1 %v5804_v22  ;;  %6875 = vmatpush2.msra.mxu0 %v5812_v42  ;;  %v5682_v22 = vld [vmem:[%s19189_s11 + $0x1a0] sm:$0xff]  ;;  %v6045_v42 = vld [vmem:[%s19189_s11 + $0xcf8] sm:$0xff]  ;;  %v6035_v44 = vld [vmem:[%s19189_s11 + $0xca8] sm:$0xff] }
 0x846   :  { %6955 = vmatpush1.msra.mxu1 %v5803_v12  ;;  %7018 = vmatprep.mubr.f32.mxu1 %v16153_v10  ;;  %v17334_v28 = vadd.f32 %v6523_v3, %v6453_v55  ;;  %v5672_v12 = vld [vmem:[%s19189_s11 + $0x150] sm:$0xff]  ;;  %v6034_v55 = vld [vmem:[%s19189_s11 + $0xca0] sm:$0xff] }
 0x847   :  { %6877 = vmatmul.mubr.f32.vlgmr.msra.gmra.mxu0 %v16157_v14  ;;  %6956 = vmatprep.subr.mxu1 %v5793_v19  ;;  %v5671_v19 = vld [vmem:[%s19189_s11 + $0x148] sm:$0xff]  ;;  %v5660_v3 = vld [vmem:[%s19189_s11 + $0xf0] sm:$0xff] }
 0x848   :  { %7025 = vmatprep.subr.mxu0 %v6156_v2  ;;  %6957 = vmatpush1.msra.mxu1 %v5792_v33  ;;  %v5661_v2 = vld [vmem:[%s19189_s11 + $0xf8] sm:$0xff]  ;;  %v6024_v33 = vld [vmem:[%s19189_s11 + $0xc50] sm:$0xff] }
 0x849   :  { %7026 = vmatpush1.msra.mxu0 %v6155_v56  ;;  %8257 = vmatprep.mubr.msk.f32.mxu0 %vm6382_vm2, %v16155_v1  ;;  %v6023_v56 = vld [vmem:[%s19189_s11 + $0xc48] sm:$0xff] }
 0x84a   :  { %6958 = vmatprep.subr.mxu1 %v5782_v46  ;;  %7027 = vmatprep.subr.mxu0 %v6145_v57  ;;  %v5650_v46 = vld [vmem:[%s19189_s11 + $0xa0] sm:$0xff]  ;;  %v6013_v57 = vld [vmem:[%s19189_s11 + $0xbf8] sm:$0xff] }
 0x84b   :  { %6959 = vmatpush1.msra.mxu1 %v5781_v45  ;;  %7028 = vmatpush1.msra.mxu0 %v6144_v58  ;;  %v5649_v45 = vld [vmem:[%s19189_s11 + $0x98] sm:$0xff]  ;;  %v6012_v58 = vld [vmem:[%s19189_s11 + $0xbf0] sm:$0xff] }
 0x84c   :  { %6960 = vmatprep.subr.mxu1 %v5771_v60  ;;  %7029 = vmatprep.subr.mxu0 %v6134_v63  ;;  %v5639_v60 = vld [vmem:[%s19189_s11 + $0x48] sm:$0xff]  ;;  %v6002_v63 = vld [vmem:[%s19189_s11 + $0xba0] sm:$0xff] }
 0x84d   :  { %6961 = vmatpush1.msra.mxu1 %v5770_v21  ;;  %7030 = vmatpush1.msra.mxu0 %v6133_v62  ;;  %v5638_v21 = vld [vmem:[%s19189_s11 + $0x40] sm:$0xff]  ;;  %v6001_v62 = vld [vmem:[%s19189_s11 + $0xb98] sm:$0xff] }
 0x84e   :  { %6962 = vmatprep.subr.mxu1 %v5760_v38  ;;  %7031 = vmatprep.subr.mxu0 %v6123_v6  ;;  %v5980_v38 = vld [vmem:[%s19189_s11 + $0xaf0] sm:$0xff]  ;;  %v5991_v6 = vld [vmem:[%s19189_s11 + $0xb48] sm:$0xff] }
 0x84f   :  { %6963 = vmatpush1.msra.mxu1 %v5759_v9  ;;  %7032 = vmatpush1.msra.mxu0 %v6122_v61  ;;  %v5979_v9 = vld [vmem:[%s19189_s11 + $0xae8] sm:$0xff]  ;;  %v5990_v61 = vld [vmem:[%s19189_s11 + $0xb40] sm:$0xff] }
 0x850   :  { %6964 = vmatprep.subr.mxu1 %v5749_v18  ;;  %7033 = vmatprep.subr.mxu0 %v6112_v31  ;;  %v5969_v18 = vld [vmem:[%s19189_s11 + $0xa98] sm:$0xff] }
 0x851   :  { %6965 = vmatpush1.msra.mxu1 %v5748_v54  ;;  %7034 = vmatpush1.msra.mxu0 %v6111_v47  ;;  %v6321_v31 = vld [vmem:[%s19189_s11 + $0x1598] sm:$0xff]  ;;  %v5968_v54 = vld [vmem:[%s19189_s11 + $0xa90] sm:$0xff] }
 0x852   :  { %6966 = vmatprep.subr.mxu1 %v5738_v20  ;;  %7035 = vmatprep.subr.mxu0 %v6101_v59  ;;  %v6320_v47 = vld [vmem:[%s19189_s11 + $0x1590] sm:$0xff]  ;;  %v5958_v20 = vld [vmem:[%s19189_s11 + $0xa40] sm:$0xff] }
 0x853   :  { %6967 = vmatpush1.msra.mxu1 %v5737_v53  ;;  %7036 = vmatpush1.msra.mxu0 %v6100_v23  ;;  %v6310_v59 = vld [vmem:[%s19189_s11 + $0x1540] sm:$0xff]  ;;  %v5957_v53 = vld [vmem:[%s19189_s11 + $0xa38] sm:$0xff] }
 0x854   :  { %6968 = vmatprep.subr.mxu1 %v5727_v26  ;;  %7037 = vmatprep.subr.mxu0 %v6090_v36  ;;  %v6309_v23 = vld [vmem:[%s19189_s11 + $0x1538] sm:$0xff]  ;;  %v5947_v26 = vld [vmem:[%s19189_s11 + $0x9e8] sm:$0xff] }
 0x855   :  { %6969 = vmatpush1.msra.mxu1 %v5726_v4  ;;  %7038 = vmatpush1.msra.mxu0 %v6089_v17  ;;  %v6299_v36 = vld [vmem:[%s19189_s11 + $0x14e8] sm:$0xff]  ;;  %v5946_v4 = vld [vmem:[%s19189_s11 + $0x9e0] sm:$0xff] }
 0x856   :  { %6970 = vmatprep.subr.mxu1 %v5716_v27  ;;  %7039 = vmatprep.subr.mxu0 %v6079_v34  ;;  %v6298_v17 = vld [vmem:[%s19189_s11 + $0x14e0] sm:$0xff]  ;;  %v5936_v27 = vld [vmem:[%s19189_s11 + $0x990] sm:$0xff] }
 0x857   :  { %6971 = vmatpush1.msra.mxu1 %v5715_v29  ;;  %7040 = vmatpush1.msra.mxu0 %v6078_v40  ;;  %v6288_v34 = vld [vmem:[%s19189_s11 + $0x1490] sm:$0xff]  ;;  %v5935_v29 = vld [vmem:[%s19189_s11 + $0x988] sm:$0xff] }
 0x858   :  { %6972 = vmatprep.subr.mxu1 %v5705_v50  ;;  %7041 = vmatprep.subr.mxu0 %v6068_v32  ;;  %v6287_v40 = vld [vmem:[%s19189_s11 + $0x1488] sm:$0xff]  ;;  %v5925_v50 = vld [vmem:[%s19189_s11 + $0x938] sm:$0xff] }
 0x859   :  { %6973 = vmatpush1.msra.mxu1 %v5704_v25  ;;  %7042 = vmatpush1.msra.mxu0 %v6067_v0  ;;  %v6277_v32 = vld [vmem:[%s19189_s11 + $0x1438] sm:$0xff]  ;;  %v5924_v25 = vld [vmem:[%s19189_s11 + $0x930] sm:$0xff] }
 0x85a   :  { %6974 = vmatprep.subr.mxu1 %v5694_v41  ;;  %7043 = vmatprep.subr.mxu0 %v6057_v24  ;;  %v6276_v0 = vld [vmem:[%s19189_s11 + $0x1430] sm:$0xff]  ;;  %v5914_v41 = vld [vmem:[%s19189_s11 + $0x8e0] sm:$0xff] }
 0x85b   :  { %6975 = vmatpush1.msra.mxu1 %v5693_v39  ;;  %7044 = vmatpush1.msra.mxu0 %v6056_v43  ;;  %v6266_v24 = vld [vmem:[%s19189_s11 + $0x13e0] sm:$0xff]  ;;  %v5913_v39 = vld [vmem:[%s19189_s11 + $0x8d8] sm:$0xff] }
 0x85c   :  { %6976 = vmatprep.subr.mxu1 %v5683_v30  ;;  %7045 = vmatprep.subr.mxu0 %v6046_v5  ;;  %v6265_v43 = vld [vmem:[%s19189_s11 + $0x13d8] sm:$0xff]  ;;  %v5903_v30 = vld [vmem:[%s19189_s11 + $0x888] sm:$0xff] }
 0x85d   :  { %6977 = vmatpush1.msra.mxu1 %v5682_v22  ;;  %7046 = vmatpush1.msra.mxu0 %v6045_v42  ;;  %v6255_v5 = vld [vmem:[%s19189_s11 + $0x1388] sm:$0xff]  ;;  %v5902_v22 = vld [vmem:[%s19189_s11 + $0x880] sm:$0xff] }
 0x85e   :  { %6978 = vmatprep.subr.mxu1 %v5672_v12  ;;  %7047 = vmatprep.subr.mxu0 %v6035_v44  ;;  %v6254_v42 = vld [vmem:[%s19189_s11 + $0x1380] sm:$0xff]  ;;  %v5892_v12 = vld [vmem:[%s19189_s11 + $0x830] sm:$0xff] }
 0x85f   :  { %6979 = vmatpush1.msra.mxu1 %v5671_v19  ;;  %7048 = vmatpush1.msra.mxu0 %v6034_v55  ;;  %v6244_v44 = vld [vmem:[%s19189_s11 + $0x1330] sm:$0xff]  ;;  %v5891_v19 = vld [vmem:[%s19189_s11 + $0x828] sm:$0xff] }
 0x860   :  { %6980 = vmatprep.subr.mxu1 %v5661_v2  ;;  %7049 = vmatprep.subr.mxu0 %v6024_v33  ;;  %v6243_v55 = vld [vmem:[%s19189_s11 + $0x1328] sm:$0xff]  ;;  %v5881_v2 = vld [vmem:[%s19189_s11 + $0x7d8] sm:$0xff] }
 0x861   :  { %6981 = vmatpush1.msra.mxu1 %v5660_v3  ;;  %7050 = vmatpush1.msra.mxu0 %v6023_v56  ;;  %v6233_v33 = vld [vmem:[%s19189_s11 + $0x12d8] sm:$0xff]  ;;  %v5880_v3 = vld [vmem:[%s19189_s11 + $0x7d0] sm:$0xff] }
 0x862   :  { %6982 = vmatprep.subr.mxu1 %v5650_v46  ;;  %7051 = vmatprep.subr.mxu0 %v6013_v57  ;;  %v6232_v56 = vld [vmem:[%s19189_s11 + $0x12d0] sm:$0xff]  ;;  %v5870_v46 = vld [vmem:[%s19189_s11 + $0x780] sm:$0xff] }
 0x863   :  { %6983 = vmatpush1.msra.mxu1 %v5649_v45  ;;  %7052 = vmatpush1.msra.mxu0 %v6012_v58  ;;  %v6222_v57 = vld [vmem:[%s19189_s11 + $0x1280] sm:$0xff]  ;;  %v5869_v45 = vld [vmem:[%s19189_s11 + $0x778] sm:$0xff] }
 0x864   :  { %6984 = vmatprep.subr.mxu1 %v5639_v60  ;;  %7053 = vmatprep.subr.mxu0 %v6002_v63  ;;  %v6221_v58 = vld [vmem:[%s19189_s11 + $0x1278] sm:$0xff]  ;;  %v5859_v60 = vld [vmem:[%s19189_s11 + $0x728] sm:$0xff] }
 0x865   :  { %6985 = vmatpush1.msra.mxu1 %v5638_v21  ;;  %7054 = vmatpush1.msra.mxu0 %v6001_v62  ;;  %v6211_v63 = vld [vmem:[%s19189_s11 + $0x1228] sm:$0xff]  ;;  %v5858_v21 = vld [vmem:[%s19189_s11 + $0x720] sm:$0xff] }
 0x866   :  { %6986 = vmatprep.subr.mxu1 %v5980_v38  ;;  %7055 = vmatprep.subr.mxu0 %v5991_v6  ;;  %v6210_v62 = vld [vmem:[%s19189_s11 + $0x1220] sm:$0xff]  ;;  %v5848_v38 = vld [vmem:[%s19189_s11 + $0x6d0] sm:$0xff] }
 0x867   :  { %6987 = vmatpush2.msra.mxu1 %v5979_v9  ;;  %7056 = vmatpush1.msra.mxu0 %v5990_v61  ;;  %v6200_v6 = vld [vmem:[%s19189_s11 + $0x11d0] sm:$0xff]  ;;  %v5847_v9 = vld [vmem:[%s19189_s11 + $0x6c8] sm:$0xff] }
 0x868   :  { %6988 = vmatprep.subr.mxu1 %v5969_v18  ;;  %7059 = vmatprep.subr.mxu0 %v6321_v31  ;;  %v6199_v61 = vld [vmem:[%s19189_s11 + $0x11c8] sm:$0xff]  ;;  %v5837_v18 = vld [vmem:[%s19189_s11 + $0x678] sm:$0xff] }
 0x869   :  { %6989 = vmatpush2.msra.mxu1 %v5968_v54  ;;  %7060 = vmatpush2.msra.mxu0 %v6320_v47  ;;  %v6189_v31 = vld [vmem:[%s19189_s11 + $0x1178] sm:$0xff]  ;;  %v5836_v54 = vld [vmem:[%s19189_s11 + $0x670] sm:$0xff] }
 0x86a   :  { %6990 = vmatprep.subr.mxu1 %v5958_v20  ;;  %7061 = vmatprep.subr.mxu0 %v6310_v59  ;;  %v6188_v47 = vld [vmem:[%s19189_s11 + $0x1170] sm:$0xff]  ;;  %v5826_v20 = vld [vmem:[%s19189_s11 + $0x620] sm:$0xff] }
 0x86b   :  { %6991 = vmatpush2.msra.mxu1 %v5957_v53  ;;  %7062 = vmatpush2.msra.mxu0 %v6309_v23  ;;  %v6178_v59 = vld [vmem:[%s19189_s11 + $0x1120] sm:$0xff]  ;;  %v5825_v53 = vld [vmem:[%s19189_s11 + $0x618] sm:$0xff] }
 0x86c   :  { %6992 = vmatprep.subr.mxu1 %v5947_v26  ;;  %7063 = vmatprep.subr.mxu0 %v6299_v36  ;;  %v6177_v23 = vld [vmem:[%s19189_s11 + $0x1118] sm:$0xff]  ;;  %v5815_v26 = vld [vmem:[%s19189_s11 + $0x5c8] sm:$0xff] }
 0x86d   :  { %6993 = vmatpush2.msra.mxu1 %v5946_v4  ;;  %7064 = vmatpush2.msra.mxu0 %v6298_v17  ;;  %v6167_v36 = vld [vmem:[%s19189_s11 + $0x10c8] sm:$0xff]  ;;  %v5814_v4 = vld [vmem:[%s19189_s11 + $0x5c0] sm:$0xff] }
 0x86e   :  { %6994 = vmatprep.subr.mxu1 %v5936_v27  ;;  %7065 = vmatprep.subr.mxu0 %v6288_v34  ;;  %v6166_v17 = vld [vmem:[%s19189_s11 + $0x10c0] sm:$0xff]  ;;  %v6338_v27 = vrot.slane %v17286_v7, %v9779_v48  ;;  %v17701_v34 = vpop.f32.mrf.mxu0 }
 0x86f   :  { %6995 = vmatpush2.msra.mxu1 %v5935_v29  ;;  %7066 = vmatpush2.msra.mxu0 %v6287_v40  ;;  %v5981_v29 = vld [vmem:[%s19189_s11 + $0xaf8] sm:$0xff]  ;;  %v17706_v40 = vpop.f32.mrf.mxu1 }
 0x870   :  { %6996 = vmatprep.subr.mxu1 %v5925_v50  ;;  %7067 = vmatprep.subr.mxu0 %v6277_v32  ;;  %v5805_v50 = vld [vmem:[%s19189_s11 + $0x578] sm:$0xff] }
 0x871   :  { %6997 = vmatpush2.msra.mxu1 %v5924_v25  ;;  %7068 = vmatpush2.msra.mxu0 %v6276_v0  ;;  %v6157_v25 = vld [vmem:[%s19189_s11 + $0x1078] sm:$0xff] }
 0x872   :  { %6998 = vmatprep.subr.mxu1 %v5914_v41  ;;  %7069 = vmatprep.subr.mxu0 %v6266_v24  ;;  %v5970_v24 = vld [vmem:[%s19189_s11 + $0xaa0] sm:$0xff] }
 0x873   :  { %6999 = vmatpush2.msra.mxu1 %v5913_v39  ;;  %7070 = vmatpush2.msra.mxu0 %v6265_v43  ;;  %v5794_v39 = vld [vmem:[%s19189_s11 + $0x520] sm:$0xff] }
 0x874   :  { %7000 = vmatprep.subr.mxu1 %v5903_v30  ;;  %7071 = vmatprep.subr.mxu0 %v6255_v5  ;;  %v6146_v43 = vld [vmem:[%s19189_s11 + $0x1020] sm:$0xff]  ;;  %v5959_v5 = vld [vmem:[%s19189_s11 + $0xa48] sm:$0xff] }
 0x875   :  { %7001 = vmatpush2.msra.mxu1 %v5902_v22  ;;  %7072 = vmatpush2.msra.mxu0 %v6254_v42  ;;  %v6135_v22 = vld [vmem:[%s19189_s11 + $0xfc8] sm:$0xff]  ;;  %v5772_v42 = vld [vmem:[%s19189_s11 + $0x470] sm:$0xff] }
 0x876   :  { %7002 = vmatprep.subr.mxu1 %v5892_v12  ;;  %7073 = vmatprep.subr.mxu0 %v6244_v44  ;;  %v6124_v12 = vld [vmem:[%s19189_s11 + $0xf70] sm:$0xff]  ;;  %v5937_v44 = vld [vmem:[%s19189_s11 + $0x998] sm:$0xff] }
 0x877   :  { %7003 = vmatpush2.msra.mxu1 %v5891_v19  ;;  %7074 = vmatpush2.msra.mxu0 %v6243_v55  ;;  %v5761_v19 = vld [vmem:[%s19189_s11 + $0x418] sm:$0xff] }
 0x878   :  { %7004 = vmatprep.subr.mxu1 %v5881_v2  ;;  %7075 = vmatprep.subr.mxu0 %v6233_v33  ;;  %v6113_v55 = vld [vmem:[%s19189_s11 + $0xf18] sm:$0xff]  ;;  %v5926_v2 = vld [vmem:[%s19189_s11 + $0x940] sm:$0xff] }
 0x879   :  { %7005 = vmatpush2.msra.mxu1 %v5880_v3  ;;  %7076 = vmatpush2.msra.mxu0 %v6232_v56  ;;  %v5750_v33 = vld [vmem:[%s19189_s11 + $0x3c0] sm:$0xff]  ;;  %v5915_v56 = vld [vmem:[%s19189_s11 + $0x8e8] sm:$0xff] }
 0x87a   :  { %7006 = vmatprep.subr.mxu1 %v5870_v46  ;;  %7077 = vmatprep.subr.mxu0 %v6222_v57  ;;  %v6102_v3 = vld [vmem:[%s19189_s11 + $0xec0] sm:$0xff]  ;;  %v5739_v46 = vld [vmem:[%s19189_s11 + $0x368] sm:$0xff] }
 0x87b   :  { %7007 = vmatpush2.msra.mxu1 %v5869_v45  ;;  %7078 = vmatpush2.msra.mxu0 %v6221_v58  ;;  %v6091_v57 = vld [vmem:[%s19189_s11 + $0xe68] sm:$0xff]  ;;  %v5904_v45 = vld [vmem:[%s19189_s11 + $0x890] sm:$0xff] }
 0x87c   :  { %7008 = vmatprep.subr.mxu1 %v5859_v60  ;;  %7079 = vmatprep.subr.mxu0 %v6211_v63  ;;  %v5728_v58 = vld [vmem:[%s19189_s11 + $0x310] sm:$0xff]  ;;  %v5893_v63 = vld [vmem:[%s19189_s11 + $0x838] sm:$0xff] }
 0x87d   :  { %7009 = vmatpush2.msra.mxu1 %v5858_v21  ;;  %7080 = vmatpush2.msra.mxu0 %v6210_v62  ;;  %v6080_v60 = vld [vmem:[%s19189_s11 + $0xe10] sm:$0xff]  ;;  %v5717_v21 = vld [vmem:[%s19189_s11 + $0x2b8] sm:$0xff] }
 0x87e   :  { %7010 = vmatprep.subr.mxu1 %v5848_v38  ;;  %7081 = vmatprep.subr.mxu0 %v6200_v6  ;;  %v6069_v62 = vld [vmem:[%s19189_s11 + $0xdb8] sm:$0xff]  ;;  %v5882_v38 = vld [vmem:[%s19189_s11 + $0x7e0] sm:$0xff] }
 0x87f   :  { %7011 = vmatpush2.msra.mxu1 %v5847_v9  ;;  %7082 = vmatpush2.msra.mxu0 %v6199_v61  ;;  %v5706_v6 = vld [vmem:[%s19189_s11 + $0x260] sm:$0xff]  ;;  %v5871_v61 = vld [vmem:[%s19189_s11 + $0x788] sm:$0xff] }
 0x880   :  { %7012 = vmatprep.subr.mxu1 %v5837_v18  ;;  %7083 = vmatprep.subr.mxu0 %v6189_v31  ;;  %v6058_v9 = vld [vmem:[%s19189_s11 + $0xd60] sm:$0xff]  ;;  %v5695_v18 = vld [vmem:[%s19189_s11 + $0x208] sm:$0xff] }
 0x881   :  { %7013 = vmatpush2.msra.mxu1 %v5836_v54  ;;  %7084 = vmatpush2.msra.mxu0 %v6188_v47  ;;  %v6047_v31 = vld [vmem:[%s19189_s11 + $0xd08] sm:$0xff]  ;;  %v5860_v54 = vld [vmem:[%s19189_s11 + $0x730] sm:$0xff]  ;;  %v6334_v47 = vrot.slane %v17286_v7, %v9790_v51 }
 0x882   :  { %7014 = vmatprep.subr.mxu1 %v5826_v20  ;;  %7085 = vmatprep.subr.mxu0 %v6178_v59  ;;  %v6665_v41 = vpop.f32.mrf.mxu1  ;;  %v5684_v20 = vld [vmem:[%s19189_s11 + $0x1b0] sm:$0xff] }
 0x883   :  { %7015 = vmatpush2.msra.mxu1 %v5825_v53  ;;  %7086 = vmatpush2.msra.mxu0 %v6177_v23  ;;  %v6036_v59 = vld [vmem:[%s19189_s11 + $0xcb0] sm:$0xff]  ;;  %v5849_v53 = vld [vmem:[%s19189_s11 + $0x6d8] sm:$0xff] }
 0x884   :  { %7016 = vmatprep.subr.mxu1 %v5815_v26  ;;  %7087 = vmatprep.subr.mxu0 %v6167_v36  ;;  %v5673_v23 = vld [vmem:[%s19189_s11 + $0x158] sm:$0xff]  ;;  %v5838_v36 = vld [vmem:[%s19189_s11 + $0x680] sm:$0xff] }
 0x885   :  { %7017 = vmatpush2.msra.mxu1 %v5814_v4  ;;  %7088 = vmatpush2.msra.mxu0 %v6166_v17  ;;  %v6594_v32 = vpop.f32.mrf.mxu0  ;;  %v6025_v26 = vld [vmem:[%s19189_s11 + $0xc58] sm:$0xff]  ;;  %v6455_v4 = vadd.f32 %v17706_v40, %v6334_v47  ;;  %v5662_v17 = vld [vmem:[%s19189_s11 + $0x100] sm:$0xff]  ;;  %v5651_v40 = vld [vmem:[%s19189_s11 + $0xa8] sm:$0xff] }
 0x886   :  { %7019 = vmatmul.mubr.f32.vlgmr.msra.gmra.mxu1 %v16157_v14  ;;  %7090 = vmatmul.mubr.f32.vlgmr.msra.gmra.mxu0 %v16159_v15  ;;  %v6595_v0 = vadd.f32 %v6594_v32, %v6338_v27  ;;  %v6014_v27 = vld [vmem:[%s19189_s11 + $0xc00] sm:$0xff]  ;;  %v5816_v32 = vld [vmem:[%s19189_s11 + $0x5d0] sm:$0xff] }
 0x887   :  { %8475 = vmatprep.subr.mxu0 %v5981_v29  ;;  %7166 = vmatprep.subr.mxu1 %v8560_v13  ;;  %v5827_v29 = vld [vmem:[%s19189_s11 + $0x628] sm:$0xff]  ;;  %v6212_v47 = vld [vmem:[%s19189_s11 + $0x1230] sm:$0xff] }
 0x888   :  { %8476 = vmatpush3.msra.mxu0 %v5805_v50  ;;  %7160 = vmatprep.mubr.f32.mxu0 %v16153_v10  ;;  %v17727_v30 = vadd.f32 %v6665_v41, %v6595_v0  ;;  %v5783_v10 = vld [vmem:[%s19189_s11 + $0x4c8] sm:$0xff]  ;;  %v5640_v0 = vld [vmem:[%s19189_s11 + $0x50] sm:$0xff] }
 0x889   :  { %7167 = vmatpush1.msra.mxu1 %v6157_v25  ;;  %8258 = vmatprep.mubr.msk.f32.mxu1 %vm6382_vm2, %v16155_v1  ;;  %v5948_v1 = vld [vmem:[%s19189_s11 + $0x9f0] sm:$0xff]  ;;  %v6003_v50 = vld [vmem:[%s19189_s11 + $0xba8] sm:$0xff]  ;;  %v6526_v25 = vadd.f32 %v17701_v34, %v6455_v4  ;;  %v7278_v34 = vld [vmem:[%s19193_s13 + $0xf8] sm:$0xff] }
 0x88a   :  { %8477 = vmatprep.subr.mxu0 %v5970_v24  ;;  %7168 = vmatprep.subr.mxu1 %v8560_v13  ;;  %v5992_v41 = vld [vmem:[%s19189_s11 + $0xb50] sm:$0xff]  ;;  %v6322_v24 = vld [vmem:[%s19189_s11 + $0x15a0] sm:$0xff] }
 0x88b   :  { %8478 = vmatpush3.msra.mxu0 %v5794_v39  ;;  %7169 = vmatpush1.msra.mxu1 %v6146_v43  ;;  %v7277_v39 = vld [vmem:[%s19193_s13 + $0xf0] sm:$0xff]  ;;  %v7237_v43 = vmax.f32 %v6526_v25, 0.0  ;;  %v6190_v4 = vld [vmem:[%s19189_s11 + $0x1180] sm:$0xff]  ;;  %v7250_v25 = vld [vmem:[%s19193_s13 + $0x18] sm:$0xff] }
 0x88c   :  { %8479 = vmatprep.subr.mxu0 %v5959_v5  ;;  %7170 = vmatprep.subr.mxu1 %v8560_v13  ;;  %v7276_v5 = vld [vmem:[%s19193_s13 + $0xe8] sm:$0xff] }
 0x88d   :  { %8480 = vmatpush3.msra.mxu0 %v5783_v10  ;;  %7171 = vmatpush1.msra.mxu1 %v6135_v22  ;;  %v6311_v10 = vld [vmem:[%s19189_s11 + $0x1548] sm:$0xff]  ;;  %v7275_v22 = vld [vmem:[%s19193_s13 + $0xe0] sm:$0xff] }
 0x88e   :  { %8481 = vmatprep.subr.mxu0 %v5948_v1  ;;  %7172 = vmatprep.subr.mxu1 %v8560_v13  ;;  %v6300_v1 = vld [vmem:[%s19189_s11 + $0x14f0] sm:$0xff] }
 0x88f   :  { %8482 = vmatpush3.msra.mxu0 %v5772_v42  ;;  %7173 = vmatpush1.msra.mxu1 %v6124_v12  ;;  %v7273_v42 = vld [vmem:[%s19193_s13 + $0xd0] sm:$0xff]  ;;  %v7272_v12 = vld [vmem:[%s19193_s13 + $0xc8] sm:$0xff] }
 0x890   :  { %8483 = vmatprep.subr.mxu0 %v5937_v44  ;;  %7174 = vmatprep.subr.mxu1 %v8560_v13  ;;  %v6289_v44 = vld [vmem:[%s19189_s11 + $0x1498] sm:$0xff] }
 0x891   :  { %8484 = vmatpush3.msra.mxu0 %v5761_v19  ;;  %7175 = vmatpush1.msra.mxu1 %v6113_v55  ;;  %v7271_v19 = vld [vmem:[%s19193_s13 + $0xc0] sm:$0xff]  ;;  %v7270_v55 = vld [vmem:[%s19193_s13 + $0xb8] sm:$0xff] }
 0x892   :  { %8485 = vmatprep.subr.mxu0 %v5926_v2  ;;  %7176 = vmatprep.subr.mxu1 %v8560_v13  ;;  %v6278_v2 = vld [vmem:[%s19189_s11 + $0x1440] sm:$0xff] }
 0x893   :  { %8486 = vmatpush3.msra.mxu0 %v5750_v33  ;;  %7177 = vmatpush1.msra.mxu1 %v6102_v3  ;;  %v7269_v33 = vld [vmem:[%s19193_s13 + $0xb0] sm:$0xff]  ;;  %v7268_v3 = vld [vmem:[%s19193_s13 + $0xa8] sm:$0xff] }
 0x894   :  { %8487 = vmatprep.subr.mxu0 %v5915_v56  ;;  %7178 = vmatprep.subr.mxu1 %v8560_v13  ;;  %v6267_v56 = vld [vmem:[%s19189_s11 + $0x13e8] sm:$0xff] }
 0x895   :  { %8488 = vmatpush3.msra.mxu0 %v5739_v46  ;;  %7179 = vmatpush1.msra.mxu1 %v6091_v57  ;;  %v7267_v46 = vld [vmem:[%s19193_s13 + $0xa0] sm:$0xff]  ;;  %v7266_v57 = vld [vmem:[%s19193_s13 + $0x98] sm:$0xff] }
 0x896   :  { %8489 = vmatprep.subr.mxu0 %v5904_v45  ;;  %7180 = vmatprep.subr.mxu1 %v8560_v13  ;;  %v6256_v45 = vld [vmem:[%s19189_s11 + $0x1390] sm:$0xff] }
 0x897   :  { %8490 = vmatpush3.msra.mxu0 %v5728_v58  ;;  %7181 = vmatpush1.msra.mxu1 %v6080_v60  ;;  %v7265_v58 = vld [vmem:[%s19193_s13 + $0x90] sm:$0xff]  ;;  %v7264_v60 = vld [vmem:[%s19193_s13 + $0x88] sm:$0xff] }
 0x898   :  { %8491 = vmatprep.subr.mxu0 %v5893_v63  ;;  %7182 = vmatprep.subr.mxu1 %v8560_v13  ;;  %v6245_v63 = vld [vmem:[%s19189_s11 + $0x1338] sm:$0xff] }
 0x899   :  { %8492 = vmatpush3.msra.mxu0 %v5717_v21  ;;  %7183 = vmatpush1.msra.mxu1 %v6069_v62  ;;  %v7263_v21 = vld [vmem:[%s19193_s13 + $0x80] sm:$0xff]  ;;  %v7262_v62 = vld [vmem:[%s19193_s13 + $0x78] sm:$0xff] }
 0x89a   :  { %8493 = vmatprep.subr.mxu0 %v5882_v38  ;;  %7184 = vmatprep.subr.mxu1 %v8560_v13  ;;  %v6234_v38 = vld [vmem:[%s19189_s11 + $0x12e0] sm:$0xff] }
 0x89b   :  { %8494 = vmatpush3.msra.mxu0 %v5706_v6  ;;  %7185 = vmatpush1.msra.mxu1 %v6058_v9  ;;  %v7261_v6 = vld [vmem:[%s19193_s13 + $0x70] sm:$0xff]  ;;  %v7260_v9 = vld [vmem:[%s19193_s13 + $0x68] sm:$0xff] }
 0x89c   :  { %8495 = vmatprep.subr.mxu0 %v5871_v61  ;;  %7186 = vmatprep.subr.mxu1 %v8560_v13  ;;  %v6223_v61 = vld [vmem:[%s19189_s11 + $0x1288] sm:$0xff] }
 0x89d   :  { %8496 = vmatpush3.msra.mxu0 %v5695_v18  ;;  %7187 = vmatpush1.msra.mxu1 %v6047_v31  ;;  %v7259_v18 = vld [vmem:[%s19193_s13 + $0x60] sm:$0xff]  ;;  %v7258_v31 = vld [vmem:[%s19193_s13 + $0x58] sm:$0xff] }
 0x89e   :  { %8497 = vmatprep.subr.mxu0 %v5860_v54  ;;  %7188 = vmatprep.subr.mxu1 %v8560_v13  ;;  %v6342_v54 = vrot.slane %v17286_v7, %v9793_v52  ;;  %v6201_v52 = vld [vmem:[%s19189_s11 + $0x11d8] sm:$0xff] }
 0x89f   :  { %8498 = vmatpush3.msra.mxu0 %v5684_v20  ;;  %7189 = vmatpush1.msra.mxu1 %v6036_v59  ;;  %v7257_v20 = vld [vmem:[%s19193_s13 + $0x50] sm:$0xff]  ;;  %v6596_v59 = vpop.f32.mrf.mxu0 }
 0x8a0   :  { %8499 = vmatprep.subr.mxu0 %v5849_v53  ;;  %7190 = vmatprep.subr.mxu1 %v8560_v13  ;;  %v7256_v53 = vld [vmem:[%s19193_s13 + $0x48] sm:$0xff] }
 0x8a1   :  { %8500 = vmatpush3.msra.mxu0 %v5673_v23  ;;  %7191 = vmatpush1.msra.mxu1 %v6025_v26  ;;  %v7255_v23 = vld [vmem:[%s19193_s13 + $0x40] sm:$0xff]  ;;  %v7254_v26 = vld [vmem:[%s19193_s13 + $0x38] sm:$0xff] }
 0x8a2   :  { %8501 = vmatprep.subr.mxu0 %v5838_v36  ;;  %7192 = vmatprep.subr.mxu1 %v8560_v13  ;;  %v6597_v36 = vadd.f32 %v6596_v59, %v6342_v54  ;;  %v7328_v54 = vld [vmem:[%s19193_s13 + $0x288] sm:$0xff] }
 0x8a3   :  { %8502 = vmatpush3.msra.mxu0 %v5662_v17  ;;  %7193 = vmatpush1.msra.mxu1 %v6014_v27  ;;  %v7253_v17 = vld [vmem:[%s19193_s13 + $0x30] sm:$0xff]  ;;  %v7252_v27 = vld [vmem:[%s19193_s13 + $0x28] sm:$0xff] }
 0x8a4   :  { %8503 = vmatprep.subr.mxu0 %v5827_v29  ;;  %7194 = vmatprep.subr.mxu1 %v8560_v13  ;;  %v6179_v29 = vld [vmem:[%s19189_s11 + $0x1128] sm:$0xff] }
 0x8a5   :  { %8504 = vmatpush3.msra.mxu0 %v5651_v40  ;;  %7195 = vmatpush1.msra.mxu1 %v6003_v50  ;;  %v7251_v40 = vld [vmem:[%s19193_s13 + $0x20] sm:$0xff]  ;;  %v6346_v50 = vrot.slane %v17286_v7, %v10147_v16  ;;  %v7248_v16 = vld [vmem:[%s19193_s13 + $0x8] sm:$0xff] }
 0x8a6   :  { %8505 = vmatprep.subr.mxu0 %v5816_v32  ;;  %7196 = vmatprep.subr.mxu1 %v8560_v13  ;;  %v6667_v32 = vpop.f32.mrf.mxu1  ;;  %v7296_v59 = vld [vmem:[%s19193_s13 + $0x188] sm:$0xff] }
 0x8a7   :  { %8506 = vmatpush3.msra.mxu0 %v5640_v0  ;;  %7197 = vmatpush1.msra.mxu1 %v5992_v41  ;;  %v6668_v0 = vadd.f32 %v6667_v32, %v6597_v36  ;;  %v6168_v41 = vld [vmem:[%s19189_s11 + $0x10d0] sm:$0xff]  ;;  %v7324_v36 = vld [vmem:[%s19193_s13 + $0x268] sm:$0xff]  ;;  %v7290_v32 = vld [vmem:[%s19193_s13 + $0x158] sm:$0xff] }
 0x8a8   :  { %7161 = vmatmul.mubr.f32.vlgmr.msra.gmra.mxu0 %v16157_v14  ;;  %7200 = vmatprep.subr.mxu1 %v8560_v13  ;;  %v7274_v14 = vld [vmem:[%s19193_s13 + $0xd8] sm:$0xff] }
 0x8a9   :  { %7605 = vmatprep.subr.mxu0 %v7278_v34  ;;  %7201 = vmatpush2.msra.mxu1 %v6322_v24  ;;  %v7249_v34 = vld [vmem:[%s19193_s13 + $0x10] sm:$0xff]  ;;  %v7342_v24 = vld [vmem:[%s19193_s13 + $0x2f8] sm:$0xff] }
 0x8aa   :  { %7606 = vmatpush1.msra.mxu0 %v7277_v39  ;;  %7669 = vmatprep.mubr.f32.mxu0 %v7237_v43  ;;  %v7247_v39 = vld [vmem:[%s19193_s13] sm:$0xff] }
 0x8ab   :  { %7202 = vmatprep.subr.mxu1 %v8560_v13  ;;  %7607 = vmatprep.subr.mxu0 %v7276_v5  ;;  %v7341_v5 = vld [vmem:[%s19193_s13 + $0x2f0] sm:$0xff] }
 0x8ac   :  { %7203 = vmatpush2.msra.mxu1 %v6311_v10  ;;  %7608 = vmatpush1.msra.mxu0 %v7275_v22  ;;  %v7239_v22 = vmax.f32 %v6668_v0, 0.0  ;;  %v7289_v0 = vld [vmem:[%s19193_s13 + $0x150] sm:$0xff] }
 0x8ad   :  { %7204 = vmatprep.subr.mxu1 %v8560_v13  ;;  %7609 = vmatprep.subr.mxu0 %v7274_v14  ;;  %v7310_v14 = vld [vmem:[%s19193_s13 + $0x1f8] sm:$0xff] }
 0x8ae   :  { %7205 = vmatpush2.msra.mxu1 %v6300_v1  ;;  %7610 = vmatpush1.msra.mxu0 %v7273_v42  ;;  %v7340_v1 = vld [vmem:[%s19193_s13 + $0x2e8] sm:$0xff] }
 0x8af   :  { %7206 = vmatprep.subr.mxu1 %v8560_v13  ;;  %7611 = vmatprep.subr.mxu0 %v7272_v12  ;;  %v7309_v12 = vld [vmem:[%s19193_s13 + $0x1f0] sm:$0xff] }
 0x8b0   :  { %7207 = vmatpush2.msra.mxu1 %v6289_v44  ;;  %7612 = vmatpush1.msra.mxu0 %v7271_v19  ;;  %v7308_v44 = vld [vmem:[%s19193_s13 + $0x1e8] sm:$0xff]  ;;  %v7338_v19 = vld [vmem:[%s19193_s13 + $0x2d8] sm:$0xff] }
 0x8b1   :  { %7208 = vmatprep.subr.mxu1 %v8560_v13  ;;  %7613 = vmatprep.subr.mxu0 %v7270_v55  ;;  %v7307_v55 = vld [vmem:[%s19193_s13 + $0x1e0] sm:$0xff] }
 0x8b2   :  { %7209 = vmatpush2.msra.mxu1 %v6278_v2  ;;  %7614 = vmatpush1.msra.mxu0 %v7269_v33  ;;  %v7337_v2 = vld [vmem:[%s19193_s13 + $0x2d0] sm:$0xff]  ;;  %v7306_v33 = vld [vmem:[%s19193_s13 + $0x1d8] sm:$0xff] }
 0x8b3   :  { %7210 = vmatprep.subr.mxu1 %v8560_v13  ;;  %7615 = vmatprep.subr.mxu0 %v7268_v3  ;;  %v7336_v3 = vld [vmem:[%s19193_s13 + $0x2c8] sm:$0xff] }
 0x8b4   :  { %7211 = vmatpush2.msra.mxu1 %v6267_v56  ;;  %7616 = vmatpush1.msra.mxu0 %v7267_v46  ;;  %v7305_v56 = vld [vmem:[%s19193_s13 + $0x1d0] sm:$0xff]  ;;  %v7335_v46 = vld [vmem:[%s19193_s13 + $0x2c0] sm:$0xff] }
 0x8b5   :  { %7212 = vmatprep.subr.mxu1 %v8560_v13  ;;  %7617 = vmatprep.subr.mxu0 %v7266_v57  ;;  %v7304_v57 = vld [vmem:[%s19193_s13 + $0x1c8] sm:$0xff] }
 0x8b6   :  { %7213 = vmatpush2.msra.mxu1 %v6256_v45  ;;  %7618 = vmatpush1.msra.mxu0 %v7265_v58  ;;  %v7334_v45 = vld [vmem:[%s19193_s13 + $0x2b8] sm:$0xff]  ;;  %v7303_v58 = vld [vmem:[%s19193_s13 + $0x1c0] sm:$0xff] }
 0x8b7   :  { %7214 = vmatprep.subr.mxu1 %v8560_v13  ;;  %7619 = vmatprep.subr.mxu0 %v7264_v60  ;;  %v7333_v60 = vld [vmem:[%s19193_s13 + $0x2b0] sm:$0xff] }
 0x8b8   :  { %7215 = vmatpush2.msra.mxu1 %v6245_v63  ;;  %7620 = vmatpush1.msra.mxu0 %v7263_v21  ;;  %v7302_v63 = vld [vmem:[%s19193_s13 + $0x1b8] sm:$0xff]  ;;  %v7332_v21 = vld [vmem:[%s19193_s13 + $0x2a8] sm:$0xff] }
 0x8b9   :  { %7216 = vmatprep.subr.mxu1 %v8560_v13  ;;  %7621 = vmatprep.subr.mxu0 %v7262_v62  ;;  %v7301_v62 = vld [vmem:[%s19193_s13 + $0x1b0] sm:$0xff] }
 0x8ba   :  { %7217 = vmatpush2.msra.mxu1 %v6234_v38  ;;  %7622 = vmatpush1.msra.mxu0 %v7261_v6  ;;  %v7331_v38 = vld [vmem:[%s19193_s13 + $0x2a0] sm:$0xff]  ;;  %v7300_v6 = vld [vmem:[%s19193_s13 + $0x1a8] sm:$0xff] }
 0x8bb   :  { %7218 = vmatprep.subr.mxu1 %v8560_v13  ;;  %7623 = vmatprep.subr.mxu0 %v7260_v9  ;;  %v7330_v9 = vld [vmem:[%s19193_s13 + $0x298] sm:$0xff] }
 0x8bc   :  { %7219 = vmatpush2.msra.mxu1 %v6223_v61  ;;  %7624 = vmatpush1.msra.mxu0 %v7259_v18  ;;  %v7299_v61 = vld [vmem:[%s19193_s13 + $0x1a0] sm:$0xff]  ;;  %v7329_v18 = vld [vmem:[%s19193_s13 + $0x290] sm:$0xff] }
 0x8bd   :  { %7220 = vmatprep.subr.mxu1 %v8560_v13  ;;  %7625 = vmatprep.subr.mxu0 %v7258_v31  ;;  %v7298_v31 = vld [vmem:[%s19193_s13 + $0x198] sm:$0xff] }
 0x8be   :  { %7221 = vmatpush2.msra.mxu1 %v6212_v47  ;;  %7626 = vmatpush1.msra.mxu0 %v7257_v20  ;;  %v7297_v47 = vld [vmem:[%s19193_s13 + $0x190] sm:$0xff]  ;;  %v7327_v20 = vld [vmem:[%s19193_s13 + $0x280] sm:$0xff] }
 0x8bf   :  { %7222 = vmatprep.subr.mxu1 %v8560_v13  ;;  %7627 = vmatprep.subr.mxu0 %v7256_v53  ;;  %v7326_v53 = vld [vmem:[%s19193_s13 + $0x278] sm:$0xff] }
 0x8c0   :  { %7223 = vmatpush2.msra.mxu1 %v6201_v52  ;;  %7628 = vmatpush1.msra.mxu0 %v7255_v23  ;;  %v7295_v52 = vld [vmem:[%s19193_s13 + $0x180] sm:$0xff]  ;;  %v7325_v23 = vld [vmem:[%s19193_s13 + $0x270] sm:$0xff] }
 0x8c1   :  { %7224 = vmatprep.subr.mxu1 %v8560_v13  ;;  %7629 = vmatprep.subr.mxu0 %v7254_v26  ;;  %v7294_v26 = vld [vmem:[%s19193_s13 + $0x178] sm:$0xff] }
 0x8c2   :  { %7225 = vmatpush2.msra.mxu1 %v6190_v4  ;;  %7630 = vmatpush1.msra.mxu0 %v7253_v17  ;;  %v7293_v4 = vld [vmem:[%s19193_s13 + $0x170] sm:$0xff]  ;;  %v7323_v17 = vld [vmem:[%s19193_s13 + $0x260] sm:$0xff] }
 0x8c3   :  { %7226 = vmatprep.subr.mxu1 %v8560_v13  ;;  %7631 = vmatprep.subr.mxu0 %v7252_v27  ;;  %v7292_v27 = vld [vmem:[%s19193_s13 + $0x168] sm:$0xff] }
 0x8c4   :  { %7227 = vmatpush2.msra.mxu1 %v6179_v29  ;;  %7632 = vmatpush1.msra.mxu0 %v7251_v40  ;;  %v6736_v7 = vpop.f32.mrf.mxu1  ;;  %v6807_v10 = vpop.f32.mrf.mxu0  ;;  %v7322_v29 = vld [vmem:[%s19193_s13 + $0x258] sm:$0xff]  ;;  %v7291_v40 = vld [vmem:[%s19193_s13 + $0x160] sm:$0xff] }
 0x8c5   :  { %7228 = vmatprep.subr.mxu1 %v8560_v13  ;;  %7633 = vmatprep.subr.mxu0 %v7250_v25  ;;  %v6737_v43 = vadd.f32 %v6736_v7, %v6346_v50  ;;  %v7321_v50 = vld [vmem:[%s19193_s13 + $0x250] sm:$0xff]  ;;  %v7320_v25 = vld [vmem:[%s19193_s13 + $0x248] sm:$0xff]  ;;  %v18187_v7 = vld [vmem:[%s19192_s12] sm:$0xff] }
 0x8c6   :  { %7229 = vmatpush2.msra.mxu1 %v6168_v41  ;;  %7634 = vmatpush1.msra.mxu0 %v7249_v34  ;;  %v7319_v41 = vld [vmem:[%s19193_s13 + $0x240] sm:$0xff]  ;;  %v7288_v34 = vld [vmem:[%s19193_s13 + $0x148] sm:$0xff] }
 0x8c7   :  { %7231 = vmatmul.mubr.f32.vlgmr.msra.gmra.mxu1 %v16159_v15  ;;  %7635 = vmatprep.subr.mxu0 %v7248_v16  ;;  %v18050_v42 = vadd.f32 %v6807_v10, %v6737_v43  ;;  %v7339_v15 = vld [vmem:[%s19193_s13 + $0x2e0] sm:$0xff]  ;;  %v7318_v16 = vld [vmem:[%s19193_s13 + $0x238] sm:$0xff]  ;;  %v7317_v43 = vld [vmem:[%s19193_s13 + $0x230] sm:$0xff] }
 0x8c8   :  { %7676 = vmatprep.subr.mxu1 %v7342_v24  ;;  %7636 = vmatpush1.msra.mxu0 %v7247_v39  ;;  %v6350_v24 = vrot.slane %v18187_v7, %v10062_v37  ;;  %v7287_v39 = vld [vmem:[%s19193_s13 + $0x140] sm:$0xff]  ;;  %v7286_v10 = vld [vmem:[%s19193_s13 + $0x138] sm:$0xff]  ;;  %v7316_v37 = vld [vmem:[%s19193_s13 + $0x228] sm:$0xff] }
 0x8c9   :  { %7677 = vmatpush1.msra.mxu1 %v7341_v5  ;;  %7740 = vmatprep.mubr.f32.mxu1 %v7239_v22  ;;  %v6738_v5 = vpop.f32.mrf.mxu1  ;;  %v7285_v22 = vld [vmem:[%s19193_s13 + $0x130] sm:$0xff] }
 0x8ca   :  { %7637 = vmatprep.subr.mxu0 %v7310_v14  ;;  %7678 = vmatprep.subr.mxu1 %v7340_v1  ;;  %v7315_v14 = vld [vmem:[%s19193_s13 + $0x220] sm:$0xff]  ;;  %v7284_v1 = vld [vmem:[%s19193_s13 + $0x128] sm:$0xff] }
 0x8cb   :  { %7638 = vmatpush2.msra.mxu0 %v7309_v12  ;;  %7679 = vmatpush1.msra.mxu1 %v7339_v15  ;;  %v7314_v12 = vld [vmem:[%s19193_s13 + $0x218] sm:$0xff]  ;;  %v6739_v15 = vadd.f32 %v6738_v5, %v6350_v24  ;;  %v7392_v24 = vld [vmem:[%s19193_s13 + $0x488] sm:$0xff] }
 0x8cc   :  { %7639 = vmatprep.subr.mxu0 %v7308_v44  ;;  %7680 = vmatprep.subr.mxu1 %v7338_v19  ;;  %v7283_v44 = vld [vmem:[%s19193_s13 + $0x120] sm:$0xff]  ;;  %v7313_v19 = vld [vmem:[%s19193_s13 + $0x210] sm:$0xff]  ;;  %v7356_v5 = vld [vmem:[%s19193_s13 + $0x368] sm:$0xff] }
 0x8cd   :  { %7640 = vmatpush2.msra.mxu0 %v7307_v55  ;;  %7681 = vmatpush1.msra.mxu1 %v7337_v2  ;;  %v7282_v55 = vld [vmem:[%s19193_s13 + $0x118] sm:$0xff]  ;;  %v7312_v2 = vld [vmem:[%s19193_s13 + $0x208] sm:$0xff] }
 0x8ce   :  { %7641 = vmatprep.subr.mxu0 %v7306_v33  ;;  %7682 = vmatprep.subr.mxu1 %v7336_v3  ;;  %v7281_v33 = vld [vmem:[%s19193_s13 + $0x110] sm:$0xff]  ;;  %v7311_v3 = vld [vmem:[%s19193_s13 + $0x200] sm:$0xff] }
 0x8cf   :  { %7642 = vmatpush2.msra.mxu0 %v7305_v56  ;;  %7683 = vmatpush1.msra.mxu1 %v7335_v46  ;;  %v6809_v56 = vpop.f32.mrf.mxu0  ;;  %v7280_v46 = vld [vmem:[%s19193_s13 + $0x108] sm:$0xff] }
 0x8d0   :  { %7643 = vmatprep.subr.mxu0 %v7304_v57  ;;  %7684 = vmatprep.subr.mxu1 %v7334_v45  ;;  %v7374_v57 = vld [vmem:[%s19193_s13 + $0x3f8] sm:$0xff]  ;;  %v6810_v45 = vadd.f32 %v6809_v56, %v6739_v15  ;;  %v7387_v15 = vld [vmem:[%s19193_s13 + $0x460] sm:$0xff]  ;;  %v7349_v56 = vld [vmem:[%s19193_s13 + $0x330] sm:$0xff] }
 0x8d1   :  { %7644 = vmatpush2.msra.mxu0 %v7303_v58  ;;  %7685 = vmatpush1.msra.mxu1 %v7333_v60  ;;  %v7279_v58 = vld [vmem:[%s19193_s13 + $0x100] sm:$0xff]  ;;  %v7373_v60 = vld [vmem:[%s19193_s13 + $0x3f0] sm:$0xff] }
 0x8d2   :  { %7645 = vmatprep.subr.mxu0 %v7302_v63  ;;  %7686 = vmatprep.subr.mxu1 %v7332_v21  ;;  %v7372_v63 = vld [vmem:[%s19193_s13 + $0x3e8] sm:$0xff]  ;;  %v7236_v21 = vmax.f32 %v17334_v28, 0.0  ;;  %v7370_v28 = vld [vmem:[%s19193_s13 + $0x3d8] sm:$0xff] }
 0x8d3   :  { %7646 = vmatpush2.msra.mxu0 %v7301_v62  ;;  %7687 = vmatpush1.msra.mxu1 %v7331_v38  ;;  %v7406_v62 = vld [vmem:[%s19193_s13 + $0x4f8] sm:$0xff]  ;;  %v7371_v38 = vld [vmem:[%s19193_s13 + $0x3e0] sm:$0xff] }
 0x8d4   :  { %7647 = vmatprep.subr.mxu0 %v7300_v6  ;;  %7688 = vmatprep.subr.mxu1 %v7330_v9  ;;  %v7405_v6 = vld [vmem:[%s19193_s13 + $0x4f0] sm:$0xff]  ;;  %v7241_v9 = vmax.f32 %v6810_v45, 0.0  ;;  %v7382_v45 = vld [vmem:[%s19193_s13 + $0x438] sm:$0xff] }
 0x8d5   :  { %7648 = vmatpush2.msra.mxu0 %v7299_v61  ;;  %7689 = vmatpush1.msra.mxu1 %v7329_v18  ;;  %v7404_v61 = vld [vmem:[%s19193_s13 + $0x4e8] sm:$0xff]  ;;  %v7369_v18 = vld [vmem:[%s19193_s13 + $0x3d0] sm:$0xff] }
 0x8d6   :  { %7649 = vmatprep.subr.mxu0 %v7298_v31  ;;  %7690 = vmatprep.subr.mxu1 %v7328_v54  ;;  %v7403_v31 = vld [vmem:[%s19193_s13 + $0x4e0] sm:$0xff]  ;;  %v7368_v54 = vld [vmem:[%s19193_s13 + $0x3c8] sm:$0xff] }
 0x8d7   :  { %7650 = vmatpush2.msra.mxu0 %v7297_v47  ;;  %7691 = vmatpush1.msra.mxu1 %v7327_v20  ;;  %v7402_v47 = vld [vmem:[%s19193_s13 + $0x4d8] sm:$0xff]  ;;  %v7367_v20 = vld [vmem:[%s19193_s13 + $0x3c0] sm:$0xff] }
 0x8d8   :  { %7651 = vmatprep.subr.mxu0 %v7296_v59  ;;  %7692 = vmatprep.subr.mxu1 %v7326_v53  ;;  %v7401_v59 = vld [vmem:[%s19193_s13 + $0x4d0] sm:$0xff]  ;;  %v7366_v53 = vld [vmem:[%s19193_s13 + $0x3b8] sm:$0xff] }
 0x8d9   :  { %7652 = vmatpush2.msra.mxu0 %v7295_v52  ;;  %7693 = vmatpush1.msra.mxu1 %v7325_v23  ;;  %v7400_v52 = vld [vmem:[%s19193_s13 + $0x4c8] sm:$0xff]  ;;  %v7365_v23 = vld [vmem:[%s19193_s13 + $0x3b0] sm:$0xff] }
 0x8da   :  { %7653 = vmatprep.subr.mxu0 %v7294_v26  ;;  %7694 = vmatprep.subr.mxu1 %v7324_v36  ;;  %v7399_v26 = vld [vmem:[%s19193_s13 + $0x4c0] sm:$0xff]  ;;  %v7364_v36 = vld [vmem:[%s19193_s13 + $0x3a8] sm:$0xff] }
 0x8db   :  { %7654 = vmatpush2.msra.mxu0 %v7293_v4  ;;  %7695 = vmatpush1.msra.mxu1 %v7323_v17  ;;  %v7398_v4 = vld [vmem:[%s19193_s13 + $0x4b8] sm:$0xff]  ;;  %v7363_v17 = vld [vmem:[%s19193_s13 + $0x3a0] sm:$0xff] }
 0x8dc   :  { %7655 = vmatprep.subr.mxu0 %v7292_v27  ;;  %7696 = vmatprep.subr.mxu1 %v7322_v29  ;;  %v7397_v27 = vld [vmem:[%s19193_s13 + $0x4b0] sm:$0xff]  ;;  %v7362_v29 = vld [vmem:[%s19193_s13 + $0x398] sm:$0xff] }
 0x8dd   :  { %7656 = vmatpush2.msra.mxu0 %v7291_v40  ;;  %7697 = vmatpush1.msra.mxu1 %v7321_v50  ;;  %v7396_v40 = vld [vmem:[%s19193_s13 + $0x4a8] sm:$0xff]  ;;  %v7361_v50 = vld [vmem:[%s19193_s13 + $0x390] sm:$0xff] }
 0x8de   :  { %7657 = vmatprep.subr.mxu0 %v7290_v32  ;;  %7698 = vmatprep.subr.mxu1 %v7320_v25  ;;  %v7395_v32 = vld [vmem:[%s19193_s13 + $0x4a0] sm:$0xff]  ;;  %v7360_v25 = vld [vmem:[%s19193_s13 + $0x388] sm:$0xff] }
 0x8df   :  { %7658 = vmatpush2.msra.mxu0 %v7289_v0  ;;  %7699 = vmatpush1.msra.mxu1 %v7319_v41  ;;  %v7394_v0 = vld [vmem:[%s19193_s13 + $0x498] sm:$0xff]  ;;  %v7359_v41 = vld [vmem:[%s19193_s13 + $0x380] sm:$0xff] }
 0x8e0   :  { %7659 = vmatprep.subr.mxu0 %v7288_v34  ;;  %7700 = vmatprep.subr.mxu1 %v7318_v16  ;;  %v7393_v34 = vld [vmem:[%s19193_s13 + $0x490] sm:$0xff]  ;;  %v7358_v16 = vld [vmem:[%s19193_s13 + $0x378] sm:$0xff] }
 0x8e1   :  { %7660 = vmatpush2.msra.mxu0 %v7287_v39  ;;  %7701 = vmatpush1.msra.mxu1 %v7317_v43  ;;  %v7357_v39 = vld [vmem:[%s19193_s13 + $0x370] sm:$0xff]  ;;  %v7391_v43 = vld [vmem:[%s19193_s13 + $0x480] sm:$0xff] }
 0x8e2   :  { %7661 = vmatprep.subr.mxu0 %v7286_v10  ;;  %7702 = vmatprep.subr.mxu1 %v7316_v37  ;;  %v7390_v10 = vld [vmem:[%s19193_s13 + $0x478] sm:$0xff]  ;;  %v7355_v37 = vld [vmem:[%s19193_s13 + $0x360] sm:$0xff] }
 0x8e3   :  { %7662 = vmatpush2.msra.mxu0 %v7285_v22  ;;  %7703 = vmatpush1.msra.mxu1 %v7315_v14  ;;  %v7389_v22 = vld [vmem:[%s19193_s13 + $0x470] sm:$0xff]  ;;  %v7354_v14 = vld [vmem:[%s19193_s13 + $0x358] sm:$0xff] }
 0x8e4   :  { %7663 = vmatprep.subr.mxu0 %v7284_v1  ;;  %7704 = vmatprep.subr.mxu1 %v7314_v12  ;;  %v7388_v1 = vld [vmem:[%s19193_s13 + $0x468] sm:$0xff]  ;;  %v7353_v12 = vld [vmem:[%s19193_s13 + $0x350] sm:$0xff] }
 0x8e5   :  { %7664 = vmatpush2.msra.mxu0 %v7283_v44  ;;  %7705 = vmatpush1.msra.mxu1 %v7313_v19  ;;  %v7352_v44 = vld [vmem:[%s19193_s13 + $0x348] sm:$0xff]  ;;  %v7386_v19 = vld [vmem:[%s19193_s13 + $0x458] sm:$0xff] }
 0x8e6   :  { %7665 = vmatprep.subr.mxu0 %v7282_v55  ;;  %7706 = vmatprep.subr.mxu1 %v7312_v2  ;;  %v7351_v55 = vld [vmem:[%s19193_s13 + $0x340] sm:$0xff]  ;;  %v7385_v2 = vld [vmem:[%s19193_s13 + $0x450] sm:$0xff] }
 0x8e7   :  { %7666 = vmatpush2.msra.mxu0 %v7281_v33  ;;  %7707 = vmatpush1.msra.mxu1 %v7311_v3  ;;  %v7350_v33 = vld [vmem:[%s19193_s13 + $0x338] sm:$0xff]  ;;  %v7384_v3 = vld [vmem:[%s19193_s13 + $0x448] sm:$0xff] }
 0x8e8   :  { %7667 = vmatprep.subr.mxu0 %v7280_v46  ;;  %7708 = vmatprep.subr.mxu1 %v7374_v57  ;;  %v7383_v46 = vld [vmem:[%s19193_s13 + $0x440] sm:$0xff]  ;;  %v7348_v57 = vld [vmem:[%s19193_s13 + $0x328] sm:$0xff] }
 0x8e9   :  { %7668 = vmatpush2.msra.mxu0 %v7279_v58  ;;  %7709 = vmatpush2.msra.mxu1 %v7373_v60  ;;  %v7347_v58 = vld [vmem:[%s19193_s13 + $0x320] sm:$0xff]  ;;  %v7381_v60 = vld [vmem:[%s19193_s13 + $0x430] sm:$0xff] }
 0x8ea   :  { %7670 = vmatmul.mubr.f32.vlgmr.msra.gmra.mxu0 %v7236_v21  ;;  %7710 = vmatprep.subr.mxu1 %v7372_v63  ;;  %v7346_v63 = vld [vmem:[%s19193_s13 + $0x318] sm:$0xff]  ;;  %v7380_v21 = vld [vmem:[%s19193_s13 + $0x428] sm:$0xff] }
 0x8eb   :  { %7747 = vmatprep.subr.mxu0 %v7406_v62  ;;  %7711 = vmatpush2.msra.mxu1 %v7371_v38  ;;  %v7345_v62 = vld [vmem:[%s19193_s13 + $0x310] sm:$0xff]  ;;  %v7379_v38 = vld [vmem:[%s19193_s13 + $0x420] sm:$0xff] }
 0x8ec   :  { %7748 = vmatpush1.msra.mxu0 %v7405_v6  ;;  %7811 = vmatprep.mubr.f32.mxu0 %v7241_v9  ;;  %v7344_v6 = vld [vmem:[%s19193_s13 + $0x308] sm:$0xff]  ;;  %v7378_v9 = vld [vmem:[%s19193_s13 + $0x418] sm:$0xff] }
 0x8ed   :  { %7712 = vmatprep.subr.mxu1 %v7370_v28  ;;  %7749 = vmatprep.subr.mxu0 %v7404_v61  ;;  %v7343_v28 = vld [vmem:[%s19193_s13 + $0x300] sm:$0xff]  ;;  %v7377_v61 = vld [vmem:[%s19193_s13 + $0x410] sm:$0xff] }
 0x8ee   :  { %7713 = vmatpush2.msra.mxu1 %v7369_v18  ;;  %7750 = vmatpush1.msra.mxu0 %v7403_v31  ;;  %v7376_v18 = vld [vmem:[%s19193_s13 + $0x408] sm:$0xff]  ;;  %v7238_v31 = vmax.f32 %v17727_v30, 0.0  ;;  %v7469_v30 = vld [vmem:[%s19193_s13 + $0x6f0] sm:$0xff] }
 0x8ef   :  { %7714 = vmatprep.subr.mxu1 %v7368_v54  ;;  %7751 = vmatprep.subr.mxu0 %v7402_v47  ;;  %v7470_v54 = vld [vmem:[%s19193_s13 + $0x6f8] sm:$0xff]  ;;  %v7375_v47 = vld [vmem:[%s19193_s13 + $0x400] sm:$0xff] }
 0x8f0   :  { %7715 = vmatpush2.msra.mxu1 %v7367_v20  ;;  %7752 = vmatpush1.msra.mxu0 %v7401_v59  ;;  %v6358_v59 = vrot.slane %v18187_v7, %v10128_v8  ;;  %v7437_v8 = vld [vmem:[%s19193_s13 + $0x5f0] sm:$0xff] }
 0x8f1   :  { %7716 = vmatprep.subr.mxu1 %v7366_v53  ;;  %7753 = vmatprep.subr.mxu0 %v7400_v52  ;;  %v7438_v53 = vld [vmem:[%s19193_s13 + $0x5f8] sm:$0xff]  ;;  %v7468_v52 = vld [vmem:[%s19193_s13 + $0x6e8] sm:$0xff] }
 0x8f2   :  { %7717 = vmatpush2.msra.mxu1 %v7365_v23  ;;  %7754 = vmatpush1.msra.mxu0 %v7399_v26 }
 0x8f3   :  { %7718 = vmatprep.subr.mxu1 %v7364_v36  ;;  %7755 = vmatprep.subr.mxu0 %v7398_v4  ;;  %v7467_v36 = vld [vmem:[%s19193_s13 + $0x6e0] sm:$0xff]  ;;  %v7436_v4 = vld [vmem:[%s19193_s13 + $0x5e8] sm:$0xff] }
 0x8f4   :  { %7719 = vmatpush2.msra.mxu1 %v7363_v17  ;;  %7756 = vmatpush1.msra.mxu0 %v7397_v27  ;;  %v7466_v17 = vld [vmem:[%s19193_s13 + $0x6d8] sm:$0xff]  ;;  %v7435_v27 = vld [vmem:[%s19193_s13 + $0x5e0] sm:$0xff] }
 0x8f5   :  { %7720 = vmatprep.subr.mxu1 %v7362_v29  ;;  %7757 = vmatprep.subr.mxu0 %v7396_v40  ;;  %v7465_v40 = vld [vmem:[%s19193_s13 + $0x6d0] sm:$0xff] }
 0x8f6   :  { %7721 = vmatpush2.msra.mxu1 %v7361_v50  ;;  %7758 = vmatpush1.msra.mxu0 %v7395_v32  ;;  %v7434_v50 = vld [vmem:[%s19193_s13 + $0x5d8] sm:$0xff]  ;;  %v7464_v32 = vld [vmem:[%s19193_s13 + $0x6c8] sm:$0xff] }
 0x8f7   :  { %7722 = vmatprep.subr.mxu1 %v7360_v25  ;;  %7759 = vmatprep.subr.mxu0 %v7394_v0  ;;  %v7433_v25 = vld [vmem:[%s19193_s13 + $0x5d0] sm:$0xff] }
 0x8f8   :  { %7723 = vmatpush2.msra.mxu1 %v7359_v41  ;;  %7760 = vmatpush1.msra.mxu0 %v7393_v34  ;;  %v7463_v41 = vld [vmem:[%s19193_s13 + $0x6c0] sm:$0xff]  ;;  %v7432_v34 = vld [vmem:[%s19193_s13 + $0x5c8] sm:$0xff] }
 0x8f9   :  { %7724 = vmatprep.subr.mxu1 %v7358_v16  ;;  %7761 = vmatprep.subr.mxu0 %v7392_v24  ;;  %v7462_v24 = vld [vmem:[%s19193_s13 + $0x6b8] sm:$0xff] }
 0x8fa   :  { %7725 = vmatpush2.msra.mxu1 %v7357_v39  ;;  %7762 = vmatpush1.msra.mxu0 %v7391_v43  ;;  %v7431_v39 = vld [vmem:[%s19193_s13 + $0x5c0] sm:$0xff]  ;;  %v7461_v43 = vld [vmem:[%s19193_s13 + $0x6b0] sm:$0xff] }
 0x8fb   :  { %7726 = vmatprep.subr.mxu1 %v7356_v5  ;;  %7763 = vmatprep.subr.mxu0 %v7390_v10  ;;  %v7430_v5 = vld [vmem:[%s19193_s13 + $0x5b8] sm:$0xff]  ;;  %v7460_v10 = vld [vmem:[%s19193_s13 + $0x6a8] sm:$0xff] }
 0x8fc   :  { %7727 = vmatpush2.msra.mxu1 %v7355_v37  ;;  %7764 = vmatpush1.msra.mxu0 %v7389_v22  ;;  %v7429_v37 = vld [vmem:[%s19193_s13 + $0x5b0] sm:$0xff]  ;;  %v7459_v22 = vld [vmem:[%s19193_s13 + $0x6a0] sm:$0xff] }
 0x8fd   :  { %7728 = vmatprep.subr.mxu1 %v7354_v14  ;;  %7765 = vmatprep.subr.mxu0 %v7388_v1  ;;  %v7428_v14 = vld [vmem:[%s19193_s13 + $0x5a8] sm:$0xff] }
 0x8fe   :  { %7729 = vmatpush2.msra.mxu1 %v7353_v12  ;;  %7766 = vmatpush1.msra.mxu0 %v7387_v15  ;;  %v7458_v12 = vld [vmem:[%s19193_s13 + $0x698] sm:$0xff]  ;;  %v7427_v15 = vld [vmem:[%s19193_s13 + $0x5a0] sm:$0xff] }
 0x8ff   :  { %7730 = vmatprep.subr.mxu1 %v7352_v44  ;;  %7767 = vmatprep.subr.mxu0 %v7386_v19  ;;  %v7457_v44 = vld [vmem:[%s19193_s13 + $0x690] sm:$0xff]  ;;  %v7426_v19 = vld [vmem:[%s19193_s13 + $0x598] sm:$0xff] }
 0x900   :  { %7731 = vmatpush2.msra.mxu1 %v7351_v55  ;;  %7768 = vmatpush1.msra.mxu0 %v7385_v2  ;;  %v7456_v55 = vld [vmem:[%s19193_s13 + $0x688] sm:$0xff]  ;;  %v7425_v2 = vld [vmem:[%s19193_s13 + $0x590] sm:$0xff] }
 0x901   :  { %7732 = vmatprep.subr.mxu1 %v7350_v33  ;;  %7769 = vmatprep.subr.mxu0 %v7384_v3  ;;  %v7455_v33 = vld [vmem:[%s19193_s13 + $0x680] sm:$0xff]  ;;  %v7424_v3 = vld [vmem:[%s19193_s13 + $0x588] sm:$0xff] }
 0x902   :  { %7733 = vmatpush2.msra.mxu1 %v7349_v56  ;;  %7770 = vmatpush1.msra.mxu0 %v7383_v46  ;;  %v7454_v56 = vld [vmem:[%s19193_s13 + $0x678] sm:$0xff]  ;;  %v7423_v46 = vld [vmem:[%s19193_s13 + $0x580] sm:$0xff] }
 0x903   :  { %7734 = vmatprep.subr.mxu1 %v7348_v57  ;;  %7771 = vmatprep.subr.mxu0 %v7382_v45  ;;  %v7453_v57 = vld [vmem:[%s19193_s13 + $0x670] sm:$0xff]  ;;  %v7422_v45 = vld [vmem:[%s19193_s13 + $0x578] sm:$0xff] }
 0x904   :  { %7735 = vmatpush2.msra.mxu1 %v7347_v58  ;;  %7772 = vmatpush1.msra.mxu0 %v7381_v60  ;;  %v18452_v26 = vpop.f32.mrf.mxu1  ;;  %v7452_v58 = vld [vmem:[%s19193_s13 + $0x668] sm:$0xff]  ;;  %v7421_v60 = vld [vmem:[%s19193_s13 + $0x570] sm:$0xff] }
 0x905   :  { %7736 = vmatprep.subr.mxu1 %v7346_v63  ;;  %7773 = vmatprep.subr.mxu0 %v7380_v21  ;;  %v7451_v63 = vld [vmem:[%s19193_s13 + $0x660] sm:$0xff]  ;;  %v7420_v21 = vld [vmem:[%s19193_s13 + $0x568] sm:$0xff] }
 0x906   :  { %7737 = vmatpush2.msra.mxu1 %v7345_v62  ;;  %7774 = vmatpush1.msra.mxu0 %v7379_v38  ;;  %v6951_v0 = vpop.f32.mrf.mxu1  ;;  %v7450_v62 = vld [vmem:[%s19193_s13 + $0x658] sm:$0xff]  ;;  %v7419_v38 = vld [vmem:[%s19193_s13 + $0x560] sm:$0xff] }
 0x907   :  { %7738 = vmatprep.subr.mxu1 %v7344_v6  ;;  %7775 = vmatprep.subr.mxu0 %v7378_v9  ;;  %v18436_v20 = vpop.f32.mrf.mxu0  ;;  %v7449_v6 = vld [vmem:[%s19193_s13 + $0x650] sm:$0xff]  ;;  %v7418_v9 = vld [vmem:[%s19193_s13 + $0x558] sm:$0xff] }
 0x908   :  { %7739 = vmatpush2.msra.mxu1 %v7343_v28  ;;  %7776 = vmatpush1.msra.mxu0 %v7377_v61  ;;  %v7448_v28 = vld [vmem:[%s19193_s13 + $0x648] sm:$0xff]  ;;  %v7417_v61 = vld [vmem:[%s19193_s13 + $0x550] sm:$0xff] }
 0x909   :  { %7741 = vmatmul.mubr.f32.vlgmr.msra.gmra.mxu1 %v7238_v31  ;;  %7777 = vmatprep.subr.mxu0 %v7376_v18  ;;  %v6880_v23 = vpop.f32.mrf.mxu0  ;;  %v7447_v18 = vld [vmem:[%s19193_s13 + $0x640] sm:$0xff]  ;;  %v7416_v31 = vld [vmem:[%s19193_s13 + $0x548] sm:$0xff] }
 0x90a   :  { %7818 = vmatprep.subr.mxu1 %v7470_v54  ;;  %7778 = vmatpush1.msra.mxu0 %v7375_v47  ;;  %v6881_v29 = vadd.f32 %v6880_v23, %v6358_v59  ;;  %v7446_v54 = vld [vmem:[%s19193_s13 + $0x638] sm:$0xff]  ;;  %v7415_v47 = vld [vmem:[%s19193_s13 + $0x540] sm:$0xff]  ;;  %v7445_v59 = vld [vmem:[%s19193_s13 + $0x630] sm:$0xff] }
 0x90b   :  { %7819 = vmatpush1.msra.mxu1 %v7469_v30  ;;  %7779 = vmatprep.subr.mxu0 %v7438_v53  ;;  %v7414_v30 = vld [vmem:[%s19193_s13 + $0x538] sm:$0xff]  ;;  %v7444_v53 = vld [vmem:[%s19193_s13 + $0x628] sm:$0xff] }
 0x90c   :  { %7820 = vmatprep.subr.mxu1 %v7468_v52  ;;  %7780 = vmatpush2.msra.mxu0 %v7437_v8  ;;  %v6952_v16 = vadd.f32 %v6951_v0, %v6881_v29  ;;  %v7413_v52 = vld [vmem:[%s19193_s13 + $0x530] sm:$0xff]  ;;  %v7443_v8 = vld [vmem:[%s19193_s13 + $0x620] sm:$0xff]  ;;  %v7412_v23 = vld [vmem:[%s19193_s13 + $0x528] sm:$0xff] }
 0x90d   :  { %7821 = vmatpush1.msra.mxu1 %v7467_v36  ;;  %7781 = vmatprep.subr.mxu0 %v7436_v4  ;;  %v7442_v36 = vld [vmem:[%s19193_s13 + $0x618] sm:$0xff]  ;;  %v7411_v4 = vld [vmem:[%s19193_s13 + $0x520] sm:$0xff]  ;;  %v7440_v29 = vld [vmem:[%s19193_s13 + $0x608] sm:$0xff] }
 0x90e   :  { %7822 = vmatprep.subr.mxu1 %v7466_v17  ;;  %7782 = vmatpush2.msra.mxu0 %v7435_v27  ;;  %v7243_v1 = vmax.f32 %v6952_v16, 0.0  ;;  %v7441_v17 = vld [vmem:[%s19193_s13 + $0x610] sm:$0xff]  ;;  %v7410_v27 = vld [vmem:[%s19193_s13 + $0x518] sm:$0xff]  ;;  %v7407_v0 = vld [vmem:[%s19193_s13 + $0x500] sm:$0xff]  ;;  %v7240_v16 = vmax.f32 %v18050_v42, 0.0 }
 0x90f   :  { %7823 = vmatpush1.msra.mxu1 %v7465_v40  ;;  %7783 = vmatprep.subr.mxu0 %v7434_v50  ;;  %v7409_v40 = vld [vmem:[%s19193_s13 + $0x510] sm:$0xff]  ;;  %v7439_v50 = vld [vmem:[%s19193_s13 + $0x600] sm:$0xff]  ;;  %v7498_v42 = vld [vmem:[%s19193_s13 + $0x7d8] sm:$0xff] }
 0x910   :  { %7824 = vmatprep.subr.mxu1 %v7464_v32  ;;  %7784 = vmatpush2.msra.mxu0 %v7433_v25  ;;  %v7408_v32 = vld [vmem:[%s19193_s13 + $0x508] sm:$0xff]  ;;  %v7502_v25 = vld [vmem:[%s19193_s13 + $0x7f8] sm:$0xff] }
 0x911   :  { %7825 = vmatpush1.msra.mxu1 %v7463_v41  ;;  %7785 = vmatprep.subr.mxu0 %v7432_v34  ;;  %v7501_v41 = vld [vmem:[%s19193_s13 + $0x7f0] sm:$0xff]  ;;  %v7500_v34 = vld [vmem:[%s19193_s13 + $0x7e8] sm:$0xff] }
 0x912   :  { %7826 = vmatprep.subr.mxu1 %v7462_v24  ;;  %7786 = vmatpush2.msra.mxu0 %v7431_v39  ;;  %v7534_v24 = vld [vmem:[%s19193_s13 + $0x8f8] sm:$0xff]  ;;  %v7499_v39 = vld [vmem:[%s19193_s13 + $0x7e0] sm:$0xff] }
 0x913   :  { %7827 = vmatpush1.msra.mxu1 %v7461_v43  ;;  %7787 = vmatprep.subr.mxu0 %v7430_v5  ;;  %v7533_v43 = vld [vmem:[%s19193_s13 + $0x8f0] sm:$0xff]  ;;  %v7532_v5 = vld [vmem:[%s19193_s13 + $0x8e8] sm:$0xff] }
 0x914   :  { %7828 = vmatprep.subr.mxu1 %v7460_v10  ;;  %7788 = vmatpush2.msra.mxu0 %v7429_v37  ;;  %v7497_v10 = vld [vmem:[%s19193_s13 + $0x7d0] sm:$0xff]  ;;  %v7531_v37 = vld [vmem:[%s19193_s13 + $0x8e0] sm:$0xff] }
 0x915   :  { %7829 = vmatpush1.msra.mxu1 %v7459_v22  ;;  %7789 = vmatprep.subr.mxu0 %v7428_v14  ;;  %v7496_v22 = vld [vmem:[%s19193_s13 + $0x7c8] sm:$0xff]  ;;  %v7530_v14 = vld [vmem:[%s19193_s13 + $0x8d8] sm:$0xff] }
 0x916   :  { %7830 = vmatprep.subr.mxu1 %v7458_v12  ;;  %7790 = vmatpush2.msra.mxu0 %v7427_v15  ;;  %v7529_v12 = vld [vmem:[%s19193_s13 + $0x8d0] sm:$0xff]  ;;  %v7494_v15 = vld [vmem:[%s19193_s13 + $0x7b8] sm:$0xff] }
 0x917   :  { %7831 = vmatpush1.msra.mxu1 %v7457_v44  ;;  %7882 = vmatprep.mubr.f32.mxu1 %v7243_v1  ;;  %v7495_v1 = vld [vmem:[%s19193_s13 + $0x7c0] sm:$0xff]  ;;  %v7528_v44 = vld [vmem:[%s19193_s13 + $0x8c8] sm:$0xff] }
 0x918   :  { %7791 = vmatprep.subr.mxu0 %v7426_v19  ;;  %7832 = vmatprep.subr.mxu1 %v7456_v55  ;;  %v7493_v19 = vld [vmem:[%s19193_s13 + $0x7b0] sm:$0xff]  ;;  %v7527_v55 = vld [vmem:[%s19193_s13 + $0x8c0] sm:$0xff] }
 0x919   :  { %7792 = vmatpush2.msra.mxu0 %v7425_v2  ;;  %7833 = vmatpush1.msra.mxu1 %v7455_v33  ;;  %v7492_v2 = vld [vmem:[%s19193_s13 + $0x7a8] sm:$0xff]  ;;  %v7526_v33 = vld [vmem:[%s19193_s13 + $0x8b8] sm:$0xff] }
 0x91a   :  { %7793 = vmatprep.subr.mxu0 %v7424_v3  ;;  %7834 = vmatprep.subr.mxu1 %v7454_v56  ;;  %v7491_v3 = vld [vmem:[%s19193_s13 + $0x7a0] sm:$0xff]  ;;  %v7525_v56 = vld [vmem:[%s19193_s13 + $0x8b0] sm:$0xff] }
 0x91b   :  { %7794 = vmatpush2.msra.mxu0 %v7423_v46  ;;  %7835 = vmatpush1.msra.mxu1 %v7453_v57  ;;  %v7490_v46 = vld [vmem:[%s19193_s13 + $0x798] sm:$0xff]  ;;  %v7524_v57 = vld [vmem:[%s19193_s13 + $0x8a8] sm:$0xff] }
 0x91c   :  { %7795 = vmatprep.subr.mxu0 %v7422_v45  ;;  %7836 = vmatprep.subr.mxu1 %v7452_v58  ;;  %v7489_v45 = vld [vmem:[%s19193_s13 + $0x790] sm:$0xff]  ;;  %v7523_v58 = vld [vmem:[%s19193_s13 + $0x8a0] sm:$0xff] }
 0x91d   :  { %7796 = vmatpush2.msra.mxu0 %v7421_v60  ;;  %7837 = vmatpush1.msra.mxu1 %v7451_v63  ;;  %v7488_v60 = vld [vmem:[%s19193_s13 + $0x788] sm:$0xff]  ;;  %v7522_v63 = vld [vmem:[%s19193_s13 + $0x898] sm:$0xff] }
 0x91e   :  { %7797 = vmatprep.subr.mxu0 %v7420_v21  ;;  %7838 = vmatprep.subr.mxu1 %v7450_v62  ;;  %v7487_v21 = vld [vmem:[%s19193_s13 + $0x780] sm:$0xff]  ;;  %v7521_v62 = vld [vmem:[%s19193_s13 + $0x890] sm:$0xff] }
 0x91f   :  { %7798 = vmatpush2.msra.mxu0 %v7419_v38  ;;  %7839 = vmatpush1.msra.mxu1 %v7449_v6  ;;  %v7486_v38 = vld [vmem:[%s19193_s13 + $0x778] sm:$0xff]  ;;  %v7520_v6 = vld [vmem:[%s19193_s13 + $0x888] sm:$0xff] }
 0x920   :  { %7799 = vmatprep.subr.mxu0 %v7418_v9  ;;  %7840 = vmatprep.subr.mxu1 %v7448_v28  ;;  %v7485_v9 = vld [vmem:[%s19193_s13 + $0x770] sm:$0xff]  ;;  %v7519_v28 = vld [vmem:[%s19193_s13 + $0x880] sm:$0xff] }
 0x921   :  { %7800 = vmatpush2.msra.mxu0 %v7417_v61  ;;  %7841 = vmatpush1.msra.mxu1 %v7447_v18  ;;  %v7484_v61 = vld [vmem:[%s19193_s13 + $0x768] sm:$0xff]  ;;  %v7518_v18 = vld [vmem:[%s19193_s13 + $0x878] sm:$0xff] }
 0x922   :  { %7801 = vmatprep.subr.mxu0 %v7416_v31  ;;  %7842 = vmatprep.subr.mxu1 %v7446_v54  ;;  %v7483_v31 = vld [vmem:[%s19193_s13 + $0x760] sm:$0xff]  ;;  %v7517_v54 = vld [vmem:[%s19193_s13 + $0x870] sm:$0xff] }
 0x923   :  { %7802 = vmatpush2.msra.mxu0 %v7415_v47  ;;  %7843 = vmatpush1.msra.mxu1 %v7445_v59  ;;  %v7482_v47 = vld [vmem:[%s19193_s13 + $0x758] sm:$0xff]  ;;  %v6354_v59 = vrot.slane %v18187_v7, %v10137_v11  ;;  %v7480_v11 = vld [vmem:[%s19193_s13 + $0x748] sm:$0xff] }
 0x924   :  { %7803 = vmatprep.subr.mxu0 %v7414_v30  ;;  %7844 = vmatprep.subr.mxu1 %v7444_v53  ;;  %v7516_v30 = vld [vmem:[%s19193_s13 + $0x868] sm:$0xff]  ;;  %v7481_v53 = vld [vmem:[%s19193_s13 + $0x750] sm:$0xff]  ;;  %v7514_v7 = vld [vmem:[%s19193_s13 + $0x858] sm:$0xff] }
 0x925   :  { %7804 = vmatpush2.msra.mxu0 %v7413_v52  ;;  %7845 = vmatpush1.msra.mxu1 %v7443_v8  ;;  %v7515_v52 = vld [vmem:[%s19193_s13 + $0x860] sm:$0xff] }
 0x926   :  { %7805 = vmatprep.subr.mxu0 %v7412_v23  ;;  %7846 = vmatprep.subr.mxu1 %v7442_v36  ;;  %v7479_v8 = vld [vmem:[%s19193_s13 + $0x740] sm:$0xff]  ;;  %v7513_v23 = vld [vmem:[%s19193_s13 + $0x850] sm:$0xff]  ;;  %v7478_v36 = vld [vmem:[%s19193_s13 + $0x738] sm:$0xff] }
 0x927   :  { %7806 = vmatpush2.msra.mxu0 %v7411_v4  ;;  %7847 = vmatpush1.msra.mxu1 %v7441_v17  ;;  %v6879_v4 = vadd.f32 %v18436_v20, %v6354_v59  ;;  %v7512_v17 = vld [vmem:[%s19193_s13 + $0x848] sm:$0xff] }
 0x928   :  { %7807 = vmatprep.subr.mxu0 %v7410_v27  ;;  %7848 = vmatprep.subr.mxu1 %v7440_v29  ;;  %v7477_v27 = vld [vmem:[%s19193_s13 + $0x730] sm:$0xff]  ;;  %v7511_v29 = vld [vmem:[%s19193_s13 + $0x840] sm:$0xff]  ;;  %v7476_v20 = vld [vmem:[%s19193_s13 + $0x728] sm:$0xff] }
 0x929   :  { %7808 = vmatpush2.msra.mxu0 %v7409_v40  ;;  %7849 = vmatpush1.msra.mxu1 %v7439_v50  ;;  %v7510_v40 = vld [vmem:[%s19193_s13 + $0x838] sm:$0xff]  ;;  %v7475_v50 = vld [vmem:[%s19193_s13 + $0x720] sm:$0xff]  ;;  %v7556_v59 = vld [vmem:[%s19193_s13 + $0x9a8] sm:$0xff] }
 0x92a   :  { %7809 = vmatprep.subr.mxu0 %v7408_v32  ;;  %7850 = vmatprep.subr.mxu1 %v7502_v25  ;;  %v7509_v32 = vld [vmem:[%s19193_s13 + $0x830] sm:$0xff]  ;;  %v7474_v25 = vld [vmem:[%s19193_s13 + $0x718] sm:$0xff] }
 0x92b   :  { %7810 = vmatpush2.msra.mxu0 %v7407_v0  ;;  %7851 = vmatpush2.msra.mxu1 %v7501_v41  ;;  %v6950_v0 = vadd.f32 %v18452_v26, %v6879_v4  ;;  %v7508_v41 = vld [vmem:[%s19193_s13 + $0x828] sm:$0xff]  ;;  %v7507_v26 = vld [vmem:[%s19193_s13 + $0x820] sm:$0xff]  ;;  %v7573_v4 = vld [vmem:[%s19193_s13 + $0xa30] sm:$0xff] }
 0x92c   :  { %7812 = vmatmul.mubr.f32.vlgmr.msra.gmra.mxu0 %v7240_v16  ;;  %7852 = vmatprep.subr.mxu1 %v7500_v34  ;;  %v7473_v34 = vld [vmem:[%s19193_s13 + $0x710] sm:$0xff]  ;;  %v18810_v16 = vld [vmem:[%s19192_s12 + $0x8] sm:$0x7] }
 0x92d   :  { %7889 = vmatprep.subr.mxu0 %v7534_v24  ;;  %7853 = vmatpush2.msra.mxu1 %v7499_v39  ;;  %v7472_v24 = vld [vmem:[%s19193_s13 + $0x708] sm:$0xff]  ;;  %v6366_v39 = vrot.slane %v18810_v16, %v9790_v51 }
 0x92e   :  { %7890 = vmatpush1.msra.mxu0 %v7533_v43  ;;  %7854 = vmatprep.subr.mxu1 %v7498_v42  ;;  %v7506_v43 = vld [vmem:[%s19193_s13 + $0x818] sm:$0xff]  ;;  %v7471_v42 = vld [vmem:[%s19193_s13 + $0x700] sm:$0xff] }
 0x92f   :  { %7891 = vmatprep.subr.mxu0 %v7532_v5  ;;  %7855 = vmatpush2.msra.mxu1 %v7497_v10 }
 0x930   :  { %7892 = vmatpush1.msra.mxu0 %v7531_v37  ;;  %7856 = vmatprep.subr.mxu1 %v7496_v22  ;;  %v7505_v37 = vld [vmem:[%s19193_s13 + $0x810] sm:$0xff]  ;;  %v7242_v22 = vmax.f32 %v6950_v0, 0.0  ;;  %v7547_v0 = vld [vmem:[%s19193_s13 + $0x960] sm:$0xff] }
 0x931   :  { %7893 = vmatprep.subr.mxu0 %v7530_v14  ;;  %7857 = vmatpush2.msra.mxu1 %v7495_v1  ;;  %v7504_v14 = vld [vmem:[%s19193_s13 + $0x808] sm:$0xff] }
 0x932   :  { %7894 = vmatpush1.msra.mxu0 %v7529_v12  ;;  %7858 = vmatprep.subr.mxu1 %v7494_v15  ;;  %v7588_v12 = vld [vmem:[%s19193_s13 + $0xaa8] sm:$0xff]  ;;  %v7503_v15 = vld [vmem:[%s19193_s13 + $0x800] sm:$0xff] }
 0x933   :  { %7895 = vmatprep.subr.mxu0 %v7528_v44  ;;  %7859 = vmatpush2.msra.mxu1 %v7493_v19  ;;  %v7587_v19 = vld [vmem:[%s19193_s13 + $0xaa0] sm:$0xff] }
 0x934   :  { %7896 = vmatpush1.msra.mxu0 %v7527_v55  ;;  %7860 = vmatprep.subr.mxu1 %v7492_v2  ;;  %v7566_v55 = vld [vmem:[%s19193_s13 + $0x9f8] sm:$0xff] }
 0x935   :  { %7897 = vmatprep.subr.mxu0 %v7526_v33  ;;  %7861 = vmatpush2.msra.mxu1 %v7491_v3  ;;  %v7586_v33 = vld [vmem:[%s19193_s13 + $0xa98] sm:$0xff]  ;;  %v7565_v3 = vld [vmem:[%s19193_s13 + $0x9f0] sm:$0xff] }
 0x936   :  { %7898 = vmatpush1.msra.mxu0 %v7525_v56  ;;  %7862 = vmatprep.subr.mxu1 %v7490_v46  ;;  %v7585_v46 = vld [vmem:[%s19193_s13 + $0xa90] sm:$0xff] }
 0x937   :  { %7899 = vmatprep.subr.mxu0 %v7524_v57  ;;  %7863 = vmatpush2.msra.mxu1 %v7489_v45  ;;  %v7564_v57 = vld [vmem:[%s19193_s13 + $0x9e8] sm:$0xff] }
 0x938   :  { %7900 = vmatpush1.msra.mxu0 %v7523_v58  ;;  %7864 = vmatprep.subr.mxu1 %v7488_v60  ;;  %v7563_v58 = vld [vmem:[%s19193_s13 + $0x9e0] sm:$0xff]  ;;  %v7584_v60 = vld [vmem:[%s19193_s13 + $0xa88] sm:$0xff] }
 0x939   :  { %7901 = vmatprep.subr.mxu0 %v7522_v63  ;;  %7865 = vmatpush2.msra.mxu1 %v7487_v21  ;;  %v7562_v63 = vld [vmem:[%s19193_s13 + $0x9d8] sm:$0xff]  ;;  %v7583_v21 = vld [vmem:[%s19193_s13 + $0xa80] sm:$0xff] }
 0x93a   :  { %7902 = vmatpush1.msra.mxu0 %v7521_v62  ;;  %7866 = vmatprep.subr.mxu1 %v7486_v38  ;;  %v7561_v62 = vld [vmem:[%s19193_s13 + $0x9d0] sm:$0xff]  ;;  %v7582_v38 = vld [vmem:[%s19193_s13 + $0xa78] sm:$0xff] }
 0x93b   :  { %7903 = vmatprep.subr.mxu0 %v7520_v6  ;;  %7867 = vmatpush2.msra.mxu1 %v7485_v9  ;;  %v7560_v6 = vld [vmem:[%s19193_s13 + $0x9c8] sm:$0xff]  ;;  %v7581_v9 = vld [vmem:[%s19193_s13 + $0xa70] sm:$0xff] }
 0x93c   :  { %7904 = vmatpush1.msra.mxu0 %v7519_v28  ;;  %7868 = vmatprep.subr.mxu1 %v7484_v61  ;;  %v7559_v28 = vld [vmem:[%s19193_s13 + $0x9c0] sm:$0xff]  ;;  %v7580_v61 = vld [vmem:[%s19193_s13 + $0xa68] sm:$0xff] }
 0x93d   :  { %7905 = vmatprep.subr.mxu0 %v7518_v18  ;;  %7869 = vmatpush2.msra.mxu1 %v7483_v31  ;;  %v7558_v18 = vld [vmem:[%s19193_s13 + $0x9b8] sm:$0xff]  ;;  %v7579_v31 = vld [vmem:[%s19193_s13 + $0xa60] sm:$0xff] }
 0x93e   :  { %7906 = vmatpush1.msra.mxu0 %v7517_v54  ;;  %7870 = vmatprep.subr.mxu1 %v7482_v47  ;;  %v7557_v54 = vld [vmem:[%s19193_s13 + $0x9b0] sm:$0xff]  ;;  %v7578_v47 = vld [vmem:[%s19193_s13 + $0xa58] sm:$0xff] }
 0x93f   :  { %7907 = vmatprep.subr.mxu0 %v7516_v30  ;;  %7871 = vmatpush2.msra.mxu1 %v7481_v53  ;;  %v7577_v30 = vld [vmem:[%s19193_s13 + $0xa50] sm:$0xff]  ;;  %v7555_v53 = vld [vmem:[%s19193_s13 + $0x9a0] sm:$0xff] }
 0x940   :  { %7908 = vmatpush1.msra.mxu0 %v7515_v52  ;;  %7872 = vmatprep.subr.mxu1 %v7480_v11  ;;  %v7576_v52 = vld [vmem:[%s19193_s13 + $0xa48] sm:$0xff]  ;;  %v7554_v11 = vld [vmem:[%s19193_s13 + $0x998] sm:$0xff] }
 0x941   :  { %7909 = vmatprep.subr.mxu0 %v7514_v7  ;;  %7873 = vmatpush2.msra.mxu1 %v7479_v8  ;;  %v7575_v7 = vld [vmem:[%s19193_s13 + $0xa40] sm:$0xff]  ;;  %v7553_v8 = vld [vmem:[%s19193_s13 + $0x990] sm:$0xff] }
 0x942   :  { %7910 = vmatpush1.msra.mxu0 %v7513_v23  ;;  %7874 = vmatprep.subr.mxu1 %v7478_v36  ;;  %v7574_v23 = vld [vmem:[%s19193_s13 + $0xa38] sm:$0xff]  ;;  %v7552_v36 = vld [vmem:[%s19193_s13 + $0x988] sm:$0xff] }
 0x943   :  { %7911 = vmatprep.subr.mxu0 %v7512_v17  ;;  %7875 = vmatpush2.msra.mxu1 %v7477_v27  ;;  %v7551_v17 = vld [vmem:[%s19193_s13 + $0x980] sm:$0xff]  ;;  %v7572_v27 = vld [vmem:[%s19193_s13 + $0xa28] sm:$0xff] }
 0x944   :  { %7912 = vmatpush1.msra.mxu0 %v7511_v29  ;;  %7876 = vmatprep.subr.mxu1 %v7476_v20  ;;  %v7550_v29 = vld [vmem:[%s19193_s13 + $0x978] sm:$0xff]  ;;  %v7571_v20 = vld [vmem:[%s19193_s13 + $0xa20] sm:$0xff] }
 0x945   :  { %7913 = vmatprep.subr.mxu0 %v7510_v40  ;;  %7877 = vmatpush2.msra.mxu1 %v7475_v50  ;;  %v7549_v40 = vld [vmem:[%s19193_s13 + $0x970] sm:$0xff]  ;;  %v7570_v50 = vld [vmem:[%s19193_s13 + $0xa18] sm:$0xff] }
 0x946   :  { %7914 = vmatpush1.msra.mxu0 %v7509_v32  ;;  %7878 = vmatprep.subr.mxu1 %v7474_v25  ;;  %v18826_v5 = vpop.f32.mrf.mxu1  ;;  %v18828_v10 = vpop.f32.mrf.mxu0  ;;  %v7548_v32 = vld [vmem:[%s19193_s13 + $0x968] sm:$0xff]  ;;  %v7569_v25 = vld [vmem:[%s19193_s13 + $0xa10] sm:$0xff] }
 0x947   :  { %7915 = vmatprep.subr.mxu0 %v7508_v41  ;;  %7879 = vmatpush2.msra.mxu1 %v7473_v34  ;;  %v7568_v41 = vld [vmem:[%s19193_s13 + $0xa08] sm:$0xff]  ;;  %v7546_v34 = vld [vmem:[%s19193_s13 + $0x958] sm:$0xff] }
 0x948   :  { %7916 = vmatpush1.msra.mxu0 %v7507_v26  ;;  %7880 = vmatprep.subr.mxu1 %v7472_v24  ;;  %v7022_v1 = vpop.f32.mrf.mxu1  ;;  %v7093_v2 = vpop.f32.mrf.mxu0  ;;  %v7567_v26 = vld [vmem:[%s19193_s13 + $0xa00] sm:$0xff]  ;;  %v6362_v24 = vrot.slane %v18810_v16, %v9782_v49 }
 0x949   :  { %7917 = vmatprep.subr.mxu0 %v7506_v43  ;;  %7881 = vmatpush2.msra.mxu1 %v7471_v42  ;;  %v7023_v44 = vadd.f32 %v7022_v1, %v6366_v39  ;;  %v7545_v39 = vld [vmem:[%s19193_s13 + $0x950] sm:$0xff]  ;;  %v7544_v43 = vld [vmem:[%s19193_s13 + $0x948] sm:$0xff]  ;;  %v7543_v42 = vld [vmem:[%s19193_s13 + $0x940] sm:$0xff] }
 0x94a   :  { %7918 = vmatpush1.msra.mxu0 %v7505_v37  ;;  %7883 = vmatmul.mubr.f32.vlgmr.msra.gmra.mxu1 %v7242_v22  ;;  %v7542_v37 = vld [vmem:[%s19193_s13 + $0x938] sm:$0xff]  ;;  %v7021_v22 = vadd.f32 %v18826_v5, %v6362_v24  ;;  %v7540_v1 = vld [vmem:[%s19193_s13 + $0x928] sm:$0xff] }
 0x94b   :  { %7919 = vmatprep.subr.mxu0 %v7504_v14  ;;  %v7094_v56 = vadd.f32 %v7093_v2, %v7023_v44  ;;  %7970 = vmatprep.subr.mxu1 %v7588_v12  ;;  %v7541_v14 = vld [vmem:[%s19193_s13 + $0x930] sm:$0xff]  ;;  %v7539_v12 = vld [vmem:[%s19193_s13 + $0x920] sm:$0xff]  ;;  %v7538_v5 = vld [vmem:[%s19193_s13 + $0x918] sm:$0xff] }
 0x94c   :  { %7920 = vmatpush1.msra.mxu0 %v7503_v15  ;;  %7971 = vmatpush1.msra.mxu1 %v7587_v19  ;;  %v7092_v15 = vadd.f32 %v18828_v10, %v7021_v22  ;;  %v7537_v44 = vld [vmem:[%s19193_s13 + $0x910] sm:$0xff]  ;;  %v7536_v19 = vld [vmem:[%s19193_s13 + $0x908] sm:$0xff] }
 0x94d   :  { %7921 = vmatprep.subr.mxu0 %v7566_v55  ;;  %v7245_v45 = vmax.f32 %v7094_v56, 0.0  ;;  %7972 = vmatprep.subr.mxu1 %v7586_v33  ;;  %v7535_v55 = vld [vmem:[%s19193_s13 + $0x900] sm:$0xff]  ;;  %v6370_v56 = vrot.slane %v18810_v16, %v9779_v48  ;;  %v8047_v48 = vld [vmem:[%s19194_s15 + $0x68] sm:$0xff] }
 0x94e   :  { %7922 = vmatpush2.msra.mxu0 %v7565_v3  ;;  %7973 = vmatpush1.msra.mxu1 %v7585_v46  ;;  %v7244_v2 = vmax.f32 %v7092_v15, 0.0  ;;  %v8046_v16 = vld [vmem:[%s19194_s15 + $0x60] sm:$0xff] }
 0x94f   :  { %7923 = vmatprep.subr.mxu0 %v7564_v57  ;;  %7953 = vmatprep.mubr.f32.mxu0 %v7245_v45 }
 0x950   :  { %7924 = vmatpush2.msra.mxu0 %v7563_v58  ;;  %7974 = vmatprep.subr.mxu1 %v7584_v60 }
 0x951   :  { %7925 = vmatprep.subr.mxu0 %v7562_v63  ;;  %7975 = vmatpush1.msra.mxu1 %v7583_v21  ;;  %v8049_v63 = vld [vmem:[%s19194_s15 + $0x78] sm:$0xff]  ;;  %v8048_v21 = vld [vmem:[%s19194_s15 + $0x70] sm:$0xff] }
 0x952   :  { %7926 = vmatpush2.msra.mxu0 %v7561_v62  ;;  %7976 = vmatprep.subr.mxu1 %v7582_v38  ;;  %v8045_v62 = vld [vmem:[%s19194_s15 + $0x58] sm:$0xff]  ;;  %v8044_v38 = vld [vmem:[%s19194_s15 + $0x50] sm:$0xff] }
 0x953   :  { %7927 = vmatprep.subr.mxu0 %v7560_v6  ;;  %7977 = vmatpush1.msra.mxu1 %v7581_v9  ;;  %v8043_v6 = vld [vmem:[%s19194_s15 + $0x48] sm:$0xff]  ;;  %v8042_v9 = vld [vmem:[%s19194_s15 + $0x40] sm:$0xff] }
 0x954   :  { %7928 = vmatpush2.msra.mxu0 %v7559_v28  ;;  %7978 = vmatprep.subr.mxu1 %v7580_v61  ;;  %v8041_v28 = vld [vmem:[%s19194_s15 + $0x38] sm:$0xff]  ;;  %v8040_v61 = vld [vmem:[%s19194_s15 + $0x30] sm:$0xff] }
 0x955   :  { %7929 = vmatprep.subr.mxu0 %v7558_v18  ;;  %7979 = vmatpush1.msra.mxu1 %v7579_v31  ;;  %v8039_v18 = vld [vmem:[%s19194_s15 + $0x28] sm:$0xff]  ;;  %v8038_v31 = vld [vmem:[%s19194_s15 + $0x20] sm:$0xff] }
 0x956   :  { %7930 = vmatpush2.msra.mxu0 %v7557_v54  ;;  %7980 = vmatprep.subr.mxu1 %v7578_v47  ;;  %v8037_v54 = vld [vmem:[%s19194_s15 + $0x18] sm:$0xff]  ;;  %v8036_v47 = vld [vmem:[%s19194_s15 + $0x10] sm:$0xff] }
 0x957   :  { %7931 = vmatprep.subr.mxu0 %v7556_v59  ;;  %7981 = vmatpush1.msra.mxu1 %v7577_v30  ;;  %v8035_v59 = vld [vmem:[%s19194_s15 + $0x8] sm:$0xff]  ;;  %v8034_v30 = vld [vmem:[%s19194_s15] sm:$0xff] }
 0x958   :  { %7932 = vmatpush2.msra.mxu0 %v7555_v53  ;;  %7982 = vmatprep.subr.mxu1 %v7576_v52  ;;  %v8058_v53 = vld [vmem:[%s19194_s15 + $0xc0] sm:$0xff]  ;;  %v8057_v52 = vld [vmem:[%s19194_s15 + $0xb8] sm:$0xff] }
 0x959   :  { %7933 = vmatprep.subr.mxu0 %v7554_v11  ;;  %7983 = vmatpush1.msra.mxu1 %v7575_v7  ;;  %v8056_v11 = vld [vmem:[%s19194_s15 + $0xb0] sm:$0xff]  ;;  %v8055_v7 = vld [vmem:[%s19194_s15 + $0xa8] sm:$0xff] }
 0x95a   :  { %7934 = vmatpush2.msra.mxu0 %v7553_v8  ;;  %7984 = vmatprep.subr.mxu1 %v7574_v23  ;;  %v8054_v8 = vld [vmem:[%s19194_s15 + $0xa0] sm:$0xff]  ;;  %v8053_v23 = vld [vmem:[%s19194_s15 + $0x98] sm:$0xff] }
 0x95b   :  { %7935 = vmatprep.subr.mxu0 %v7552_v36  ;;  %7985 = vmatpush1.msra.mxu1 %v7573_v4  ;;  %v8052_v36 = vld [vmem:[%s19194_s15 + $0x90] sm:$0xff]  ;;  %v8051_v4 = vld [vmem:[%s19194_s15 + $0x88] sm:$0xff] }
 0x95c   :  { %7936 = vmatpush2.msra.mxu0 %v7551_v17  ;;  %7986 = vmatprep.subr.mxu1 %v7572_v27  ;;  %v8050_v17 = vld [vmem:[%s19194_s15 + $0x80] sm:$0xff] }
 0x95d   :  { %7937 = vmatprep.subr.mxu0 %v7550_v29  ;;  %7987 = vmatpush1.msra.mxu1 %v7571_v20  ;;  %v8151_v27 = vld [vmem:[%s19195_s17 + $0x60] sm:$0xf]  ;;  %v8150_v29 = vld [vmem:[%s19195_s17 + $0x58] sm:$0xff]  ;;  %v8149_v20 = vld [vmem:[%s19195_s17 + $0x50] sm:$0xff] }
 0x95e   :  { %7938 = vmatpush2.msra.mxu0 %v7549_v40  ;;  %7988 = vmatprep.subr.mxu1 %v7570_v50  ;;  %v8148_v40 = vld [vmem:[%s19195_s17 + $0x48] sm:$0xff]  ;;  %v8147_v50 = vld [vmem:[%s19195_s17 + $0x40] sm:$0xff] }
 0x95f   :  { %7939 = vmatprep.subr.mxu0 %v7548_v32  ;;  %7989 = vmatpush1.msra.mxu1 %v7569_v25  ;;  %v8146_v32 = vld [vmem:[%s19195_s17 + $0x38] sm:$0xff]  ;;  %v8145_v25 = vld [vmem:[%s19195_s17 + $0x30] sm:$0xff] }
 0x960   :  { %7940 = vmatpush2.msra.mxu0 %v7547_v0  ;;  %7990 = vmatprep.subr.mxu1 %v7568_v41  ;;  %v8144_v0 = vld [vmem:[%s19195_s17 + $0x28] sm:$0xff]  ;;  %v8143_v41 = vld [vmem:[%s19195_s17 + $0x20] sm:$0xff] }
 0x961   :  { %7941 = vmatprep.subr.mxu0 %v7546_v34  ;;  %7991 = vmatpush1.msra.mxu1 %v7567_v26  ;;  %v8142_v34 = vld [vmem:[%s19195_s17 + $0x18] sm:$0xff]  ;;  %v8141_v26 = vld [vmem:[%s19195_s17 + $0x10] sm:$0xff] }
 0x962   :  { %7942 = vmatpush2.msra.mxu0 %v7545_v39  ;;  %8024 = vmatprep.mubr.f32.mxu1 %v8560_v13  ;;  %v7589_v39 = vld [vmem:[%s19196_s14] sm:$0x3] }
 0x963   :  { %7943 = vmatprep.subr.mxu0 %v7544_v43  ;;  %8069 = vmatprep.subr.mxu1 %v8560_v13 }
 0x964   :  { %7944 = vmatpush2.msra.mxu0 %v7543_v42 }
 0x965   :  { %7945 = vmatprep.subr.mxu0 %v7542_v37  ;;  %v7594_v37 = vrot.slane %v7589_v39, %v9782_v49 }
 0x966   :  { %7946 = vmatpush2.msra.mxu0 %v7541_v14  ;;  %v7598_v14 = vrot.slane %v7589_v39, %v9790_v51 }
 0x967   :  { %7947 = vmatprep.subr.mxu0 %v7540_v1 }
 0x968   :  { %7948 = vmatpush2.msra.mxu0 %v7539_v12  ;;  %v8507_v10 = vpop.f32.mrf.mxu0 }
 0x969   :  { %7949 = vmatprep.subr.mxu0 %v7538_v5 }
 0x96a   :  { %7950 = vmatpush2.msra.mxu0 %v7537_v44  ;;  %v8508_v33 = vpop.f32.mrf.mxu0 }
 0x96b   :  { %7951 = vmatprep.subr.mxu0 %v7536_v19  ;;  %v8509_v3 = vadd.f32 %v8508_v33, %v8507_v10 }
 0x96c   :  { %7952 = vmatpush2.msra.mxu0 %v7535_v55 }
 0x96d   :  { %7954 = vmatmul.mubr.f32.vlgmr.msra.gmra.mxu0 %v7244_v2  ;;  %8524 = vmatprep.subr.mxu0 %v8560_v13  ;;  %v7163_v46 = vadd.f32 %v8509_v3, %v6370_v56 }
 0x96e   :  { %8525 = vmatpush3.msk.msra.mxu0 %vm8163_vm4, %v8151_v27  ;;  %8550 = vmatprep.mubr.msk.f32.mxu0 %vm8561_vm5, %v8560_v13 }
 0x96f   :  { %8526 = vmatprep.subr.mxu0 %v8560_v13 }
 0x970   :  { %8527 = vmatpush3.msra.mxu0 %v8150_v29 }
 0x971   :  { %8528 = vmatprep.subr.mxu0 %v8560_v13 }
 0x972   :  { %8529 = vmatpush3.msra.mxu0 %v8149_v20 }
 0x973   :  { %8530 = vmatprep.subr.mxu0 %v8560_v13 }
 0x974   :  { %8531 = vmatpush3.msra.mxu0 %v8148_v40 }
 0x975   :  { %8532 = vmatprep.subr.mxu0 %v8560_v13 }
 0x976   :  { %8533 = vmatpush3.msra.mxu0 %v8147_v50 }
 0x977   :  { %8534 = vmatprep.subr.mxu0 %v8560_v13 }
 0x978   :  { %8535 = vmatpush3.msra.mxu0 %v8146_v32 }
 0x979   :  { %8536 = vmatprep.subr.mxu0 %v8560_v13 }
 0x97a   :  { %8537 = vmatpush3.msra.mxu0 %v8145_v25 }
 0x97b   :  { %8538 = vmatprep.subr.mxu0 %v8560_v13 }
 0x97c   :  { %8539 = vmatpush3.msra.mxu0 %v8144_v0 }
 0x97d   :  { %8540 = vmatprep.subr.mxu0 %v8560_v13 }
 0x97e   :  { %8541 = vmatpush3.msra.mxu0 %v8143_v41 }
 0x97f   :  { %8542 = vmatprep.subr.mxu0 %v8560_v13 }
 0x980   :  { %8543 = vmatpush3.msra.mxu0 %v8142_v34 }
 0x981   :  { %8544 = vmatprep.subr.mxu0 %v8560_v13 }
 0x982   :  { %8545 = vmatpush3.msra.mxu0 %v8141_v26 }
 0x983   :  { %8546 = vmatprep.subr.mxu0 %v8560_v13 }
 0x987   :  { %v7232_v57 = vpop.f32.mrf.mxu1 }
 0x988   :  { %v7233_v45 = vadd.f32 %v7232_v57, %v7163_v46 }
 0x989   :  { %v7234_v58 = vpop.f32.mrf.mxu1 }
 0x98a   :  { %v7246_v60 = vmax.f32 %v7233_v45, 0.0 }
 0x98c   :  { %8259 = vmatmul.mubr.msk.f32.vlgmr.msra.gmra.mxu1 %vm7601_vm3, %v7246_v60 }
 0x98d   :  { %8070 = vmatpush1.msra.mxu1 %v8049_v63 }
 0x98e   :  { %8071 = vmatprep.subr.mxu1 %v8560_v13 }
 0x98f   :  { %8072 = vmatpush1.msra.mxu1 %v8048_v21 }
 0x990   :  { %8073 = vmatprep.subr.mxu1 %v8560_v13 }
 0x991   :  { %8074 = vmatpush1.msra.mxu1 %v8047_v48  ;;  %v8559_v48 = vld [vmem:[%s19209_s22] sm:$0xff] }
 0x992   :  { %8075 = vmatprep.subr.mxu1 %v8560_v13 }
 0x993   :  { %8076 = vmatpush1.msra.mxu1 %v8046_v16 }
 0x994   :  { %8077 = vmatprep.subr.mxu1 %v8560_v13 }
 0x995   :  { %8078 = vmatpush1.msra.mxu1 %v8045_v62  ;;  %v8140_v62 = vld [vmem:[%s19195_s17 + $0x8] sm:$0xff] }
 0x996   :  { %8079 = vmatprep.subr.mxu1 %v8560_v13  ;;  %8547 = vmatpush3.msra.mxu0 %v8140_v62 }
 0x997   :  { %8080 = vmatpush1.msra.mxu1 %v8044_v38  ;;  %v8139_v38 = vld [vmem:[%s19195_s17] sm:$0xff]  ;;  %8548 = vmatprep.subr.mxu0 %v8560_v13 }
 0x998   :  { %8081 = vmatprep.subr.mxu1 %v8560_v13  ;;  %8549 = vmatpush3.msra.mxu0 %v8139_v38 }
 0x999   :  { %8082 = vmatpush1.msra.mxu1 %v8043_v6 }
 0x99a   :  { %8083 = vmatprep.subr.mxu1 %v8560_v13 }
 0x99b   :  { %8084 = vmatpush1.msra.mxu1 %v8042_v9 }
 0x99c   :  { %8085 = vmatprep.subr.mxu1 %v8560_v13 }
 0x99d   :  { %8086 = vmatpush1.msra.mxu1 %v8041_v28 }
 0x99e   :  { %8087 = vmatprep.subr.mxu1 %v8560_v13 }
 0x99f   :  { %8088 = vmatpush1.msra.mxu1 %v8040_v61  ;;  %v8262_v61 = vld [vmem:[%s19198_s18] ss:$0 sm:$0xff] }
 0x9a0   :  { %8089 = vmatprep.subr.mxu1 %v8560_v13 }
 0x9a1   :  { %8090 = vmatpush1.msra.mxu1 %v8039_v18 }
 0x9a2   :  { %8091 = vmatprep.subr.mxu1 %v8560_v13 }
 0x9a3   :  { %8092 = vmatpush1.msra.mxu1 %v8038_v31 }
 0x9a4   :  { %8093 = vmatprep.subr.mxu1 %v8560_v13 }
 0x9a5   :  { %8094 = vmatpush1.msra.mxu1 %v8037_v54 }
 0x9a6   :  { %8095 = vmatprep.subr.mxu1 %v8560_v13 }
 0x9a7   :  { %8096 = vmatpush1.msra.mxu1 %v8036_v47 }
 0x9a8   :  { %8097 = vmatprep.subr.mxu1 %v8560_v13 }
 0x9a9   :  { %8098 = vmatpush1.msra.mxu1 %v8035_v59 }
 0x9aa   :  { %8099 = vmatprep.subr.mxu1 %v8560_v13  ;;  %v7671_v24 = vpop.f32.mrf.mxu0 }
 0x9ab   :  { %8100 = vmatpush1.msra.mxu1 %v8034_v30  ;;  %v7672_v12 = vadd.f32 %v7671_v24, %v7594_v37 }
 0x9ac   :  { %8115 = vmatprep.subr.mxu1 %v8560_v13  ;;  %v7673_v43 = vpop.f32.mrf.mxu0 }
 0x9ad   :  { %8116 = vmatpush2.msra.mxu1 %v8058_v53  ;;  %v7674_v44 = vadd.f32 %v7673_v43, %v7598_v14 }
 0x9ae   :  { %8117 = vmatprep.subr.mxu1 %v8560_v13 }
 0x9af   :  { %8118 = vmatpush2.msra.mxu1 %v8057_v52 }
 0x9b0   :  { %8119 = vmatprep.subr.mxu1 %v8560_v13 }
 0x9b1   :  { %8120 = vmatpush2.msra.mxu1 %v8056_v11 }
 0x9b2   :  { %8121 = vmatprep.subr.mxu1 %v8560_v13 }
 0x9b3   :  { %8122 = vmatpush2.msra.mxu1 %v8055_v7 }
 0x9b4   :  { %8123 = vmatprep.subr.mxu1 %v8560_v13 }
 0x9b5   :  { %8124 = vmatpush2.msra.mxu1 %v8054_v8 }
 0x9b6   :  { %8125 = vmatprep.subr.mxu1 %v8560_v13 }
 0x9b7   :  { %8126 = vmatpush2.msra.mxu1 %v8053_v23 }
 0x9b8   :  { %8127 = vmatprep.subr.mxu1 %v8560_v13 }
 0x9b9   :  { %8128 = vmatpush2.msra.mxu1 %v8052_v36 }
 0x9ba   :  { %8129 = vmatprep.subr.mxu1 %v8560_v13 }
 0x9bb   :  { %8130 = vmatpush2.msra.mxu1 %v8051_v4 }
 0x9bc   :  { %8131 = vmatprep.subr.mxu1 %v8560_v13 }
 0x9bd   :  { %8132 = vmatpush2.msra.mxu1 %v8050_v17 }
 0x9c9   :  { %v7742_v42 = vpop.f32.mrf.mxu1 }
 0x9ca   :  { %v7743_v19 = vadd.f32 %v7742_v42, %v7672_v12 }
 0x9cb   :  { %v7744_v1 = vpop.f32.mrf.mxu1 }
 0x9cc   :  { %v7745_v2 = vadd.f32 %v7744_v1, %v7674_v44 }
 0x9ec   :  { %v7813_v22 = vpop.f32.mrf.mxu0 }
 0x9ed   :  { %v7814_v10 = vadd.f32 %v7813_v22, %v7743_v19 }
 0x9ee   :  { %v7815_v5 = vpop.f32.mrf.mxu0 }
 0x9ef   :  { %v7816_v3 = vadd.f32 %v7815_v5, %v7745_v2 }
 0xa0a   :  { %v7884_v15 = vpop.f32.mrf.mxu1 }
 0xa0b   :  { %v7885_v56 = vadd.f32 %v7884_v15, %v7814_v10 }
 0xa0c   :  { %v7886_v33 = vpop.f32.mrf.mxu1 }
 0xa0d   :  { %v7887_v57 = vadd.f32 %v7886_v33, %v7816_v3 }
 0xa2d   :  { %v7955_v55 = vpop.f32.mrf.mxu0 }
 0xa2e   :  { %v7956_v45 = vadd.f32 %v7955_v55, %v7885_v56 }
 0xa2f   :  { %v7957_v46 = vpop.f32.mrf.mxu0 }
 0xa30   :  { %v7958_v49 = vadd.f32 %v7957_v46, %v7887_v57 }
 0xa4c   :  { %v8026_v58 = vpop.f32.mrf.mxu1 }
 0xa4d   :  { %v8027_v60 = vadd.f32 %v8026_v58, %v7956_v45 }
 0xa4e   :  { %v8028_v63 = vpop.f32.mrf.mxu1 }
 0xa4f   :  { %v8029_v51 = vadd.f32 %v8028_v63, %v7958_v49  ;;  %v8032_v16 = vsub.f32 %v8027_v60, %v8559_v48 }
 0xa51   :  { %v8033_v21 = vsub.f32 %v8029_v51, %v8963_v35  ;;  %v8260_v35 = vld [vmem:[%s19197_s16] ss:$0 sm:$0xff] }
 0xa53   :  { %8261 = vmatprep.mubr.msk.f32.mxu1 %vm339_vm0, %v8033_v21 }
 0xa54   :  { %8134 = vmatmul.mubr.f32.vlgmr.msra.gmra.mxu1 %v8032_v16 }
 0xb14   :  { %v8135_v6 = vpop.f32.mrf.mxu1 }
 0xb15   :  { %v8136_v9 = vadd.f32 %v8260_v35, %v8135_v6 }
 0xb16   :  { %v8137_v28 = vpop.f32.mrf.mxu1 }
 0xb17   :  { %8551 = vmatmul.mubr.msk.f32.vlgmr.msra.gmra.mxu0 %vm8159_vm6, %v8136_v9 }
 0xbd7   :  { %v8233_v18 = vpop.f32.mrf.mxu0 }
 0xbd8   :  { %v8234_v31 = vadd.f32 %v8262_v61, %v8233_v18 }
 0xbd9   :  { %v8552_v54 = vpop.f32.mrf.mxu0 }
 0xbda   :  { %8238 = vst.msk [vmem:[%s19199_s19] sm:$0xf] %vm8237_vm7, %v8234_v31 }

</bundles_post_ra>
